<compile_context>
chip_gen: v7x
topology: tpu7x:2x2x1
jax: 0.10.0
libtpu: 0.0.40
codegen_flags: <defaults>
</compile_context>

<pallas_src>
import jax
import jax.numpy as jnp
from jax import lax
from jax.experimental import pallas as pl
from jax.experimental.pallas import tpu as pltpu

N_NODES = 116      # fixed by the architecture (Conv1d(116,116,1), Linear(116,116), ...)
NODE_FEAT = 3
NP = 128           # padded node dim   (lane-dense / full MXU tiles)
FP = 8             # padded feature dim
POOL_E_OUT = 3     # ConvDownSample(116) output length
POOL_N_OUT = 1     # ConvDownSample(3)   output length
BN_EPS = 1e-5
F32 = jnp.float32
_HI = jax.lax.Precision.HIGHEST   # used only by the pure-JAX reference


# ---------------------------------------------------------------------------
# BlockSpec helpers
# ---------------------------------------------------------------------------
def _per_batch(shape):
    n = len(shape)
    return pl.BlockSpec((1,) + shape, lambda b, _n=n: (b,) + (0,) * _n)


def _bcast(shape):
    n = len(shape)
    return pl.BlockSpec(shape, lambda b, _n=n: (0,) * _n)


# ---------------------------------------------------------------------------
# Kernel 1: initial ConvDownSample of the raw X and Z (one launch, grid over B)
# ---------------------------------------------------------------------------
def _init_pool_kernel(x_ref, z_ref, pwe_ref, pwn_ref, cbe_ref, cbn_ref,
                      pe_ref, pn_ref):
    z = z_ref[0]                                      # (NP, NP), pad rows/cols = 0
    x = x_ref[0]                                      # (NP, FP)
    pe_ref[0] = jnp.maximum(
        jnp.dot(z, pwe_ref[...], preferred_element_type=jnp.float32) + cbe_ref[0], 0.0)
    pn_ref[0] = jnp.maximum(
        jnp.dot(x, pwn_ref[...], preferred_element_type=jnp.float32) + cbn_ref[0], 0.0)


def init_pool(xp, zp, mod_e, mod_n):
    b = xp.shape[0]
    return pl.pallas_call(
        _init_pool_kernel,
        out_shape=(jax.ShapeDtypeStruct((b, NP, POOL_E_OUT), F32),
                   jax.ShapeDtypeStruct((b, NP, POOL_N_OUT), F32)),
        grid=(b,),
        in_specs=[
            _per_batch((NP, FP)), _per_batch((NP, NP)),
            _bcast((NP, POOL_E_OUT)), _bcast((FP, POOL_N_OUT)),
            pl.BlockSpec(memory_space=pltpu.SMEM),      # conv bias (edge pool)
            pl.BlockSpec(memory_space=pltpu.SMEM),      # conv bias (node pool)
        ],
        out_specs=(_per_batch((NP, POOL_E_OUT)), _per_batch((NP, POOL_N_OUT))),
        compiler_params=pltpu.CompilerParams(dimension_semantics=("parallel",)),
    )(xp, zp, mod_e["pw"], mod_n["pw"], mod_e["conv_b"], mod_n["conv_b"])


# ---------------------------------------------------------------------------
# Kernel 2: fused Attention + A@Z / A@X + edge/node Linear (grid over batch)
# ---------------------------------------------------------------------------
def _attn_prop_kernel(x_ref, z_ref, w1t_ref, b1_ref, w2t_ref, b2_ref,
                      wet_ref, be_ref, wnt_ref, bn_ref, z1_ref, x1_ref):
    x = x_ref[0]                                      # (NP, FP)
    z = z_ref[0]                                      # (NP, NP)

    # Q = conv1(X^T)^T = X @ w1^T + b1 ; K = Q^T  =>  S = Q @ Q^T
    q = jnp.dot(x, w1t_ref[...], preferred_element_type=jnp.float32) + b1_ref[...]
    s = lax.dot_general(q, q, (((1,), (1,)), ((), ())),
                        preferred_element_type=jnp.float32)          # (NP, NP)
    # Mask padded key columns so the softmax matches the unpadded 116-wide one.
    col = lax.broadcasted_iota(jnp.int32, s.shape, 1)
    s = jnp.where(col < N_NODES, s, -1e30)
    m = jnp.max(s, axis=-1, keepdims=True)
    e = jnp.exp(s - m)
    attn = e * pl.reciprocal(jnp.sum(e, axis=-1, keepdims=True), approx=True)

    # V^T = Z @ w2^T + b2  (vt[l, o] == V[o, l]); A = (attn @ V)^T = vt @ attn^T
    vt = jnp.dot(z, w2t_ref[...], preferred_element_type=jnp.float32) + b2_ref[...]
    a = lax.dot_general(vt, attn, (((1,), (1,)), ((), ())),
                        preferred_element_type=jnp.float32)          # (NP, NP)

    az = jnp.dot(a, z, preferred_element_type=jnp.float32)           # A @ Z
    ax = jnp.dot(a, x, preferred_element_type=jnp.float32)           # A @ X

    z1_ref[0] = jnp.dot(az, wet_ref[...], preferred_element_type=jnp.float32) + be_ref[...]
    x1_ref[0] = jnp.dot(ax, wnt_ref[...], preferred_element_type=jnp.float32) + bn_ref[...]


def attention_propagate(xp, zp, lp):
    b = xp.shape[0]
    return pl.pallas_call(
        _attn_prop_kernel,
        out_shape=(jax.ShapeDtypeStruct((b, NP, NP), F32),
                   jax.ShapeDtypeStruct((b, NP, FP), F32)),
        grid=(b,),
        in_specs=[
            _per_batch((NP, FP)), _per_batch((NP, NP)),
            _bcast((FP, FP)), _bcast((1, FP)),            # conv1  (w^T, b)
            _bcast((NP, NP)), _bcast((1, NP)),            # conv2  (w^T, b)
            _bcast((NP, NP)), _bcast((1, NP)),            # edge_w (W^T, b)
            _bcast((FP, FP)), _bcast((1, FP)),            # node_w (W^T, b)
        ],
        out_specs=(_per_batch((NP, NP)), _per_batch((NP, FP))),
        compiler_params=pltpu.CompilerParams(dimension_semantics=("parallel",)),
    )(xp, zp, lp["w1t"], lp["b1"], lp["w2t"], lp["b2"],
      lp["wet"], lp["be"], lp["wnt"], lp["bn"])


# ---------------------------------------------------------------------------
# Kernel 3: fused layer epilogue
#   Z <- relu(scale_e*Z1+shift_e) + Z ; X <- relu(scale_n*X1+shift_n) + X
#   plus both ConvDownSample pool-matmuls (pre-BN1), one launch per layer.
# ---------------------------------------------------------------------------
def _layer_epilogue_kernel(z1_ref, x1_ref, zo_ref, xo_ref,
                           se_ref, te_ref, sn_ref, tn_ref,
                           pwe_ref, pwn_ref, cbe_ref, cbn_ref,
                           zn_ref, xn_ref, pe_ref, pn_ref):
    # Keep padded node ROWS exactly zero so they never pollute later layers.
    row_ok_z = lax.broadcasted_iota(jnp.int32, (NP, NP), 0) < N_NODES
    row_ok_x = lax.broadcasted_iota(jnp.int32, (NP, FP), 0) < N_NODES

    z_new = jnp.where(row_ok_z,
                      jnp.maximum(se_ref[...] * z1_ref[0] + te_ref[...], 0.0),
                      0.0) + zo_ref[0]
    x_new = jnp.where(row_ok_x,
                      jnp.maximum(sn_ref[...] * x1_ref[0] + tn_ref[...], 0.0),
                      0.0) + xo_ref[0]
    zn_ref[0] = z_new
    xn_ref[0] = x_new

    # ConvDownSample as MXU matmul against the constant pool matrix, +bias, ReLU.
    pe_ref[0] = jnp.maximum(
        jnp.dot(z_new, pwe_ref[...], preferred_element_type=jnp.float32) + cbe_ref[0], 0.0)
    pn_ref[0] = jnp.maximum(
        jnp.dot(x_new, pwn_ref[...], preferred_element_type=jnp.float32) + cbn_ref[0], 0.0)


def layer_epilogue(z1, x1, z_old, x_old, se, te, sn, tn, mod_e, mod_n):
    b = z1.shape[0]
    return pl.pallas_call(
        _layer_epilogue_kernel,
        out_shape=(jax.ShapeDtypeStruct((b, NP, NP), F32),
                   jax.ShapeDtypeStruct((b, NP, FP), F32),
                   jax.ShapeDtypeStruct((b, NP, POOL_E_OUT), F32),
                   jax.ShapeDtypeStruct((b, NP, POOL_N_OUT), F32)),
        grid=(b,),
        in_specs=[
            _per_batch((NP, NP)), _per_batch((NP, FP)),
            _per_batch((NP, NP)), _per_batch((NP, FP)),
            _bcast((NP, 1)), _bcast((NP, 1)),             # folded BN_e scale/shift
            _bcast((NP, 1)), _bcast((NP, 1)),             # folded BN_n scale/shift
            _bcast((NP, POOL_E_OUT)), _bcast((FP, POOL_N_OUT)),
            pl.BlockSpec(memory_space=pltpu.SMEM),        # conv bias (edge pool)
            pl.BlockSpec(memory_space=pltpu.SMEM),        # conv bias (node pool)
        ],
        out_specs=(_per_batch((NP, NP)), _per_batch((NP, FP)),
                   _per_batch((NP, POOL_E_OUT)), _per_batch((NP, POOL_N_OUT))),
        compiler_params=pltpu.CompilerParams(dimension_semantics=("parallel",)),
    )(z1, x1, z_old, x_old, se, te, sn, tn,
      mod_e["pw"], mod_n["pw"], mod_e["conv_b"], mod_n["conv_b"])


# ---------------------------------------------------------------------------
# Kernel 4: fused classifier MLP (Linear -> Dropout(identity) -> ReLU -> Linear)
# ---------------------------------------------------------------------------
def _mlp_kernel(x_ref, w1_ref, b1_ref, w2_ref, b2_ref, o_ref):
    # bf16 inputs, f32 accumulation (halves the big w1 DMA; v6e/v7x MXU native rate).
    h = jnp.dot(x_ref[...].astype(jnp.bfloat16), w1_ref[...],
                preferred_element_type=jnp.float32) + b1_ref[...]
    h = jnp.maximum(h, 0.0)
    o_ref[...] = jnp.dot(h, w2_ref[...], preferred_element_type=jnp.float32) + b2_ref[...]


def classifier(xz, cp):
    # TODO(synk): nn.Dropout(0.2) is stochastic in training mode; applied as identity (eval).
    b, d = xz.shape
    h1 = cp["w1t"].shape[1]
    n_out = cp["w2t"].shape[1]

    def full(shape):
        return pl.BlockSpec(shape, lambda _n=len(shape): (0,) * _n)

    return pl.pallas_call(
        _mlp_kernel,
        out_shape=jax.ShapeDtypeStruct((b, n_out), F32),
        in_specs=[full((b, d)),
                  full((d, h1)), full((1, h1)),
                  full((h1, n_out)), full((1, n_out))],
        out_specs=full((b, n_out)),
    )(xz, cp["w1t"], cp["b1"], cp["w2t"], cp["b2"])


# ---------------------------------------------------------------------------
# XLA glue: tiny cross-batch reductions (BN stats) + flatten / concat
# ---------------------------------------------------------------------------
def _bn_fold_channels(x_real, gamma, beta):
    """Folded scale/shift of training-mode BatchNorm1d(116), padded to (NP,1)."""
    mean = jnp.mean(x_real, axis=(0, 2))
    var = jnp.mean(jnp.square(x_real - mean[None, :, None]), axis=(0, 2))   # biased
    scale = gamma * lax.rsqrt(var + BN_EPS)
    shift = beta - mean * scale
    pad = NP - N_NODES
    return jnp.pad(scale, (0, pad))[:, None], jnp.pad(shift, (0, pad))[:, None]
    # TODO(synk): BatchNorm running_mean/running_var buffer updates (training
    # side effect) are not reproduced; forward output is unaffected.


def _finish_pool_e(pe, mod):
    """BatchNorm1d(1) on the (already ReLU'd) pooled edges, flattened node-major."""
    h = pe[:, :N_NODES, :]                              # (B, 116, 3)
    mean = jnp.mean(h)
    var = jnp.mean(jnp.square(h - mean))                # biased
    scale = mod["bn_gamma"][0] * lax.rsqrt(var + BN_EPS)
    shift = mod["bn_beta"][0] - mean * scale
    return (h * scale + shift).reshape(h.shape[0], -1)  # (B, 348)


def _finish_pool_n(pn, mod):
    h = pn[:, :N_NODES, 0]                              # (B, 116)
    mean = jnp.mean(h)
    var = jnp.mean(jnp.square(h - mean))
    scale = mod["bn_gamma"][0] * lax.rsqrt(var + BN_EPS)
    shift = mod["bn_beta"][0] - mean * scale
    return h * scale + shift


# ---------------------------------------------------------------------------
# Full ANEGCN_2 forward (consumes prepared / pre-padded parameters)
# ---------------------------------------------------------------------------
def anegcn2_forward(prep, x, z):
    b = x.shape[0]
    xp = jnp.pad(x.astype(F32), ((0, 0), (0, NP - N_NODES), (0, FP - NODE_FEAT)))
    zp = jnp.pad(z.astype(F32), ((0, 0), (0, NP - N_NODES), (0, NP - N_NODES)))

    pe0, pn0 = init_pool(xp, zp, prep["line_e"][0], prep["line_n"][0])
    zz = [_finish_pool_e(pe0, prep["line_e"][0])]
    xx = [_finish_pool_n(pn0, prep["line_n"][0])]

    for i, lp in enumerate(prep["layers"]):
        z1, x1 = attention_propagate(xp, zp, lp)
        se, te = _bn_fold_channels(z1[:, :N_NODES, :N_NODES],
                                   lp["bn_e_gamma"], lp["bn_e_beta"])
        sn, tn = _bn_fold_channels(x1[:, :N_NODES, :NODE_FEAT],
                                   lp["bn_n_gamma"], lp["bn_n_beta"])
        zp, xp, pe, pn = layer_epilogue(z1, x1, zp, xp, se, te, sn, tn,
                                        prep["line_e"][i + 1], prep["line_n"][i + 1])
        zz.append(_finish_pool_e(pe, prep["line_e"][i + 1]))
        xx.append(_finish_pool_n(pn, prep["line_n"][i + 1]))

    xz = jnp.concatenate(xx + zz, axis=1)
    return classifier(xz, prep["clase"])


# ---------------------------------------------------------------------------
# Parameter construction (PyTorch-style init) + one-time kernel-ready prep
# ---------------------------------------------------------------------------
def _conv1d_as_matrix(weight, l_in, stride, padding):
    """Dense (L_in, L_out) matrix equivalent to Conv1d(1,1,k,stride,padding)."""
    k = weight.shape[0]
    l_out = (l_in + 2 * padding - k) // stride + 1
    i = jnp.arange(l_in)[:, None]
    j = jnp.arange(l_out)[None, :]
    t = i - (j * stride - padding)
    valid = (t >= 0) & (t < k)
    return jnp.where(valid, weight[jnp.clip(t, 0, k - 1)], 0.0).astype(F32)


def init_params(key, layer):
    ks = iter(jax.random.split(key, 64))

    def lin(k, out_f, in_f):
        bound = float(in_f) ** -0.5
        kw, kb = jax.random.split(k)
        return (jax.random.uniform(kw, (out_f, in_f), F32, -bound, bound),
                jax.random.uniform(kb, (out_f,), F32, -bound, bound))

    def down(k, in_feat):
        if in_feat == NODE_FEAT:
            ksz, stride, padding = 3, 1, 0
        else:
            ksz, stride, padding = 78, 39, 39
        bound = float(ksz) ** -0.5
        kw, kb = jax.random.split(k)
        return {"conv_w": jax.random.uniform(kw, (ksz,), F32, -bound, bound),
                "conv_b": jax.random.uniform(kb, (1,), F32, -bound, bound),
                "stride": stride, "padding": padding,
                "bn_gamma": jnp.ones((1,), F32),
                "bn_beta": jnp.zeros((1,), F32)}

    layers = []
    for _ in range(layer):
        w1, b1 = lin(next(ks), NODE_FEAT, NODE_FEAT)
        w2, b2 = lin(next(ks), N_NODES, N_NODES)
        we, be = lin(next(ks), N_NODES, N_NODES)
        wn, bn = lin(next(ks), NODE_FEAT, NODE_FEAT)
        layers.append({"att_w1": w1, "att_b1": b1, "att_w2": w2, "att_b2": b2,
                       "edge_w": we, "edge_b": be, "node_w": wn, "node_b": bn,
                       "bn_e_gamma": jnp.ones((N_NODES,), F32),
                       "bn_e_beta": jnp.zeros((N_NODES,), F32),
                       "bn_n_gamma": jnp.ones((N_NODES,), F32),
                       "bn_n_beta": jnp.zeros((N_NODES,), F32)})
    line_n = [down(next(ks), NODE_FEAT) for _ in range(layer + 1)]
    line_e = [down(next(ks), N_NODES) for _ in range(layer + 1)]
    w1c, b1c = lin(next(ks), 1024, N_NODES * 4 * (layer + 1))
    w2c, b2c = lin(next(ks), 2, 1024)
    return {"layers": layers, "line_n": line_n, "line_e": line_e,
            "clase": {"w1": w1c, "b1": b1c, "w2": w2c, "b2": b2c}}


def prepare_params(params):
    """One-time padding / transposition / pool-matrix construction (review #7)."""
    def pad2(w, r, c):
        return jnp.zeros((r, c), F32).at[:w.shape[0], :w.shape[1]].set(w)

    def pad_row(v, c):
        return jnp.zeros((1, c), F32).at[0, :v.shape[0]].set(v)

    layers = []
    for lp in params["layers"]:
        layers.append({
            "w1t": pad2(lp["att_w1"].T, FP, FP), "b1": pad_row(lp["att_b1"], FP),
            "w2t": pad2(lp["att_w2"].T, NP, NP), "b2": pad_row(lp["att_b2"], NP),
            "wet": pad2(lp["edge_w"].T, NP, NP), "be": pad_row(lp["edge_b"], NP),
            "wnt": pad2(lp["node_w"].T, FP, FP), "bn": pad_row(lp["node_b"], FP),
            "bn_e_gamma": lp["bn_e_gamma"], "bn_e_beta": lp["bn_e_beta"],
            "bn_n_gamma": lp["bn_n_gamma"], "bn_n_beta": lp["bn_n_beta"],
        })

    def prep_down(p, in_feat):
        pool = _conv1d_as_matrix(p["conv_w"], in_feat, p["stride"], p["padding"])
        rows = FP if in_feat == NODE_FEAT else NP
        pw = jnp.zeros((rows, pool.shape[1]), F32).at[:in_feat, :].set(pool)
        return {"pw": pw, "conv_b": p["conv_b"].astype(F32),
                "bn_gamma": p["bn_gamma"], "bn_beta": p["bn_beta"]}

    cp = params["clase"]
    return {
        "layers": layers,
        "line_n": [prep_down(p, NODE_FEAT) for p in params["line_n"]],
        "line_e": [prep_down(p, N_NODES) for p in params["line_e"]],
        "clase": {"w1t": cp["w1"].T.astype(jnp.bfloat16),     # bf16 weights, f32 accum
                  "b1": cp["b1"][None, :].astype(F32),
                  "w2t": cp["w2"].T.astype(F32),
                  "b2": cp["b2"][None, :].astype(F32)},
    }


# ---------------------------------------------------------------------------
# Pure-JAX reference (mirrors the PyTorch code; HIGHEST-precision matmuls)
# ---------------------------------------------------------------------------
def _ref_conv_down(x3d, p):
    b, nn, l = x3d.shape
    w, bias = p["conv_w"], p["conv_b"]
    stride, padding = p["stride"], p["padding"]
    k = w.shape[0]
    x = x3d.reshape(b * nn, l)
    xp = jnp.pad(x, ((0, 0), (padding, padding)))
    l_out = (l + 2 * padding - k) // stride + 1
    h = jnp.stack([jnp.einsum("nk,k->n", xp[:, j * stride:j * stride + k], w,
                              precision=_HI) for j in range(l_out)], axis=1) + bias[0]
    h = jnp.maximum(h, 0.0)
    mean = jnp.mean(h)
    var = jnp.mean(jnp.square(h - mean))
    y = (h - mean) / jnp.sqrt(var + BN_EPS) * p["bn_gamma"][0] + p["bn_beta"][0]
    return y.reshape(b, -1)


def _ref_attention(x, z, p):
    k = jnp.einsum("oc,bnc->bon", p["att_w1"], x, precision=_HI) + p["att_b1"][None, :, None]
    q = jnp.transpose(k, (0, 2, 1))
    v = jnp.einsum("oc,bnc->bon", p["att_w2"], z, precision=_HI) + p["att_b2"][None, :, None]
    s = jnp.einsum("bnf,bfm->bnm", q, k, precision=_HI)
    attn = jax.nn.softmax(s, axis=-1)
    out = jnp.einsum("bnk,bkm->bnm", attn, v, precision=_HI)
    return jnp.transpose(out, (0, 2, 1))


def _ref_bn1d(x, gamma, beta):
    mean = jnp.mean(x, axis=(0, 2), keepdims=True)
    var = jnp.mean(jnp.square(x - mean), axis=(0, 2), keepdims=True)
    return (x - mean) / jnp.sqrt(var + BN_EPS) * gamma[None, :, None] + beta[None, :, None]


def _ref_forward(params, x, z):
    xx = _ref_conv_down(x, params["line_n"][0])
    zz = _ref_conv_down(z, params["line_e"][0])
    for i in range(len(params["layers"])):
        lp = params["layers"][i]
        a = _ref_attention(x, z, lp)
        az = jnp.einsum("bnm,bmk->bnk", a, z, precision=_HI)
        z1 = jnp.einsum("bnk,ok->bno", az, lp["edge_w"], precision=_HI) + lp["edge_b"]
        z = jnp.maximum(_ref_bn1d(z1, lp["bn_e_gamma"], lp["bn_e_beta"]), 0.0) + z
        zz = jnp.concatenate([zz, _ref_conv_down(z, params["line_e"][i + 1])], axis=1)
        ax = jnp.einsum("bnm,bmk->bnk", a, x, precision=_HI)
        x1 = jnp.einsum("bnk,ok->bno", ax, lp["node_w"], precision=_HI) + lp["node_b"]
        x = jnp.maximum(_ref_bn1d(x1, lp["bn_n_gamma"], lp["bn_n_beta"]), 0.0) + x
        xx = jnp.concatenate([xx, _ref_conv_down(x, params["line_n"][i + 1])], axis=1)
    xz = jnp.concatenate([xx, zz], axis=1)
    cp = params["clase"]
    h = jnp.maximum(jnp.einsum("bd,od->bo", xz, cp["w1"], precision=_HI) + cp["b1"], 0.0)
    return jnp.einsum("bh,oh->bo", h, cp["w2"], precision=_HI) + cp["b2"]


if __name__ == "__main__":
    LAYER = 2
    BATCH = 2
    key = jax.random.PRNGKey(0)
    kx, kz, kp = jax.random.split(key, 3)
    x = jax.random.normal(kx, (BATCH, N_NODES, NODE_FEAT), dtype=F32)
    z = jax.random.normal(kz, (BATCH, N_NODES, N_NODES), dtype=F32)
    params = init_params(kp, LAYER)
    prep = prepare_params(params)          # one-time weight padding / transposition

    fwd = jax.jit(anegcn2_forward)
    y = jax.block_until_ready(fwd(prep, x, z))
    assert y.shape == (BATCH, 2)

    y_ref = jax.block_until_ready(_ref_forward(params, x, z))
    assert jnp.allclose(y, y_ref, rtol=2e-2, atol=2e-2), (y, y_ref)

    print("KERNEL_OK")
</pallas_src>

<mosaic_0001>
module attributes {stable_mosaic.version = 11 : i64} {
  func.func @_init_pool_kernel(%arg0: i32, %arg1: memref<1x128x8xf32, #tpu.memory_space<vmem>>, %arg2: memref<1x128x128xf32, #tpu.memory_space<vmem>>, %arg3: memref<128x3xf32, #tpu.memory_space<vmem>>, %arg4: memref<8x1xf32, #tpu.memory_space<vmem>>, %arg5: memref<1xf32, #tpu.memory_space<smem>>, %arg6: memref<1xf32, #tpu.memory_space<smem>>, %arg7: memref<1x128x3xf32, #tpu.memory_space<vmem>>, %arg8: memref<1x128x1xf32, #tpu.memory_space<vmem>>) attributes {dimension_semantics = [#tpu.dimension_semantics<parallel>], iteration_bounds = array<i64: 2>, scalar_prefetch = 0 : i64, scratch_operands = 0 : i64, tpu.core_type = #tpu.core_type<tc>, window_params = [{transform_indices = @transform_0, window_bounds = array<i64: 1, 128, 8>}, {transform_indices = @transform_1, window_bounds = array<i64: 1, 128, 128>}, {pipeline_mode = #tpu.pipeline_mode<synchronous>, transform_indices = @transform_2, window_bounds = array<i64: 128, 3>}, {pipeline_mode = #tpu.pipeline_mode<synchronous>, transform_indices = @transform_3, window_bounds = array<i64: 8, 1>}, {transform_indices = @transform_4, window_bounds = array<i64: 1>}, {transform_indices = @transform_5, window_bounds = array<i64: 1>}, {transform_indices = @transform_6, window_bounds = array<i64: 1, 128, 3>}, {transform_indices = @transform_7, window_bounds = array<i64: 1, 128, 1>}]} {
    %c0 = arith.constant 0 : index
    %c0_0 = arith.constant 0 : index
    %c0_1 = arith.constant 0 : index
    %0 = vector.load %arg2[%c0, %c0_0, %c0_1] : memref<1x128x128xf32, #tpu.memory_space<vmem>>, vector<1x128x128xf32>
    %1 = vector.shape_cast %0 : vector<1x128x128xf32> to vector<128x128xf32>
    %c0_2 = arith.constant 0 : index
    %c0_3 = arith.constant 0 : index
    %c0_4 = arith.constant 0 : index
    %2 = vector.load %arg1[%c0_2, %c0_3, %c0_4] : memref<1x128x8xf32, #tpu.memory_space<vmem>>, vector<1x128x8xf32>
    %3 = vector.shape_cast %2 : vector<1x128x8xf32> to vector<128x8xf32>
    %c0_5 = arith.constant 0 : index
    %c0_6 = arith.constant 0 : index
    %4 = vector.load %arg3[%c0_5, %c0_6] : memref<128x3xf32, #tpu.memory_space<vmem>>, vector<128x3xf32>
    %cst = arith.constant dense<0.000000e+00> : vector<128x3xf32>
    %5 = tpu.matmul %1, %4, %cst {dimension_numbers = #tpu.dot_dimension_numbers<[1], [0], [0], [1], [0, 0, 1, 1], [], []>} : vector<128x128xf32>, vector<128x3xf32>, vector<128x3xf32> -> vector<128x3xf32>
    %c0_7 = arith.constant 0 : index
    %6 = memref.load %arg5[%c0_7] : memref<1xf32, #tpu.memory_space<smem>>
    %7 = vector.broadcast %6 : f32 to vector<128x3xf32>
    %8 = arith.addf %5, %7 : vector<128x3xf32>
    %cst_8 = arith.constant 0.000000e+00 : f32
    %9 = vector.broadcast %cst_8 : f32 to vector<128x3xf32>
    %10 = arith.maximumf %8, %9 : vector<128x3xf32>
    %c0_9 = arith.constant 0 : index
    %c0_10 = arith.constant 0 : index
    %c0_11 = arith.constant 0 : index
    %11 = vector.load %arg7[%c0_9, %c0_10, %c0_11] : memref<1x128x3xf32, #tpu.memory_space<vmem>>, vector<1x128x3xf32>
    %12 = vector.shape_cast %11 : vector<1x128x3xf32> to vector<128x3xf32>
    %13 = vector.shape_cast %10 : vector<128x3xf32> to vector<1x128x3xf32>
    tpu.vector_store %arg7[%c0_9, %c0_10, %c0_11], %13 {strides = array<i32>} : memref<1x128x3xf32, #tpu.memory_space<vmem>>, vector<1x128x3xf32>,
    %c0_12 = arith.constant 0 : index
    %c0_13 = arith.constant 0 : index
    %14 = vector.load %arg4[%c0_12, %c0_13] : memref<8x1xf32, #tpu.memory_space<vmem>>, vector<8x1xf32>
    %cst_14 = arith.constant dense<0.000000e+00> : vector<128x1xf32>
    %15 = tpu.matmul %3, %14, %cst_14 {dimension_numbers = #tpu.dot_dimension_numbers<[1], [0], [0], [1], [0, 0, 1, 1], [], []>} : vector<128x8xf32>, vector<8x1xf32>, vector<128x1xf32> -> vector<128x1xf32>
    %c0_15 = arith.constant 0 : index
    %16 = memref.load %arg6[%c0_15] : memref<1xf32, #tpu.memory_space<smem>>
    %17 = vector.broadcast %16 : f32 to vector<128x1xf32>
    %18 = arith.addf %15, %17 : vector<128x1xf32>
    %cst_16 = arith.constant 0.000000e+00 : f32
    %19 = vector.broadcast %cst_16 : f32 to vector<128x1xf32>
    %20 = arith.maximumf %18, %19 : vector<128x1xf32>
    %c0_17 = arith.constant 0 : index
    %c0_18 = arith.constant 0 : index
    %c0_19 = arith.constant 0 : index
    %21 = vector.load %arg8[%c0_17, %c0_18, %c0_19] : memref<1x128x1xf32, #tpu.memory_space<vmem>>, vector<1x128x1xf32>
    %22 = vector.shape_cast %21 : vector<1x128x1xf32> to vector<128x1xf32>
    %23 = vector.shape_cast %20 : vector<128x1xf32> to vector<1x128x1xf32>
    tpu.vector_store %arg8[%c0_17, %c0_18, %c0_19], %23 {strides = array<i32>} : memref<1x128x1xf32, #tpu.memory_space<vmem>>, vector<1x128x1xf32>,
    return
  }
  func.func @transform_0(%arg0: i32) -> (i32, i32, i32) {
    %c0_i32 = arith.constant 0 : i32
    %c0_i32_0 = arith.constant 0 : i32
    %c0_i32_1 = arith.constant 0 : i32
    return %arg0, %c0_i32, %c0_i32_0 : i32, i32, i32
  }
  func.func @transform_1(%arg0: i32) -> (i32, i32, i32) {
    %c0_i32 = arith.constant 0 : i32
    %c0_i32_0 = arith.constant 0 : i32
    %c0_i32_1 = arith.constant 0 : i32
    return %arg0, %c0_i32, %c0_i32_0 : i32, i32, i32
  }
  func.func @transform_2(%arg0: i32) -> (i32, i32) {
    %c0_i32 = arith.constant 0 : i32
    %c0_i32_0 = arith.constant 0 : i32
    %c0_i32_1 = arith.constant 0 : i32
    return %c0_i32, %c0_i32_0 : i32, i32
  }
  func.func @transform_3(%arg0: i32) -> (i32, i32) {
    %c0_i32 = arith.constant 0 : i32
    %c0_i32_0 = arith.constant 0 : i32
    %c0_i32_1 = arith.constant 0 : i32
    return %c0_i32, %c0_i32_0 : i32, i32
  }
  func.func @transform_4(%arg0: i32) -> i32 {
    %c0_i32 = arith.constant 0 : i32
    %c0_i32_0 = arith.constant 0 : i32
    return %c0_i32 : i32
  }
  func.func @transform_5(%arg0: i32) -> i32 {
    %c0_i32 = arith.constant 0 : i32
    %c0_i32_0 = arith.constant 0 : i32
    return %c0_i32 : i32
  }
  func.func @transform_6(%arg0: i32) -> (i32, i32, i32) {
    %c0_i32 = arith.constant 0 : i32
    %c0_i32_0 = arith.constant 0 : i32
    %c0_i32_1 = arith.constant 0 : i32
    return %arg0, %c0_i32, %c0_i32_0 : i32, i32, i32
  }
  func.func @transform_7(%arg0: i32) -> (i32, i32, i32) {
    %c0_i32 = arith.constant 0 : i32
    %c0_i32_0 = arith.constant 0 : i32
    %c0_i32_1 = arith.constant 0 : i32
    return %arg0, %c0_i32, %c0_i32_0 : i32, i32, i32
  }
}

module attributes {stable_mosaic.version = 11 : i64} {
  func.func @_attn_prop_kernel(%arg0: i32, %arg1: memref<1x128x8xf32, #tpu.memory_space<vmem>>, %arg2: memref<1x128x128xf32, #tpu.memory_space<vmem>>, %arg3: memref<8x8xf32, #tpu.memory_space<vmem>>, %arg4: memref<1x8xf32, #tpu.memory_space<vmem>>, %arg5: memref<128x128xf32, #tpu.memory_space<vmem>>, %arg6: memref<1x128xf32, #tpu.memory_space<vmem>>, %arg7: memref<128x128xf32, #tpu.memory_space<vmem>>, %arg8: memref<1x128xf32, #tpu.memory_space<vmem>>, %arg9: memref<8x8xf32, #tpu.memory_space<vmem>>, %arg10: memref<1x8xf32, #tpu.memory_space<vmem>>, %arg11: memref<1x128x128xf32, #tpu.memory_space<vmem>>, %arg12: memref<1x128x8xf32, #tpu.memory_space<vmem>>) attributes {dimension_semantics = [#tpu.dimension_semantics<parallel>], iteration_bounds = array<i64: 2>, scalar_prefetch = 0 : i64, scratch_operands = 0 : i64, tpu.core_type = #tpu.core_type<tc>, window_params = [{transform_indices = @transform_0, window_bounds = array<i64: 1, 128, 8>}, {transform_indices = @transform_1, window_bounds = array<i64: 1, 128, 128>}, {pipeline_mode = #tpu.pipeline_mode<synchronous>, transform_indices = @transform_2, window_bounds = array<i64: 8, 8>}, {pipeline_mode = #tpu.pipeline_mode<synchronous>, transform_indices = @transform_3, window_bounds = array<i64: 1, 8>}, {pipeline_mode = #tpu.pipeline_mode<synchronous>, transform_indices = @transform_4, window_bounds = array<i64: 128, 128>}, {pipeline_mode = #tpu.pipeline_mode<synchronous>, transform_indices = @transform_5, window_bounds = array<i64: 1, 128>}, {pipeline_mode = #tpu.pipeline_mode<synchronous>, transform_indices = @transform_6, window_bounds = array<i64: 128, 128>}, {pipeline_mode = #tpu.pipeline_mode<synchronous>, transform_indices = @transform_7, window_bounds = array<i64: 1, 128>}, {pipeline_mode = #tpu.pipeline_mode<synchronous>, transform_indices = @transform_8, window_bounds = array<i64: 8, 8>}, {pipeline_mode = #tpu.pipeline_mode<synchronous>, transform_indices = @transform_9, window_bounds = array<i64: 1, 8>}, {transform_indices = @transform_10, window_bounds = array<i64: 1, 128, 128>}, {transform_indices = @transform_11, window_bounds = array<i64: 1, 128, 8>}]} {
    %c0 = arith.constant 0 : index
    %c0_0 = arith.constant 0 : index
    %c0_1 = arith.constant 0 : index
    %0 = vector.load %arg1[%c0, %c0_0, %c0_1] : memref<1x128x8xf32, #tpu.memory_space<vmem>>, vector<1x128x8xf32>
    %1 = vector.shape_cast %0 : vector<1x128x8xf32> to vector<128x8xf32>
    %c0_2 = arith.constant 0 : index
    %c0_3 = arith.constant 0 : index
    %c0_4 = arith.constant 0 : index
    %2 = vector.load %arg2[%c0_2, %c0_3, %c0_4] : memref<1x128x128xf32, #tpu.memory_space<vmem>>, vector<1x128x128xf32>
    %3 = vector.shape_cast %2 : vector<1x128x128xf32> to vector<128x128xf32>
    %c0_5 = arith.constant 0 : index
    %c0_6 = arith.constant 0 : index
    %4 = vector.load %arg3[%c0_5, %c0_6] : memref<8x8xf32, #tpu.memory_space<vmem>>, vector<8x8xf32>
    %cst = arith.constant dense<0.000000e+00> : vector<128x8xf32>
    %5 = tpu.matmul %1, %4, %cst {dimension_numbers = #tpu.dot_dimension_numbers<[1], [0], [0], [1], [0, 0, 1, 1], [], []>} : vector<128x8xf32>, vector<8x8xf32>, vector<128x8xf32> -> vector<128x8xf32>
    %c0_7 = arith.constant 0 : index
    %c0_8 = arith.constant 0 : index
    %6 = vector.load %arg4[%c0_7, %c0_8] : memref<1x8xf32, #tpu.memory_space<vmem>>, vector<1x8xf32>
    %7 = vector.broadcast %6 : vector<1x8xf32> to vector<128x8xf32>
    %8 = arith.addf %5, %7 : vector<128x8xf32>
    %cst_9 = arith.constant dense<0.000000e+00> : vector<128x128xf32>
    %9 = tpu.matmul %8, %8, %cst_9 {dimension_numbers = #tpu.dot_dimension_numbers<[1], [1], [0], [0], [0, 0, 1, 0], [], []>} : vector<128x8xf32>, vector<128x8xf32>, vector<128x128xf32> -> vector<128x128xf32>
    %10 = tpu.iota {dimensions = array<i32: 1>} : vector<128x128xi32>
    %c116_i32 = arith.constant 116 : i32
    %11 = vector.broadcast %c116_i32 : i32 to vector<128x128xi32>
    %12 = arith.cmpi slt, %10, %11 : vector<128x128xi32>
    %cst_10 = arith.constant -1.000000e+30 : f32
    %13 = vector.broadcast %cst_10 : f32 to vector<128x128xf32>
    %14 = arith.select %12, %9, %13 : vector<128x128xi1>, vector<128x128xf32>
    %cst_11 = arith.constant dense<0xFF800000> : vector<128xf32>
    %15 = vector.multi_reduction <maximumf>, %14, %cst_11 [1] : vector<128x128xf32> to vector<128xf32>
    %16 = vector.shape_cast %15 : vector<128xf32> to vector<128x1xf32>
    %17 = vector.broadcast %16 : vector<128x1xf32> to vector<128x128xf32>
    %18 = arith.subf %14, %17 : vector<128x128xf32>
    %19 = math.exp %18 : vector<128x128xf32>
    %cst_12 = arith.constant dense<0.000000e+00> : vector<128xf32>
    %20 = vector.multi_reduction <add>, %19, %cst_12 [1] : vector<128x128xf32> to vector<128xf32>
    %21 = vector.shape_cast %20 : vector<128xf32> to vector<128x1xf32>
    %22 = tpu.reciprocal %21 {approx = true} : vector<128x1xf32> -> vector<128x1xf32>
    %23 = vector.broadcast %22 : vector<128x1xf32> to vector<128x128xf32>
    %24 = arith.mulf %19, %23 : vector<128x128xf32>
    %c0_13 = arith.constant 0 : index
    %c0_14 = arith.constant 0 : index
    %25 = vector.load %arg5[%c0_13, %c0_14] : memref<128x128xf32, #tpu.memory_space<vmem>>, vector<128x128xf32>
    %cst_15 = arith.constant dense<0.000000e+00> : vector<128x128xf32>
    %26 = tpu.matmul %3, %25, %cst_15 {dimension_numbers = #tpu.dot_dimension_numbers<[1], [0], [0], [1], [0, 0, 1, 1], [], []>} : vector<128x128xf32>, vector<128x128xf32>, vector<128x128xf32> -> vector<128x128xf32>
    %c0_16 = arith.constant 0 : index
    %c0_17 = arith.constant 0 : index
    %27 = vector.load %arg6[%c0_16, %c0_17] : memref<1x128xf32, #tpu.memory_space<vmem>>, vector<1x128xf32>
    %28 = vector.broadcast %27 : vector<1x128xf32> to vector<128x128xf32>
    %29 = arith.addf %26, %28 : vector<128x128xf32>
    %cst_18 = arith.constant dense<0.000000e+00> : vector<128x128xf32>
    %30 = tpu.matmul %29, %24, %cst_18 {dimension_numbers = #tpu.dot_dimension_numbers<[1], [1], [0], [0], [0, 0, 1, 0], [], []>} : vector<128x128xf32>, vector<128x128xf32>, vector<128x128xf32> -> vector<128x128xf32>
    %cst_19 = arith.constant dense<0.000000e+00> : vector<128x128xf32>
    %31 = tpu.matmul %30, %3, %cst_19 {dimension_numbers = #tpu.dot_dimension_numbers<[1], [0], [0], [1], [0, 0, 1, 1], [], []>} : vector<128x128xf32>, vector<128x128xf32>, vector<128x128xf32> -> vector<128x128xf32>
    %cst_20 = arith.constant dense<0.000000e+00> : vector<128x8xf32>
    %32 = tpu.matmul %30, %1, %cst_20 {dimension_numbers = #tpu.dot_dimension_numbers<[1], [0], [0], [1], [0, 0, 1, 1], [], []>} : vector<128x128xf32>, vector<128x8xf32>, vector<128x8xf32> -> vector<128x8xf32>
    %c0_21 = arith.constant 0 : index
    %c0_22 = arith.constant 0 : index
    %33 = vector.load %arg7[%c0_21, %c0_22] : memref<128x128xf32, #tpu.memory_space<vmem>>, vector<128x128xf32>
    %cst_23 = arith.constant dense<0.000000e+00> : vector<128x128xf32>
    %34 = tpu.matmul %31, %33, %cst_23 {dimension_numbers = #tpu.dot_dimension_numbers<[1], [0], [0], [1], [0, 0, 1, 1], [], []>} : vector<128x128xf32>, vector<128x128xf32>, vector<128x128xf32> -> vector<128x128xf32>
    %c0_24 = arith.constant 0 : index
    %c0_25 = arith.constant 0 : index
    %35 = vector.load %arg8[%c0_24, %c0_25] : memref<1x128xf32, #tpu.memory_space<vmem>>, vector<1x128xf32>
    %36 = vector.broadcast %35 : vector<1x128xf32> to vector<128x128xf32>
    %37 = arith.addf %34, %36 : vector<128x128xf32>
    %c0_26 = arith.constant 0 : index
    %c0_27 = arith.constant 0 : index
    %c0_28 = arith.constant 0 : index
    %38 = vector.load %arg11[%c0_26, %c0_27, %c0_28] : memref<1x128x128xf32, #tpu.memory_space<vmem>>, vector<1x128x128xf32>
    %39 = vector.shape_cast %38 : vector<1x128x128xf32> to vector<128x128xf32>
    %40 = vector.shape_cast %37 : vector<128x128xf32> to vector<1x128x128xf32>
    tpu.vector_store %arg11[%c0_26, %c0_27, %c0_28], %40 {strides = array<i32>} : memref<1x128x128xf32, #tpu.memory_space<vmem>>, vector<1x128x128xf32>,
    %c0_29 = arith.constant 0 : index
    %c0_30 = arith.constant 0 : index
    %41 = vector.load %arg9[%c0_29, %c0_30] : memref<8x8xf32, #tpu.memory_space<vmem>>, vector<8x8xf32>
    %cst_31 = arith.constant dense<0.000000e+00> : vector<128x8xf32>
    %42 = tpu.matmul %32, %41, %cst_31 {dimension_numbers = #tpu.dot_dimension_numbers<[1], [0], [0], [1], [0, 0, 1, 1], [], []>} : vector<128x8xf32>, vector<8x8xf32>, vector<128x8xf32> -> vector<128x8xf32>
    %c0_32 = arith.constant 0 : index
    %c0_33 = arith.constant 0 : index
    %43 = vector.load %arg10[%c0_32, %c0_33] : memref<1x8xf32, #tpu.memory_space<vmem>>, vector<1x8xf32>
    %44 = vector.broadcast %43 : vector<1x8xf32> to vector<128x8xf32>
    %45 = arith.addf %42, %44 : vector<128x8xf32>
    %c0_34 = arith.constant 0 : index
    %c0_35 = arith.constant 0 : index
    %c0_36 = arith.constant 0 : index
    %46 = vector.load %arg12[%c0_34, %c0_35, %c0_36] : memref<1x128x8xf32, #tpu.memory_space<vmem>>, vector<1x128x8xf32>
    %47 = vector.shape_cast %46 : vector<1x128x8xf32> to vector<128x8xf32>
    %48 = vector.shape_cast %45 : vector<128x8xf32> to vector<1x128x8xf32>
    tpu.vector_store %arg12[%c0_34, %c0_35, %c0_36], %48 {strides = array<i32>} : memref<1x128x8xf32, #tpu.memory_space<vmem>>, vector<1x128x8xf32>,
    return
  }
  func.func @transform_0(%arg0: i32) -> (i32, i32, i32) {
    %c0_i32 = arith.constant 0 : i32
    %c0_i32_0 = arith.constant 0 : i32
    %c0_i32_1 = arith.constant 0 : i32
    return %arg0, %c0_i32, %c0_i32_0 : i32, i32, i32
  }
  func.func @transform_1(%arg0: i32) -> (i32, i32, i32) {
    %c0_i32 = arith.constant 0 : i32
    %c0_i32_0 = arith.constant 0 : i32
    %c0_i32_1 = arith.constant 0 : i32
    return %arg0, %c0_i32, %c0_i32_0 : i32, i32, i32
  }
  func.func @transform_2(%arg0: i32) -> (i32, i32) {
    %c0_i32 = arith.constant 0 : i32
    %c0_i32_0 = arith.constant 0 : i32
    %c0_i32_1 = arith.constant 0 : i32
    return %c0_i32, %c0_i32_0 : i32, i32
  }
  func.func @transform_3(%arg0: i32) -> (i32, i32) {
    %c0_i32 = arith.constant 0 : i32
    %c0_i32_0 = arith.constant 0 : i32
    %c0_i32_1 = arith.constant 0 : i32
    return %c0_i32, %c0_i32_0 : i32, i32
  }
  func.func @transform_4(%arg0: i32) -> (i32, i32) {
    %c0_i32 = arith.constant 0 : i32
    %c0_i32_0 = arith.constant 0 : i32
    %c0_i32_1 = arith.constant 0 : i32
    return %c0_i32, %c0_i32_0 : i32, i32
  }
  func.func @transform_5(%arg0: i32) -> (i32, i32) {
    %c0_i32 = arith.constant 0 : i32
    %c0_i32_0 = arith.constant 0 : i32
    %c0_i32_1 = arith.constant 0 : i32
    return %c0_i32, %c0_i32_0 : i32, i32
  }
  func.func @transform_6(%arg0: i32) -> (i32, i32) {
    %c0_i32 = arith.constant 0 : i32
    %c0_i32_0 = arith.constant 0 : i32
    %c0_i32_1 = arith.constant 0 : i32
    return %c0_i32, %c0_i32_0 : i32, i32
  }
  func.func @transform_7(%arg0: i32) -> (i32, i32) {
    %c0_i32 = arith.constant 0 : i32
    %c0_i32_0 = arith.constant 0 : i32
    %c0_i32_1 = arith.constant 0 : i32
    return %c0_i32, %c0_i32_0 : i32, i32
  }
  func.func @transform_8(%arg0: i32) -> (i32, i32) {
    %c0_i32 = arith.constant 0 : i32
    %c0_i32_0 = arith.constant 0 : i32
    %c0_i32_1 = arith.constant 0 : i32
    return %c0_i32, %c0_i32_0 : i32, i32
  }
  func.func @transform_9(%arg0: i32) -> (i32, i32) {
    %c0_i32 = arith.constant 0 : i32
    %c0_i32_0 = arith.constant 0 : i32
    %c0_i32_1 = arith.constant 0 : i32
    return %c0_i32, %c0_i32_0 : i32, i32
  }
  func.func @transform_10(%arg0: i32) -> (i32, i32, i32) {
    %c0_i32 = arith.constant 0 : i32
    %c0_i32_0 = arith.constant 0 : i32
    %c0_i32_1 = arith.constant 0 : i32
    return %arg0, %c0_i32, %c0_i32_0 : i32, i32, i32
  }
  func.func @transform_11(%arg0: i32) -> (i32, i32, i32) {
    %c0_i32 = arith.constant 0 : i32
    %c0_i32_0 = arith.constant 0 : i32
    %c0_i32_1 = arith.constant 0 : i32
    return %arg0, %c0_i32, %c0_i32_0 : i32, i32, i32
  }
}

module attributes {stable_mosaic.version = 11 : i64} {
  func.func @_layer_epilogue_kernel(%arg0: i32, %arg1: memref<1x128x128xf32, #tpu.memory_space<vmem>>, %arg2: memref<1x128x8xf32, #tpu.memory_space<vmem>>, %arg3: memref<1x128x128xf32, #tpu.memory_space<vmem>>, %arg4: memref<1x128x8xf32, #tpu.memory_space<vmem>>, %arg5: memref<128x1xf32, #tpu.memory_space<vmem>>, %arg6: memref<128x1xf32, #tpu.memory_space<vmem>>, %arg7: memref<128x1xf32, #tpu.memory_space<vmem>>, %arg8: memref<128x1xf32, #tpu.memory_space<vmem>>, %arg9: memref<128x3xf32, #tpu.memory_space<vmem>>, %arg10: memref<8x1xf32, #tpu.memory_space<vmem>>, %arg11: memref<1xf32, #tpu.memory_space<smem>>, %arg12: memref<1xf32, #tpu.memory_space<smem>>, %arg13: memref<1x128x128xf32, #tpu.memory_space<vmem>>, %arg14: memref<1x128x8xf32, #tpu.memory_space<vmem>>, %arg15: memref<1x128x3xf32, #tpu.memory_space<vmem>>, %arg16: memref<1x128x1xf32, #tpu.memory_space<vmem>>) attributes {dimension_semantics = [#tpu.dimension_semantics<parallel>], iteration_bounds = array<i64: 2>, scalar_prefetch = 0 : i64, scratch_operands = 0 : i64, tpu.core_type = #tpu.core_type<tc>, window_params = [{transform_indices = @transform_0, window_bounds = array<i64: 1, 128, 128>}, {transform_indices = @transform_1, window_bounds = array<i64: 1, 128, 8>}, {transform_indices = @transform_2, window_bounds = array<i64: 1, 128, 128>}, {transform_indices = @transform_3, window_bounds = array<i64: 1, 128, 8>}, {pipeline_mode = #tpu.pipeline_mode<synchronous>, transform_indices = @transform_4, window_bounds = array<i64: 128, 1>}, {pipeline_mode = #tpu.pipeline_mode<synchronous>, transform_indices = @transform_5, window_bounds = array<i64: 128, 1>}, {pipeline_mode = #tpu.pipeline_mode<synchronous>, transform_indices = @transform_6, window_bounds = array<i64: 128, 1>}, {pipeline_mode = #tpu.pipeline_mode<synchronous>, transform_indices = @transform_7, window_bounds = array<i64: 128, 1>}, {pipeline_mode = #tpu.pipeline_mode<synchronous>, transform_indices = @transform_8, window_bounds = array<i64: 128, 3>}, {pipeline_mode = #tpu.pipeline_mode<synchronous>, transform_indices = @transform_9, window_bounds = array<i64: 8, 1>}, {transform_indices = @transform_10, window_bounds = array<i64: 1>}, {transform_indices = @transform_11, window_bounds = array<i64: 1>}, {transform_indices = @transform_12, window_bounds = array<i64: 1, 128, 128>}, {transform_indices = @transform_13, window_bounds = array<i64: 1, 128, 8>}, {transform_indices = @transform_14, window_bounds = array<i64: 1, 128, 3>}, {transform_indices = @transform_15, window_bounds = array<i64: 1, 128, 1>}]} {
    %0 = tpu.iota {dimensions = array<i32: 0>} : vector<128x128xi32>
    %c116_i32 = arith.constant 116 : i32
    %1 = vector.broadcast %c116_i32 : i32 to vector<128x128xi32>
    %2 = arith.cmpi slt, %0, %1 : vector<128x128xi32>
    %3 = tpu.iota {dimensions = array<i32: 0>} : vector<128x8xi32>
    %c116_i32_0 = arith.constant 116 : i32
    %4 = vector.broadcast %c116_i32_0 : i32 to vector<128x8xi32>
    %5 = arith.cmpi slt, %3, %4 : vector<128x8xi32>
    %c0 = arith.constant 0 : index
    %c0_1 = arith.constant 0 : index
    %6 = vector.load %arg5[%c0, %c0_1] : memref<128x1xf32, #tpu.memory_space<vmem>>, vector<128x1xf32>
    %c0_2 = arith.constant 0 : index
    %c0_3 = arith.constant 0 : index
    %c0_4 = arith.constant 0 : index
    %7 = vector.load %arg1[%c0_2, %c0_3, %c0_4] : memref<1x128x128xf32, #tpu.memory_space<vmem>>, vector<1x128x128xf32>
    %8 = vector.shape_cast %7 : vector<1x128x128xf32> to vector<128x128xf32>
    %9 = vector.broadcast %6 : vector<128x1xf32> to vector<128x128xf32>
    %10 = arith.mulf %9, %8 : vector<128x128xf32>
    %c0_5 = arith.constant 0 : index
    %c0_6 = arith.constant 0 : index
    %11 = vector.load %arg6[%c0_5, %c0_6] : memref<128x1xf32, #tpu.memory_space<vmem>>, vector<128x1xf32>
    %12 = vector.broadcast %11 : vector<128x1xf32> to vector<128x128xf32>
    %13 = arith.addf %10, %12 : vector<128x128xf32>
    %cst = arith.constant 0.000000e+00 : f32
    %14 = vector.broadcast %cst : f32 to vector<128x128xf32>
    %15 = arith.maximumf %13, %14 : vector<128x128xf32>
    %cst_7 = arith.constant 0.000000e+00 : f32
    %16 = vector.broadcast %cst_7 : f32 to vector<128x128xf32>
    %17 = arith.select %2, %15, %16 : vector<128x128xi1>, vector<128x128xf32>
    %c0_8 = arith.constant 0 : index
    %c0_9 = arith.constant 0 : index
    %c0_10 = arith.constant 0 : index
    %18 = vector.load %arg3[%c0_8, %c0_9, %c0_10] : memref<1x128x128xf32, #tpu.memory_space<vmem>>, vector<1x128x128xf32>
    %19 = vector.shape_cast %18 : vector<1x128x128xf32> to vector<128x128xf32>
    %20 = arith.addf %17, %19 : vector<128x128xf32>
    %c0_11 = arith.constant 0 : index
    %c0_12 = arith.constant 0 : index
    %21 = vector.load %arg7[%c0_11, %c0_12] : memref<128x1xf32, #tpu.memory_space<vmem>>, vector<128x1xf32>
    %c0_13 = arith.constant 0 : index
    %c0_14 = arith.constant 0 : index
    %c0_15 = arith.constant 0 : index
    %22 = vector.load %arg2[%c0_13, %c0_14, %c0_15] : memref<1x128x8xf32, #tpu.memory_space<vmem>>, vector<1x128x8xf32>
    %23 = vector.shape_cast %22 : vector<1x128x8xf32> to vector<128x8xf32>
    %24 = vector.broadcast %21 : vector<128x1xf32> to vector<128x8xf32>
    %25 = arith.mulf %24, %23 : vector<128x8xf32>
    %c0_16 = arith.constant 0 : index
    %c0_17 = arith.constant 0 : index
    %26 = vector.load %arg8[%c0_16, %c0_17] : memref<128x1xf32, #tpu.memory_space<vmem>>, vector<128x1xf32>
    %27 = vector.broadcast %26 : vector<128x1xf32> to vector<128x8xf32>
    %28 = arith.addf %25, %27 : vector<128x8xf32>
    %cst_18 = arith.constant 0.000000e+00 : f32
    %29 = vector.broadcast %cst_18 : f32 to vector<128x8xf32>
    %30 = arith.maximumf %28, %29 : vector<128x8xf32>
    %cst_19 = arith.constant 0.000000e+00 : f32
    %31 = vector.broadcast %cst_19 : f32 to vector<128x8xf32>
    %32 = arith.select %5, %30, %31 : vector<128x8xi1>, vector<128x8xf32>
    %c0_20 = arith.constant 0 : index
    %c0_21 = arith.constant 0 : index
    %c0_22 = arith.constant 0 : index
    %33 = vector.load %arg4[%c0_20, %c0_21, %c0_22] : memref<1x128x8xf32, #tpu.memory_space<vmem>>, vector<1x128x8xf32>
    %34 = vector.shape_cast %33 : vector<1x128x8xf32> to vector<128x8xf32>
    %35 = arith.addf %32, %34 : vector<128x8xf32>
    %c0_23 = arith.constant 0 : index
    %c0_24 = arith.constant 0 : index
    %c0_25 = arith.constant 0 : index
    %36 = vector.load %arg13[%c0_23, %c0_24, %c0_25] : memref<1x128x128xf32, #tpu.memory_space<vmem>>, vector<1x128x128xf32>
    %37 = vector.shape_cast %36 : vector<1x128x128xf32> to vector<128x128xf32>
    %38 = vector.shape_cast %20 : vector<128x128xf32> to vector<1x128x128xf32>
    tpu.vector_store %arg13[%c0_23, %c0_24, %c0_25], %38 {strides = array<i32>} : memref<1x128x128xf32, #tpu.memory_space<vmem>>, vector<1x128x128xf32>,
    %c0_26 = arith.constant 0 : index
    %c0_27 = arith.constant 0 : index
    %c0_28 = arith.constant 0 : index
    %39 = vector.load %arg14[%c0_26, %c0_27, %c0_28] : memref<1x128x8xf32, #tpu.memory_space<vmem>>, vector<1x128x8xf32>
    %40 = vector.shape_cast %39 : vector<1x128x8xf32> to vector<128x8xf32>
    %41 = vector.shape_cast %35 : vector<128x8xf32> to vector<1x128x8xf32>
    tpu.vector_store %arg14[%c0_26, %c0_27, %c0_28], %41 {strides = array<i32>} : memref<1x128x8xf32, #tpu.memory_space<vmem>>, vector<1x128x8xf32>,
    %c0_29 = arith.constant 0 : index
    %c0_30 = arith.constant 0 : index
    %42 = vector.load %arg9[%c0_29, %c0_30] : memref<128x3xf32, #tpu.memory_space<vmem>>, vector<128x3xf32>
    %cst_31 = arith.constant dense<0.000000e+00> : vector<128x3xf32>
    %43 = tpu.matmul %20, %42, %cst_31 {dimension_numbers = #tpu.dot_dimension_numbers<[1], [0], [0], [1], [0, 0, 1, 1], [], []>} : vector<128x128xf32>, vector<128x3xf32>, vector<128x3xf32> -> vector<128x3xf32>
    %c0_32 = arith.constant 0 : index
    %44 = memref.load %arg11[%c0_32] : memref<1xf32, #tpu.memory_space<smem>>
    %45 = vector.broadcast %44 : f32 to vector<128x3xf32>
    %46 = arith.addf %43, %45 : vector<128x3xf32>
    %cst_33 = arith.constant 0.000000e+00 : f32
    %47 = vector.broadcast %cst_33 : f32 to vector<128x3xf32>
    %48 = arith.maximumf %46, %47 : vector<128x3xf32>
    %c0_34 = arith.constant 0 : index
    %c0_35 = arith.constant 0 : index
    %c0_36 = arith.constant 0 : index
    %49 = vector.load %arg15[%c0_34, %c0_35, %c0_36] : memref<1x128x3xf32, #tpu.memory_space<vmem>>, vector<1x128x3xf32>
    %50 = vector.shape_cast %49 : vector<1x128x3xf32> to vector<128x3xf32>
    %51 = vector.shape_cast %48 : vector<128x3xf32> to vector<1x128x3xf32>
    tpu.vector_store %arg15[%c0_34, %c0_35, %c0_36], %51 {strides = array<i32>} : memref<1x128x3xf32, #tpu.memory_space<vmem>>, vector<1x128x3xf32>,
    %c0_37 = arith.constant 0 : index
    %c0_38 = arith.constant 0 : index
    %52 = vector.load %arg10[%c0_37, %c0_38] : memref<8x1xf32, #tpu.memory_space<vmem>>, vector<8x1xf32>
    %cst_39 = arith.constant dense<0.000000e+00> : vector<128x1xf32>
    %53 = tpu.matmul %35, %52, %cst_39 {dimension_numbers = #tpu.dot_dimension_numbers<[1], [0], [0], [1], [0, 0, 1, 1], [], []>} : vector<128x8xf32>, vector<8x1xf32>, vector<128x1xf32> -> vector<128x1xf32>
    %c0_40 = arith.constant 0 : index
    %54 = memref.load %arg12[%c0_40] : memref<1xf32, #tpu.memory_space<smem>>
    %55 = vector.broadcast %54 : f32 to vector<128x1xf32>
    %56 = arith.addf %53, %55 : vector<128x1xf32>
    %cst_41 = arith.constant 0.000000e+00 : f32
    %57 = vector.broadcast %cst_41 : f32 to vector<128x1xf32>
    %58 = arith.maximumf %56, %57 : vector<128x1xf32>
    %c0_42 = arith.constant 0 : index
    %c0_43 = arith.constant 0 : index
    %c0_44 = arith.constant 0 : index
    %59 = vector.load %arg16[%c0_42, %c0_43, %c0_44] : memref<1x128x1xf32, #tpu.memory_space<vmem>>, vector<1x128x1xf32>
    %60 = vector.shape_cast %59 : vector<1x128x1xf32> to vector<128x1xf32>
    %61 = vector.shape_cast %58 : vector<128x1xf32> to vector<1x128x1xf32>
    tpu.vector_store %arg16[%c0_42, %c0_43, %c0_44], %61 {strides = array<i32>} : memref<1x128x1xf32, #tpu.memory_space<vmem>>, vector<1x128x1xf32>,
    return
  }
  func.func @transform_0(%arg0: i32) -> (i32, i32, i32) {
    %c0_i32 = arith.constant 0 : i32
    %c0_i32_0 = arith.constant 0 : i32
    %c0_i32_1 = arith.constant 0 : i32
    return %arg0, %c0_i32, %c0_i32_0 : i32, i32, i32
  }
  func.func @transform_1(%arg0: i32) -> (i32, i32, i32) {
    %c0_i32 = arith.constant 0 : i32
    %c0_i32_0 = arith.constant 0 : i32
    %c0_i32_1 = arith.constant 0 : i32
    return %arg0, %c0_i32, %c0_i32_0 : i32, i32, i32
  }
  func.func @transform_2(%arg0: i32) -> (i32, i32, i32) {
    %c0_i32 = arith.constant 0 : i32
    %c0_i32_0 = arith.constant 0 : i32
    %c0_i32_1 = arith.constant 0 : i32
    return %arg0, %c0_i32, %c0_i32_0 : i32, i32, i32
  }
  func.func @transform_3(%arg0: i32) -> (i32, i32, i32) {
    %c0_i32 = arith.constant 0 : i32
    %c0_i32_0 = arith.constant 0 : i32
    %c0_i32_1 = arith.constant 0 : i32
    return %arg0, %c0_i32, %c0_i32_0 : i32, i32, i32
  }
  func.func @transform_4(%arg0: i32) -> (i32, i32) {
    %c0_i32 = arith.constant 0 : i32
    %c0_i32_0 = arith.constant 0 : i32
    %c0_i32_1 = arith.constant 0 : i32
    return %c0_i32, %c0_i32_0 : i32, i32
  }
  func.func @transform_5(%arg0: i32) -> (i32, i32) {
    %c0_i32 = arith.constant 0 : i32
    %c0_i32_0 = arith.constant 0 : i32
    %c0_i32_1 = arith.constant 0 : i32
    return %c0_i32, %c0_i32_0 : i32, i32
  }
  func.func @transform_6(%arg0: i32) -> (i32, i32) {
    %c0_i32 = arith.constant 0 : i32
    %c0_i32_0 = arith.constant 0 : i32
    %c0_i32_1 = arith.constant 0 : i32
    return %c0_i32, %c0_i32_0 : i32, i32
  }
  func.func @transform_7(%arg0: i32) -> (i32, i32) {
    %c0_i32 = arith.constant 0 : i32
    %c0_i32_0 = arith.constant 0 : i32
    %c0_i32_1 = arith.constant 0 : i32
    return %c0_i32, %c0_i32_0 : i32, i32
  }
  func.func @transform_8(%arg0: i32) -> (i32, i32) {
    %c0_i32 = arith.constant 0 : i32
    %c0_i32_0 = arith.constant 0 : i32
    %c0_i32_1 = arith.constant 0 : i32
    return %c0_i32, %c0_i32_0 : i32, i32
  }
  func.func @transform_9(%arg0: i32) -> (i32, i32) {
    %c0_i32 = arith.constant 0 : i32
    %c0_i32_0 = arith.constant 0 : i32
    %c0_i32_1 = arith.constant 0 : i32
    return %c0_i32, %c0_i32_0 : i32, i32
  }
  func.func @transform_10(%arg0: i32) -> i32 {
    %c0_i32 = arith.constant 0 : i32
    %c0_i32_0 = arith.constant 0 : i32
    return %c0_i32 : i32
  }
  func.func @transform_11(%arg0: i32) -> i32 {
    %c0_i32 = arith.constant 0 : i32
    %c0_i32_0 = arith.constant 0 : i32
    return %c0_i32 : i32
  }
  func.func @transform_12(%arg0: i32) -> (i32, i32, i32) {
    %c0_i32 = arith.constant 0 : i32
    %c0_i32_0 = arith.constant 0 : i32
    %c0_i32_1 = arith.constant 0 : i32
    return %arg0, %c0_i32, %c0_i32_0 : i32, i32, i32
  }
  func.func @transform_13(%arg0: i32) -> (i32, i32, i32) {
    %c0_i32 = arith.constant 0 : i32
    %c0_i32_0 = arith.constant 0 : i32
    %c0_i32_1 = arith.constant 0 : i32
    return %arg0, %c0_i32, %c0_i32_0 : i32, i32, i32
  }
  func.func @transform_14(%arg0: i32) -> (i32, i32, i32) {
    %c0_i32 = arith.constant 0 : i32
    %c0_i32_0 = arith.constant 0 : i32
    %c0_i32_1 = arith.constant 0 : i32
    return %arg0, %c0_i32, %c0_i32_0 : i32, i32, i32
  }
  func.func @transform_15(%arg0: i32) -> (i32, i32, i32) {
    %c0_i32 = arith.constant 0 : i32
    %c0_i32_0 = arith.constant 0 : i32
    %c0_i32_1 = arith.constant 0 : i32
    return %arg0, %c0_i32, %c0_i32_0 : i32, i32, i32
  }
}

module attributes {stable_mosaic.version = 11 : i64} {
  func.func @_attn_prop_kernel(%arg0: i32, %arg1: memref<1x128x8xf32, #tpu.memory_space<vmem>>, %arg2: memref<1x128x128xf32, #tpu.memory_space<vmem>>, %arg3: memref<8x8xf32, #tpu.memory_space<vmem>>, %arg4: memref<1x8xf32, #tpu.memory_space<vmem>>, %arg5: memref<128x128xf32, #tpu.memory_space<vmem>>, %arg6: memref<1x128xf32, #tpu.memory_space<vmem>>, %arg7: memref<128x128xf32, #tpu.memory_space<vmem>>, %arg8: memref<1x128xf32, #tpu.memory_space<vmem>>, %arg9: memref<8x8xf32, #tpu.memory_space<vmem>>, %arg10: memref<1x8xf32, #tpu.memory_space<vmem>>, %arg11: memref<1x128x128xf32, #tpu.memory_space<vmem>>, %arg12: memref<1x128x8xf32, #tpu.memory_space<vmem>>) attributes {dimension_semantics = [#tpu.dimension_semantics<parallel>], iteration_bounds = array<i64: 2>, scalar_prefetch = 0 : i64, scratch_operands = 0 : i64, tpu.core_type = #tpu.core_type<tc>, window_params = [{transform_indices = @transform_0, window_bounds = array<i64: 1, 128, 8>}, {transform_indices = @transform_1, window_bounds = array<i64: 1, 128, 128>}, {pipeline_mode = #tpu.pipeline_mode<synchronous>, transform_indices = @transform_2, window_bounds = array<i64: 8, 8>}, {pipeline_mode = #tpu.pipeline_mode<synchronous>, transform_indices = @transform_3, window_bounds = array<i64: 1, 8>}, {pipeline_mode = #tpu.pipeline_mode<synchronous>, transform_indices = @transform_4, window_bounds = array<i64: 128, 128>}, {pipeline_mode = #tpu.pipeline_mode<synchronous>, transform_indices = @transform_5, window_bounds = array<i64: 1, 128>}, {pipeline_mode = #tpu.pipeline_mode<synchronous>, transform_indices = @transform_6, window_bounds = array<i64: 128, 128>}, {pipeline_mode = #tpu.pipeline_mode<synchronous>, transform_indices = @transform_7, window_bounds = array<i64: 1, 128>}, {pipeline_mode = #tpu.pipeline_mode<synchronous>, transform_indices = @transform_8, window_bounds = array<i64: 8, 8>}, {pipeline_mode = #tpu.pipeline_mode<synchronous>, transform_indices = @transform_9, window_bounds = array<i64: 1, 8>}, {transform_indices = @transform_10, window_bounds = array<i64: 1, 128, 128>}, {transform_indices = @transform_11, window_bounds = array<i64: 1, 128, 8>}]} {
    %c0 = arith.constant 0 : index
    %c0_0 = arith.constant 0 : index
    %c0_1 = arith.constant 0 : index
    %0 = vector.load %arg1[%c0, %c0_0, %c0_1] : memref<1x128x8xf32, #tpu.memory_space<vmem>>, vector<1x128x8xf32>
    %1 = vector.shape_cast %0 : vector<1x128x8xf32> to vector<128x8xf32>
    %c0_2 = arith.constant 0 : index
    %c0_3 = arith.constant 0 : index
    %c0_4 = arith.constant 0 : index
    %2 = vector.load %arg2[%c0_2, %c0_3, %c0_4] : memref<1x128x128xf32, #tpu.memory_space<vmem>>, vector<1x128x128xf32>
    %3 = vector.shape_cast %2 : vector<1x128x128xf32> to vector<128x128xf32>
    %c0_5 = arith.constant 0 : index
    %c0_6 = arith.constant 0 : index
    %4 = vector.load %arg3[%c0_5, %c0_6] : memref<8x8xf32, #tpu.memory_space<vmem>>, vector<8x8xf32>
    %cst = arith.constant dense<0.000000e+00> : vector<128x8xf32>
    %5 = tpu.matmul %1, %4, %cst {dimension_numbers = #tpu.dot_dimension_numbers<[1], [0], [0], [1], [0, 0, 1, 1], [], []>} : vector<128x8xf32>, vector<8x8xf32>, vector<128x8xf32> -> vector<128x8xf32>
    %c0_7 = arith.constant 0 : index
    %c0_8 = arith.constant 0 : index
    %6 = vector.load %arg4[%c0_7, %c0_8] : memref<1x8xf32, #tpu.memory_space<vmem>>, vector<1x8xf32>
    %7 = vector.broadcast %6 : vector<1x8xf32> to vector<128x8xf32>
    %8 = arith.addf %5, %7 : vector<128x8xf32>
    %cst_9 = arith.constant dense<0.000000e+00> : vector<128x128xf32>
    %9 = tpu.matmul %8, %8, %cst_9 {dimension_numbers = #tpu.dot_dimension_numbers<[1], [1], [0], [0], [0, 0, 1, 0], [], []>} : vector<128x8xf32>, vector<128x8xf32>, vector<128x128xf32> -> vector<128x128xf32>
    %10 = tpu.iota {dimensions = array<i32: 1>} : vector<128x128xi32>
    %c116_i32 = arith.constant 116 : i32
    %11 = vector.broadcast %c116_i32 : i32 to vector<128x128xi32>
    %12 = arith.cmpi slt, %10, %11 : vector<128x128xi32>
    %cst_10 = arith.constant -1.000000e+30 : f32
    %13 = vector.broadcast %cst_10 : f32 to vector<128x128xf32>
    %14 = arith.select %12, %9, %13 : vector<128x128xi1>, vector<128x128xf32>
    %cst_11 = arith.constant dense<0xFF800000> : vector<128xf32>
    %15 = vector.multi_reduction <maximumf>, %14, %cst_11 [1] : vector<128x128xf32> to vector<128xf32>
    %16 = vector.shape_cast %15 : vector<128xf32> to vector<128x1xf32>
    %17 = vector.broadcast %16 : vector<128x1xf32> to vector<128x128xf32>
    %18 = arith.subf %14, %17 : vector<128x128xf32>
    %19 = math.exp %18 : vector<128x128xf32>
    %cst_12 = arith.constant dense<0.000000e+00> : vector<128xf32>
    %20 = vector.multi_reduction <add>, %19, %cst_12 [1] : vector<128x128xf32> to vector<128xf32>
    %21 = vector.shape_cast %20 : vector<128xf32> to vector<128x1xf32>
    %22 = tpu.reciprocal %21 {approx = true} : vector<128x1xf32> -> vector<128x1xf32>
    %23 = vector.broadcast %22 : vector<128x1xf32> to vector<128x128xf32>
    %24 = arith.mulf %19, %23 : vector<128x128xf32>
    %c0_13 = arith.constant 0 : index
    %c0_14 = arith.constant 0 : index
    %25 = vector.load %arg5[%c0_13, %c0_14] : memref<128x128xf32, #tpu.memory_space<vmem>>, vector<128x128xf32>
    %cst_15 = arith.constant dense<0.000000e+00> : vector<128x128xf32>
    %26 = tpu.matmul %3, %25, %cst_15 {dimension_numbers = #tpu.dot_dimension_numbers<[1], [0], [0], [1], [0, 0, 1, 1], [], []>} : vector<128x128xf32>, vector<128x128xf32>, vector<128x128xf32> -> vector<128x128xf32>
    %c0_16 = arith.constant 0 : index
    %c0_17 = arith.constant 0 : index
    %27 = vector.load %arg6[%c0_16, %c0_17] : memref<1x128xf32, #tpu.memory_space<vmem>>, vector<1x128xf32>
    %28 = vector.broadcast %27 : vector<1x128xf32> to vector<128x128xf32>
    %29 = arith.addf %26, %28 : vector<128x128xf32>
    %cst_18 = arith.constant dense<0.000000e+00> : vector<128x128xf32>
    %30 = tpu.matmul %29, %24, %cst_18 {dimension_numbers = #tpu.dot_dimension_numbers<[1], [1], [0], [0], [0, 0, 1, 0], [], []>} : vector<128x128xf32>, vector<128x128xf32>, vector<128x128xf32> -> vector<128x128xf32>
    %cst_19 = arith.constant dense<0.000000e+00> : vector<128x128xf32>
    %31 = tpu.matmul %30, %3, %cst_19 {dimension_numbers = #tpu.dot_dimension_numbers<[1], [0], [0], [1], [0, 0, 1, 1], [], []>} : vector<128x128xf32>, vector<128x128xf32>, vector<128x128xf32> -> vector<128x128xf32>
    %cst_20 = arith.constant dense<0.000000e+00> : vector<128x8xf32>
    %32 = tpu.matmul %30, %1, %cst_20 {dimension_numbers = #tpu.dot_dimension_numbers<[1], [0], [0], [1], [0, 0, 1, 1], [], []>} : vector<128x128xf32>, vector<128x8xf32>, vector<128x8xf32> -> vector<128x8xf32>
    %c0_21 = arith.constant 0 : index
    %c0_22 = arith.constant 0 : index
    %33 = vector.load %arg7[%c0_21, %c0_22] : memref<128x128xf32, #tpu.memory_space<vmem>>, vector<128x128xf32>
    %cst_23 = arith.constant dense<0.000000e+00> : vector<128x128xf32>
    %34 = tpu.matmul %31, %33, %cst_23 {dimension_numbers = #tpu.dot_dimension_numbers<[1], [0], [0], [1], [0, 0, 1, 1], [], []>} : vector<128x128xf32>, vector<128x128xf32>, vector<128x128xf32> -> vector<128x128xf32>
    %c0_24 = arith.constant 0 : index
    %c0_25 = arith.constant 0 : index
    %35 = vector.load %arg8[%c0_24, %c0_25] : memref<1x128xf32, #tpu.memory_space<vmem>>, vector<1x128xf32>
    %36 = vector.broadcast %35 : vector<1x128xf32> to vector<128x128xf32>
    %37 = arith.addf %34, %36 : vector<128x128xf32>
    %c0_26 = arith.constant 0 : index
    %c0_27 = arith.constant 0 : index
    %c0_28 = arith.constant 0 : index
    %38 = vector.load %arg11[%c0_26, %c0_27, %c0_28] : memref<1x128x128xf32, #tpu.memory_space<vmem>>, vector<1x128x128xf32>
    %39 = vector.shape_cast %38 : vector<1x128x128xf32> to vector<128x128xf32>
    %40 = vector.shape_cast %37 : vector<128x128xf32> to vector<1x128x128xf32>
    tpu.vector_store %arg11[%c0_26, %c0_27, %c0_28], %40 {strides = array<i32>} : memref<1x128x128xf32, #tpu.memory_space<vmem>>, vector<1x128x128xf32>,
    %c0_29 = arith.constant 0 : index
    %c0_30 = arith.constant 0 : index
    %41 = vector.load %arg9[%c0_29, %c0_30] : memref<8x8xf32, #tpu.memory_space<vmem>>, vector<8x8xf32>
    %cst_31 = arith.constant dense<0.000000e+00> : vector<128x8xf32>
    %42 = tpu.matmul %32, %41, %cst_31 {dimension_numbers = #tpu.dot_dimension_numbers<[1], [0], [0], [1], [0, 0, 1, 1], [], []>} : vector<128x8xf32>, vector<8x8xf32>, vector<128x8xf32> -> vector<128x8xf32>
    %c0_32 = arith.constant 0 : index
    %c0_33 = arith.constant 0 : index
    %43 = vector.load %arg10[%c0_32, %c0_33] : memref<1x8xf32, #tpu.memory_space<vmem>>, vector<1x8xf32>
    %44 = vector.broadcast %43 : vector<1x8xf32> to vector<128x8xf32>
    %45 = arith.addf %42, %44 : vector<128x8xf32>
    %c0_34 = arith.constant 0 : index
    %c0_35 = arith.constant 0 : index
    %c0_36 = arith.constant 0 : index
    %46 = vector.load %arg12[%c0_34, %c0_35, %c0_36] : memref<1x128x8xf32, #tpu.memory_space<vmem>>, vector<1x128x8xf32>
    %47 = vector.shape_cast %46 : vector<1x128x8xf32> to vector<128x8xf32>
    %48 = vector.shape_cast %45 : vector<128x8xf32> to vector<1x128x8xf32>
    tpu.vector_store %arg12[%c0_34, %c0_35, %c0_36], %48 {strides = array<i32>} : memref<1x128x8xf32, #tpu.memory_space<vmem>>, vector<1x128x8xf32>,
    return
  }
  func.func @transform_0(%arg0: i32) -> (i32, i32, i32) {
    %c0_i32 = arith.constant 0 : i32
    %c0_i32_0 = arith.constant 0 : i32
    %c0_i32_1 = arith.constant 0 : i32
    return %arg0, %c0_i32, %c0_i32_0 : i32, i32, i32
  }
  func.func @transform_1(%arg0: i32) -> (i32, i32, i32) {
    %c0_i32 = arith.constant 0 : i32
    %c0_i32_0 = arith.constant 0 : i32
    %c0_i32_1 = arith.constant 0 : i32
    return %arg0, %c0_i32, %c0_i32_0 : i32, i32, i32
  }
  func.func @transform_2(%arg0: i32) -> (i32, i32) {
    %c0_i32 = arith.constant 0 : i32
    %c0_i32_0 = arith.constant 0 : i32
    %c0_i32_1 = arith.constant 0 : i32
    return %c0_i32, %c0_i32_0 : i32, i32
  }
  func.func @transform_3(%arg0: i32) -> (i32, i32) {
    %c0_i32 = arith.constant 0 : i32
    %c0_i32_0 = arith.constant 0 : i32
    %c0_i32_1 = arith.constant 0 : i32
    return %c0_i32, %c0_i32_0 : i32, i32
  }
  func.func @transform_4(%arg0: i32) -> (i32, i32) {
    %c0_i32 = arith.constant 0 : i32
    %c0_i32_0 = arith.constant 0 : i32
    %c0_i32_1 = arith.constant 0 : i32
    return %c0_i32, %c0_i32_0 : i32, i32
  }
  func.func @transform_5(%arg0: i32) -> (i32, i32) {
    %c0_i32 = arith.constant 0 : i32
    %c0_i32_0 = arith.constant 0 : i32
    %c0_i32_1 = arith.constant 0 : i32
    return %c0_i32, %c0_i32_0 : i32, i32
  }
  func.func @transform_6(%arg0: i32) -> (i32, i32) {
    %c0_i32 = arith.constant 0 : i32
    %c0_i32_0 = arith.constant 0 : i32
    %c0_i32_1 = arith.constant 0 : i32
    return %c0_i32, %c0_i32_0 : i32, i32
  }
  func.func @transform_7(%arg0: i32) -> (i32, i32) {
    %c0_i32 = arith.constant 0 : i32
    %c0_i32_0 = arith.constant 0 : i32
    %c0_i32_1 = arith.constant 0 : i32
    return %c0_i32, %c0_i32_0 : i32, i32
  }
  func.func @transform_8(%arg0: i32) -> (i32, i32) {
    %c0_i32 = arith.constant 0 : i32
    %c0_i32_0 = arith.constant 0 : i32
    %c0_i32_1 = arith.constant 0 : i32
    return %c0_i32, %c0_i32_0 : i32, i32
  }
  func.func @transform_9(%arg0: i32) -> (i32, i32) {
    %c0_i32 = arith.constant 0 : i32
    %c0_i32_0 = arith.constant 0 : i32
    %c0_i32_1 = arith.constant 0 : i32
    return %c0_i32, %c0_i32_0 : i32, i32
  }
  func.func @transform_10(%arg0: i32) -> (i32, i32, i32) {
    %c0_i32 = arith.constant 0 : i32
    %c0_i32_0 = arith.constant 0 : i32
    %c0_i32_1 = arith.constant 0 : i32
    return %arg0, %c0_i32, %c0_i32_0 : i32, i32, i32
  }
  func.func @transform_11(%arg0: i32) -> (i32, i32, i32) {
    %c0_i32 = arith.constant 0 : i32
    %c0_i32_0 = arith.constant 0 : i32
    %c0_i32_1 = arith.constant 0 : i32
    return %arg0, %c0_i32, %c0_i32_0 : i32, i32, i32
  }
}

module attributes {stable_mosaic.version = 11 : i64} {
  func.func @_layer_epilogue_kernel(%arg0: i32, %arg1: memref<1x128x128xf32, #tpu.memory_space<vmem>>, %arg2: memref<1x128x8xf32, #tpu.memory_space<vmem>>, %arg3: memref<1x128x128xf32, #tpu.memory_space<vmem>>, %arg4: memref<1x128x8xf32, #tpu.memory_space<vmem>>, %arg5: memref<128x1xf32, #tpu.memory_space<vmem>>, %arg6: memref<128x1xf32, #tpu.memory_space<vmem>>, %arg7: memref<128x1xf32, #tpu.memory_space<vmem>>, %arg8: memref<128x1xf32, #tpu.memory_space<vmem>>, %arg9: memref<128x3xf32, #tpu.memory_space<vmem>>, %arg10: memref<8x1xf32, #tpu.memory_space<vmem>>, %arg11: memref<1xf32, #tpu.memory_space<smem>>, %arg12: memref<1xf32, #tpu.memory_space<smem>>, %arg13: memref<1x128x128xf32, #tpu.memory_space<vmem>>, %arg14: memref<1x128x8xf32, #tpu.memory_space<vmem>>, %arg15: memref<1x128x3xf32, #tpu.memory_space<vmem>>, %arg16: memref<1x128x1xf32, #tpu.memory_space<vmem>>) attributes {dimension_semantics = [#tpu.dimension_semantics<parallel>], iteration_bounds = array<i64: 2>, scalar_prefetch = 0 : i64, scratch_operands = 0 : i64, tpu.core_type = #tpu.core_type<tc>, window_params = [{transform_indices = @transform_0, window_bounds = array<i64: 1, 128, 128>}, {transform_indices = @transform_1, window_bounds = array<i64: 1, 128, 8>}, {transform_indices = @transform_2, window_bounds = array<i64: 1, 128, 128>}, {transform_indices = @transform_3, window_bounds = array<i64: 1, 128, 8>}, {pipeline_mode = #tpu.pipeline_mode<synchronous>, transform_indices = @transform_4, window_bounds = array<i64: 128, 1>}, {pipeline_mode = #tpu.pipeline_mode<synchronous>, transform_indices = @transform_5, window_bounds = array<i64: 128, 1>}, {pipeline_mode = #tpu.pipeline_mode<synchronous>, transform_indices = @transform_6, window_bounds = array<i64: 128, 1>}, {pipeline_mode = #tpu.pipeline_mode<synchronous>, transform_indices = @transform_7, window_bounds = array<i64: 128, 1>}, {pipeline_mode = #tpu.pipeline_mode<synchronous>, transform_indices = @transform_8, window_bounds = array<i64: 128, 3>}, {pipeline_mode = #tpu.pipeline_mode<synchronous>, transform_indices = @transform_9, window_bounds = array<i64: 8, 1>}, {transform_indices = @transform_10, window_bounds = array<i64: 1>}, {transform_indices = @transform_11, window_bounds = array<i64: 1>}, {transform_indices = @transform_12, window_bounds = array<i64: 1, 128, 128>}, {transform_indices = @transform_13, window_bounds = array<i64: 1, 128, 8>}, {transform_indices = @transform_14, window_bounds = array<i64: 1, 128, 3>}, {transform_indices = @transform_15, window_bounds = array<i64: 1, 128, 1>}]} {
    %0 = tpu.iota {dimensions = array<i32: 0>} : vector<128x128xi32>
    %c116_i32 = arith.constant 116 : i32
    %1 = vector.broadcast %c116_i32 : i32 to vector<128x128xi32>
    %2 = arith.cmpi slt, %0, %1 : vector<128x128xi32>
    %3 = tpu.iota {dimensions = array<i32: 0>} : vector<128x8xi32>
    %c116_i32_0 = arith.constant 116 : i32
    %4 = vector.broadcast %c116_i32_0 : i32 to vector<128x8xi32>
    %5 = arith.cmpi slt, %3, %4 : vector<128x8xi32>
    %c0 = arith.constant 0 : index
    %c0_1 = arith.constant 0 : index
    %6 = vector.load %arg5[%c0, %c0_1] : memref<128x1xf32, #tpu.memory_space<vmem>>, vector<128x1xf32>
    %c0_2 = arith.constant 0 : index
    %c0_3 = arith.constant 0 : index
    %c0_4 = arith.constant 0 : index
    %7 = vector.load %arg1[%c0_2, %c0_3, %c0_4] : memref<1x128x128xf32, #tpu.memory_space<vmem>>, vector<1x128x128xf32>
    %8 = vector.shape_cast %7 : vector<1x128x128xf32> to vector<128x128xf32>
    %9 = vector.broadcast %6 : vector<128x1xf32> to vector<128x128xf32>
    %10 = arith.mulf %9, %8 : vector<128x128xf32>
    %c0_5 = arith.constant 0 : index
    %c0_6 = arith.constant 0 : index
    %11 = vector.load %arg6[%c0_5, %c0_6] : memref<128x1xf32, #tpu.memory_space<vmem>>, vector<128x1xf32>
    %12 = vector.broadcast %11 : vector<128x1xf32> to vector<128x128xf32>
    %13 = arith.addf %10, %12 : vector<128x128xf32>
    %cst = arith.constant 0.000000e+00 : f32
    %14 = vector.broadcast %cst : f32 to vector<128x128xf32>
    %15 = arith.maximumf %13, %14 : vector<128x128xf32>
    %cst_7 = arith.constant 0.000000e+00 : f32
    %16 = vector.broadcast %cst_7 : f32 to vector<128x128xf32>
    %17 = arith.select %2, %15, %16 : vector<128x128xi1>, vector<128x128xf32>
    %c0_8 = arith.constant 0 : index
    %c0_9 = arith.constant 0 : index
    %c0_10 = arith.constant 0 : index
    %18 = vector.load %arg3[%c0_8, %c0_9, %c0_10] : memref<1x128x128xf32, #tpu.memory_space<vmem>>, vector<1x128x128xf32>
    %19 = vector.shape_cast %18 : vector<1x128x128xf32> to vector<128x128xf32>
    %20 = arith.addf %17, %19 : vector<128x128xf32>
    %c0_11 = arith.constant 0 : index
    %c0_12 = arith.constant 0 : index
    %21 = vector.load %arg7[%c0_11, %c0_12] : memref<128x1xf32, #tpu.memory_space<vmem>>, vector<128x1xf32>
    %c0_13 = arith.constant 0 : index
    %c0_14 = arith.constant 0 : index
    %c0_15 = arith.constant 0 : index
    %22 = vector.load %arg2[%c0_13, %c0_14, %c0_15] : memref<1x128x8xf32, #tpu.memory_space<vmem>>, vector<1x128x8xf32>
    %23 = vector.shape_cast %22 : vector<1x128x8xf32> to vector<128x8xf32>
    %24 = vector.broadcast %21 : vector<128x1xf32> to vector<128x8xf32>
    %25 = arith.mulf %24, %23 : vector<128x8xf32>
    %c0_16 = arith.constant 0 : index
    %c0_17 = arith.constant 0 : index
    %26 = vector.load %arg8[%c0_16, %c0_17] : memref<128x1xf32, #tpu.memory_space<vmem>>, vector<128x1xf32>
    %27 = vector.broadcast %26 : vector<128x1xf32> to vector<128x8xf32>
    %28 = arith.addf %25, %27 : vector<128x8xf32>
    %cst_18 = arith.constant 0.000000e+00 : f32
    %29 = vector.broadcast %cst_18 : f32 to vector<128x8xf32>
    %30 = arith.maximumf %28, %29 : vector<128x8xf32>
    %cst_19 = arith.constant 0.000000e+00 : f32
    %31 = vector.broadcast %cst_19 : f32 to vector<128x8xf32>
    %32 = arith.select %5, %30, %31 : vector<128x8xi1>, vector<128x8xf32>
    %c0_20 = arith.constant 0 : index
    %c0_21 = arith.constant 0 : index
    %c0_22 = arith.constant 0 : index
    %33 = vector.load %arg4[%c0_20, %c0_21, %c0_22] : memref<1x128x8xf32, #tpu.memory_space<vmem>>, vector<1x128x8xf32>
    %34 = vector.shape_cast %33 : vector<1x128x8xf32> to vector<128x8xf32>
    %35 = arith.addf %32, %34 : vector<128x8xf32>
    %c0_23 = arith.constant 0 : index
    %c0_24 = arith.constant 0 : index
    %c0_25 = arith.constant 0 : index
    %36 = vector.load %arg13[%c0_23, %c0_24, %c0_25] : memref<1x128x128xf32, #tpu.memory_space<vmem>>, vector<1x128x128xf32>
    %37 = vector.shape_cast %36 : vector<1x128x128xf32> to vector<128x128xf32>
    %38 = vector.shape_cast %20 : vector<128x128xf32> to vector<1x128x128xf32>
    tpu.vector_store %arg13[%c0_23, %c0_24, %c0_25], %38 {strides = array<i32>} : memref<1x128x128xf32, #tpu.memory_space<vmem>>, vector<1x128x128xf32>,
    %c0_26 = arith.constant 0 : index
    %c0_27 = arith.constant 0 : index
    %c0_28 = arith.constant 0 : index
    %39 = vector.load %arg14[%c0_26, %c0_27, %c0_28] : memref<1x128x8xf32, #tpu.memory_space<vmem>>, vector<1x128x8xf32>
    %40 = vector.shape_cast %39 : vector<1x128x8xf32> to vector<128x8xf32>
    %41 = vector.shape_cast %35 : vector<128x8xf32> to vector<1x128x8xf32>
    tpu.vector_store %arg14[%c0_26, %c0_27, %c0_28], %41 {strides = array<i32>} : memref<1x128x8xf32, #tpu.memory_space<vmem>>, vector<1x128x8xf32>,
    %c0_29 = arith.constant 0 : index
    %c0_30 = arith.constant 0 : index
    %42 = vector.load %arg9[%c0_29, %c0_30] : memref<128x3xf32, #tpu.memory_space<vmem>>, vector<128x3xf32>
    %cst_31 = arith.constant dense<0.000000e+00> : vector<128x3xf32>
    %43 = tpu.matmul %20, %42, %cst_31 {dimension_numbers = #tpu.dot_dimension_numbers<[1], [0], [0], [1], [0, 0, 1, 1], [], []>} : vector<128x128xf32>, vector<128x3xf32>, vector<128x3xf32> -> vector<128x3xf32>
    %c0_32 = arith.constant 0 : index
    %44 = memref.load %arg11[%c0_32] : memref<1xf32, #tpu.memory_space<smem>>
    %45 = vector.broadcast %44 : f32 to vector<128x3xf32>
    %46 = arith.addf %43, %45 : vector<128x3xf32>
    %cst_33 = arith.constant 0.000000e+00 : f32
    %47 = vector.broadcast %cst_33 : f32 to vector<128x3xf32>
    %48 = arith.maximumf %46, %47 : vector<128x3xf32>
    %c0_34 = arith.constant 0 : index
    %c0_35 = arith.constant 0 : index
    %c0_36 = arith.constant 0 : index
    %49 = vector.load %arg15[%c0_34, %c0_35, %c0_36] : memref<1x128x3xf32, #tpu.memory_space<vmem>>, vector<1x128x3xf32>
    %50 = vector.shape_cast %49 : vector<1x128x3xf32> to vector<128x3xf32>
    %51 = vector.shape_cast %48 : vector<128x3xf32> to vector<1x128x3xf32>
    tpu.vector_store %arg15[%c0_34, %c0_35, %c0_36], %51 {strides = array<i32>} : memref<1x128x3xf32, #tpu.memory_space<vmem>>, vector<1x128x3xf32>,
    %c0_37 = arith.constant 0 : index
    %c0_38 = arith.constant 0 : index
    %52 = vector.load %arg10[%c0_37, %c0_38] : memref<8x1xf32, #tpu.memory_space<vmem>>, vector<8x1xf32>
    %cst_39 = arith.constant dense<0.000000e+00> : vector<128x1xf32>
    %53 = tpu.matmul %35, %52, %cst_39 {dimension_numbers = #tpu.dot_dimension_numbers<[1], [0], [0], [1], [0, 0, 1, 1], [], []>} : vector<128x8xf32>, vector<8x1xf32>, vector<128x1xf32> -> vector<128x1xf32>
    %c0_40 = arith.constant 0 : index
    %54 = memref.load %arg12[%c0_40] : memref<1xf32, #tpu.memory_space<smem>>
    %55 = vector.broadcast %54 : f32 to vector<128x1xf32>
    %56 = arith.addf %53, %55 : vector<128x1xf32>
    %cst_41 = arith.constant 0.000000e+00 : f32
    %57 = vector.broadcast %cst_41 : f32 to vector<128x1xf32>
    %58 = arith.maximumf %56, %57 : vector<128x1xf32>
    %c0_42 = arith.constant 0 : index
    %c0_43 = arith.constant 0 : index
    %c0_44 = arith.constant 0 : index
    %59 = vector.load %arg16[%c0_42, %c0_43, %c0_44] : memref<1x128x1xf32, #tpu.memory_space<vmem>>, vector<1x128x1xf32>
    %60 = vector.shape_cast %59 : vector<1x128x1xf32> to vector<128x1xf32>
    %61 = vector.shape_cast %58 : vector<128x1xf32> to vector<1x128x1xf32>
    tpu.vector_store %arg16[%c0_42, %c0_43, %c0_44], %61 {strides = array<i32>} : memref<1x128x1xf32, #tpu.memory_space<vmem>>, vector<1x128x1xf32>,
    return
  }
  func.func @transform_0(%arg0: i32) -> (i32, i32, i32) {
    %c0_i32 = arith.constant 0 : i32
    %c0_i32_0 = arith.constant 0 : i32
    %c0_i32_1 = arith.constant 0 : i32
    return %arg0, %c0_i32, %c0_i32_0 : i32, i32, i32
  }
  func.func @transform_1(%arg0: i32) -> (i32, i32, i32) {
    %c0_i32 = arith.constant 0 : i32
    %c0_i32_0 = arith.constant 0 : i32
    %c0_i32_1 = arith.constant 0 : i32
    return %arg0, %c0_i32, %c0_i32_0 : i32, i32, i32
  }
  func.func @transform_2(%arg0: i32) -> (i32, i32, i32) {
    %c0_i32 = arith.constant 0 : i32
    %c0_i32_0 = arith.constant 0 : i32
    %c0_i32_1 = arith.constant 0 : i32
    return %arg0, %c0_i32, %c0_i32_0 : i32, i32, i32
  }
  func.func @transform_3(%arg0: i32) -> (i32, i32, i32) {
    %c0_i32 = arith.constant 0 : i32
    %c0_i32_0 = arith.constant 0 : i32
    %c0_i32_1 = arith.constant 0 : i32
    return %arg0, %c0_i32, %c0_i32_0 : i32, i32, i32
  }
  func.func @transform_4(%arg0: i32) -> (i32, i32) {
    %c0_i32 = arith.constant 0 : i32
    %c0_i32_0 = arith.constant 0 : i32
    %c0_i32_1 = arith.constant 0 : i32
    return %c0_i32, %c0_i32_0 : i32, i32
  }
  func.func @transform_5(%arg0: i32) -> (i32, i32) {
    %c0_i32 = arith.constant 0 : i32
    %c0_i32_0 = arith.constant 0 : i32
    %c0_i32_1 = arith.constant 0 : i32
    return %c0_i32, %c0_i32_0 : i32, i32
  }
  func.func @transform_6(%arg0: i32) -> (i32, i32) {
    %c0_i32 = arith.constant 0 : i32
    %c0_i32_0 = arith.constant 0 : i32
    %c0_i32_1 = arith.constant 0 : i32
    return %c0_i32, %c0_i32_0 : i32, i32
  }
  func.func @transform_7(%arg0: i32) -> (i32, i32) {
    %c0_i32 = arith.constant 0 : i32
    %c0_i32_0 = arith.constant 0 : i32
    %c0_i32_1 = arith.constant 0 : i32
    return %c0_i32, %c0_i32_0 : i32, i32
  }
  func.func @transform_8(%arg0: i32) -> (i32, i32) {
    %c0_i32 = arith.constant 0 : i32
    %c0_i32_0 = arith.constant 0 : i32
    %c0_i32_1 = arith.constant 0 : i32
    return %c0_i32, %c0_i32_0 : i32, i32
  }
  func.func @transform_9(%arg0: i32) -> (i32, i32) {
    %c0_i32 = arith.constant 0 : i32
    %c0_i32_0 = arith.constant 0 : i32
    %c0_i32_1 = arith.constant 0 : i32
    return %c0_i32, %c0_i32_0 : i32, i32
  }
  func.func @transform_10(%arg0: i32) -> i32 {
    %c0_i32 = arith.constant 0 : i32
    %c0_i32_0 = arith.constant 0 : i32
    return %c0_i32 : i32
  }
  func.func @transform_11(%arg0: i32) -> i32 {
    %c0_i32 = arith.constant 0 : i32
    %c0_i32_0 = arith.constant 0 : i32
    return %c0_i32 : i32
  }
  func.func @transform_12(%arg0: i32) -> (i32, i32, i32) {
    %c0_i32 = arith.constant 0 : i32
    %c0_i32_0 = arith.constant 0 : i32
    %c0_i32_1 = arith.constant 0 : i32
    return %arg0, %c0_i32, %c0_i32_0 : i32, i32, i32
  }
  func.func @transform_13(%arg0: i32) -> (i32, i32, i32) {
    %c0_i32 = arith.constant 0 : i32
    %c0_i32_0 = arith.constant 0 : i32
    %c0_i32_1 = arith.constant 0 : i32
    return %arg0, %c0_i32, %c0_i32_0 : i32, i32, i32
  }
  func.func @transform_14(%arg0: i32) -> (i32, i32, i32) {
    %c0_i32 = arith.constant 0 : i32
    %c0_i32_0 = arith.constant 0 : i32
    %c0_i32_1 = arith.constant 0 : i32
    return %arg0, %c0_i32, %c0_i32_0 : i32, i32, i32
  }
  func.func @transform_15(%arg0: i32) -> (i32, i32, i32) {
    %c0_i32 = arith.constant 0 : i32
    %c0_i32_0 = arith.constant 0 : i32
    %c0_i32_1 = arith.constant 0 : i32
    return %arg0, %c0_i32, %c0_i32_0 : i32, i32, i32
  }
}

module attributes {stable_mosaic.version = 11 : i64} {
  func.func @_mlp_kernel(%arg0: memref<2x1392xf32, #tpu.memory_space<vmem>>, %arg1: memref<1392x1024xbf16, #tpu.memory_space<vmem>>, %arg2: memref<1x1024xf32, #tpu.memory_space<vmem>>, %arg3: memref<1024x2xf32, #tpu.memory_space<vmem>>, %arg4: memref<1x2xf32, #tpu.memory_space<vmem>>, %arg5: memref<2x2xf32, #tpu.memory_space<vmem>>) attributes {dimension_semantics = [], scalar_prefetch = 0 : i64, scratch_operands = 0 : i64, tpu.core_type = #tpu.core_type<tc>} {
    %c0 = arith.constant 0 : index
    %c0_0 = arith.constant 0 : index
    %0 = vector.load %arg0[%c0, %c0_0] : memref<2x1392xf32, #tpu.memory_space<vmem>>, vector<2x1392xf32>
    %1 = arith.truncf %0 : vector<2x1392xf32> to vector<2x1392xbf16>
    %c0_1 = arith.constant 0 : index
    %c0_2 = arith.constant 0 : index
    %2 = vector.load %arg1[%c0_1, %c0_2] : memref<1392x1024xbf16, #tpu.memory_space<vmem>>, vector<1392x1024xbf16>
    %cst = arith.constant dense<0.000000e+00> : vector<2x1024xf32>
    %3 = tpu.matmul %1, %2, %cst {dimension_numbers = #tpu.dot_dimension_numbers<[1], [0], [0], [1], [0, 0, 1, 1], [], []>} : vector<2x1392xbf16>, vector<1392x1024xbf16>, vector<2x1024xf32> -> vector<2x1024xf32>
    %c0_3 = arith.constant 0 : index
    %c0_4 = arith.constant 0 : index
    %4 = vector.load %arg2[%c0_3, %c0_4] : memref<1x1024xf32, #tpu.memory_space<vmem>>, vector<1x1024xf32>
    %5 = vector.broadcast %4 : vector<1x1024xf32> to vector<2x1024xf32>
    %6 = arith.addf %3, %5 : vector<2x1024xf32>
    %cst_5 = arith.constant 0.000000e+00 : f32
    %7 = vector.broadcast %cst_5 : f32 to vector<2x1024xf32>
    %8 = arith.maximumf %6, %7 : vector<2x1024xf32>
    %c0_6 = arith.constant 0 : index
    %c0_7 = arith.constant 0 : index
    %9 = vector.load %arg3[%c0_6, %c0_7] : memref<1024x2xf32, #tpu.memory_space<vmem>>, vector<1024x2xf32>
    %cst_8 = arith.constant dense<0.000000e+00> : vector<2x2xf32>
    %10 = tpu.matmul %8, %9, %cst_8 {dimension_numbers = #tpu.dot_dimension_numbers<[1], [0], [0], [1], [0, 0, 1, 1], [], []>} : vector<2x1024xf32>, vector<1024x2xf32>, vector<2x2xf32> -> vector<2x2xf32>
    %c0_9 = arith.constant 0 : index
    %c0_10 = arith.constant 0 : index
    %11 = vector.load %arg4[%c0_9, %c0_10] : memref<1x2xf32, #tpu.memory_space<vmem>>, vector<1x2xf32>
    %12 = vector.broadcast %11 : vector<1x2xf32> to vector<2x2xf32>
    %13 = arith.addf %10, %12 : vector<2x2xf32>
    %c0_11 = arith.constant 0 : index
    %c0_12 = arith.constant 0 : index
    %14 = vector.load %arg5[%c0_11, %c0_12] : memref<2x2xf32, #tpu.memory_space<vmem>>, vector<2x2xf32>
    tpu.vector_store %arg5[%c0_11, %c0_12], %13 {strides = array<i32>} : memref<2x2xf32, #tpu.memory_space<vmem>>, vector<2x2xf32>,
    return
  }
}

</mosaic_0001>

<bundles_post_ra>
// kernel: anegcn2_forward.6
= control target key start
LH: loop header
LB: loop body
LE: loop exit
PB: predicated region body
PF: predicated region fallthrough
CT: control target
= control target key end

     0   :  { %s1132_s28 = smov 0   ;;  %s1368_s0 = inlined_call_operand.vmem [shape: f32[2,128,8], index: 0, kind: input, shape index: {}]   ;;  %s1369_s1 = inlined_call_operand.vmem [shape: f32[2,128,128], index: 1, kind: input, shape index: {}]   ;;  %s1370_s2 = inlined_call_operand.vmem [shape: f32[128,3], index: 2, kind: input, shape index: {}]   ;;  %s1371_s3 = inlined_call_operand.vmem [shape: f32[8,1], index: 3, kind: input, shape index: {}]   ;;  %s1372_s4 = inlined_call_operand.<no memory space> [shape: f32[1], index: 4, kind: input, shape index: {}]   ;;  %s1373_s5 = inlined_call_operand.<no memory space> [shape: f32[1], index: 5, kind: input, shape index: {}]   ;;  %s1374_s6 = inlined_call_operand.vmem [shape: f32[2,128,3], index: 6, kind: output, shape index: {0}]   ;;  %s1375_s7 = inlined_call_operand.vmem [shape: f32[2,128,1], index: 7, kind: output, shape index: {1}]  }
   0x1   :  { %13 = sst [smem:[#allocation2]] %s1372_s4 }
   0x2   :  { %14 = sst [smem:[#allocation3]] %s1373_s5 }
   0x3 LB: > { %s872_s29 = sadd.s32 4294967295, %s1084_s28   ;;  %p876_p0 = scmp.ge.s32.totalorder %s1084_s28, 1  ;;  %s1084_s28 = sphi %s1132_s28, %s20_s28  }
   0x4   : > { %p252_p1 = scmp.lt.s32.totalorder %s1084_s28, 3 }
   0x6   : > { %p253_p2 = pnand %p876_p0, %p252_p1 }
   0x7   : > { %v346_v0 = vld [vmem:[%s1370_s2] sm:$0xff] (!%p253_p2)  ;;  %v347_v1 = vld [vmem:[%s1370_s2 + $0x8] sm:$0xff] (!%p253_p2)  ;;  %v348_v2 = vld [vmem:[%s1370_s2 + $0x10] sm:$0xff] (!%p253_p2)  ;;  %p294_p3 = scmp.lt.s32.totalorder (!%p253_p2), %s872_s29, 1  ;;  %vm545_vm0 = vcmask (!%p253_p2), 64512   ;;  %s543_s23 = sld [smem:[#allocation3]] (!%p253_p2) }
   0x8   : > { %256 = sbr.rel (%p253_p2) target bundleno = 288 (0x120), region = 44  ;;  %v1038_v3 = vpack.c.bf16 (!%p253_p2), %v347_v1, %v346_v0  ;;  %v349_v4 = vld [vmem:[%s1370_s2 + $0x18] sm:$0xff] (!%p253_p2)  ;;  %v350_v6 = vld [vmem:[%s1370_s2 + $0x20] sm:$0xff] (!%p253_p2)  ;;  %v351_v7 = vld [vmem:[%s1370_s2 + $0x28] sm:$0xff] (!%p253_p2)  ;;  %vm755_vm1 = vcmask (!%p253_p2), 7168   ;;  %s362_s27 = sld [smem:[#allocation2]] (!%p253_p2) }
   0x9   : > { %v1042_v5 = vpack.c.bf16 (!%p253_p2), %v349_v4, %v348_v2  ;;  %v1046_v8 = vpack.c.bf16 (!%p253_p2), %v351_v7, %v350_v6  ;;  %v352_v9 = vld [vmem:[%s1370_s2 + $0x30] sm:$0xff] (!%p253_p2)  ;;  %v353_v10 = vld [vmem:[%s1370_s2 + $0x38] sm:$0xff] (!%p253_p2)  ;;  %v542_v11 = vld [vmem:[%s1371_s3] sm:$0xff] (!%p253_p2)  ;;  %vm525_vm2 = vcmask (!%p253_p2), 23552  }
   0xa   : > { %1039 = vmatprep.subr.bf16.mxu0 (!%p253_p2), %v1038_v3  ;;  %1012 = vmatprep.subr.mxu1 (!%p253_p2), %v542_v11  ;;  %v1050_v16 = vpack.c.bf16 (!%p253_p2), %v353_v10, %v352_v9  ;;  %v354_v17 = vld [vmem:[%s1370_s2 + $0x40] sm:$0xff] (!%p253_p2)  ;;  %v355_v18 = vld [vmem:[%s1370_s2 + $0x48] sm:$0xff] (!%p253_p2)  ;;  %v356_v22 = vld [vmem:[%s1370_s2 + $0x50] sm:$0xff] (!%p253_p2) }
   0xb   : > { %1041 = vmatpush3.bf16.msra.mxu0 (!%p253_p2), %v1038_v3  ;;  %1013 = vmatpush3.msra.mxu1 (!%p253_p2), %v542_v11  ;;  %v1054_v21 = vpack.c.bf16 (!%p253_p2), %v355_v18, %v354_v17  ;;  %v357_v23 = vld [vmem:[%s1370_s2 + $0x58] sm:$0xff] (!%p253_p2)  ;;  %v358_v27 = vld [vmem:[%s1370_s2 + $0x60] sm:$0xff] (!%p253_p2)  ;;  %v359_v28 = vld [vmem:[%s1370_s2 + $0x68] sm:$0xff] (!%p253_p2) }
   0xc   : > { %1043 = vmatprep.subr.bf16.mxu0 (!%p253_p2), %v1042_v5  ;;  %v1058_v26 = vpack.c.bf16 (!%p253_p2), %v357_v23, %v356_v22  ;;  %v1062_v31 = vpack.c.bf16 (!%p253_p2), %v359_v28, %v358_v27  ;;  %v360_v32 = vld [vmem:[%s1370_s2 + $0x70] sm:$0xff] (!%p253_p2)  ;;  %v361_v33 = vld [vmem:[%s1370_s2 + $0x78] sm:$0xff] (!%p253_p2) }
   0xd   : > { %v1066_v36 = vpack.c.bf16 (!%p253_p2), %v361_v33, %v360_v32  ;;  %v1253_v57 = vstv (!%p253_p2), %s543_s23 }
   0xf   : > { %s1377_s29 = smov (!%p294_p3, %s872_s29), 1  ;;  %1045 = vmatpush3.bf16.msra.mxu0 %v1042_v5 }
  0x10   : > { %s1158_s17 = sshll.u32 %s1377_s29, 7  ;;  %1047 = vmatprep.subr.bf16.mxu0 %v1046_v8 }
  0x11   : > { %s1173_s26 = scalar_lea.vmem %s1368_s0, %s1158_s17  ;;  %s1179_s4 = scalar_lea.vmem %s1369_s1, %s1158_s17 }
  0x12   : > { %v330_v12 = vld [vmem:[%s1173_s26] sm:$0xff]  ;;  %v331_v14 = vld [vmem:[%s1173_s26 + $0x8] sm:$0xff]  ;;  %v332_v15 = vld [vmem:[%s1173_s26 + $0x10] sm:$0xff]  ;;  %s1306_s30 = scalar_lea.vmem %s1374_s6, %s1158_s17 }
  0x13   : > { %v314_v13 = vld [vmem:[%s1179_s4] sm:$0xff]  ;;  %1014 = vmatprep.mubr.msk.f32.mxu1 %vm545_vm0, %v330_v12  ;;  %v333_v19 = vld [vmem:[%s1173_s26 + $0x18] sm:$0xff]  ;;  %1049 = vmatpush3.bf16.msra.mxu0 %v1046_v8  ;;  %v335_v24 = vld [vmem:[%s1173_s26 + $0x28] sm:$0xff] }
  0x14   : > { %988 = vmatprep.mubr.f32.mxu0 %v314_v13  ;;  %1015 = vmatmul.mubr.msk.f32.vlgmr.msra.gmra.mrb[0].mxu1 %vm545_vm0, %v331_v14  ;;  %v334_v20 = vld [vmem:[%s1173_s26 + $0x20] sm:$0xff]  ;;  %v336_v25 = vld [vmem:[%s1173_s26 + $0x30] sm:$0xff]  ;;  %v337_v29 = vld [vmem:[%s1173_s26 + $0x38] sm:$0xff] }
  0x15   : > { %1017 = vmatprep.mubr.msk.f32.mxu1 %vm545_vm0, %v332_v15  ;;  %1051 = vmatprep.subr.bf16.mxu0 %v1050_v16  ;;  %v338_v30 = vld [vmem:[%s1173_s26 + $0x40] sm:$0xff]  ;;  %v339_v34 = vld [vmem:[%s1173_s26 + $0x48] sm:$0xff]  ;;  %v340_v35 = vld [vmem:[%s1173_s26 + $0x50] sm:$0xff] }
  0x16   : > { %v341_v37 = vld [vmem:[%s1173_s26 + $0x58] sm:$0xff]  ;;  %v342_v38 = vld [vmem:[%s1173_s26 + $0x60] sm:$0xff]  ;;  %v343_v39 = vld [vmem:[%s1173_s26 + $0x68] sm:$0xff] }
  0x17   : > { %1053 = vmatpush3.bf16.msra.mxu0 %v1050_v16  ;;  %v344_v40 = vld [vmem:[%s1173_s26 + $0x70] sm:$0xff]  ;;  %v315_v41 = vld [vmem:[%s1179_s4 + $0x8] sm:$0xff]  ;;  %v345_v43 = vld [vmem:[%s1173_s26 + $0x78] sm:$0xff]  ;;  %s1260_s26 = scalar_lea.vmem %s1375_s7, %s1158_s17 }
  0x18   : > { %1018 = vmatmul.mubr.msk.f32.gmra.mrb[2].mxu1 %vm545_vm0, %v333_v19  ;;  %1055 = vmatprep.subr.bf16.mxu0 %v1054_v21  ;;  %v316_v42 = vld [vmem:[%s1179_s4 + $0x10] sm:$0xff]  ;;  %v317_v44 = vld [vmem:[%s1179_s4 + $0x18] sm:$0xff]  ;;  %v318_v45 = vld [vmem:[%s1179_s4 + $0x20] sm:$0xff] }
  0x19   : > { %1020 = vmatprep.mubr.msk.f32.mxu1 %vm545_vm0, %v334_v20  ;;  %v319_v46 = vld [vmem:[%s1179_s4 + $0x28] sm:$0xff]  ;;  %v320_v47 = vld [vmem:[%s1179_s4 + $0x30] sm:$0xff]  ;;  %v321_v48 = vld [vmem:[%s1179_s4 + $0x38] sm:$0xff] }
  0x1a   : > { %v322_v49 = vld [vmem:[%s1179_s4 + $0x40] sm:$0xff]  ;;  %v323_v50 = vld [vmem:[%s1179_s4 + $0x48] sm:$0xff]  ;;  %v324_v51 = vld [vmem:[%s1179_s4 + $0x50] sm:$0xff] }
  0x1b   : > { %1057 = vmatpush3.bf16.msra.mxu0 %v1054_v21  ;;  %v325_v52 = vld [vmem:[%s1179_s4 + $0x58] sm:$0xff]  ;;  %v326_v53 = vld [vmem:[%s1179_s4 + $0x60] sm:$0xff]  ;;  %v327_v54 = vld [vmem:[%s1179_s4 + $0x68] sm:$0xff] }
  0x1c   : > { %1021 = vmatmul.mubr.msk.f32.gmra.mrb[4].mxu1 %vm545_vm0, %v335_v24  ;;  %1059 = vmatprep.subr.bf16.mxu0 %v1058_v26  ;;  %v328_v55 = vld [vmem:[%s1179_s4 + $0x70] sm:$0xff]  ;;  %v329_v56 = vld [vmem:[%s1179_s4 + $0x78] sm:$0xff] }
  0x1d   : > { %1023 = vmatprep.mubr.msk.f32.mxu1 %vm545_vm0, %v336_v25 }
  0x1f   : > { %1061 = vmatpush3.bf16.msra.mxu0 %v1058_v26 }
  0x20   : > { %1024 = vmatmul.mubr.msk.f32.gmra.mrb[6].mxu1 %vm545_vm0, %v337_v29  ;;  %1063 = vmatprep.subr.bf16.mxu0 %v1062_v31  ;;  %v1293_v29 = vstv %s362_s27 }
  0x21   : > { %1026 = vmatprep.mubr.msk.f32.mxu1 %vm545_vm0, %v338_v30 }
  0x23   : > { %1065 = vmatpush3.bf16.msra.mxu0 %v1062_v31 }
  0x24   : > { %1027 = vmatmul.mubr.msk.f32.gmra.mrb[8].mxu1 %vm545_vm0, %v339_v34  ;;  %1067 = vmatprep.subr.bf16.mxu0 %v1066_v36 }
  0x25   : > { %1029 = vmatprep.mubr.msk.f32.mxu1 %vm545_vm0, %v340_v35 }
  0x27   : > { %1069 = vmatpush3.bf16.msra.mxu0 %v1066_v36 }
  0x28   : > { %1030 = vmatmul.mubr.msk.f32.gmra.mrb[10].mxu1 %vm545_vm0, %v341_v37 }
  0x29   : > { %1032 = vmatprep.mubr.msk.f32.mxu1 %vm545_vm0, %v342_v38 }
  0x2a   : > { %989 = vmatmul.mubr.f32.vlgmr.msra.gmra.mrb[0].mxu0 %v315_v41 }
  0x2b   : > { %991 = vmatprep.mubr.f32.mxu0 %v316_v42 }
  0x2c   : > { %1033 = vmatmul.mubr.msk.f32.gmra.mrb[12].mxu1 %vm545_vm0, %v343_v39 }
  0x2d   : > { %1035 = vmatprep.mubr.msk.f32.mxu1 %vm545_vm0, %v344_v40 }
  0x2e   : > { %992 = vmatmul.mubr.f32.gmra.mrb[2].mxu0 %v317_v44 }
  0x2f   : > { %994 = vmatprep.mubr.f32.mxu0 %v318_v45 }
  0x30   : > { %1036 = vmatmul.mubr.msk.f32.gmra.mrb[14].mxu1 %vm545_vm0, %v345_v43 }
  0x32   : > { %995 = vmatmul.mubr.f32.gmra.mrb[4].mxu0 %v319_v46 }
  0x33   : > { %997 = vmatprep.mubr.f32.mxu0 %v320_v47 }
  0x36   : > { %998 = vmatmul.mubr.f32.gmra.mrb[6].mxu0 %v321_v48 }
  0x37   : > { %1000 = vmatprep.mubr.f32.mxu0 %v322_v49 }
  0x3a   : > { %1001 = vmatmul.mubr.f32.gmra.mrb[8].mxu0 %v323_v50 }
  0x3b   : > { %1003 = vmatprep.mubr.f32.mxu0 %v324_v51 }
  0x3e   : > { %1004 = vmatmul.mubr.f32.gmra.mrb[10].mxu0 %v325_v52 }
  0x3f   : > { %1006 = vmatprep.mubr.f32.mxu0 %v326_v53 }
  0x42   : > { %1007 = vmatmul.mubr.f32.gmra.mrb[12].mxu0 %v327_v54 }
  0x43   : > { %1009 = vmatprep.mubr.f32.mxu0 %v328_v55 }
  0x46   : > { %1010 = vmatmul.mubr.f32.gmra.mrb[14].mxu0 %v329_v56 }
  0xe7   : > { %v1016_v58 = vpop.f32.mrb[0].mxu1 }
  0xe8   : > { %v666_v59 = vadd.f32 %v1016_v58, %v1253_v57  ;;  %v660_v60 = vpop.f32.mrb[1].mxu1 }
  0xe9   : > { %v661_v61 = vadd.f32 %v660_v60, %v1253_v57 }
  0xea   : > { %v740_v62 = vmax.f32 %v666_v59, 0.0 }
  0xeb   : > { %v739_v63 = vmax.f32 %v661_v61, 0.0  ;;  %v1019_v0 = vpop.f32.mrb[2].mxu1 }
  0xec   : > { %757 = vst.msk [vmem:[%s1260_s26 + $0x8] sm:$0xff] %vm755_vm1, %v740_v62  ;;  %v676_v1 = vadd.f32 %v1019_v0, %v1253_v57  ;;  %v670_v2 = vpop.f32.mrb[3].mxu1 }
  0xed   : > { %756 = vst.msk [vmem:[%s1260_s26] sm:$0xff] %vm755_vm1, %v739_v63  ;;  %v671_v3 = vadd.f32 %v670_v2, %v1253_v57 }
  0xee   : > { %v742_v4 = vmax.f32 %v676_v1, 0.0 }
  0xef   : > { %v741_v5 = vmax.f32 %v671_v3, 0.0  ;;  %v1022_v6 = vpop.f32.mrb[4].mxu1 }
  0xf0   : > { %759 = vst.msk [vmem:[%s1260_s26 + $0x18] sm:$0xff] %vm755_vm1, %v742_v4  ;;  %v686_v7 = vadd.f32 %v1022_v6, %v1253_v57  ;;  %v680_v8 = vpop.f32.mrb[5].mxu1 }
  0xf1   : > { %758 = vst.msk [vmem:[%s1260_s26 + $0x10] sm:$0xff] %vm755_vm1, %v741_v5  ;;  %v681_v9 = vadd.f32 %v680_v8, %v1253_v57 }
  0xf2   : > { %v744_v10 = vmax.f32 %v686_v7, 0.0 }
  0xf3   : > { %v743_v11 = vmax.f32 %v681_v9, 0.0  ;;  %v1025_v12 = vpop.f32.mrb[6].mxu1 }
  0xf4   : > { %761 = vst.msk [vmem:[%s1260_s26 + $0x28] sm:$0xff] %vm755_vm1, %v744_v10  ;;  %v696_v13 = vadd.f32 %v1025_v12, %v1253_v57  ;;  %v690_v14 = vpop.f32.mrb[7].mxu1 }
  0xf5   : > { %760 = vst.msk [vmem:[%s1260_s26 + $0x20] sm:$0xff] %vm755_vm1, %v743_v11  ;;  %v691_v15 = vadd.f32 %v690_v14, %v1253_v57 }
  0xf6   : > { %v746_v16 = vmax.f32 %v696_v13, 0.0 }
  0xf7   : > { %v745_v17 = vmax.f32 %v691_v15, 0.0  ;;  %v1028_v18 = vpop.f32.mrb[8].mxu1 }
  0xf8   : > { %763 = vst.msk [vmem:[%s1260_s26 + $0x38] sm:$0xff] %vm755_vm1, %v746_v16  ;;  %v706_v19 = vadd.f32 %v1028_v18, %v1253_v57  ;;  %v700_v20 = vpop.f32.mrb[9].mxu1 }
  0xf9   : > { %762 = vst.msk [vmem:[%s1260_s26 + $0x30] sm:$0xff] %vm755_vm1, %v745_v17  ;;  %v701_v21 = vadd.f32 %v700_v20, %v1253_v57 }
  0xfa   : > { %v748_v22 = vmax.f32 %v706_v19, 0.0 }
  0xfb   : > { %v747_v23 = vmax.f32 %v701_v21, 0.0  ;;  %v1031_v24 = vpop.f32.mrb[10].mxu1 }
  0xfc   : > { %765 = vst.msk [vmem:[%s1260_s26 + $0x48] sm:$0xff] %vm755_vm1, %v748_v22  ;;  %v716_v25 = vadd.f32 %v1031_v24, %v1253_v57  ;;  %v710_v26 = vpop.f32.mrb[11].mxu1 }
  0xfd   : > { %764 = vst.msk [vmem:[%s1260_s26 + $0x40] sm:$0xff] %vm755_vm1, %v747_v23  ;;  %v711_v27 = vadd.f32 %v710_v26, %v1253_v57  ;;  %v990_v34 = vpop.f32.mrb[0].mxu0 }
  0xfe   : > { %v750_v28 = vmax.f32 %v716_v25, 0.0  ;;  %v436_v36 = vadd.f32 %v990_v34, %v1293_v29  ;;  %v430_v37 = vpop.f32.mrb[1].mxu0 }
  0xff   : > { %v749_v30 = vmax.f32 %v711_v27, 0.0  ;;  %v1034_v31 = vpop.f32.mrb[12].mxu1  ;;  %v431_v39 = vadd.f32 %v430_v37, %v1293_v29 }
 0x100   : > { %767 = vst.msk [vmem:[%s1260_s26 + $0x58] sm:$0xff] %vm755_vm1, %v750_v28  ;;  %v726_v32 = vadd.f32 %v1034_v31, %v1253_v57  ;;  %v720_v33 = vpop.f32.mrb[13].mxu1  ;;  %v510_v42 = vmax.f32 %v436_v36, 0.0 }
 0x101   : > { %766 = vst.msk [vmem:[%s1260_s26 + $0x50] sm:$0xff] %vm755_vm1, %v749_v30  ;;  %v721_v35 = vadd.f32 %v720_v33, %v1253_v57  ;;  %v509_v45 = vmax.f32 %v431_v39, 0.0  ;;  %v993_v46 = vpop.f32.mrb[2].mxu0 }
 0x102   : > { %v752_v38 = vmax.f32 %v726_v32, 0.0  ;;  %527 = vst.msk [vmem:[%s1306_s30 + $0x8] sm:$0xff] %vm525_vm2, %v510_v42  ;;  %v446_v48 = vadd.f32 %v993_v46, %v1293_v29  ;;  %v440_v49 = vpop.f32.mrb[3].mxu0 }
 0x103   : > { %v751_v40 = vmax.f32 %v721_v35, 0.0  ;;  %v1037_v41 = vpop.f32.mrb[14].mxu1  ;;  %526 = vst.msk [vmem:[%s1306_s30] sm:$0xff] %vm525_vm2, %v509_v45  ;;  %v441_v51 = vadd.f32 %v440_v49, %v1293_v29 }
 0x104   : > { %769 = vst.msk [vmem:[%s1260_s26 + $0x68] sm:$0xff] %vm755_vm1, %v752_v38  ;;  %v736_v43 = vadd.f32 %v1037_v41, %v1253_v57  ;;  %v730_v44 = vpop.f32.mrb[15].mxu1  ;;  %v512_v53 = vmax.f32 %v446_v48, 0.0 }
 0x105   : > { %768 = vst.msk [vmem:[%s1260_s26 + $0x60] sm:$0xff] %vm755_vm1, %v751_v40  ;;  %v731_v47 = vadd.f32 %v730_v44, %v1253_v57  ;;  %v511_v54 = vmax.f32 %v441_v51, 0.0  ;;  %v996_v55 = vpop.f32.mrb[4].mxu0 }
 0x106   : > { %v754_v50 = vmax.f32 %v736_v43, 0.0  ;;  %529 = vst.msk [vmem:[%s1306_s30 + $0x18] sm:$0xff] %vm525_vm2, %v512_v53  ;;  %v456_v56 = vadd.f32 %v996_v55, %v1293_v29  ;;  %v450_v57 = vpop.f32.mrb[5].mxu0 }
 0x107   : > { %v753_v52 = vmax.f32 %v731_v47, 0.0  ;;  %528 = vst.msk [vmem:[%s1306_s30 + $0x10] sm:$0xff] %vm525_vm2, %v511_v54  ;;  %v451_v58 = vadd.f32 %v450_v57, %v1293_v29 }
 0x108   : > { %771 = vst.msk [vmem:[%s1260_s26 + $0x78] sm:$0xff] %vm755_vm1, %v754_v50  ;;  %v514_v59 = vmax.f32 %v456_v56, 0.0 }
 0x109   : > { %770 = vst.msk [vmem:[%s1260_s26 + $0x70] sm:$0xff] %vm755_vm1, %v753_v52  ;;  %v513_v60 = vmax.f32 %v451_v58, 0.0  ;;  %v999_v61 = vpop.f32.mrb[6].mxu0 }
 0x10a   : > { %531 = vst.msk [vmem:[%s1306_s30 + $0x28] sm:$0xff] %vm525_vm2, %v514_v59  ;;  %v466_v62 = vadd.f32 %v999_v61, %v1293_v29  ;;  %v460_v63 = vpop.f32.mrb[7].mxu0 }
 0x10b   : > { %530 = vst.msk [vmem:[%s1306_s30 + $0x20] sm:$0xff] %vm525_vm2, %v513_v60  ;;  %v461_v0 = vadd.f32 %v460_v63, %v1293_v29 }
 0x10c   : > { %v516_v1 = vmax.f32 %v466_v62, 0.0 }
 0x10d   : > { %v515_v2 = vmax.f32 %v461_v0, 0.0  ;;  %v1002_v3 = vpop.f32.mrb[8].mxu0 }
 0x10e   : > { %533 = vst.msk [vmem:[%s1306_s30 + $0x38] sm:$0xff] %vm525_vm2, %v516_v1  ;;  %v476_v4 = vadd.f32 %v1002_v3, %v1293_v29  ;;  %v470_v5 = vpop.f32.mrb[9].mxu0 }
 0x10f   : > { %532 = vst.msk [vmem:[%s1306_s30 + $0x30] sm:$0xff] %vm525_vm2, %v515_v2  ;;  %v471_v6 = vadd.f32 %v470_v5, %v1293_v29 }
 0x110   : > { %v518_v7 = vmax.f32 %v476_v4, 0.0 }
 0x111   : > { %v517_v8 = vmax.f32 %v471_v6, 0.0  ;;  %v1005_v9 = vpop.f32.mrb[10].mxu0 }
 0x112   : > { %535 = vst.msk [vmem:[%s1306_s30 + $0x48] sm:$0xff] %vm525_vm2, %v518_v7  ;;  %v486_v10 = vadd.f32 %v1005_v9, %v1293_v29  ;;  %v480_v11 = vpop.f32.mrb[11].mxu0 }
 0x113   : > { %534 = vst.msk [vmem:[%s1306_s30 + $0x40] sm:$0xff] %vm525_vm2, %v517_v8  ;;  %v481_v12 = vadd.f32 %v480_v11, %v1293_v29 }
 0x114   : > { %v520_v13 = vmax.f32 %v486_v10, 0.0 }
 0x115   : > { %v519_v14 = vmax.f32 %v481_v12, 0.0  ;;  %v1008_v15 = vpop.f32.mrb[12].mxu0 }
 0x116   : > { %537 = vst.msk [vmem:[%s1306_s30 + $0x58] sm:$0xff] %vm525_vm2, %v520_v13  ;;  %v496_v16 = vadd.f32 %v1008_v15, %v1293_v29  ;;  %v490_v17 = vpop.f32.mrb[13].mxu0 }
 0x117   : > { %536 = vst.msk [vmem:[%s1306_s30 + $0x50] sm:$0xff] %vm525_vm2, %v519_v14  ;;  %v491_v18 = vadd.f32 %v490_v17, %v1293_v29 }
 0x118   : > { %v522_v19 = vmax.f32 %v496_v16, 0.0 }
 0x119   : > { %v521_v20 = vmax.f32 %v491_v18, 0.0  ;;  %v1011_v21 = vpop.f32.mrb[14].mxu0 }
 0x11a   : > { %539 = vst.msk [vmem:[%s1306_s30 + $0x68] sm:$0xff] %vm525_vm2, %v522_v19  ;;  %v506_v22 = vadd.f32 %v1011_v21, %v1293_v29  ;;  %v500_v23 = vpop.f32.mrb[15].mxu0 }
 0x11b   : > { %538 = vst.msk [vmem:[%s1306_s30 + $0x60] sm:$0xff] %vm525_vm2, %v521_v20  ;;  %v501_v24 = vadd.f32 %v500_v23, %v1293_v29 }
 0x11c   : > { %v524_v25 = vmax.f32 %v506_v22, 0.0 }
 0x11d   : > { %v523_v26 = vmax.f32 %v501_v24, 0.0 }
 0x11e   : > { %541 = vst.msk [vmem:[%s1306_s30 + $0x78] sm:$0xff] %vm525_vm2, %v524_v25 }
 0x11f   : > { %540 = vst.msk [vmem:[%s1306_s30 + $0x70] sm:$0xff] %vm525_vm2, %v523_v26 }
 0x120 PF: > { %s20_s28 = sadd.s32 1, %s1084_s28  }
 0x121   : > { %p17_p4 = scmp.ge.s32.totalorder %s20_s28, 4  }
 0x123   :  { %19 = sbr.rel (!%p17_p4) target bundleno = 3 (0x3), region = 89 }

// kernel: anegcn2_forward.7
= control target key start
LH: loop header
LB: loop body
LE: loop exit
PB: predicated region body
PF: predicated region fallthrough
CT: control target
= control target key end

     0   :  { %17 = vsyncpa [#allocation3], 0  ;;  %s4380_s0 = inlined_call_operand.vmem [shape: f32[2,128,8], index: 0, kind: input, shape index: {}]   ;;  %s4381_s1 = inlined_call_operand.vmem [shape: f32[2,128,128], index: 1, kind: input, shape index: {}]   ;;  %s4382_s2 = inlined_call_operand.hbm [shape: f32[8,8], index: 2, kind: input, shape index: {}]   ;;  %s4383_s3 = inlined_call_operand.hbm [shape: f32[1,8], index: 3, kind: input, shape index: {}]   ;;  %s4384_s4 = inlined_call_operand.hbm [shape: f32[128,128], index: 4, kind: input, shape index: {}]   ;;  %s4385_s5 = inlined_call_operand.hbm [shape: f32[1,128], index: 5, kind: input, shape index: {}]   ;;  %s4386_s6 = inlined_call_operand.hbm [shape: f32[128,128], index: 6, kind: input, shape index: {}]   ;;  %s4387_s7 = inlined_call_operand.hbm [shape: f32[1,128], index: 7, kind: input, shape index: {}]   ;;  %s4388_s8 = inlined_call_operand.hbm [shape: f32[8,8], index: 8, kind: input, shape index: {}]   ;;  %s4389_s9 = inlined_call_operand.hbm [shape: f32[1,8], index: 9, kind: input, shape index: {}]   ;;  %s4390_s10 = inlined_call_operand.vmem [shape: f32[2,128,128], index: 10, kind: output, shape index: {0}]   ;;  %s4391_s11 = inlined_call_operand.vmem [shape: f32[2,128,8], index: 11, kind: output, shape index: {1}]  }
   0x1   :  { %18 = vsyncpa [#allocation5], 0 }
   0x2   :  { %19 = vsyncpa [#allocation8], 0 }
   0x3   :  { %20 = vsyncpa [#allocation11], 0 }
   0x4   :  { %21 = vsyncpa [#allocation14], 0  ;;  %s3716_s17 = smov 0  }
   0x5 LB: > { %s3646_s18 = smov [#allocation4]   ;;  %s3722_s20 = sadd.s32 4294967295, %s3644_s17   ;;  %s3644_s17 = sphi %s3716_s17, %s27_s17  }
   0x6   : > { %s328_s19 = sshll.u32 %s3646_s18, 4  ;;  %p2300_p0 = scmp.ge.s32.totalorder %s3644_s17, 1  ;;  %s3727_s19 = int_to_ptr.vmem [resolvable:$true] %s328_s19 }
   0x7   : > { %p304_p1 = scmp.lt.s32.totalorder %s3644_s17, 3  ;;  %p4392_p2 = scmp.eq.s32.totalorder %s3722_s20, 0 }
   0x8   : > { %s3647_s22 = smov [#allocation7]   ;;  %s3648_s24 = smov [#allocation10]  }
   0x9   : > { %p3729_p3 = pnand %p2300_p0, %p304_p1  ;;  %s352_s23 = sshll.u32 %s3647_s22, 4  ;;  %s3735_s23 = int_to_ptr.vmem [resolvable:$true] %s352_s23 }
   0xa   : > { %s376_s25 = sshll.u32 %s3648_s24, 4  ;;  %s3649_s27 = smov [#allocation2]   ;;  %s3743_s25 = int_to_ptr.vmem [resolvable:$true] %s376_s25 }
   0xb   : > { %s4394_s21 = scalar_select %p3729_p3, 1, 0 }
   0xc   : > { %p3257_p4 = pneg %p3729_p3  ;;  %s317_s28 = sshll.u32 %s3649_s27, 4  ;;  %s3745_s28 = int_to_ptr.vmem [resolvable:$true] %s317_s28 }
   0xd   : > { %s3394_s12 = scalar_lea.hbm %s4383_s3, 16 }
   0xe   : > { %p3739_p5 = pnand %p4392_p2, %p3257_p4  ;;  %p3395_p6 = scmp.ne.s32.totalorder %s4383_s3, %s3394_s12 }
   0xf   : > { %p3401_p10 = scmp.lt.u32.totalorder %s3394_s12, %s4383_s3 }
  0x10   : > { %p3755_p7 = pneg %p3739_p5 }
  0x12   : > { %p3397_p8 = pnand %p3755_p7, %p3395_p6 }
  0x14   : > { %p3398_p9 = pneg %p3397_p8 }
  0x16   : > { %p3403_p11 = pnand %p3401_p10, %p3398_p9 }
  0x18   : > { %3406 = shalt.err (!%p3403_p11)
}
  0x19   : > { %s3407_s22 = scalar_lea.vmem %s3727_s19, 16  ;;  %s3414_s24 = scalar_lea.vmem %s3727_s19, 32 }
  0x1a   : > { %p3408_p12 = scmp.ne.s32.totalorder %s3727_s19, %s3407_s22  ;;  %p3415_p1 = scmp.lt.s32.totalorder %s3727_s19, %s3727_s19 }
  0x1b   : > { %p3416_p4 = scmp.lt.s32.totalorder %s3414_s24, %s3407_s22 }
  0x1c   : > { %p3410_p13 = pnand %p3408_p12, %p3755_p7 }
  0x1d   : > { %p3417_p6 = por %p3416_p4, %p3415_p1 }
  0x1e   : > { %p3411_p0 = pneg %p3410_p13 }
  0x20   : > { %p3418_p8 = pnand %p3417_p6, %p3411_p0 }
  0x22   : > { %3421 = shalt.err (!%p3418_p8)
}
  0x23   : > { %3263 = dma.hbm_to_vmem [thread:$0]  (!%p3739_p5), %s4383_s3, 16, %s3727_s19, [#allocation5]  }
  0x24   : > { %s3422_s13 = scalar_lea.hbm %s4385_s5, 16 }
  0x25   : > { %p3423_p9 = scmp.ne.s32.totalorder %s4385_s5, %s3422_s13  ;;  %p3429_p12 = scmp.lt.u32.totalorder %s3422_s13, %s4385_s5 }
  0x27   : > { %p3425_p10 = pnand %p3423_p9, %p3755_p7 }
  0x29   : > { %p3426_p11 = pneg %p3425_p10 }
  0x2b   : > { %p3431_p13 = pnand %p3429_p12, %p3426_p11 }
  0x2d   : > { %3434 = shalt.err (!%p3431_p13)
}
  0x2e   : > { %s3435_s19 = scalar_lea.vmem %s3735_s23, 16  ;;  %s3442_s24 = scalar_lea.vmem %s3735_s23, 32 }
  0x2f   : > { %p3436_p0 = scmp.ne.s32.totalorder %s3735_s23, %s3435_s19  ;;  %p3443_p6 = scmp.lt.s32.totalorder %s3735_s23, %s3735_s23 }
  0x30   : > { %p3444_p8 = scmp.lt.s32.totalorder %s3442_s24, %s3435_s19 }
  0x31   : > { %p3438_p1 = pnand %p3436_p0, %p3755_p7 }
  0x32   : > { %p3445_p9 = por %p3444_p8, %p3443_p6 }
  0x33   : > { %p3439_p4 = pneg %p3438_p1 }
  0x35   : > { %p3446_p10 = pnand %p3445_p9, %p3439_p4 }
  0x37   : > { %3449 = shalt.err (!%p3446_p10)
}
  0x38   : > { %3269 = dma.hbm_to_vmem [thread:$0]  (!%p3739_p5), %s4385_s5, 16, %s3735_s23, [#allocation8]  }
  0x39   : > { %s3450_s13 = scalar_lea.hbm %s4387_s7, 16 }
  0x3a   : > { %p3451_p11 = scmp.ne.s32.totalorder %s4387_s7, %s3450_s13  ;;  %p3457_p0 = scmp.lt.u32.totalorder %s3450_s13, %s4387_s7 }
  0x3c   : > { %p3453_p12 = pnand %p3451_p11, %p3755_p7 }
  0x3e   : > { %p3454_p13 = pneg %p3453_p12 }
  0x40   : > { %p3459_p1 = pnand %p3457_p0, %p3454_p13 }
  0x42   : > { %3462 = shalt.err (!%p3459_p1)
}
  0x43   : > { %s3463_s23 = scalar_lea.vmem %s3743_s25, 16  ;;  %s3470_s19 = scalar_lea.vmem %s3743_s25, 32 }
  0x44   : > { %p3464_p4 = scmp.ne.s32.totalorder %s3743_s25, %s3463_s23  ;;  %p3471_p9 = scmp.lt.s32.totalorder %s3743_s25, %s3743_s25 }
  0x45   : > { %p3472_p10 = scmp.lt.s32.totalorder %s3470_s19, %s3463_s23 }
  0x46   : > { %p3466_p6 = pnand %p3464_p4, %p3755_p7 }
  0x47   : > { %p3473_p11 = por %p3472_p10, %p3471_p9 }
  0x48   : > { %p3467_p8 = pneg %p3466_p6 }
  0x4a   : > { %p3474_p12 = pnand %p3473_p11, %p3467_p8 }
  0x4c   : > { %3477 = shalt.err (!%p3474_p12)
}
  0x4d   : > { %3275 = dma.hbm_to_vmem [thread:$0]  (!%p3739_p5), %s4387_s7, 16, %s3743_s25, [#allocation11]  }
  0x4e   : > { %s3478_s12 = scalar_lea.hbm %s4382_s2, 128 }
  0x4f   : > { %p3479_p13 = scmp.ne.s32.totalorder %s4382_s2, %s3478_s12  ;;  %p3485_p4 = scmp.lt.u32.totalorder %s3478_s12, %s4382_s2 }
  0x51   : > { %p3481_p0 = pnand %p3479_p13, %p3755_p7 }
  0x53   : > { %p3482_p1 = pneg %p3481_p0 }
  0x55   : > { %p3487_p6 = pnand %p3485_p4, %p3482_p1 }
  0x57   : > { %3490 = shalt.err (!%p3487_p6)
}
  0x58   : > { %s3491_s25 = scalar_lea.vmem %s3745_s28, 128  ;;  %p3499_p11 = scmp.lt.s32.totalorder %s3745_s28, %s3745_s28 }
  0x59   : > { %p3492_p8 = scmp.ne.s32.totalorder %s3745_s28, %s3491_s25  ;;  %p3500_p12 = scmp.lt.s32.totalorder %s3491_s25, %s3491_s25 }
  0x5b   : > { %p3494_p9 = pnand %p3492_p8, %p3755_p7  ;;  %p3501_p13 = por %p3500_p12, %p3499_p11 }
  0x5d   : > { %p3495_p10 = pneg %p3494_p9 }
  0x5f   : > { %p3502_p0 = pnand %p3501_p13, %p3495_p10 }
  0x61   : > { %3505 = shalt.err (!%p3502_p0)
}
  0x62   : > { %3260 = dma.hbm_to_vmem [thread:$0]  (!%p3739_p5), %s4382_s2, 128, %s3745_s28, [#allocation3]  }
  0x63   : > { %s3650_s19 = smov [#allocation6]   ;;  %s3506_s30 = scalar_lea.hbm %s4384_s4, 2048 }
  0x64   : > { %s338_s24 = sshll.u32 %s3650_s19, 4  ;;  %p3507_p1 = scmp.ne.s32.totalorder %s4384_s4, %s3506_s30  ;;  %s339_s24 = int_to_ptr.vmem [resolvable:$true] %s338_s24 }
  0x65   : > { %p3513_p8 = scmp.lt.u32.totalorder %s3506_s30, %s4384_s4 }
  0x66   : > { %p3509_p4 = pnand %p3507_p1, %p3755_p7 }
  0x68   : > { %p3510_p6 = pneg %p3509_p4 }
  0x6a   : > { %p3515_p9 = pnand %p3513_p8, %p3510_p6 }
  0x6c   : > { %3518 = shalt.err (!%p3515_p9)
}
  0x6d   : > { %s3519_s28 = scalar_lea.vmem %s339_s24, 2048  ;;  %p3527_p13 = scmp.lt.s32.totalorder %s339_s24, %s339_s24 }
  0x6e   : > { %p3520_p10 = scmp.ne.s32.totalorder %s339_s24, %s3519_s28  ;;  %p3528_p0 = scmp.lt.s32.totalorder %s3519_s28, %s3519_s28 }
  0x70   : > { %p3522_p11 = pnand %p3520_p10, %p3755_p7  ;;  %p3529_p2 = por %p3528_p0, %p3527_p13 }
  0x72   : > { %p3523_p12 = pneg %p3522_p11 }
  0x74   : > { %p3530_p3 = pnand %p3529_p2, %p3523_p12 }
  0x76   : > { %3533 = shalt.err (!%p3530_p3)
}
  0x77   : > { %s3651_s18 = smov 128   ;;  %s3652_s25 = smov 8  }
  0x78   : > { %3266 = dma.hbm_to_vmem [thread:$0]  (!%p3739_p5), %s4384_s4, 2048, %s339_s24, [#allocation5], %s3651_s18, %s3651_s18, %s3652_s25  }
  0x79   : > { %s3653_s19 = smov [#allocation9]   ;;  %s3654_s29 = smov [#allocation12]  }
  0x7a   : > { %s362_s27 = sshll.u32 %s3653_s19, 4  ;;  %s387_s30 = sshll.u32 %s3654_s29, 4  ;;  %s363_s27 = int_to_ptr.vmem [resolvable:$true] %s362_s27  ;;  %s3866_s30 = int_to_ptr.vmem [resolvable:$true] %s387_s30 }
  0x7b   : > { %s3534_s14 = scalar_lea.hbm %s4386_s6, 2048 }
  0x7c   : > { %p3535_p2 = scmp.ne.s32.totalorder %s4386_s6, %s3534_s14  ;;  %p3541_p4 = scmp.lt.u32.totalorder %s3534_s14, %s4386_s6 }
  0x7e   : > { %p3537_p3 = pnand %p3535_p2, %p3755_p7 }
  0x80   : > { %p3538_p1 = pneg %p3537_p3 }
  0x82   : > { %p3543_p6 = pnand %p3541_p4, %p3538_p1 }
  0x84   : > { %3546 = shalt.err (!%p3543_p6)
}
  0x85   : > { %s3547_s23 = scalar_lea.vmem %s363_s27, 2048  ;;  %p3555_p11 = scmp.lt.s32.totalorder %s363_s27, %s363_s27 }
  0x86   : > { %p3548_p8 = scmp.ne.s32.totalorder %s363_s27, %s3547_s23  ;;  %p3556_p12 = scmp.lt.s32.totalorder %s3547_s23, %s3547_s23 }
  0x88   : > { %p3550_p9 = pnand %p3548_p8, %p3755_p7  ;;  %p3557_p13 = por %p3556_p12, %p3555_p11 }
  0x8a   : > { %p3551_p10 = pneg %p3550_p9 }
  0x8c   : > { %p3558_p0 = pnand %p3557_p13, %p3551_p10 }
  0x8e   : > { %3561 = shalt.err (!%p3558_p0)
}
  0x8f   : > { %3272 = dma.hbm_to_vmem [thread:$0]  (!%p3739_p5), %s4386_s6, 2048, %s363_s27, [#allocation8], %s3651_s18, %s3651_s18, %s3652_s25  }
  0x90   : > { %s3562_s14 = scalar_lea.hbm %s4388_s8, 128 }
  0x91   : > { %p3563_p2 = scmp.ne.s32.totalorder %s4388_s8, %s3562_s14  ;;  %p3569_p4 = scmp.lt.u32.totalorder %s3562_s14, %s4388_s8 }
  0x93   : > { %p3565_p3 = pnand %p3563_p2, %p3755_p7 }
  0x95   : > { %p3566_p1 = pneg %p3565_p3 }
  0x97   : > { %p3571_p6 = pnand %p3569_p4, %p3566_p1 }
  0x99   : > { %3574 = shalt.err (!%p3571_p6)
}
  0x9a   : > { %s3575_s18 = scalar_lea.vmem %s3866_s30, 128  ;;  %p3583_p11 = scmp.lt.s32.totalorder %s3866_s30, %s3866_s30 }
  0x9b   : > { %p3576_p8 = scmp.ne.s32.totalorder %s3866_s30, %s3575_s18  ;;  %p3584_p12 = scmp.lt.s32.totalorder %s3575_s18, %s3575_s18 }
  0x9d   : > { %p3578_p9 = pnand %p3576_p8, %p3755_p7  ;;  %p3585_p13 = por %p3584_p12, %p3583_p11 }
  0x9f   : > { %p3579_p10 = pneg %p3578_p9 }
  0xa1   : > { %p3586_p0 = pnand %p3585_p13, %p3579_p10 }
  0xa3   : > { %3589 = shalt.err (!%p3586_p0)
}
  0xa4   : > { %3278 = dma.hbm_to_vmem [thread:$0]  (!%p3739_p5), %s4388_s8, 128, %s3866_s30, [#allocation11]  }
  0xa5   : > { %s3655_s23 = smov [#allocation13]   ;;  %s3590_s13 = scalar_lea.hbm %s4389_s9, 16 }
  0xa6   : > { %s398_s19 = sshll.u32 %s3655_s23, 4  ;;  %p3591_p2 = scmp.ne.s32.totalorder %s4389_s9, %s3590_s13  ;;  %s399_s19 = int_to_ptr.vmem [resolvable:$true] %s398_s19 }
  0xa7   : > { %p3597_p4 = scmp.lt.u32.totalorder %s3590_s13, %s4389_s9 }
  0xa8   : > { %p3593_p3 = pnand %p3591_p2, %p3755_p7 }
  0xaa   : > { %p3594_p1 = pneg %p3593_p3 }
  0xac   : > { %p3599_p6 = pnand %p3597_p4, %p3594_p1 }
  0xae   : > { %3602 = shalt.err (!%p3599_p6)
}
  0xaf   : > { %s3603_s30 = scalar_lea.vmem %s399_s19, 16  ;;  %s3610_s24 = scalar_lea.vmem %s399_s19, 32 }
  0xb0   : > { %p3604_p8 = scmp.ne.s32.totalorder %s399_s19, %s3603_s30  ;;  %p3611_p11 = scmp.lt.s32.totalorder %s399_s19, %s399_s19 }
  0xb1   : > { %p3612_p12 = scmp.lt.s32.totalorder %s3610_s24, %s3603_s30 }
  0xb2   : > { %p3606_p9 = pnand %p3604_p8, %p3755_p7 }
  0xb3   : > { %p3613_p13 = por %p3612_p12, %p3611_p11 }
  0xb4   : > { %p3607_p10 = pneg %p3606_p9 }
  0xb6   : > { %p3614_p0 = pnand %p3613_p13, %p3607_p10 }
  0xb8   : > { %3617 = shalt.err (!%p3614_p0)
}
  0xb9   : > { %3281 = dma.hbm_to_vmem [thread:$0]  (!%p3739_p5), %s4389_s9, 16, %s399_s19, [#allocation14]  }
  0xba   : > { %p4397_p2 = scmp.ne.s32.totalorder %s4394_s21, 0 }
  0xbb   : > { %p4398_p3 = scmp.eq.s32.totalorder (!%p4397_p2), %s3722_s20, 0 }
  0xbc   : > { %427 = sbr.rel (%p4397_p2) target bundleno = 1796 (0x704), region = 60 }
  0xc3   : > { %3623 = dma.done.wait (%p4398_p3), [#allocation3], 128   ;;  %p4399_p7 = pmov %p4398_p3 }
  0xc4   : > { %p4400_p1 = pmov %p4398_p3 }
  0xc5   : > { %3625 = vsyncadd (%p4399_p7), [#allocation3], 4294967168 }
  0xc6   : > { %3627 = dma.done.wait (%p4400_p1), [#allocation5], 2064   ;;  %p4401_p4 = pmov %p4400_p1 }
  0xc7   : > { %p4402_p6 = pmov %p4400_p1 }
  0xc8   : > { %3629 = vsyncadd (%p4401_p4), [#allocation5], 4294965232 }
  0xc9   : > { %3631 = dma.done.wait (%p4402_p6), [#allocation8], 2064   ;;  %p4403_p5 = pmov %p4400_p1 }
  0xca   : > { %p4404_p8 = pmov %p4400_p1 }
  0xcb   : > { %3633 = vsyncadd (%p4403_p5), [#allocation8], 4294965232 }
  0xcc   : > { %3635 = dma.done.wait (%p4404_p8), [#allocation11], 144   ;;  %p4405_p9 = pmov %p4400_p1 }
  0xcd   : > { %p4406_p10 = pmov %p4400_p1 }
  0xce   : > { %3637 = vsyncadd (%p4405_p9), [#allocation11], 4294967152 }
  0xcf   : > { %3639 = dma.done.wait (%p4406_p10), [#allocation14], 16   ;;  %p4407_p11 = pmov %p4400_p1 }
  0xd0   : > { %p505_p12 = scmp.lt.s32.totalorder %s3722_s20, 1  ;;  %vm565_vm0 = vcmask 64512   ;;  %v557_v0 = vld [vmem:[#allocation2] sm:$0xff]  ;;  %v2327_v18 = vld [vmem:[#allocation4] ss:$0 sm:$0xff]  ;;  %v1115_v60 = vld [vmem:[#allocation6] sm:$0xff] }
  0xd1   : > { %3641 = vsyncadd (%p4407_p11), [#allocation14], 4294967280  ;;  %2627 = vmatprep.subr.mxu0 %v557_v0  ;;  %v1116_v61 = vld [vmem:[#allocation6 + $0x8] sm:$0xff]  ;;  %v1117_v62 = vld [vmem:[#allocation6 + $0x10] sm:$0xff] }
  0xd2   : > { %s4411_s20 = smov (!%p505_p12, %s3722_s20), 1  ;;  %2628 = vmatpush3.msra.mxu0 %v557_v0  ;;  %vm3995_vm1 = vmpackc.low %vm565_vm0, %vm565_vm0  ;;  %v3063_v63 = vpack.c.bf16 %v1116_v61, %v1115_v60  ;;  %v1118_v0 = vld [vmem:[#allocation6 + $0x18] sm:$0xff] }
  0xd3   : > { %s3951_s21 = sshll.u32 %s4411_s20, 7 }
  0xd4   : > { %s3957_s27 = scalar_lea.vmem %s4380_s0, %s3951_s21  ;;  %3064 = vmatprep.subr.bf16.mxu0 %v3063_v63  ;;  %s4134_s19 = scalar_lea.vmem %s4381_s1, %s3951_s21 }
  0xd5   : > { %v525_v1 = vld [vmem:[%s3957_s27] sm:$0xff]  ;;  %v526_v2 = vld [vmem:[%s3957_s27 + $0x8] sm:$0xff]  ;;  %v527_v4 = vld [vmem:[%s3957_s27 + $0x10] sm:$0xff]  ;;  %s4321_s13 = scalar_lea.vmem %s4390_s10, %s3951_s21  ;;  %s4343_s28 = scalar_lea.vmem %s4391_s11, %s3951_s21 }
  0xd6   : > { %2629 = vmatprep.mubr.msk.f32.mxu0 %vm565_vm0, %v525_v1  ;;  %v3962_v3 = vpack.c.bf16 %v526_v2, %v525_v1  ;;  %v528_v5 = vld [vmem:[%s3957_s27 + $0x18] sm:$0xff]  ;;  %v529_v6 = vld [vmem:[%s3957_s27 + $0x20] sm:$0xff]  ;;  %v530_v7 = vld [vmem:[%s3957_s27 + $0x28] sm:$0xff]  ;;  %v3067_v1 = vpack.c.bf16 %v1118_v0, %v1117_v62 }
  0xd7   : > { %2630 = vmatmul.mubr.msk.f32.vlgmr.msra.gmra.mrb[0].mxu0 %vm565_vm0, %v526_v2  ;;  %v531_v8 = vld [vmem:[%s3957_s27 + $0x30] sm:$0xff]  ;;  %v532_v9 = vld [vmem:[%s3957_s27 + $0x38] sm:$0xff]  ;;  %v533_v10 = vld [vmem:[%s3957_s27 + $0x40] sm:$0xff] }
  0xd8   : > { %2632 = vmatprep.mubr.msk.f32.mxu0 %vm565_vm0, %v527_v4  ;;  %v534_v11 = vld [vmem:[%s3957_s27 + $0x48] sm:$0xff]  ;;  %v535_v12 = vld [vmem:[%s3957_s27 + $0x50] sm:$0xff]  ;;  %v536_v13 = vld [vmem:[%s3957_s27 + $0x58] sm:$0xff]  ;;  %3066 = vmatpush3.bf16.msra.mxu0 %v3063_v63 }
  0xd9   : > { %v537_v14 = vld [vmem:[%s3957_s27 + $0x60] sm:$0xff]  ;;  %v538_v15 = vld [vmem:[%s3957_s27 + $0x68] sm:$0xff]  ;;  %v539_v16 = vld [vmem:[%s3957_s27 + $0x70] sm:$0xff]  ;;  %3068 = vmatprep.subr.bf16.mxu0 %v3067_v1 }
  0xda   : > { %v540_v17 = vld [vmem:[%s3957_s27 + $0x78] sm:$0xff]  ;;  %v1119_v2 = vld [vmem:[#allocation6 + $0x20] sm:$0xff]  ;;  %v545_v61 = vld [vmem:[%s4134_s19 + $0x20] sm:$0xff] }
  0xdb   : > { %2633 = vmatmul.mubr.msk.f32.gmra.mrb[2].mxu0 %vm565_vm0, %v528_v5  ;;  %v1120_v4 = vld [vmem:[#allocation6 + $0x28] sm:$0xff]  ;;  %v546_v62 = vld [vmem:[%s4134_s19 + $0x28] sm:$0xff] }
  0xdc   : > { %2635 = vmatprep.mubr.msk.f32.mxu0 %vm565_vm0, %v529_v6  ;;  %v3071_v5 = vpack.c.bf16 %v1120_v4, %v1119_v2  ;;  %3070 = vmatpush3.bf16.msra.mxu0 %v3067_v1  ;;  %v952_v6 = vlaneseq  ;;  %v3135_v63 = vpack.c.bf16 %v546_v62, %v545_v61  ;;  %v547_v0 = vld [vmem:[%s4134_s19 + $0x30] sm:$0xff]  ;;  %v548_v1 = vld [vmem:[%s4134_s19 + $0x38] sm:$0xff]  ;;  %v549_v4 = vld [vmem:[%s4134_s19 + $0x40] sm:$0xff] }
  0xdd   : > { %v3139_v2 = vpack.c.bf16 %v548_v1, %v547_v0 }
  0xde   : > { %3072 = vmatprep.subr.bf16.mxu0 %v3071_v5 }
  0xdf   : > { %2636 = vmatmul.mubr.msk.f32.gmra.mrb[4].mxu0 %vm565_vm0, %v530_v7  ;;  %v4047_v7 = vand.u32 127, %v952_v6 }
  0xe0   : > { %2638 = vmatprep.mubr.msk.f32.mxu0 %vm565_vm0, %v531_v8  ;;  %3074 = vmatpush3.bf16.msra.mxu0 %v3071_v5  ;;  %v550_v5 = vld [vmem:[%s4134_s19 + $0x48] sm:$0xff] }
  0xe1   : > { %vm954_vm2 = vcmp.lt.s32.totalorder %v4047_v7, 116  ;;  %v3143_v6 = vpack.c.bf16 %v550_v5, %v549_v4  ;;  %v551_v7 = vld [vmem:[%s4134_s19 + $0x50] sm:$0xff] }
  0xe3   : > { %2639 = vmatmul.mubr.msk.f32.gmra.mrb[6].mxu0 %vm565_vm0, %v532_v9 }
  0xe4   : > { %2641 = vmatprep.mubr.msk.f32.mxu0 %vm565_vm0, %v533_v10 }
  0xe7   : > { %2642 = vmatmul.mubr.msk.f32.gmra.mrb[8].mxu0 %vm565_vm0, %v534_v11 }
  0xe8   : > { %2644 = vmatprep.mubr.msk.f32.mxu0 %vm565_vm0, %v535_v12 }
  0xeb   : > { %2645 = vmatmul.mubr.msk.f32.gmra.mrb[10].mxu0 %vm565_vm0, %v536_v13 }
  0xec   : > { %2647 = vmatprep.mubr.msk.f32.mxu0 %vm565_vm0, %v537_v14 }
  0xef   : > { %2648 = vmatmul.mubr.msk.f32.gmra.mrb[12].mxu0 %vm565_vm0, %v538_v15 }
  0xf0   : > { %2650 = vmatprep.mubr.msk.f32.mxu0 %vm565_vm0, %v539_v16 }
  0xf3   : > { %2651 = vmatmul.mubr.msk.f32.gmra.mrb[14].mxu0 %vm565_vm0, %v540_v17 }
 0x1aa   : > { %v2631_v19 = vpop.f32.mrb[0].mxu0 }
 0x1ab   : > { %v686_v20 = vadd.f32 %v2631_v19, %v2327_v18  ;;  %v680_v21 = vpop.f32.mrb[1].mxu0 }
 0x1ac   : > { %v681_v22 = vadd.f32 %v2327_v18, %v680_v21 }
 0x1ae   : > { %2685 = vmatprep.mubr.msk.f32.mxu1 %vm565_vm0, %v681_v22  ;;  %v3015_v24 = vpack.c.bf16 %v686_v20, %v681_v22  ;;  %v2634_v25 = vpop.f32.mrb[2].mxu0 }
 0x1af   : > { %v696_v26 = vadd.f32 %v2634_v25, %v2327_v18  ;;  %v690_v27 = vpop.f32.mrb[3].mxu0  ;;  %v1121_v25 = vld [vmem:[#allocation6 + $0x30] sm:$0xff] }
 0x1b0   : > { %3017 = vmatprep.subr.msk.bf16.mxu1 %vm3995_vm1, %v3015_v24  ;;  %v691_v28 = vadd.f32 %v2327_v18, %v690_v27 }
 0x1b1   : > { %3020 = vmatpush3.bf16.xpose.msk.msra.mxu1 %vm3995_vm1, %v3015_v24 }
 0x1b2   : > { %v3021_v29 = vpack.c.bf16 %v696_v26, %v691_v28  ;;  %v2637_v30 = vpop.f32.mrb[4].mxu0 }
 0x1b3   : > { %v706_v31 = vadd.f32 %v2637_v30, %v2327_v18  ;;  %v700_v32 = vpop.f32.mrb[5].mxu0 }
 0x1b4   : > { %3023 = vmatprep.subr.msk.bf16.mxu1 %vm3995_vm1, %v3021_v29  ;;  %v701_v33 = vadd.f32 %v2327_v18, %v700_v32 }
 0x1b6   : > { %v3027_v34 = vpack.c.bf16 %v706_v31, %v701_v33  ;;  %v2640_v35 = vpop.f32.mrb[6].mxu0 }
 0x1b7   : > { %v716_v36 = vadd.f32 %v2640_v35, %v2327_v18  ;;  %v710_v37 = vpop.f32.mrb[7].mxu0  ;;  %v1124_v35 = vld [vmem:[#allocation6 + $0x48] sm:$0xff] }
 0x1b8   : > { %v711_v38 = vadd.f32 %v2327_v18, %v710_v37 }
 0x1b9   : > { %3026 = vmatpush3.bf16.xpose.msk.msra.mxu1 %vm3995_vm1, %v3021_v29 }
 0x1ba   : > { %3029 = vmatprep.subr.msk.bf16.mxu1 %vm3995_vm1, %v3027_v34  ;;  %v3033_v39 = vpack.c.bf16 %v716_v36, %v711_v38  ;;  %v2643_v40 = vpop.f32.mrb[8].mxu0 }
 0x1bb   : > { %v726_v41 = vadd.f32 %v2643_v40, %v2327_v18  ;;  %v720_v42 = vpop.f32.mrb[9].mxu0 }
 0x1bc   : > { %v721_v43 = vadd.f32 %v2327_v18, %v720_v42  ;;  %v1126_v42 = vld [vmem:[#allocation6 + $0x58] sm:$0xff] }
 0x1be   : > { %v3039_v44 = vpack.c.bf16 %v726_v41, %v721_v43  ;;  %v2646_v45 = vpop.f32.mrb[10].mxu0 }
 0x1bf   : > { %v736_v46 = vadd.f32 %v2646_v45, %v2327_v18  ;;  %v730_v47 = vpop.f32.mrb[11].mxu0 }
 0x1c0   : > { %v731_v48 = vadd.f32 %v2327_v18, %v730_v47 }
 0x1c1   : > { %3032 = vmatpush3.bf16.xpose.msk.msra.mxu1 %vm3995_vm1, %v3027_v34  ;;  %v1123_v34 = vld [vmem:[#allocation6 + $0x40] sm:$0xff] }
 0x1c2   : > { %3035 = vmatprep.subr.msk.bf16.mxu1 %vm3995_vm1, %v3033_v39  ;;  %v3045_v49 = vpack.c.bf16 %v736_v46, %v731_v48  ;;  %v2649_v50 = vpop.f32.mrb[12].mxu0 }
 0x1c3   : > { %v746_v51 = vadd.f32 %v2649_v50, %v2327_v18  ;;  %v740_v52 = vpop.f32.mrb[13].mxu0 }
 0x1c4   : > { %v741_v53 = vadd.f32 %v2327_v18, %v740_v52  ;;  %v1129_v52 = vld [vmem:[#allocation6 + $0x70] sm:$0xff] }
 0x1c6   : > { %v3051_v54 = vpack.c.bf16 %v746_v51, %v741_v53  ;;  %v2652_v55 = vpop.f32.mrb[14].mxu0 }
 0x1c7   : > { %v756_v56 = vadd.f32 %v2652_v55, %v2327_v18  ;;  %v750_v57 = vpop.f32.mrb[15].mxu0  ;;  %v541_v55 = vld [vmem:[%s4134_s19] sm:$0xff] }
 0x1c8   : > { %v751_v58 = vadd.f32 %v2327_v18, %v750_v57  ;;  %2741 = vmatprep.mubr.f32.mxu0 %v541_v55 }
 0x1c9   : > { %3038 = vmatpush3.bf16.xpose.msk.msra.mxu1 %vm3995_vm1, %v3033_v39 }
 0x1ca   : > { %3041 = vmatprep.subr.msk.bf16.mxu1 %vm3995_vm1, %v3039_v44  ;;  %v3057_v59 = vpack.c.bf16 %v756_v56, %v751_v58 }
 0x1d1   : > { %3044 = vmatpush3.bf16.xpose.msk.msra.mxu1 %vm3995_vm1, %v3039_v44 }
 0x1d2   : > { %3047 = vmatprep.subr.msk.bf16.mxu1 %vm3995_vm1, %v3045_v49 }
 0x1d9   : > { %3050 = vmatpush3.bf16.xpose.msk.msra.mxu1 %vm3995_vm1, %v3045_v49  ;;  %v1128_v49 = vld [vmem:[#allocation6 + $0x68] sm:$0xff] }
 0x1da   : > { %3053 = vmatprep.subr.msk.bf16.mxu1 %vm3995_vm1, %v3051_v54 }
 0x1e1   : > { %3056 = vmatpush3.bf16.xpose.msk.msra.mxu1 %vm3995_vm1, %v3051_v54 }
 0x1e2   : > { %3059 = vmatprep.subr.msk.bf16.mxu1 %vm3995_vm1, %v3057_v59 }
 0x1e9   : > { %3062 = vmatpush3.bf16.xpose.msk.msra.mxu1 %vm3995_vm1, %v3057_v59  ;;  %v544_v59 = vld [vmem:[%s4134_s19 + $0x18] sm:$0xff] }
 0x1f0   : > { %2686 = vmatmul.mubr.msk.f32.vlgmr.msra.gmra.mrb[0].mxu1 %vm565_vm0, %v686_v20 }
 0x1f1   : > { %2688 = vmatprep.mubr.msk.f32.mxu1 %vm565_vm0, %v691_v28 }
 0x1f4   : > { %2689 = vmatmul.mubr.msk.f32.gmra.mrb[2].mxu1 %vm565_vm0, %v696_v26  ;;  %v1122_v26 = vld [vmem:[#allocation6 + $0x38] sm:$0xff] }
 0x1f5   : > { %2691 = vmatprep.mubr.msk.f32.mxu1 %vm565_vm0, %v701_v33  ;;  %v3075_v29 = vpack.c.bf16 %v1122_v26, %v1121_v25 }
 0x1f7   : > { %3076 = vmatprep.subr.bf16.mxu0 %v3075_v29 }
 0x1f8   : > { %2692 = vmatmul.mubr.msk.f32.gmra.mrb[4].mxu1 %vm565_vm0, %v706_v31  ;;  %3078 = vmatpush3.bf16.msra.mxu0 %v3075_v29 }
 0x1f9   : > { %2694 = vmatprep.mubr.msk.f32.mxu1 %vm565_vm0, %v711_v38 }
 0x1fc   : > { %2695 = vmatmul.mubr.msk.f32.gmra.mrb[6].mxu1 %vm565_vm0, %v716_v36  ;;  %v3079_v36 = vpack.c.bf16 %v1124_v35, %v1123_v34 }
 0x1fd   : > { %2697 = vmatprep.mubr.msk.f32.mxu1 %vm565_vm0, %v721_v43 }
 0x1fe   : > { %3080 = vmatprep.subr.bf16.mxu0 %v3079_v36 }
 0x1ff   : > { %3082 = vmatpush3.bf16.msra.mxu0 %v3079_v36 }
 0x200   : > { %2698 = vmatmul.mubr.msk.f32.gmra.mrb[8].mxu1 %vm565_vm0, %v726_v41  ;;  %v1125_v41 = vld [vmem:[#allocation6 + $0x50] sm:$0xff] }
 0x201   : > { %2700 = vmatprep.mubr.msk.f32.mxu1 %vm565_vm0, %v731_v48  ;;  %v3083_v43 = vpack.c.bf16 %v1126_v42, %v1125_v41  ;;  %v1127_v48 = vld [vmem:[#allocation6 + $0x60] sm:$0xff] }
 0x202   : > { %v3087_v50 = vpack.c.bf16 %v1128_v49, %v1127_v48 }
 0x203   : > { %3084 = vmatprep.subr.bf16.mxu0 %v3083_v43 }
 0x204   : > { %2701 = vmatmul.mubr.msk.f32.gmra.mrb[10].mxu1 %vm565_vm0, %v736_v46  ;;  %3086 = vmatpush3.bf16.msra.mxu0 %v3083_v43 }
 0x205   : > { %2703 = vmatprep.mubr.msk.f32.mxu1 %vm565_vm0, %v741_v53  ;;  %3088 = vmatprep.subr.bf16.mxu0 %v3087_v50  ;;  %v1130_v53 = vld [vmem:[#allocation6 + $0x78] sm:$0xff] }
 0x206   : > { %v3091_v54 = vpack.c.bf16 %v1130_v53, %v1129_v52 }
 0x208   : > { %2704 = vmatmul.mubr.msk.f32.gmra.mrb[12].mxu1 %vm565_vm0, %v746_v51  ;;  %3090 = vmatpush3.bf16.msra.mxu0 %v3087_v50 }
 0x209   : > { %2706 = vmatprep.mubr.msk.f32.mxu1 %vm565_vm0, %v751_v58  ;;  %3092 = vmatprep.subr.bf16.mxu0 %v3091_v54  ;;  %v543_v58 = vld [vmem:[%s4134_s19 + $0x10] sm:$0xff] }
 0x20a   : > { %v3131_v60 = vpack.c.bf16 %v544_v59, %v543_v58 }
 0x20c   : > { %2707 = vmatmul.mubr.msk.f32.gmra.mrb[14].mxu1 %vm565_vm0, %v756_v56  ;;  %3094 = vmatpush3.bf16.msra.mxu0 %v3091_v54  ;;  %v542_v56 = vld [vmem:[%s4134_s19 + $0x8] sm:$0xff] }
 0x20d   : > { %v3127_v57 = vpack.c.bf16 %v542_v56, %v541_v55 }
 0x20f   : > { %2742 = vmatmul.mubr.f32.vlgmr.msra.gmra.mrb[16].mxu0 %v542_v56  ;;  %3128 = vmatprep.subr.bf16.mxu1 %v3127_v57 }
 0x210   : > { %2744 = vmatprep.mubr.f32.mxu0 %v543_v58  ;;  %3130 = vmatpush3.bf16.msra.mxu1 %v3127_v57 }
 0x211   : > { %3132 = vmatprep.subr.bf16.mxu1 %v3131_v60 }
 0x213   : > { %2745 = vmatmul.mubr.f32.gmra.mrb[18].mxu0 %v544_v59 }
 0x214   : > { %2747 = vmatprep.mubr.f32.mxu0 %v545_v61  ;;  %3134 = vmatpush3.bf16.msra.mxu1 %v3131_v60 }
 0x215   : > { %3136 = vmatprep.subr.bf16.mxu1 %v3135_v63 }
 0x217   : > { %2748 = vmatmul.mubr.f32.gmra.mrb[20].mxu0 %v546_v62 }
 0x218   : > { %2750 = vmatprep.mubr.f32.mxu0 %v547_v0  ;;  %3138 = vmatpush3.bf16.msra.mxu1 %v3135_v63 }
 0x219   : > { %3140 = vmatprep.subr.bf16.mxu1 %v3139_v2 }
 0x21b   : > { %2751 = vmatmul.mubr.f32.gmra.mrb[22].mxu0 %v548_v1 }
 0x21c   : > { %2753 = vmatprep.mubr.f32.mxu0 %v549_v4  ;;  %3142 = vmatpush3.bf16.msra.mxu1 %v3139_v2 }
 0x21d   : > { %3144 = vmatprep.subr.bf16.mxu1 %v3143_v6 }
 0x21f   : > { %2754 = vmatmul.mubr.f32.gmra.mrb[24].mxu0 %v550_v5 }
 0x220   : > { %2756 = vmatprep.mubr.f32.mxu0 %v551_v7  ;;  %3146 = vmatpush3.bf16.msra.mxu1 %v3143_v6 }
 0x2c3   : > { %v2687_v8 = vpop.f32.mrb[0].mxu1 }
 0x2c4   : > { %v873_v9 = vpop.f32.mrb[1].mxu1  ;;  %v4057_v13 = vsel %vm954_vm2, %v2687_v8, -1e+30  ;;  %v552_v8 = vld [vmem:[%s4134_s19 + $0x58] sm:$0xff] }
 0x2c5   : > { %v4052_v10 = vsel %vm954_vm2, %v873_v9, -1e+30  ;;  %v3147_v9 = vpack.c.bf16 %v552_v8, %v551_v7  ;;  %2757 = vmatmul.mubr.f32.gmra.mrb[26].mxu0 %v552_v8 }
 0x2c6   : > { %971 = vmax.xlane.f32.xlu0 %v4052_v10 }
 0x2c7   : > { %v2690_v11 = vpop.f32.mrb[2].mxu1  ;;  %3148 = vmatprep.subr.bf16.mxu1 %v3147_v9 }
 0x2c8   : > { %v883_v12 = vpop.f32.mrb[3].mxu1  ;;  %v4067_v17 = vsel %vm954_vm2, %v2690_v11, -1e+30  ;;  %v553_v11 = vld [vmem:[%s4134_s19 + $0x60] sm:$0xff]  ;;  %3150 = vmatpush3.bf16.msra.mxu1 %v3147_v9 }
 0x2c9   : > { %v4061_v14 = vsel %vm954_vm2, %v883_v12, -1e+30  ;;  %v554_v12 = vld [vmem:[%s4134_s19 + $0x68] sm:$0xff]  ;;  %2759 = vmatprep.mubr.f32.mxu0 %v553_v11 }
 0x2ca   : > { %973 = vmax.xlane.f32.xlu0 %v4057_v13  ;;  %975 = vmax.xlane.f32.xlu1 %v4061_v14 }
 0x2cb   : > { %v2693_v15 = vpop.f32.mrb[4].mxu1  ;;  %2760 = vmatmul.mubr.f32.gmra.mrb[28].mxu0 %v554_v12 }
 0x2cc   : > { %v893_v16 = vpop.f32.mrb[5].mxu1  ;;  %v4077_v21 = vsel %vm954_vm2, %v2693_v15, -1e+30  ;;  %v3151_v15 = vpack.c.bf16 %v554_v12, %v553_v11 }
 0x2cd   : > { %v4071_v18 = vsel %vm954_vm2, %v893_v16, -1e+30  ;;  %v555_v16 = vld [vmem:[%s4134_s19 + $0x70] sm:$0xff] }
 0x2ce   : > { %977 = vmax.xlane.f32.xlu1 %v4067_v17  ;;  %979 = vmax.xlane.f32.xlu0 %v4071_v18 }
 0x2cf   : > { %v2696_v19 = vpop.f32.mrb[6].mxu1  ;;  %2762 = vmatprep.mubr.f32.mxu0 %v555_v16  ;;  %3152 = vmatprep.subr.bf16.mxu1 %v3151_v15 }
 0x2d0   : > { %v903_v20 = vpop.f32.mrb[7].mxu1  ;;  %v4087_v27 = vsel %vm954_vm2, %v2696_v19, -1e+30  ;;  %v556_v19 = vld [vmem:[%s4134_s19 + $0x78] sm:$0xff]  ;;  %3154 = vmatpush3.bf16.msra.mxu1 %v3151_v15 }
 0x2d1   : > { %v4081_v22 = vsel %vm954_vm2, %v903_v20, -1e+30  ;;  %v3155_v20 = vpack.c.bf16 %v556_v19, %v555_v16  ;;  %2763 = vmatmul.mubr.f32.gmra.mrb[30].mxu0 %v556_v19 }
 0x2d2   : > { %981 = vmax.xlane.f32.xlu1 %v4077_v21  ;;  %983 = vmax.xlane.f32.xlu0 %v4081_v22 }
 0x2d3   : > { %v2699_v23 = vpop.f32.mrb[8].mxu1  ;;  %3156 = vmatprep.subr.bf16.mxu1 %v3155_v20 }
 0x2d4   : > { %v913_v24 = vpop.f32.mrb[9].mxu1  ;;  %v4097_v32 = vsel %vm954_vm2, %v2699_v23, -1e+30  ;;  %3158 = vmatpush3.bf16.msra.mxu1 %v3155_v20 }
 0x2d5   : > { %v4091_v28 = vsel %vm954_vm2, %v913_v24, -1e+30  ;;  %3160 = vmatprep.subr.bf16.mxu1 %v3962_v3 }
 0x2d6   : > { %985 = vmax.xlane.f32.xlu1 %v4087_v27  ;;  %987 = vmax.xlane.f32.xlu0 %v4091_v28 }
 0x2d7   : > { %v2702_v30 = vpop.f32.mrb[10].mxu1 }
 0x2d8   : > { %v923_v31 = vpop.f32.mrb[11].mxu1  ;;  %v4107_v39 = vsel %vm954_vm2, %v2702_v30, -1e+30 }
 0x2d9   : > { %v4101_v33 = vsel %vm954_vm2, %v923_v31, -1e+30 }
 0x2da   : > { %989 = vmax.xlane.f32.xlu1 %v4097_v32  ;;  %991 = vmax.xlane.f32.xlu0 %v4101_v33 }
 0x2db   : > { %v2705_v37 = vpop.f32.mrb[12].mxu1 }
 0x2dc   : > { %v933_v38 = vpop.f32.mrb[13].mxu1  ;;  %v4117_v46 = vsel %vm954_vm2, %v2705_v37, -1e+30 }
 0x2dd   : > { %v4111_v40 = vsel %vm954_vm2, %v933_v38, -1e+30 }
 0x2de   : > { %993 = vmax.xlane.f32.xlu1 %v4107_v39  ;;  %995 = vmax.xlane.f32.xlu0 %v4111_v40 }
 0x2df   : > { %v2708_v44 = vpop.f32.mrb[14].mxu1 }
 0x2e0   : > { %v943_v45 = vpop.f32.mrb[15].mxu1  ;;  %v4127_v51 = vsel %vm954_vm2, %v2708_v44, -1e+30 }
 0x2e1   : > { %v4121_v47 = vsel %vm954_vm2, %v943_v45, -1e+30 }
 0x2e2   : > { %997 = vmax.xlane.f32.xlu1 %v4117_v46  ;;  %999 = vmax.xlane.f32.xlu0 %v4121_v47 }
 0x2e6   : > { %1001 = vmax.xlane.f32.xlu1 %v4127_v51 }
 0x353   : > { %v972_v23 = vpop.xlane.xlu0 %971 }
 0x354   : > { %v1003_v24 = vsub.f32 %v4052_v10, %v972_v23 }
 0x356   : > { %v1019_v25 = vmul.f32 1.442695, %v1003_v24  ;;  %v2376_v24 = vld [vmem:[#allocation7] ss:$0 sm:$0xff] }
 0x357   : > { %v974_v26 = vpop.xlane.xlu0 %973  ;;  %v976_v29 = vpop.xlane.xlu1 %975 }
 0x358   : > { %3316 = vpow2.f32 %v1019_v25  ;;  %v1004_v30 = vsub.f32 %v4057_v13, %v974_v26  ;;  %v1005_v31 = vsub.f32 %v4061_v14, %v976_v29  ;;  %v2743_v25 = vpop.f32.mrb[16].mxu0 }
 0x359   : > { %v4217_v26 = vadd.f32 %v2743_v25, %v2376_v24  ;;  %v1204_v29 = vpop.f32.mrb[17].mxu0 }
 0x35a   : > { %v1021_v34 = vmul.f32 1.442695, %v1004_v30  ;;  %v1023_v35 = vmul.f32 1.442695, %v1005_v31  ;;  %v1205_v30 = vadd.f32 %v2376_v24, %v1204_v29  ;;  %v2746_v31 = vpop.f32.mrb[18].mxu0 }
 0x35b   : > { %v978_v36 = vpop.xlane.xlu1 %977  ;;  %v980_v37 = vpop.xlane.xlu0 %979 }
 0x35c   : > { %3318 = vpow2.f32 %v1021_v34  ;;  %v1006_v38 = vsub.f32 %v4067_v17, %v978_v36  ;;  %v1007_v41 = vsub.f32 %v4071_v18, %v980_v37  ;;  %2797 = vmatprep.mubr.f32.mxu0 %v1205_v30  ;;  %v4219_v34 = vadd.f32 %v2746_v31, %v2376_v24 }
 0x35d   : > { %3320 = vpow2.f32 %v1023_v35  ;;  %v1214_v35 = vpop.f32.mrb[19].mxu0 }
 0x35e   : > { %v1025_v42 = vmul.f32 1.442695, %v1006_v38  ;;  %v1027_v10 = vmul.f32 1.442695, %v1007_v41  ;;  %v4221_v36 = vadd.f32 %v2376_v24, %v1214_v35  ;;  %v2749_v37 = vpop.f32.mrb[20].mxu0 }
 0x35f   : > { %v982_v43 = vpop.xlane.xlu1 %981  ;;  %v984_v44 = vpop.xlane.xlu0 %983  ;;  %v4223_v38 = vadd.f32 %v2749_v37, %v2376_v24 }
 0x360   : > { %3322 = vpow2.f32 %v1025_v42  ;;  %v1008_v45 = vsub.f32 %v4077_v21, %v982_v43  ;;  %v1009_v13 = vsub.f32 %v4081_v22, %v984_v44  ;;  %v1224_v41 = vpop.f32.mrb[21].mxu0 }
 0x361   : > { %3324 = vpow2.f32 %v1027_v10  ;;  %v4225_v42 = vadd.f32 %v2376_v24, %v1224_v41  ;;  %v2752_v10 = vpop.f32.mrb[22].mxu0 }
 0x362   : > { %v4160_v14 = vpop.eup %3316  ;;  %v1029_v48 = vmul.f32 1.442695, %v1008_v45  ;;  %v1031_v49 = vmul.f32 1.442695, %v1009_v13  ;;  %v4227_v43 = vadd.f32 %v2752_v10, %v2376_v24  ;;  %v1234_v44 = vpop.f32.mrb[23].mxu0 }
 0x363   : > { %v986_v50 = vpop.xlane.xlu1 %985  ;;  %v988_v52 = vpop.xlane.xlu0 %987  ;;  %1051 = vadd.xlane.f32.xlu0 %v4160_v14  ;;  %v4229_v45 = vadd.f32 %v2376_v24, %v1234_v44 }
 0x364   : > { %3326 = vpow2.f32 %v1029_v48  ;;  %v1010_v17 = vsub.f32 %v4087_v27, %v986_v50  ;;  %v1011_v18 = vsub.f32 %v4091_v28, %v988_v52  ;;  %v2755_v13 = vpop.f32.mrb[24].mxu0 }
 0x365   : > { %3328 = vpow2.f32 %v1031_v49  ;;  %v4231_v48 = vadd.f32 %v2755_v13, %v2376_v24  ;;  %v1244_v49 = vpop.f32.mrb[25].mxu0 }
 0x366   : > { %v4165_v53 = vpop.eup %3318  ;;  %v1033_v21 = vmul.f32 1.442695, %v1010_v17  ;;  %v1035_v54 = vmul.f32 1.442695, %v1011_v18  ;;  %v4233_v50 = vadd.f32 %v2376_v24, %v1244_v49 }
 0x367   : > { %v4167_v22 = vpop.eup %3320  ;;  %v990_v55 = vpop.xlane.xlu1 %989  ;;  %1053 = vadd.xlane.f32.xlu1 %v4165_v53 }
 0x368   : > { %v992_v56 = vpop.xlane.xlu0 %991  ;;  %3330 = vpow2.f32 %v1033_v21  ;;  %v1012_v57 = vsub.f32 %v4097_v32, %v990_v55  ;;  %1055 = vadd.xlane.f32.xlu0 %v4167_v22 }
 0x369   : > { %v1013_v58 = vsub.f32 %v4101_v33, %v992_v56  ;;  %3332 = vpow2.f32 %v1035_v54 }
 0x36a   : > { %v4173_v27 = vpop.eup %3322  ;;  %v1037_v28 = vmul.f32 1.442695, %v1012_v57 }
 0x36b   : > { %v1039_v59 = vmul.f32 1.442695, %v1013_v58  ;;  %v4175_v60 = vpop.eup %3324  ;;  %v994_v61 = vpop.xlane.xlu1 %993  ;;  %1057 = vadd.xlane.f32.xlu1 %v4173_v27 }
 0x36c   : > { %v996_v62 = vpop.xlane.xlu0 %995  ;;  %3334 = vpow2.f32 %v1037_v28  ;;  %v1014_v63 = vsub.f32 %v4107_v39, %v994_v61  ;;  %1059 = vadd.xlane.f32.xlu0 %v4175_v60 }
 0x36d   : > { %v1015_v32 = vsub.f32 %v4111_v40, %v996_v62  ;;  %3336 = vpow2.f32 %v1039_v59 }
 0x36e   : > { %v4181_v33 = vpop.eup %3326  ;;  %v1041_v0 = vmul.f32 1.442695, %v1014_v63 }
 0x36f   : > { %v1043_v1 = vmul.f32 1.442695, %v1015_v32  ;;  %v4183_v2 = vpop.eup %3328  ;;  %v998_v4 = vpop.xlane.xlu1 %997  ;;  %1061 = vadd.xlane.f32.xlu1 %v4181_v33 }
 0x370   : > { %v1000_v5 = vpop.xlane.xlu0 %999  ;;  %3338 = vpow2.f32 %v1041_v0  ;;  %v1016_v6 = vsub.f32 %v4117_v46, %v998_v4  ;;  %1063 = vadd.xlane.f32.xlu0 %v4183_v2 }
 0x371   : > { %v1017_v39 = vsub.f32 %v4121_v47, %v1000_v5  ;;  %3340 = vpow2.f32 %v1043_v1 }
 0x372   : > { %v4189_v40 = vpop.eup %3330  ;;  %v1045_v7 = vmul.f32 1.442695, %v1016_v6 }
 0x373   : > { %v1047_v8 = vmul.f32 1.442695, %v1017_v39  ;;  %v4191_v9 = vpop.eup %3332  ;;  %1065 = vadd.xlane.f32.xlu1 %v4189_v40  ;;  %v1002_v11 = vpop.xlane.xlu1 %1001 }
 0x374   : > { %3342 = vpow2.f32 %v1045_v7  ;;  %v1018_v12 = vsub.f32 %v4127_v51, %v1002_v11  ;;  %1067 = vadd.xlane.f32.xlu0 %v4191_v9 }
 0x375   : > { %3344 = vpow2.f32 %v1047_v8 }
 0x376   : > { %v4196_v46 = vpop.eup %3334  ;;  %v1049_v15 = vmul.f32 1.442695, %v1018_v12 }
 0x377   : > { %v4198_v47 = vpop.eup %3336  ;;  %1069 = vadd.xlane.f32.xlu1 %v4196_v46 }
 0x378   : > { %3346 = vpow2.f32 %v1049_v15  ;;  %1071 = vadd.xlane.f32.xlu0 %v4198_v47 }
 0x37a   : > { %v4202_v16 = vpop.eup %3338 }
 0x37b   : > { %v4204_v19 = vpop.eup %3340  ;;  %1073 = vadd.xlane.f32.xlu1 %v4202_v16 }
 0x37c   : > { %1075 = vadd.xlane.f32.xlu0 %v4204_v19 }
 0x37e   : > { %v4208_v51 = vpop.eup %3342 }
 0x37f   : > { %v4210_v20 = vpop.eup %3344  ;;  %1077 = vadd.xlane.f32.xlu1 %v4208_v51 }
 0x380   : > { %1079 = vadd.xlane.f32.xlu0 %v4210_v20 }
 0x382   : > { %v4214_v23 = vpop.eup %3346 }
 0x383   : > { %1081 = vadd.xlane.f32.xlu1 %v4214_v23 }
 0x398   : > { %v2758_v52 = vpop.f32.mrb[26].mxu0 }
 0x399   : > { %v4235_v17 = vadd.f32 %v2758_v52, %v2376_v24  ;;  %v1254_v18 = vpop.f32.mrb[27].mxu0 }
 0x39a   : > { %v4237_v21 = vadd.f32 %v2376_v24, %v1254_v18 }
 0x39e   : > { %v2761_v54 = vpop.f32.mrb[28].mxu0 }
 0x39f   : > { %v4239_v55 = vadd.f32 %v2761_v54, %v2376_v24  ;;  %v1264_v56 = vpop.f32.mrb[29].mxu0 }
 0x3a0   : > { %v4241_v57 = vadd.f32 %v2376_v24, %v1264_v56 }
 0x3a4   : > { %v2764_v58 = vpop.f32.mrb[30].mxu0 }
 0x3a5   : > { %v4243_v28 = vadd.f32 %v2764_v58, %v2376_v24  ;;  %v1274_v59 = vpop.f32.mrb[31].mxu0 }
 0x3a6   : > { %v4245_v61 = vadd.f32 %v2376_v24, %v1274_v59 }
 0x3f0   : > { %v1052_v62 = vpop.xlane.xlu0 %1051 }
 0x3f1   : > { %3348 = vrcp.f32 %v1052_v62 }
 0x3f4   : > { %v1054_v63 = vpop.xlane.xlu1 %1053 }
 0x3f5   : > { %3350 = vrcp.f32 %v1054_v63  ;;  %v1056_v32 = vpop.xlane.xlu0 %1055 }
 0x3f6   : > { %3352 = vrcp.f32 %v1056_v32 }
 0x3f8   : > { %v1058_v0 = vpop.xlane.xlu1 %1057 }
 0x3f9   : > { %3354 = vrcp.f32 %v1058_v0  ;;  %v1060_v1 = vpop.xlane.xlu0 %1059 }
 0x3fa   : > { %3356 = vrcp.f32 %v1060_v1 }
 0x3fb   : > { %v3349_v5 = vpop.eup %3348 }
 0x3fc   : > { %v1062_v4 = vpop.xlane.xlu1 %1061  ;;  %v1099_v7 = vmul.f32 %v3349_v5, %v4160_v14 }
 0x3fd   : > { %3358 = vrcp.f32 %v1062_v4  ;;  %v1064_v12 = vpop.xlane.xlu0 %1063 }
 0x3ff   : > { %v3351_v6 = vpop.eup %3350 }
 0x400   : > { %v1066_v39 = vpop.xlane.xlu1 %1065  ;;  %v1100_v8 = vmul.f32 %v3351_v6, %v4165_v53  ;;  %v3353_v11 = vpop.eup %3352 }
 0x401   : > { %3360 = vrcp.f32 %v1066_v39  ;;  %v1101_v25 = vmul.f32 %v3353_v11, %v4167_v22  ;;  %v1068_v53 = vpop.xlane.xlu0 %1067 }
 0x402   : > { %v3095_v15 = vpack.c.bf16 %v1100_v8, %v1099_v7  ;;  %3362 = vrcp.f32 %v1064_v12  ;;  %v1731_v12 = vld [vmem:[#allocation9 + $0x68] sm:$0xff] }
 0x403   : > { %v3355_v24 = vpop.eup %3354 }
 0x404   : > { %3096 = vmatprep.subr.bf16.mxu0 %v3095_v15  ;;  %v1102_v29 = vmul.f32 %v3355_v24, %v4173_v27  ;;  %v3357_v30 = vpop.eup %3356  ;;  %v1070_v37 = vpop.xlane.xlu1 %1069  ;;  %v1732_v24 = vld [vmem:[#allocation9 + $0x70] sm:$0xff] }
 0x405   : > { %3098 = vmatpush3.bf16.xpose.msra.mxu0 %v3095_v15  ;;  %v1103_v41 = vmul.f32 %v3357_v30, %v4175_v60  ;;  %3364 = vrcp.f32 %v1070_v37  ;;  %v1072_v49 = vpop.xlane.xlu0 %1071  ;;  %v3381_v37 = vld [vmem:[%s3957_s27 + $0x18] sm:$0xff] }
 0x406   : > { %v3099_v31 = vpack.c.bf16 %v1102_v29, %v1101_v25  ;;  %3366 = vrcp.f32 %v1068_v53  ;;  %v1733_v25 = vld [vmem:[#allocation9 + $0x78] sm:$0xff] }
 0x407   : > { %v3359_v35 = vpop.eup %3358  ;;  %v3219_v29 = vpack.c.bf16 %v1733_v25, %v1732_v24 }
 0x408   : > { %3100 = vmatprep.subr.bf16.mxu0 %v3099_v31  ;;  %v1104_v14 = vmul.f32 %v3359_v35, %v4181_v33  ;;  %v1074_v27 = vpop.xlane.xlu1 %1073  ;;  %v3380_v35 = vld [vmem:[%s3957_s27 + $0x10] sm:$0xff] }
 0x409   : > { %3368 = vrcp.f32 %v1074_v27  ;;  %v1076_v58 = vpop.xlane.xlu0 %1075 }
 0x40a   : > { %v3103_v10 = vpack.c.bf16 %v1104_v14, %v1103_v41  ;;  %3370 = vrcp.f32 %v1072_v49  ;;  %v3163_v14 = vpack.c.bf16 %v3381_v37, %v3380_v35  ;;  %v3384_v49 = vld [vmem:[%s3957_s27 + $0x30] sm:$0xff] }
 0x40b   : > { %v3361_v44 = vpop.eup %3360 }
 0x40c   : > { %v3363_v22 = vpop.eup %3362  ;;  %v1106_v13 = vmul.f32 %v3361_v44, %v4189_v40  ;;  %v1078_v33 = vpop.xlane.xlu1 %1077  ;;  %v3383_v44 = vld [vmem:[%s3957_s27 + $0x28] sm:$0xff] }
 0x40d   : > { %3102 = vmatpush3.bf16.xpose.msra.mxu0 %v3099_v31  ;;  %v1105_v52 = vmul.f32 %v3363_v22, %v4183_v2  ;;  %3372 = vrcp.f32 %v1078_v33  ;;  %v1080_v0 = vpop.xlane.xlu0 %1079  ;;  %v3387_v33 = vld [vmem:[%s3957_s27 + $0x48] sm:$0xff] }
 0x40e   : > { %3104 = vmatprep.subr.bf16.mxu0 %v3103_v10  ;;  %3374 = vrcp.f32 %v1076_v58 }
 0x40f   : > { %v3107_v18 = vpack.c.bf16 %v1106_v13, %v1105_v52  ;;  %v3365_v54 = vpop.eup %3364  ;;  %v3385_v52 = vld [vmem:[%s3957_s27 + $0x38] sm:$0xff] }
 0x410   : > { %v3367_v60 = vpop.eup %3366  ;;  %v1108_v56 = vmul.f32 %v3365_v54, %v4196_v46  ;;  %v1082_v40 = vpop.xlane.xlu1 %1081 }
 0x411   : > { %v1107_v59 = vmul.f32 %v3367_v60, %v4191_v9  ;;  %3376 = vrcp.f32 %v1082_v40  ;;  %v3386_v60 = vld [vmem:[%s3957_s27 + $0x40] sm:$0xff] }
 0x412   : > { %3378 = vrcp.f32 %v1080_v0  ;;  %v3390_v0 = vld [vmem:[%s3957_s27 + $0x60] sm:$0xff] }
 0x413   : > { %v3111_v62 = vpack.c.bf16 %v1108_v56, %v1107_v59  ;;  %v3369_v63 = vpop.eup %3368  ;;  %v3175_v56 = vpack.c.bf16 %v3387_v33, %v3386_v60 }
 0x414   : > { %v3371_v2 = vpop.eup %3370  ;;  %v1110_v32 = vmul.f32 %v3369_v63, %v4202_v16  ;;  %v3389_v63 = vld [vmem:[%s3957_s27 + $0x58] sm:$0xff] }
 0x415   : > { %3106 = vmatpush3.bf16.xpose.msra.mxu0 %v3103_v10  ;;  %v1109_v1 = vmul.f32 %v3371_v2, %v4198_v47  ;;  %v3382_v10 = vld [vmem:[%s3957_s27 + $0x20] sm:$0xff] }
 0x416   : > { %3108 = vmatprep.subr.bf16.mxu0 %v3107_v18  ;;  %v3167_v22 = vpack.c.bf16 %v3383_v44, %v3382_v10 }
 0x417   : > { %v3115_v4 = vpack.c.bf16 %v1110_v32, %v1109_v1  ;;  %v3373_v5 = vpop.eup %3372  ;;  %v3391_v1 = vld [vmem:[%s3957_s27 + $0x68] sm:$0xff] }
 0x418   : > { %v3375_v9 = vpop.eup %3374  ;;  %v1112_v46 = vmul.f32 %v3373_v5, %v4208_v51  ;;  %v1719_v51 = vld [vmem:[#allocation9 + $0x8] sm:$0xff] }
 0x419   : > { %v1111_v6 = vmul.f32 %v3375_v9, %v4204_v19  ;;  %v1718_v19 = vld [vmem:[#allocation9] sm:$0xff] }
 0x41b   : > { %v3119_v39 = vpack.c.bf16 %v1112_v46, %v1111_v6  ;;  %v3377_v7 = vpop.eup %3376  ;;  %v3392_v46 = vld [vmem:[%s3957_s27 + $0x70] sm:$0xff]  ;;  %v3393_v6 = vld [vmem:[%s3957_s27 + $0x78] sm:$0xff] }
 0x41c   : > { %v3379_v8 = vpop.eup %3378  ;;  %v1114_v16 = vmul.f32 %v3377_v7, %v4214_v23  ;;  %v3191_v23 = vpack.c.bf16 %v1719_v51, %v1718_v19 }
 0x41d   : > { %3110 = vmatpush3.bf16.xpose.msra.mxu0 %v3107_v18  ;;  %v1113_v47 = vmul.f32 %v3379_v8, %v4210_v20  ;;  %v1720_v20 = vld [vmem:[#allocation9 + $0x10] sm:$0xff]  ;;  %v3171_v18 = vpack.c.bf16 %v3385_v52, %v3384_v49 }
 0x41e   : > { %3112 = vmatprep.subr.bf16.mxu0 %v3111_v62 }
 0x41f   : > { %v3123_v11 = vpack.c.bf16 %v1114_v16, %v1113_v47  ;;  %v1902_v16 = vld [vmem:[#allocation12] sm:$0xff] }
 0x425   : > { %3114 = vmatpush3.bf16.xpose.msra.mxu0 %v3111_v62  ;;  %v3388_v62 = vld [vmem:[%s3957_s27 + $0x50] sm:$0xff] }
 0x426   : > { %3116 = vmatprep.subr.bf16.mxu0 %v3115_v4  ;;  %v3179_v2 = vpack.c.bf16 %v3389_v63, %v3388_v62 }
 0x42d   : > { %3118 = vmatpush3.bf16.xpose.msra.mxu0 %v3115_v4  ;;  %v3183_v4 = vpack.c.bf16 %v3391_v1, %v3390_v0 }
 0x42e   : > { %3120 = vmatprep.subr.bf16.mxu0 %v3119_v39 }
 0x435   : > { %3122 = vmatpush3.bf16.xpose.msra.mxu0 %v3119_v39  ;;  %v3187_v39 = vpack.c.bf16 %v3393_v6, %v3392_v46 }
 0x436   : > { %3124 = vmatprep.subr.bf16.mxu0 %v3123_v11 }
 0x43d   : > { %3126 = vmatpush3.bf16.xpose.msra.mxu0 %v3123_v11 }
 0x43e   : > { %3192 = vmatprep.subr.bf16.mxu0 %v3191_v23 }
 0x444   : > { %2798 = vmatmul.mubr.f32.vlgmr.msra.gmra.mrb[32].mxu0 %v4217_v26  ;;  %v1721_v26 = vld [vmem:[#allocation9 + $0x18] sm:$0xff] }
 0x445   : > { %2800 = vmatprep.mubr.f32.mxu0 %v4221_v36  ;;  %v1722_v36 = vld [vmem:[#allocation9 + $0x20] sm:$0xff]  ;;  %3194 = vmatpush3.bf16.msra.mxu0 %v3191_v23 }
 0x448   : > { %2801 = vmatmul.mubr.f32.gmra.mrb[34].mxu0 %v4219_v34  ;;  %v3195_v34 = vpack.c.bf16 %v1721_v26, %v1720_v20 }
 0x449   : > { %2803 = vmatprep.mubr.f32.mxu0 %v4225_v42 }
 0x44a   : > { %3196 = vmatprep.subr.bf16.mxu0 %v3195_v34 }
 0x44b   : > { %3198 = vmatpush3.bf16.msra.mxu0 %v3195_v34 }
 0x44c   : > { %2804 = vmatmul.mubr.f32.gmra.mrb[36].mxu0 %v4223_v38  ;;  %v1723_v38 = vld [vmem:[#allocation9 + $0x28] sm:$0xff] }
 0x44d   : > { %2806 = vmatprep.mubr.f32.mxu0 %v4229_v45  ;;  %v3199_v42 = vpack.c.bf16 %v1723_v38, %v1722_v36  ;;  %v1725_v45 = vld [vmem:[#allocation9 + $0x38] sm:$0xff] }
 0x44f   : > { %3200 = vmatprep.subr.bf16.mxu0 %v3199_v42 }
 0x450   : > { %2807 = vmatmul.mubr.f32.gmra.mrb[38].mxu0 %v4227_v43  ;;  %v1724_v43 = vld [vmem:[#allocation9 + $0x30] sm:$0xff] }
 0x451   : > { %2809 = vmatprep.mubr.f32.mxu0 %v4233_v50  ;;  %v1726_v50 = vld [vmem:[#allocation9 + $0x40] sm:$0xff]  ;;  %3202 = vmatpush3.bf16.msra.mxu0 %v3199_v42 }
 0x454   : > { %2810 = vmatmul.mubr.f32.gmra.mrb[40].mxu0 %v4231_v48  ;;  %v3203_v48 = vpack.c.bf16 %v1725_v45, %v1724_v43 }
 0x455   : > { %2812 = vmatprep.mubr.f32.mxu0 %v4237_v21 }
 0x456   : > { %3204 = vmatprep.subr.bf16.mxu0 %v3203_v48 }
 0x457   : > { %3206 = vmatpush3.bf16.msra.mxu0 %v3203_v48 }
 0x458   : > { %2813 = vmatmul.mubr.f32.gmra.mrb[42].mxu0 %v4235_v17  ;;  %v1727_v17 = vld [vmem:[#allocation9 + $0x48] sm:$0xff] }
 0x459   : > { %2815 = vmatprep.mubr.f32.mxu0 %v4241_v57  ;;  %v3207_v21 = vpack.c.bf16 %v1727_v17, %v1726_v50  ;;  %v1729_v57 = vld [vmem:[#allocation9 + $0x58] sm:$0xff] }
 0x45b   : > { %3208 = vmatprep.subr.bf16.mxu0 %v3207_v21 }
 0x45c   : > { %2816 = vmatmul.mubr.f32.gmra.mrb[44].mxu0 %v4239_v55  ;;  %v1728_v55 = vld [vmem:[#allocation9 + $0x50] sm:$0xff] }
 0x45d   : > { %2818 = vmatprep.mubr.f32.mxu0 %v4245_v61  ;;  %v1730_v61 = vld [vmem:[#allocation9 + $0x60] sm:$0xff]  ;;  %3210 = vmatpush3.bf16.msra.mxu0 %v3207_v21 }
 0x45e   : > { %v3215_v15 = vpack.c.bf16 %v1731_v12, %v1730_v61 }
 0x460   : > { %2819 = vmatmul.mubr.f32.gmra.mrb[46].mxu0 %v4243_v28  ;;  %v3211_v28 = vpack.c.bf16 %v1729_v57, %v1728_v55 }
 0x462   : > { %3212 = vmatprep.subr.bf16.mxu0 %v3211_v28 }
 0x463   : > { %3214 = vmatpush3.bf16.msra.mxu0 %v3211_v28 }
 0x464   : > { %3216 = vmatprep.subr.bf16.mxu0 %v3215_v15 }
 0x467   : > { %3218 = vmatpush3.bf16.msra.mxu0 %v3215_v15 }
 0x468   : > { %3220 = vmatprep.subr.bf16.mxu0 %v3219_v29 }
 0x46b   : > { %3222 = vmatpush3.bf16.msra.mxu0 %v3219_v29 }
 0x46c   : > { %2989 = vmatprep.subr.mxu0 %v1902_v16 }
 0x517   : > { %v4278_v30 = vpop.f32.mrb[32].mxu0 }
 0x518   : > { %v4280_v31 = vpop.f32.mrb[33].mxu0 }
 0x519   : > { %2853 = vmatprep.mubr.f32.mxu1 %v4280_v31 }
 0x51a   : > { %2854 = vmatmul.mubr.f32.vlgmr.msra.gmra.mrb[16].mxu1 %v4278_v30 }
 0x51b   : > { %3162 = vmatpush3.bf16.msra.mxu1 %v3962_v3  ;;  %v2802_v53 = vpop.f32.mrb[34].mxu0 }
 0x51c   : > { %v1359_v41 = vpop.f32.mrb[35].mxu0  ;;  %3164 = vmatprep.subr.bf16.mxu1 %v3163_v14 }
 0x51d   : > { %2856 = vmatprep.mubr.f32.mxu1 %v1359_v41 }
 0x51e   : > { %2857 = vmatmul.mubr.f32.gmra.mrb[18].mxu1 %v2802_v53 }
 0x51f   : > { %3166 = vmatpush3.bf16.msra.mxu1 %v3163_v14  ;;  %v2805_v27 = vpop.f32.mrb[36].mxu0 }
 0x520   : > { %v1369_v13 = vpop.f32.mrb[37].mxu0  ;;  %3168 = vmatprep.subr.bf16.mxu1 %v3167_v22 }
 0x521   : > { %2859 = vmatprep.mubr.f32.mxu1 %v1369_v13 }
 0x522   : > { %2860 = vmatmul.mubr.f32.gmra.mrb[20].mxu1 %v2805_v27 }
 0x523   : > { %3170 = vmatpush3.bf16.msra.mxu1 %v3167_v22  ;;  %v2808_v3 = vpop.f32.mrb[38].mxu0 }
 0x524   : > { %v1379_v54 = vpop.f32.mrb[39].mxu0  ;;  %3172 = vmatprep.subr.bf16.mxu1 %v3171_v18 }
 0x525   : > { %2862 = vmatprep.mubr.f32.mxu1 %v1379_v54 }
 0x526   : > { %2863 = vmatmul.mubr.f32.gmra.mrb[22].mxu1 %v2808_v3 }
 0x527   : > { %3174 = vmatpush3.bf16.msra.mxu1 %v3171_v18  ;;  %v2811_v58 = vpop.f32.mrb[40].mxu0 }
 0x528   : > { %v1389_v59 = vpop.f32.mrb[41].mxu0  ;;  %3176 = vmatprep.subr.bf16.mxu1 %v3175_v56 }
 0x529   : > { %2865 = vmatprep.mubr.f32.mxu1 %v1389_v59 }
 0x52a   : > { %2866 = vmatmul.mubr.f32.gmra.mrb[24].mxu1 %v2811_v58 }
 0x52b   : > { %3178 = vmatpush3.bf16.msra.mxu1 %v3175_v56  ;;  %v2814_v40 = vpop.f32.mrb[42].mxu0 }
 0x52c   : > { %v1399_v32 = vpop.f32.mrb[43].mxu0  ;;  %3180 = vmatprep.subr.bf16.mxu1 %v3179_v2 }
 0x52d   : > { %2868 = vmatprep.mubr.f32.mxu1 %v1399_v32 }
 0x52e   : > { %2869 = vmatmul.mubr.f32.gmra.mrb[26].mxu1 %v2814_v40 }
 0x52f   : > { %3182 = vmatpush3.bf16.msra.mxu1 %v3179_v2  ;;  %v2817_v5 = vpop.f32.mrb[44].mxu0 }
 0x530   : > { %v1409_v9 = vpop.f32.mrb[45].mxu0  ;;  %3184 = vmatprep.subr.bf16.mxu1 %v3183_v4 }
 0x531   : > { %2871 = vmatprep.mubr.f32.mxu1 %v1409_v9 }
 0x532   : > { %2872 = vmatmul.mubr.f32.gmra.mrb[28].mxu1 %v2817_v5 }
 0x533   : > { %3186 = vmatpush3.bf16.msra.mxu1 %v3183_v4  ;;  %v2820_v7 = vpop.f32.mrb[46].mxu0 }
 0x534   : > { %v1419_v8 = vpop.f32.mrb[47].mxu0  ;;  %3188 = vmatprep.subr.bf16.mxu1 %v3187_v39 }
 0x535   : > { %2874 = vmatprep.mubr.f32.mxu1 %v1419_v8 }
 0x536   : > { %2875 = vmatmul.mubr.f32.gmra.mrb[30].mxu1 %v2820_v7 }
 0x537   : > { %3190 = vmatpush3.bf16.msra.mxu1 %v3187_v39  ;;  %2909 = vmatprep.mubr.f32.mxu1 %v4280_v31 }
 0x538   : > { %3223 = vmatprep.subr.mxu1 %v1902_v16 }
 0x53a   : > { %2910 = vmatmul.mubr.f32.vlgmr.msra.gmra.mrb[32].mxu1 %v4278_v30 }
 0x53b   : > { %2912 = vmatprep.mubr.f32.mxu1 %v1359_v41  ;;  %3224 = vmatpush3.msra.mxu1 %v1902_v16  ;;  %v2377_v41 = vld [vmem:[#allocation10] ss:$0 sm:$0xff] }
 0x53e   : > { %2913 = vmatmul.mubr.f32.gmra.mrb[34].mxu1 %v2802_v53 }
 0x53f   : > { %2915 = vmatprep.mubr.f32.mxu1 %v1369_v13 }
 0x542   : > { %2916 = vmatmul.mubr.f32.gmra.mrb[36].mxu1 %v2805_v27 }
 0x543   : > { %2918 = vmatprep.mubr.f32.mxu1 %v1379_v54 }
 0x546   : > { %2919 = vmatmul.mubr.f32.gmra.mrb[38].mxu1 %v2808_v3 }
 0x547   : > { %2921 = vmatprep.mubr.f32.mxu1 %v1389_v59 }
 0x54a   : > { %2922 = vmatmul.mubr.f32.gmra.mrb[40].mxu1 %v2811_v58 }
 0x54b   : > { %2924 = vmatprep.mubr.f32.mxu1 %v1399_v32 }
 0x54e   : > { %2925 = vmatmul.mubr.f32.gmra.mrb[42].mxu1 %v2814_v40 }
 0x54f   : > { %2927 = vmatprep.mubr.f32.mxu1 %v1409_v9 }
 0x552   : > { %2928 = vmatmul.mubr.f32.gmra.mrb[44].mxu1 %v2817_v5 }
 0x553   : > { %2930 = vmatprep.mubr.f32.mxu1 %v1419_v8 }
 0x556   : > { %2931 = vmatmul.mubr.f32.gmra.mrb[46].mxu1 %v2820_v7 }
 0x5ed   : > { %v2855_v47 = vpop.f32.mrb[16].mxu1 }
 0x5ee   : > { %v1494_v11 = vpop.f32.mrb[17].mxu1 }
 0x5ef   : > { %2965 = vmatprep.mubr.f32.mxu0 %v1494_v11  ;;  %v2378_v11 = vld [vmem:[#allocation13] ss:$0 sm:$0xff] }
 0x5f0   : > { %2966 = vmatmul.mubr.f32.vlgmr.msra.gmra.mrb[48].mxu0 %v2855_v47 }
 0x5f1   : > { %v2858_v19 = vpop.f32.mrb[18].mxu1  ;;  %2990 = vmatpush3.msra.mxu0 %v1902_v16 }
 0x5f2   : > { %v1504_v51 = vpop.f32.mrb[19].mxu1 }
 0x5f3   : > { %2968 = vmatprep.mubr.f32.mxu0 %v1504_v51 }
 0x5f4   : > { %2969 = vmatmul.mubr.f32.gmra.mrb[50].mxu0 %v2858_v19 }
 0x5f5   : > { %v2861_v20 = vpop.f32.mrb[20].mxu1 }
 0x5f6   : > { %v1514_v23 = vpop.f32.mrb[21].mxu1 }
 0x5f7   : > { %2971 = vmatprep.mubr.f32.mxu0 %v1514_v23 }
 0x5f8   : > { %2972 = vmatmul.mubr.f32.gmra.mrb[52].mxu0 %v2861_v20 }
 0x5f9   : > { %v2864_v26 = vpop.f32.mrb[22].mxu1 }
 0x5fa   : > { %v1524_v34 = vpop.f32.mrb[23].mxu1 }
 0x5fb   : > { %2974 = vmatprep.mubr.f32.mxu0 %v1524_v34 }
 0x5fc   : > { %2975 = vmatmul.mubr.f32.gmra.mrb[54].mxu0 %v2864_v26 }
 0x5fd   : > { %v2867_v36 = vpop.f32.mrb[24].mxu1 }
 0x5fe   : > { %v1534_v38 = vpop.f32.mrb[25].mxu1 }
 0x5ff   : > { %2977 = vmatprep.mubr.f32.mxu0 %v1534_v38 }
 0x600   : > { %2978 = vmatmul.mubr.f32.gmra.mrb[56].mxu0 %v2867_v36 }
 0x601   : > { %v2870_v42 = vpop.f32.mrb[26].mxu1 }
 0x602   : > { %v1544_v43 = vpop.f32.mrb[27].mxu1 }
 0x603   : > { %2980 = vmatprep.mubr.f32.mxu0 %v1544_v43 }
 0x604   : > { %2981 = vmatmul.mubr.f32.gmra.mrb[58].mxu0 %v2870_v42 }
 0x605   : > { %v2873_v45 = vpop.f32.mrb[28].mxu1 }
 0x606   : > { %v1554_v48 = vpop.f32.mrb[29].mxu1 }
 0x607   : > { %2983 = vmatprep.mubr.f32.mxu0 %v1554_v48 }
 0x608   : > { %2984 = vmatmul.mubr.f32.gmra.mrb[60].mxu0 %v2873_v45 }
 0x609   : > { %v2876_v50 = vpop.f32.mrb[30].mxu1 }
 0x60a   : > { %v1564_v17 = vpop.f32.mrb[31].mxu1 }
 0x60b   : > { %2986 = vmatprep.mubr.f32.mxu0 %v1564_v17 }
 0x60c   : > { %2987 = vmatmul.mubr.f32.gmra.mrb[62].mxu0 %v2876_v50 }
 0x60d   : > { %v2911_v21 = vpop.f32.mrb[32].mxu1 }
 0x60e   : > { %v1639_v55 = vpop.f32.mrb[33].mxu1 }
 0x60f   : > { %2991 = vmatprep.mubr.msk.f32.mxu0 %vm565_vm0, %v1639_v55 }
 0x610   : > { %2992 = vmatmul.mubr.msk.f32.vlgmr.msra.gmra.mrb[64].mxu0 %vm565_vm0, %v2911_v21 }
 0x611   : > { %v2914_v57 = vpop.f32.mrb[34].mxu1 }
 0x612   : > { %v1649_v28 = vpop.f32.mrb[35].mxu1 }
 0x613   : > { %2994 = vmatprep.mubr.msk.f32.mxu0 %vm565_vm0, %v1649_v28 }
 0x614   : > { %2995 = vmatmul.mubr.msk.f32.gmra.mrb[66].mxu0 %vm565_vm0, %v2914_v57 }
 0x615   : > { %v2917_v61 = vpop.f32.mrb[36].mxu1 }
 0x616   : > { %v1659_v12 = vpop.f32.mrb[37].mxu1 }
 0x617   : > { %2997 = vmatprep.mubr.msk.f32.mxu0 %vm565_vm0, %v1659_v12 }
 0x618   : > { %2998 = vmatmul.mubr.msk.f32.gmra.mrb[68].mxu0 %vm565_vm0, %v2917_v61 }
 0x619   : > { %v2920_v15 = vpop.f32.mrb[38].mxu1 }
 0x61a   : > { %v1669_v24 = vpop.f32.mrb[39].mxu1 }
 0x61b   : > { %3000 = vmatprep.mubr.msk.f32.mxu1 %vm565_vm0, %v1669_v24 }
 0x61c   : > { %3001 = vmatmul.mubr.msk.f32.vlgmr.msra.gmra.mrb[48].mxu1 %vm565_vm0, %v2920_v15 }
 0x61d   : > { %v2923_v25 = vpop.f32.mrb[40].mxu1 }
 0x61e   : > { %v1679_v29 = vpop.f32.mrb[41].mxu1 }
 0x61f   : > { %3003 = vmatprep.mubr.msk.f32.mxu1 %vm565_vm0, %v1679_v29 }
 0x620   : > { %3004 = vmatmul.mubr.msk.f32.gmra.mrb[50].mxu1 %vm565_vm0, %v2923_v25 }
 0x621   : > { %v2926_v30 = vpop.f32.mrb[42].mxu1 }
 0x622   : > { %v1689_v31 = vpop.f32.mrb[43].mxu1 }
 0x623   : > { %3006 = vmatprep.mubr.msk.f32.mxu1 %vm565_vm0, %v1689_v31 }
 0x624   : > { %3007 = vmatmul.mubr.msk.f32.gmra.mrb[52].mxu1 %vm565_vm0, %v2926_v30 }
 0x625   : > { %v2929_v35 = vpop.f32.mrb[44].mxu1 }
 0x626   : > { %v1699_v37 = vpop.f32.mrb[45].mxu1 }
 0x627   : > { %3009 = vmatprep.mubr.msk.f32.mxu1 %vm565_vm0, %v1699_v37 }
 0x628   : > { %3010 = vmatmul.mubr.msk.f32.gmra.mrb[54].mxu1 %vm565_vm0, %v2929_v35 }
 0x629   : > { %v2932_v14 = vpop.f32.mrb[46].mxu1 }
 0x62a   : > { %v1709_v53 = vpop.f32.mrb[47].mxu1 }
 0x62b   : > { %3012 = vmatprep.mubr.msk.f32.mxu1 %vm565_vm0, %v1709_v53 }
 0x62c   : > { %3013 = vmatmul.mubr.msk.f32.gmra.mrb[56].mxu1 %vm565_vm0, %v2932_v14 }
 0x6c3   : > { %v2967_v10 = vpop.f32.mrb[48].mxu0 }
 0x6c4   : > { %v1813_v44 = vadd.f32 %v2967_v10, %v2377_v41  ;;  %v1807_v22 = vpop.f32.mrb[49].mxu0 }
 0x6c5   : > { %v1808_v27 = vadd.f32 %v2377_v41, %v1807_v22 }
 0x6c6   : > { %1887 = vst [vmem:[%s4321_s13 + $0x8] sm:$0xff] %v1813_v44 }
 0x6c7   : > { %1886 = vst [vmem:[%s4321_s13] sm:$0xff] %v1808_v27  ;;  %v2970_v13 = vpop.f32.mrb[50].mxu0 }
 0x6c8   : > { %v1823_v49 = vadd.f32 %v2970_v13, %v2377_v41  ;;  %v1817_v52 = vpop.f32.mrb[51].mxu0 }
 0x6c9   : > { %v1818_v18 = vadd.f32 %v2377_v41, %v1817_v52 }
 0x6ca   : > { %1889 = vst [vmem:[%s4321_s13 + $0x18] sm:$0xff] %v1823_v49 }
 0x6cb   : > { %1888 = vst [vmem:[%s4321_s13 + $0x10] sm:$0xff] %v1818_v18  ;;  %v2973_v3 = vpop.f32.mrb[52].mxu0 }
 0x6cc   : > { %v1833_v54 = vadd.f32 %v2973_v3, %v2377_v41  ;;  %v1827_v60 = vpop.f32.mrb[53].mxu0 }
 0x6cd   : > { %v1828_v33 = vadd.f32 %v2377_v41, %v1827_v60 }
 0x6ce   : > { %1891 = vst [vmem:[%s4321_s13 + $0x28] sm:$0xff] %v1833_v54 }
 0x6cf   : > { %1890 = vst [vmem:[%s4321_s13 + $0x20] sm:$0xff] %v1828_v33  ;;  %v2976_v56 = vpop.f32.mrb[54].mxu0 }
 0x6d0   : > { %v1843_v58 = vadd.f32 %v2976_v56, %v2377_v41  ;;  %v1837_v59 = vpop.f32.mrb[55].mxu0 }
 0x6d1   : > { %v1838_v62 = vadd.f32 %v2377_v41, %v1837_v59 }
 0x6d2   : > { %1893 = vst [vmem:[%s4321_s13 + $0x38] sm:$0xff] %v1843_v58 }
 0x6d3   : > { %1892 = vst [vmem:[%s4321_s13 + $0x30] sm:$0xff] %v1838_v62  ;;  %v2979_v63 = vpop.f32.mrb[56].mxu0 }
 0x6d4   : > { %v1853_v2 = vadd.f32 %v2979_v63, %v2377_v41  ;;  %v1847_v40 = vpop.f32.mrb[57].mxu0 }
 0x6d5   : > { %v1848_v32 = vadd.f32 %v2377_v41, %v1847_v40 }
 0x6d6   : > { %1895 = vst [vmem:[%s4321_s13 + $0x48] sm:$0xff] %v1853_v2 }
 0x6d7   : > { %1894 = vst [vmem:[%s4321_s13 + $0x40] sm:$0xff] %v1848_v32  ;;  %v2982_v0 = vpop.f32.mrb[58].mxu0 }
 0x6d8   : > { %v1863_v1 = vadd.f32 %v2982_v0, %v2377_v41  ;;  %v1857_v4 = vpop.f32.mrb[59].mxu0 }
 0x6d9   : > { %v1858_v5 = vadd.f32 %v2377_v41, %v1857_v4 }
 0x6da   : > { %1897 = vst [vmem:[%s4321_s13 + $0x58] sm:$0xff] %v1863_v1 }
 0x6db   : > { %1896 = vst [vmem:[%s4321_s13 + $0x50] sm:$0xff] %v1858_v5  ;;  %v2985_v9 = vpop.f32.mrb[60].mxu0 }
 0x6dc   : > { %v1873_v46 = vadd.f32 %v2985_v9, %v2377_v41  ;;  %v1867_v6 = vpop.f32.mrb[61].mxu0 }
 0x6dd   : > { %v1868_v39 = vadd.f32 %v2377_v41, %v1867_v6 }
 0x6de   : > { %1899 = vst [vmem:[%s4321_s13 + $0x68] sm:$0xff] %v1873_v46 }
 0x6df   : > { %1898 = vst [vmem:[%s4321_s13 + $0x60] sm:$0xff] %v1868_v39  ;;  %v2988_v7 = vpop.f32.mrb[62].mxu0 }
 0x6e0   : > { %v1883_v8 = vadd.f32 %v2988_v7, %v2377_v41  ;;  %v1877_v16 = vpop.f32.mrb[63].mxu0 }
 0x6e1   : > { %v1878_v47 = vadd.f32 %v2377_v41, %v1877_v16 }
 0x6e2   : > { %1901 = vst [vmem:[%s4321_s13 + $0x78] sm:$0xff] %v1883_v8 }
 0x6e3   : > { %1900 = vst [vmem:[%s4321_s13 + $0x70] sm:$0xff] %v1878_v47  ;;  %v2993_v19 = vpop.f32.mrb[64].mxu0 }
 0x6e4   : > { %v2030_v51 = vadd.f32 %v2993_v19, %v2378_v11  ;;  %v2024_v20 = vpop.f32.mrb[65].mxu0 }
 0x6e5   : > { %v2025_v23 = vadd.f32 %v2378_v11, %v2024_v20 }
 0x6e6   : > { %2104 = vst.msk [vmem:[%s4343_s28 + $0x8] sm:$0xff] %vm565_vm0, %v2030_v51 }
 0x6e7   : > { %2103 = vst.msk [vmem:[%s4343_s28] sm:$0xff] %vm565_vm0, %v2025_v23  ;;  %v2996_v26 = vpop.f32.mrb[66].mxu0 }
 0x6e8   : > { %v2040_v34 = vadd.f32 %v2996_v26, %v2378_v11  ;;  %v2034_v36 = vpop.f32.mrb[67].mxu0 }
 0x6e9   : > { %v2035_v38 = vadd.f32 %v2378_v11, %v2034_v36 }
 0x6ea   : > { %2106 = vst.msk [vmem:[%s4343_s28 + $0x18] sm:$0xff] %vm565_vm0, %v2040_v34 }
 0x6eb   : > { %2105 = vst.msk [vmem:[%s4343_s28 + $0x10] sm:$0xff] %vm565_vm0, %v2035_v38  ;;  %v2999_v42 = vpop.f32.mrb[68].mxu0 }
 0x6ec   : > { %v2050_v43 = vadd.f32 %v2999_v42, %v2378_v11  ;;  %v2044_v45 = vpop.f32.mrb[69].mxu0 }
 0x6ed   : > { %v2045_v48 = vadd.f32 %v2378_v11, %v2044_v45 }
 0x6ee   : > { %2108 = vst.msk [vmem:[%s4343_s28 + $0x28] sm:$0xff] %vm565_vm0, %v2050_v43 }
 0x6ef   : > { %2107 = vst.msk [vmem:[%s4343_s28 + $0x20] sm:$0xff] %vm565_vm0, %v2045_v48  ;;  %v3002_v50 = vpop.f32.mrb[48].mxu1 }
 0x6f0   : > { %v2060_v17 = vadd.f32 %v3002_v50, %v2378_v11  ;;  %v2054_v21 = vpop.f32.mrb[49].mxu1 }
 0x6f1   : > { %v2055_v55 = vadd.f32 %v2378_v11, %v2054_v21 }
 0x6f2   : > { %2110 = vst.msk [vmem:[%s4343_s28 + $0x38] sm:$0xff] %vm565_vm0, %v2060_v17 }
 0x6f3   : > { %2109 = vst.msk [vmem:[%s4343_s28 + $0x30] sm:$0xff] %vm565_vm0, %v2055_v55  ;;  %v3005_v57 = vpop.f32.mrb[50].mxu1 }
 0x6f4   : > { %v2070_v28 = vadd.f32 %v3005_v57, %v2378_v11  ;;  %v2064_v61 = vpop.f32.mrb[51].mxu1 }
 0x6f5   : > { %v2065_v12 = vadd.f32 %v2378_v11, %v2064_v61 }
 0x6f6   : > { %2112 = vst.msk [vmem:[%s4343_s28 + $0x48] sm:$0xff] %vm565_vm0, %v2070_v28 }
 0x6f7   : > { %2111 = vst.msk [vmem:[%s4343_s28 + $0x40] sm:$0xff] %vm565_vm0, %v2065_v12  ;;  %v3008_v15 = vpop.f32.mrb[52].mxu1 }
 0x6f8   : > { %v2080_v24 = vadd.f32 %v3008_v15, %v2378_v11  ;;  %v2074_v25 = vpop.f32.mrb[53].mxu1 }
 0x6f9   : > { %v2075_v29 = vadd.f32 %v2378_v11, %v2074_v25 }
 0x6fa   : > { %2114 = vst.msk [vmem:[%s4343_s28 + $0x58] sm:$0xff] %vm565_vm0, %v2080_v24 }
 0x6fb   : > { %2113 = vst.msk [vmem:[%s4343_s28 + $0x50] sm:$0xff] %vm565_vm0, %v2075_v29  ;;  %v3011_v30 = vpop.f32.mrb[54].mxu1 }
 0x6fc   : > { %v2090_v31 = vadd.f32 %v3011_v30, %v2378_v11  ;;  %v2084_v35 = vpop.f32.mrb[55].mxu1 }
 0x6fd   : > { %v2085_v37 = vadd.f32 %v2378_v11, %v2084_v35 }
 0x6fe   : > { %2116 = vst.msk [vmem:[%s4343_s28 + $0x68] sm:$0xff] %vm565_vm0, %v2090_v31 }
 0x6ff   : > { %2115 = vst.msk [vmem:[%s4343_s28 + $0x60] sm:$0xff] %vm565_vm0, %v2085_v37  ;;  %v3014_v14 = vpop.f32.mrb[56].mxu1 }
 0x700   : > { %v2100_v53 = vadd.f32 %v3014_v14, %v2378_v11  ;;  %v2094_v41 = vpop.f32.mrb[57].mxu1 }
 0x701   : > { %v2095_v10 = vadd.f32 %v2378_v11, %v2094_v41 }
 0x702   : > { %2118 = vst.msk [vmem:[%s4343_s28 + $0x78] sm:$0xff] %vm565_vm0, %v2100_v53 }
 0x703   : > { %2117 = vst.msk [vmem:[%s4343_s28 + $0x70] sm:$0xff] %vm565_vm0, %v2095_v10 }
 0x704 PF: > { %s27_s17 = sadd.s32 1, %s3644_s17  }
 0x705   : > { %p24_p13 = scmp.ge.s32.totalorder %s27_s17, 4  }
 0x707   :  { %26 = sbr.rel (!%p24_p13) target bundleno = 5 (0x5), region = 138 }
 0x70e   :  { %2156 = vsyncpa [#allocation3], 1 }
 0x70f   :  { %2158 = vsyncpa [#allocation3 + $0x1], 1 }
 0x710   :  { %2159 = vsyncpa [#allocation5], 1 }
 0x711   :  { %2160 = vsyncpa [#allocation8], 1 }
 0x712   :  { %2161 = vsyncpa [#allocation11], 1 }
 0x713   :  { %2162 = vsyncpa [#allocation14], 1 }

// kernel: anegcn2_forward.8
= control target key start
LH: loop header
LB: loop body
LE: loop exit
PB: predicated region body
PF: predicated region fallthrough
CT: control target
= control target key end

     0   :  { %s2199_s22 = smov 0   ;;  %s2729_s0 = inlined_call_operand.vmem [shape: f32[2,128,128], index: 0, kind: input, shape index: {}]   ;;  %s2730_s1 = inlined_call_operand.vmem [shape: f32[2,128,8], index: 1, kind: input, shape index: {}]   ;;  %s2731_s2 = inlined_call_operand.vmem [shape: f32[2,128,128], index: 2, kind: input, shape index: {}]   ;;  %s2732_s3 = inlined_call_operand.vmem [shape: f32[2,128,8], index: 3, kind: input, shape index: {}]   ;;  %s2733_s4 = inlined_call_operand.vmem [shape: f32[128,1], index: 4, kind: input, shape index: {}]   ;;  %s2734_s5 = inlined_call_operand.vmem [shape: f32[128,1], index: 5, kind: input, shape index: {}]   ;;  %s2735_s6 = inlined_call_operand.vmem [shape: f32[128,1], index: 6, kind: input, shape index: {}]   ;;  %s2736_s7 = inlined_call_operand.vmem [shape: f32[128,1], index: 7, kind: input, shape index: {}]   ;;  %s2737_s8 = inlined_call_operand.vmem [shape: f32[128,3], index: 8, kind: input, shape index: {}]   ;;  %s2738_s9 = inlined_call_operand.vmem [shape: f32[8,1], index: 9, kind: input, shape index: {}]   ;;  %s2739_s10 = inlined_call_operand.<no memory space> [shape: f32[1], index: 10, kind: input, shape index: {}]   ;;  %s2740_s11 = inlined_call_operand.<no memory space> [shape: f32[1], index: 11, kind: input, shape index: {}]   ;;  %s2741_s12 = inlined_call_operand.vmem [shape: f32[2,128,128], index: 12, kind: output, shape index: {0}]   ;;  %s2742_s13 = inlined_call_operand.vmem [shape: f32[2,128,8], index: 13, kind: output, shape index: {1}]   ;;  %s2743_s14 = inlined_call_operand.vmem [shape: f32[2,128,3], index: 14, kind: output, shape index: {2}]   ;;  %s2744_s15 = inlined_call_operand.vmem [shape: f32[2,128,1], index: 15, kind: output, shape index: {3}]  }
   0x1   :  { %21 = sst [smem:[#allocation2]] %s2739_s10 }
   0x2   :  { %22 = sst [smem:[#allocation3]] %s2740_s11 }
   0x3 LB: > { %s1883_s23 = sadd.s32 4294967295, %s2110_s22   ;;  %p1887_p0 = scmp.ge.s32.totalorder %s2110_s22, 1  ;;  %s2110_s22 = sphi %s2199_s22, %s28_s22  }
   0x4   : > { %p476_p1 = scmp.lt.s32.totalorder %s2110_s22, 3 }
   0x6   : > { %p477_p2 = pnand %p1887_p0, %p476_p1 }
   0x7   : > { %v628_v0 = vld [vmem:[%s2733_s4 + $0x8] sm:$0xff] (!%p477_p2)  ;;  %v627_v1 = vld [vmem:[%s2733_s4] sm:$0xff] (!%p477_p2)  ;;  %v2112_v2 = vmov (!%p477_p2), 0   ;;  %v933_v9 = vld [vmem:[%s2735_s6 + $0x10] sm:$0xff] (!%p477_p2)  ;;  %p554_p3 = scmp.lt.s32.totalorder (!%p477_p2), %s1883_s23, 1  ;;  %vm1251_vm0 = vcmask (!%p477_p2), 64512  }
   0x8   : > { %480 = sbr.rel (%p477_p2) target bundleno = 480 (0x1e0), region = 68  ;;  %2103 = vset.pattern.permute.xlu1 (!%p477_p2), %v2112_v2  ;;  %2102 = vset.pattern.permute.xlu0 (!%p477_p2), %v2112_v2  ;;  %v932_v3 = vld [vmem:[%s2735_s6 + $0x8] sm:$0xff] (!%p477_p2)  ;;  %v931_v4 = vld [vmem:[%s2735_s6] sm:$0xff] (!%p477_p2)  ;;  %v629_v10 = vld [vmem:[%s2733_s4 + $0x10] sm:$0xff] (!%p477_p2)  ;;  %s1465_s16 = sld [smem:[#allocation3]] (!%p477_p2)  ;;  %vm1447_vm2 = vcmask (!%p477_p2), 23552  }
   0x9   : > { %666 = vperm.xlu1 (!%p477_p2), %2103, %v628_v0   ;;  %661 = vperm.xlu0 (!%p477_p2), %2102, %v627_v1   ;;  %v1059_v5 = vld [vmem:[%s2736_s7] sm:$0xff] (!%p477_p2)  ;;  %v1060_v7 = vld [vmem:[%s2736_s7 + $0x8] sm:$0xff] (!%p477_p2)  ;;  %v934_v11 = vld [vmem:[%s2735_s6 + $0x18] sm:$0xff] (!%p477_p2)  ;;  %vm1676_vm3 = vcmask (!%p477_p2), 7168  }
   0xa   : > { %v755_v6 = vld [vmem:[%s2734_s5] sm:$0xff] (!%p477_p2)  ;;  %v756_v8 = vld [vmem:[%s2734_s5 + $0x8] sm:$0xff] (!%p477_p2)  ;;  %v630_v12 = vld [vmem:[%s2733_s4 + $0x18] sm:$0xff] (!%p477_p2) }
   0xb   : > { %v1268_v13 = vld [vmem:[%s2737_s8] sm:$0xff] (!%p477_p2)  ;;  %v1269_v14 = vld [vmem:[%s2737_s8 + $0x8] sm:$0xff] (!%p477_p2)  ;;  %v1270_v16 = vld [vmem:[%s2737_s8 + $0x10] sm:$0xff] (!%p477_p2) }
   0xc   : > { %v2061_v15 = vpack.c.bf16 (!%p477_p2), %v1269_v14, %v1268_v13  ;;  %v1271_v17 = vld [vmem:[%s2737_s8 + $0x18] sm:$0xff] (!%p477_p2)  ;;  %v1272_v19 = vld [vmem:[%s2737_s8 + $0x20] sm:$0xff] (!%p477_p2)  ;;  %v1273_v20 = vld [vmem:[%s2737_s8 + $0x28] sm:$0xff] (!%p477_p2) }
   0xd   : > { %970 = vperm.xlu1 (!%p477_p2), %2103, %v932_v3   ;;  %965 = vperm.xlu0 (!%p477_p2), %2102, %v931_v4   ;;  %v2065_v18 = vpack.c.bf16 (!%p477_p2), %v1271_v17, %v1270_v16  ;;  %v1061_v21 = vld [vmem:[%s2736_s7 + $0x10] sm:$0xff] (!%p477_p2)  ;;  %v2069_v23 = vpack.c.bf16 (!%p477_p2), %v1273_v20, %v1272_v19  ;;  %v1275_v25 = vld [vmem:[%s2737_s8 + $0x38] sm:$0xff] (!%p477_p2)  ;;  %v1464_v28 = vld [vmem:[%s2738_s9] sm:$0xff] (!%p477_p2) }
   0xe   : > { %v757_v22 = vld [vmem:[%s2734_s5 + $0x10] sm:$0xff] (!%p477_p2)  ;;  %2062 = vmatprep.subr.bf16.mxu0 (!%p477_p2), %v2061_v15  ;;  %v1062_v26 = vld [vmem:[%s2736_s7 + $0x18] sm:$0xff] (!%p477_p2)  ;;  %2035 = vmatprep.subr.mxu1 (!%p477_p2), %v1464_v28  ;;  %v1276_v30 = vld [vmem:[%s2737_s8 + $0x40] sm:$0xff] (!%p477_p2) }
   0xf   : > { %2064 = vmatpush3.bf16.msra.mxu0 %v2061_v15  ;;  %v1274_v24 = vld [vmem:[%s2737_s8 + $0x30] sm:$0xff]  ;;  %v758_v27 = vld [vmem:[%s2734_s5 + $0x18] sm:$0xff]  ;;  %v1277_v31 = vld [vmem:[%s2737_s8 + $0x48] sm:$0xff]  ;;  %2036 = vmatpush3.msra.mxu1 %v1464_v28  ;;  %s2746_s23 = smov (!%p554_p3, %s1883_s23), 1 }
  0x10   : > { %2066 = vmatprep.subr.bf16.mxu0 %v2065_v18  ;;  %v2073_v29 = vpack.c.bf16 %v1275_v25, %v1274_v24  ;;  %v935_v32 = vld [vmem:[%s2735_s6 + $0x20] sm:$0xff]  ;;  %v2077_v34 = vpack.c.bf16 %v1277_v31, %v1276_v30  ;;  %v1278_v35 = vld [vmem:[%s2737_s8 + $0x50] sm:$0xff]  ;;  %v1279_v36 = vld [vmem:[%s2737_s8 + $0x58] sm:$0xff]  ;;  %s2442_s26 = sshll.u32 %s2746_s23, 7 }
  0x11   : > { %1077 = vperm.xlu1 %2103, %v1059_v5   ;;  %773 = vperm.xlu0 %2102, %v755_v6   ;;  %v631_v33 = vld [vmem:[%s2733_s4 + $0x20] sm:$0xff]  ;;  %v936_v37 = vld [vmem:[%s2735_s6 + $0x28] sm:$0xff]  ;;  %v2081_v39 = vpack.c.bf16 %v1279_v36, %v1278_v35  ;;  %v1282_v45 = vld [vmem:[%s2737_s8 + $0x70] sm:$0xff]  ;;  %s2448_s29 = scalar_lea.vmem %s2732_s3, %s2442_s26  ;;  %s2454_s17 = scalar_lea.vmem %s2731_s2, %s2442_s26 }
  0x12   : > { %v632_v38 = vld [vmem:[%s2733_s4 + $0x28] sm:$0xff]  ;;  %v1280_v40 = vld [vmem:[%s2737_s8 + $0x60] sm:$0xff]  ;;  %v1283_v46 = vld [vmem:[%s2737_s8 + $0x78] sm:$0xff]  ;;  %s2460_s19 = scalar_lea.vmem %s2742_s13, %s2442_s26  ;;  %s2466_s10 = scalar_lea.vmem %s2741_s12, %s2442_s26 }
  0x13   : > { %2068 = vmatpush3.bf16.msra.mxu0 %v2065_v18  ;;  %v1281_v41 = vld [vmem:[%s2737_s8 + $0x68] sm:$0xff]  ;;  %v1063_v42 = vld [vmem:[%s2736_s7 + $0x20] sm:$0xff]  ;;  %v2089_v49 = vpack.c.bf16 %v1283_v46, %v1282_v45  ;;  %v937_v50 = vld [vmem:[%s2735_s6 + $0x30] sm:$0xff]  ;;  %s2483_s25 = scalar_lea.vmem %s2729_s0, %s2442_s26  ;;  %s2489_s30 = scalar_lea.vmem %s2730_s1, %s2442_s26 }
  0x14   : > { %2070 = vmatprep.subr.bf16.mxu0 %v2069_v23  ;;  %v759_v43 = vld [vmem:[%s2734_s5 + $0x20] sm:$0xff]  ;;  %v2085_v44 = vpack.c.bf16 %v1281_v41, %v1280_v40  ;;  %v1064_v47 = vld [vmem:[%s2736_s7 + $0x28] sm:$0xff]  ;;  %v633_v51 = vld [vmem:[%s2733_s4 + $0x30] sm:$0xff]  ;;  %s2624_s18 = scalar_lea.vmem %s2743_s14, %s2442_s26  ;;  %s2630_s21 = scalar_lea.vmem %s2744_s15, %s2442_s26 }
  0x15   : > { %1082 = vperm.xlu1 %2103, %v1060_v7   ;;  %778 = vperm.xlu0 %2102, %v756_v8   ;;  %v760_v48 = vld [vmem:[%s2734_s5 + $0x28] sm:$0xff]  ;;  %v938_v52 = vld [vmem:[%s2735_s6 + $0x38] sm:$0xff]  ;;  %v1065_v54 = vld [vmem:[%s2736_s7 + $0x30] sm:$0xff] }
  0x16   : > { %v634_v53 = vld [vmem:[%s2733_s4 + $0x38] sm:$0xff]  ;;  %v761_v55 = vld [vmem:[%s2734_s5 + $0x30] sm:$0xff]  ;;  %v939_v58 = vld [vmem:[%s2735_s6 + $0x40] sm:$0xff] }
  0x17   : > { %2072 = vmatpush3.bf16.msra.mxu0 %v2069_v23  ;;  %v1066_v56 = vld [vmem:[%s2736_s7 + $0x38] sm:$0xff]  ;;  %v635_v59 = vld [vmem:[%s2733_s4 + $0x40] sm:$0xff]  ;;  %v940_v60 = vld [vmem:[%s2735_s6 + $0x48] sm:$0xff] }
  0x18   : > { %2074 = vmatprep.subr.bf16.mxu0 %v2073_v29  ;;  %v762_v57 = vld [vmem:[%s2734_s5 + $0x38] sm:$0xff]  ;;  %v636_v61 = vld [vmem:[%s2733_s4 + $0x48] sm:$0xff]  ;;  %v1067_v62 = vld [vmem:[%s2736_s7 + $0x40] sm:$0xff] }
  0x19   : > { %975 = vperm.xlu1 %2103, %v933_v9   ;;  %671 = vperm.xlu0 %2102, %v629_v10   ;;  %v763_v63 = vld [vmem:[%s2734_s5 + $0x40] sm:$0xff]  ;;  %v1068_v0 = vld [vmem:[%s2736_s7 + $0x48] sm:$0xff]  ;;  %v941_v2 = vld [vmem:[%s2735_s6 + $0x50] sm:$0xff] }
  0x1a   : > { %v764_v1 = vld [vmem:[%s2734_s5 + $0x48] sm:$0xff]  ;;  %v637_v3 = vld [vmem:[%s2733_s4 + $0x50] sm:$0xff]  ;;  %v942_v4 = vld [vmem:[%s2735_s6 + $0x58] sm:$0xff] }
  0x1b   : > { %2076 = vmatpush3.bf16.msra.mxu0 %v2073_v29  ;;  %v638_v5 = vld [vmem:[%s2733_s4 + $0x58] sm:$0xff]  ;;  %v1069_v6 = vld [vmem:[%s2736_s7 + $0x50] sm:$0xff]  ;;  %v943_v10 = vld [vmem:[%s2735_s6 + $0x60] sm:$0xff] }
  0x1c   : > { %2078 = vmatprep.subr.bf16.mxu0 %v2077_v34  ;;  %v765_v7 = vld [vmem:[%s2734_s5 + $0x50] sm:$0xff]  ;;  %v1070_v8 = vld [vmem:[%s2736_s7 + $0x58] sm:$0xff]  ;;  %v640_v13 = vld [vmem:[%s2733_s4 + $0x68] sm:$0xff] }
  0x1d   : > { %980 = vperm.xlu1 %2103, %v934_v11   ;;  %676 = vperm.xlu0 %2102, %v630_v12   ;;  %v766_v9 = vld [vmem:[%s2734_s5 + $0x58] sm:$0xff]  ;;  %v639_v11 = vld [vmem:[%s2733_s4 + $0x60] sm:$0xff]  ;;  %v944_v12 = vld [vmem:[%s2735_s6 + $0x68] sm:$0xff] }
  0x1e   : > { %v1071_v14 = vld [vmem:[%s2736_s7 + $0x60] sm:$0xff]  ;;  %v768_v16 = vld [vmem:[%s2734_s5 + $0x68] sm:$0xff]  ;;  %v641_v17 = vld [vmem:[%s2733_s4 + $0x70] sm:$0xff] }
  0x1f   : > { %2080 = vmatpush3.bf16.msra.mxu0 %v2077_v34  ;;  %v767_v15 = vld [vmem:[%s2734_s5 + $0x60] sm:$0xff]  ;;  %v1072_v18 = vld [vmem:[%s2736_s7 + $0x68] sm:$0xff]  ;;  %v945_v19 = vld [vmem:[%s2735_s6 + $0x70] sm:$0xff] }
  0x20   : > { %2082 = vmatprep.subr.bf16.mxu0 %v2081_v39  ;;  %v1073_v20 = vld [vmem:[%s2736_s7 + $0x70] sm:$0xff]  ;;  %v2472_v23 = vld [vmem:[%s2448_s29 + $0x78] sm:$0xff]  ;;  %v947_v29 = vld [vmem:[%s2489_s30] sm:$0xff] }
  0x21   : > { %1087 = vperm.xlu1 %2103, %v1061_v21   ;;  %783 = vperm.xlu0 %2102, %v757_v22   ;;  %v769_v21 = vld [vmem:[%s2734_s5 + $0x70] sm:$0xff]  ;;  %v2469_v22 = vld [vmem:[%s2454_s17 + $0x78] sm:$0xff]  ;;  %1267 = vst.msk [vmem:[%s2460_s19 + $0x78] sm:$0xff] %vm1251_vm0, %v2472_v23 }
  0x22   : > { %1250 = vst [vmem:[%s2466_s10 + $0x78] sm:$0xff] %v2469_v22 }
  0x23   : > { %2084 = vmatpush3.bf16.msra.mxu0 %v2081_v39  ;;  %v1203_v39 = vld [vmem:[%s2448_s29] sm:$0xff] }
  0x24   : > { %2086 = vmatprep.subr.bf16.mxu0 %v2085_v44 }
  0x25   : > { %1092 = vperm.xlu1 %2103, %v1062_v26   ;;  %788 = vperm.xlu0 %2102, %v758_v27   ;;  %v643_v26 = vld [vmem:[%s2483_s25] sm:$0xff] }
  0x27   : > { %2088 = vmatpush3.bf16.msra.mxu0 %v2085_v44 }
  0x28   : > { %2090 = vmatprep.subr.bf16.mxu0 %v2089_v49 }
  0x29   : > { %985 = vperm.xlu1 %2103, %v935_v32   ;;  %681 = vperm.xlu0 %2102, %v631_v33   ;;  %v644_v32 = vld [vmem:[%s2483_s25 + $0x8] sm:$0xff] }
  0x2a   : > { %v948_v33 = vld [vmem:[%s2489_s30 + $0x8] sm:$0xff] }
  0x2b   : > { %2092 = vmatpush3.bf16.msra.mxu0 %v2089_v49 }
  0x2d   : > { %990 = vperm.xlu1 %2103, %v936_v37   ;;  %686 = vperm.xlu0 %2102, %v632_v38   ;;  %v899_v38 = vld [vmem:[%s2454_s17] sm:$0xff] }
  0x31   : > { %1097 = vperm.xlu1 %2103, %v1063_v42   ;;  %793 = vperm.xlu0 %2102, %v759_v43  }
  0x35   : > { %1102 = vperm.xlu1 %2103, %v1064_v47   ;;  %798 = vperm.xlu0 %2102, %v760_v48  }
  0x39   : > { %995 = vperm.xlu1 %2103, %v937_v50   ;;  %691 = vperm.xlu0 %2102, %v633_v51   ;;  %v1204_v50 = vld [vmem:[%s2448_s29 + $0x8] sm:$0xff] }
  0x3a   : > { %v900_v51 = vld [vmem:[%s2454_s17 + $0x8] sm:$0xff] }
  0x3d   : > { %1000 = vperm.xlu1 %2103, %v938_v52   ;;  %696 = vperm.xlu0 %2102, %v634_v53  }
  0x41   : > { %1107 = vperm.xlu1 %2103, %v1065_v54   ;;  %803 = vperm.xlu0 %2102, %v761_v55  }
  0x45   : > { %1112 = vperm.xlu1 %2103, %v1066_v56   ;;  %808 = vperm.xlu0 %2102, %v762_v57  }
  0x49   : > { %1005 = vperm.xlu1 %2103, %v939_v58   ;;  %701 = vperm.xlu0 %2102, %v635_v59   ;;  %v949_v58 = vld [vmem:[%s2489_s30 + $0x10] sm:$0xff] }
  0x4a   : > { %v645_v59 = vld [vmem:[%s2483_s25 + $0x10] sm:$0xff] }
  0x4d   : > { %1010 = vperm.xlu1 %2103, %v940_v60   ;;  %706 = vperm.xlu0 %2102, %v636_v61  }
  0x51   : > { %1117 = vperm.xlu1 %2103, %v1067_v62   ;;  %813 = vperm.xlu0 %2102, %v763_v63  }
  0x55   : > { %1122 = vperm.xlu1 %2103, %v1068_v0   ;;  %818 = vperm.xlu0 %2102, %v764_v1   ;;  %v950_v0 = vld [vmem:[%s2489_s30 + $0x18] sm:$0xff] }
  0x56   : > { %v646_v1 = vld [vmem:[%s2483_s25 + $0x18] sm:$0xff] }
  0x59   : > { %1015 = vperm.xlu1 %2103, %v941_v2   ;;  %711 = vperm.xlu0 %2102, %v637_v3  }
  0x5d   : > { %1020 = vperm.xlu1 %2103, %v942_v4   ;;  %716 = vperm.xlu0 %2102, %v638_v5  }
  0x61   : > { %1127 = vperm.xlu1 %2103, %v1069_v6   ;;  %823 = vperm.xlu0 %2102, %v765_v7   ;;  %v1205_v6 = vld [vmem:[%s2448_s29 + $0x10] sm:$0xff] }
  0x62   : > { %v901_v7 = vld [vmem:[%s2454_s17 + $0x10] sm:$0xff] }
  0x65   : > { %1132 = vperm.xlu1 %2103, %v1070_v8   ;;  %828 = vperm.xlu0 %2102, %v766_v9  }
  0x69   : > { %1025 = vperm.xlu1 %2103, %v943_v10   ;;  %721 = vperm.xlu0 %2102, %v639_v11  }
  0x6d   : > { %1030 = vperm.xlu1 %2103, %v944_v12   ;;  %726 = vperm.xlu0 %2102, %v640_v13  }
  0x71   : > { %1137 = vperm.xlu1 %2103, %v1071_v14   ;;  %833 = vperm.xlu0 %2102, %v767_v15  }
  0x75   : > { %838 = vperm.xlu1 %2103, %v768_v16   ;;  %731 = vperm.xlu0 %2102, %v641_v17  }
  0x79   : > { %1142 = vperm.xlu1 %2103, %v1072_v18   ;;  %1035 = vperm.xlu0 %2102, %v945_v19   ;;  %v1206_v18 = vld [vmem:[%s2448_s29 + $0x18] sm:$0xff] }
  0x7a   : > { %v902_v19 = vld [vmem:[%s2454_s17 + $0x18] sm:$0xff] }
  0x7d   : > { %1147 = vperm.xlu1 %2103, %v1073_v20   ;;  %843 = vperm.xlu0 %2102, %v769_v21  }
  0x88   : > { %v667_v24 = vpop.permute.xlu1 %666  ;;  %v662_v25 = vpop.permute.xlu0 %661 }
  0x89   : > { %v739_v30 = vmul.f32 %v662_v25, %v643_v26  ;;  %v740_v40 = vmul.f32 %v667_v24, %v644_v32 }
  0x8c   : > { %v971_v27 = vpop.permute.xlu1 %970  ;;  %v966_v28 = vpop.permute.xlu0 %965 }
  0x8d   : > { %v1043_v31 = vmul.f32 %v966_v28, %v947_v29  ;;  %v1044_v41 = vmul.f32 %v971_v27, %v948_v33  ;;  %v951_v28 = vld [vmem:[%s2489_s30 + $0x20] sm:$0xff] }
  0x8e   : > { %v647_v29 = vld [vmem:[%s2483_s25 + $0x20] sm:$0xff] }
  0x90   : > { %v1078_v34 = vpop.permute.xlu1 %1077  ;;  %v774_v35 = vpop.permute.xlu0 %773 }
  0x91   : > { %v1155_v36 = vadd.f32 %v1078_v34, %v1043_v31  ;;  %v851_v37 = vadd.f32 %v774_v35, %v739_v30  ;;  %v952_v34 = vld [vmem:[%s2489_s30 + $0x28] sm:$0xff] }
  0x92   : > { %v648_v35 = vld [vmem:[%s2483_s25 + $0x28] sm:$0xff] }
  0x93   : > { %v1171_v42 = vmax.f32 %v1155_v36, 0.0  ;;  %v867_v43 = vmax.f32 %v851_v37, 0.0 }
  0x94   : > { %v1083_v44 = vpop.permute.xlu1 %1082  ;;  %v779_v45 = vpop.permute.xlu0 %778 }
  0x95   : > { %v1156_v46 = vadd.f32 %v1083_v44, %v1044_v41  ;;  %v852_v47 = vadd.f32 %v779_v45, %v740_v40  ;;  %v915_v48 = vadd.f32 %v899_v38, %v867_v43  ;;  %v1219_v49 = vadd.f32 %v1203_v39, %v1171_v42  ;;  %v1207_v40 = vld [vmem:[%s2448_s29 + $0x20] sm:$0xff] }
  0x96   : > { %v903_v41 = vld [vmem:[%s2454_s17 + $0x20] sm:$0xff] }
  0x97   : > { %v1172_v52 = vmax.f32 %v1156_v46, 0.0  ;;  %v868_v53 = vmax.f32 %v852_v47, 0.0  ;;  %1235 = vst [vmem:[%s2466_s10] sm:$0xff] %v915_v48  ;;  %2011 = vmatprep.mubr.f32.mxu0 %v915_v48  ;;  %1252 = vst.msk [vmem:[%s2460_s19] sm:$0xff] %vm1251_vm0, %v1219_v49  ;;  %2037 = vmatprep.mubr.msk.f32.mxu1 %vm1251_vm0, %v1219_v49 }
  0x98   : > { %v976_v54 = vpop.permute.xlu1 %975  ;;  %v672_v55 = vpop.permute.xlu0 %671 }
  0x99   : > { %v1220_v56 = vadd.f32 %v1204_v50, %v1172_v52  ;;  %v916_v57 = vadd.f32 %v900_v51, %v868_v53  ;;  %v1045_v62 = vmul.f32 %v976_v54, %v949_v58  ;;  %v741_v63 = vmul.f32 %v672_v55, %v645_v59  ;;  %v1208_v52 = vld [vmem:[%s2448_s29 + $0x28] sm:$0xff] }
  0x9a   : > { %v904_v53 = vld [vmem:[%s2454_s17 + $0x28] sm:$0xff] }
  0x9b   : > { %1253 = vst.msk [vmem:[%s2460_s19 + $0x8] sm:$0xff] %vm1251_vm0, %v1220_v56  ;;  %1236 = vst [vmem:[%s2466_s10 + $0x8] sm:$0xff] %v916_v57  ;;  %2012 = vmatmul.mubr.f32.vlgmr.msra.gmra.mrb[0].mxu0 %v916_v57  ;;  %2038 = vmatmul.mubr.msk.f32.vlgmr.msra.gmra.mrb[0].mxu1 %vm1251_vm0, %v1220_v56 }
  0x9c   : > { %v981_v60 = vpop.permute.xlu1 %980  ;;  %v677_v61 = vpop.permute.xlu0 %676 }
  0x9d   : > { %v1046_v8 = vmul.f32 %v981_v60, %v950_v0  ;;  %v742_v9 = vmul.f32 %v677_v61, %v646_v1  ;;  %v953_v60 = vld [vmem:[%s2489_s30 + $0x30] sm:$0xff] }
  0x9e   : > { %v649_v61 = vld [vmem:[%s2483_s25 + $0x30] sm:$0xff] }
  0xa0   : > { %v1088_v2 = vpop.permute.xlu1 %1087  ;;  %v784_v3 = vpop.permute.xlu0 %783 }
  0xa1   : > { %v1157_v4 = vadd.f32 %v1088_v2, %v1045_v62  ;;  %v853_v5 = vadd.f32 %v784_v3, %v741_v63  ;;  %v954_v2 = vld [vmem:[%s2489_s30 + $0x38] sm:$0xff] }
  0xa2   : > { %v650_v3 = vld [vmem:[%s2483_s25 + $0x38] sm:$0xff] }
  0xa3   : > { %v1173_v10 = vmax.f32 %v1157_v4, 0.0  ;;  %v869_v11 = vmax.f32 %v853_v5, 0.0 }
  0xa4   : > { %v1093_v12 = vpop.permute.xlu1 %1092  ;;  %v789_v13 = vpop.permute.xlu0 %788 }
  0xa5   : > { %v1221_v14 = vadd.f32 %v1205_v6, %v1173_v10  ;;  %v917_v15 = vadd.f32 %v901_v7, %v869_v11  ;;  %v1158_v16 = vadd.f32 %v1093_v12, %v1046_v8  ;;  %v854_v17 = vadd.f32 %v789_v13, %v742_v9  ;;  %v1209_v8 = vld [vmem:[%s2448_s29 + $0x30] sm:$0xff] }
  0xa6   : > { %v905_v9 = vld [vmem:[%s2454_s17 + $0x30] sm:$0xff] }
  0xa7   : > { %1254 = vst.msk [vmem:[%s2460_s19 + $0x10] sm:$0xff] %vm1251_vm0, %v1221_v14  ;;  %1237 = vst [vmem:[%s2466_s10 + $0x10] sm:$0xff] %v917_v15  ;;  %v1174_v20 = vmax.f32 %v1158_v16, 0.0  ;;  %v870_v21 = vmax.f32 %v854_v17, 0.0  ;;  %2014 = vmatprep.mubr.f32.mxu0 %v917_v15  ;;  %2040 = vmatprep.mubr.msk.f32.mxu1 %vm1251_vm0, %v1221_v14 }
  0xa8   : > { %v986_v24 = vpop.permute.xlu1 %985  ;;  %v682_v25 = vpop.permute.xlu0 %681 }
  0xa9   : > { %v1222_v26 = vadd.f32 %v1206_v18, %v1174_v20  ;;  %v918_v27 = vadd.f32 %v902_v19, %v870_v21  ;;  %v1047_v32 = vmul.f32 %v986_v24, %v951_v28  ;;  %v743_v33 = vmul.f32 %v682_v25, %v647_v29  ;;  %v1210_v20 = vld [vmem:[%s2448_s29 + $0x38] sm:$0xff] }
  0xaa   : > { %v906_v21 = vld [vmem:[%s2454_s17 + $0x38] sm:$0xff] }
  0xab   : > { %1255 = vst.msk [vmem:[%s2460_s19 + $0x18] sm:$0xff] %vm1251_vm0, %v1222_v26  ;;  %1238 = vst [vmem:[%s2466_s10 + $0x18] sm:$0xff] %v918_v27  ;;  %2015 = vmatmul.mubr.f32.gmra.mrb[2].mxu0 %v918_v27  ;;  %2041 = vmatmul.mubr.msk.f32.gmra.mrb[2].mxu1 %vm1251_vm0, %v1222_v26 }
  0xac   : > { %v991_v30 = vpop.permute.xlu1 %990  ;;  %v687_v31 = vpop.permute.xlu0 %686 }
  0xad   : > { %v1048_v42 = vmul.f32 %v991_v30, %v952_v34  ;;  %v744_v43 = vmul.f32 %v687_v31, %v648_v35  ;;  %v955_v30 = vld [vmem:[%s2489_s30 + $0x40] sm:$0xff] }
  0xae   : > { %v651_v31 = vld [vmem:[%s2483_s25 + $0x40] sm:$0xff] }
  0xb0   : > { %v1098_v36 = vpop.permute.xlu1 %1097  ;;  %v794_v37 = vpop.permute.xlu0 %793 }
  0xb1   : > { %v1159_v38 = vadd.f32 %v1098_v36, %v1047_v32  ;;  %v855_v39 = vadd.f32 %v794_v37, %v743_v33  ;;  %v956_v36 = vld [vmem:[%s2489_s30 + $0x48] sm:$0xff] }
  0xb2   : > { %v652_v37 = vld [vmem:[%s2483_s25 + $0x48] sm:$0xff] }
  0xb3   : > { %v1175_v44 = vmax.f32 %v1159_v38, 0.0  ;;  %v871_v45 = vmax.f32 %v855_v39, 0.0 }
  0xb4   : > { %v1103_v46 = vpop.permute.xlu1 %1102  ;;  %v799_v47 = vpop.permute.xlu0 %798 }
  0xb5   : > { %v1223_v48 = vadd.f32 %v1207_v40, %v1175_v44  ;;  %v919_v49 = vadd.f32 %v903_v41, %v871_v45  ;;  %v1160_v50 = vadd.f32 %v1103_v46, %v1048_v42  ;;  %v856_v51 = vadd.f32 %v799_v47, %v744_v43  ;;  %v1211_v42 = vld [vmem:[%s2448_s29 + $0x40] sm:$0xff] }
  0xb6   : > { %v907_v43 = vld [vmem:[%s2454_s17 + $0x40] sm:$0xff] }
  0xb7   : > { %1256 = vst.msk [vmem:[%s2460_s19 + $0x20] sm:$0xff] %vm1251_vm0, %v1223_v48  ;;  %1239 = vst [vmem:[%s2466_s10 + $0x20] sm:$0xff] %v919_v49  ;;  %v1176_v54 = vmax.f32 %v1160_v50, 0.0  ;;  %v872_v55 = vmax.f32 %v856_v51, 0.0  ;;  %2017 = vmatprep.mubr.f32.mxu0 %v919_v49  ;;  %2043 = vmatprep.mubr.msk.f32.mxu1 %vm1251_vm0, %v1223_v48 }
  0xb8   : > { %v996_v56 = vpop.permute.xlu1 %995  ;;  %v692_v57 = vpop.permute.xlu0 %691 }
  0xb9   : > { %v1224_v58 = vadd.f32 %v1208_v52, %v1176_v54  ;;  %v920_v59 = vadd.f32 %v904_v53, %v872_v55  ;;  %v1049_v0 = vmul.f32 %v996_v56, %v953_v60  ;;  %v745_v1 = vmul.f32 %v692_v57, %v649_v61  ;;  %v1212_v54 = vld [vmem:[%s2448_s29 + $0x48] sm:$0xff] }
  0xba   : > { %v908_v55 = vld [vmem:[%s2454_s17 + $0x48] sm:$0xff] }
  0xbb   : > { %1257 = vst.msk [vmem:[%s2460_s19 + $0x28] sm:$0xff] %vm1251_vm0, %v1224_v58  ;;  %1240 = vst [vmem:[%s2466_s10 + $0x28] sm:$0xff] %v920_v59  ;;  %2018 = vmatmul.mubr.f32.gmra.mrb[4].mxu0 %v920_v59  ;;  %2044 = vmatmul.mubr.msk.f32.gmra.mrb[4].mxu1 %vm1251_vm0, %v1224_v58 }
  0xbc   : > { %v1001_v62 = vpop.permute.xlu1 %1000  ;;  %v697_v63 = vpop.permute.xlu0 %696 }
  0xbd   : > { %v1050_v10 = vmul.f32 %v1001_v62, %v954_v2  ;;  %v746_v11 = vmul.f32 %v697_v63, %v650_v3  ;;  %v957_v62 = vld [vmem:[%s2489_s30 + $0x50] sm:$0xff] }
  0xbe   : > { %v653_v63 = vld [vmem:[%s2483_s25 + $0x50] sm:$0xff] }
  0xc0   : > { %v1108_v4 = vpop.permute.xlu1 %1107  ;;  %v804_v5 = vpop.permute.xlu0 %803 }
  0xc1   : > { %v1161_v6 = vadd.f32 %v1108_v4, %v1049_v0  ;;  %v857_v7 = vadd.f32 %v804_v5, %v745_v1  ;;  %v958_v4 = vld [vmem:[%s2489_s30 + $0x58] sm:$0xff] }
  0xc2   : > { %v654_v5 = vld [vmem:[%s2483_s25 + $0x58] sm:$0xff] }
  0xc3   : > { %v1177_v12 = vmax.f32 %v1161_v6, 0.0  ;;  %v873_v13 = vmax.f32 %v857_v7, 0.0 }
  0xc4   : > { %v1113_v14 = vpop.permute.xlu1 %1112  ;;  %v809_v15 = vpop.permute.xlu0 %808 }
  0xc5   : > { %v1225_v16 = vadd.f32 %v1209_v8, %v1177_v12  ;;  %v921_v17 = vadd.f32 %v905_v9, %v873_v13  ;;  %v1162_v18 = vadd.f32 %v1113_v14, %v1050_v10  ;;  %v858_v19 = vadd.f32 %v809_v15, %v746_v11  ;;  %v1213_v10 = vld [vmem:[%s2448_s29 + $0x50] sm:$0xff] }
  0xc6   : > { %v909_v11 = vld [vmem:[%s2454_s17 + $0x50] sm:$0xff] }
  0xc7   : > { %1258 = vst.msk [vmem:[%s2460_s19 + $0x30] sm:$0xff] %vm1251_vm0, %v1225_v16  ;;  %1241 = vst [vmem:[%s2466_s10 + $0x30] sm:$0xff] %v921_v17  ;;  %v1178_v24 = vmax.f32 %v1162_v18, 0.0  ;;  %v874_v25 = vmax.f32 %v858_v19, 0.0  ;;  %2020 = vmatprep.mubr.f32.mxu0 %v921_v17  ;;  %2046 = vmatprep.mubr.msk.f32.mxu1 %vm1251_vm0, %v1225_v16 }
  0xc8   : > { %v1006_v26 = vpop.permute.xlu1 %1005  ;;  %v702_v27 = vpop.permute.xlu0 %701 }
  0xc9   : > { %v1226_v28 = vadd.f32 %v1210_v20, %v1178_v24  ;;  %v922_v29 = vadd.f32 %v906_v21, %v874_v25  ;;  %v1051_v34 = vmul.f32 %v1006_v26, %v955_v30  ;;  %v747_v35 = vmul.f32 %v702_v27, %v651_v31  ;;  %v1214_v24 = vld [vmem:[%s2448_s29 + $0x58] sm:$0xff] }
  0xca   : > { %v910_v25 = vld [vmem:[%s2454_s17 + $0x58] sm:$0xff] }
  0xcb   : > { %1259 = vst.msk [vmem:[%s2460_s19 + $0x38] sm:$0xff] %vm1251_vm0, %v1226_v28  ;;  %1242 = vst [vmem:[%s2466_s10 + $0x38] sm:$0xff] %v922_v29  ;;  %2021 = vmatmul.mubr.f32.gmra.mrb[6].mxu0 %v922_v29  ;;  %2047 = vmatmul.mubr.msk.f32.gmra.mrb[6].mxu1 %vm1251_vm0, %v1226_v28 }
  0xcc   : > { %v1011_v32 = vpop.permute.xlu1 %1010  ;;  %v707_v33 = vpop.permute.xlu0 %706 }
  0xcd   : > { %v1052_v44 = vmul.f32 %v1011_v32, %v956_v36  ;;  %v748_v45 = vmul.f32 %v707_v33, %v652_v37  ;;  %v959_v32 = vld [vmem:[%s2489_s30 + $0x60] sm:$0xff] }
  0xce   : > { %v655_v33 = vld [vmem:[%s2483_s25 + $0x60] sm:$0xff] }
  0xd0   : > { %v1118_v38 = vpop.permute.xlu1 %1117  ;;  %v814_v39 = vpop.permute.xlu0 %813 }
  0xd1   : > { %v1163_v40 = vadd.f32 %v1118_v38, %v1051_v34  ;;  %v859_v41 = vadd.f32 %v814_v39, %v747_v35  ;;  %v656_v38 = vld [vmem:[%s2483_s25 + $0x68] sm:$0xff] }
  0xd3   : > { %v1179_v46 = vmax.f32 %v1163_v40, 0.0  ;;  %v875_v47 = vmax.f32 %v859_v41, 0.0 }
  0xd4   : > { %v1123_v48 = vpop.permute.xlu1 %1122  ;;  %v819_v49 = vpop.permute.xlu0 %818 }
  0xd5   : > { %v1227_v50 = vadd.f32 %v1211_v42, %v1179_v46  ;;  %v923_v51 = vadd.f32 %v907_v43, %v875_v47  ;;  %v1164_v52 = vadd.f32 %v1123_v48, %v1052_v44  ;;  %v860_v53 = vadd.f32 %v819_v49, %v748_v45  ;;  %v1215_v43 = vld [vmem:[%s2448_s29 + $0x60] sm:$0xff]  ;;  %v960_v49 = vld [vmem:[%s2489_s30 + $0x68] sm:$0xff] }
  0xd6   : > { %v911_v44 = vld [vmem:[%s2454_s17 + $0x60] sm:$0xff]  ;;  %v594_v45 = vlaneseq }
  0xd7   : > { %1260 = vst.msk [vmem:[%s2460_s19 + $0x40] sm:$0xff] %vm1251_vm0, %v1227_v50  ;;  %1243 = vst [vmem:[%s2466_s10 + $0x40] sm:$0xff] %v923_v51  ;;  %v1180_v56 = vmax.f32 %v1164_v52, 0.0  ;;  %v876_v57 = vmax.f32 %v860_v53, 0.0  ;;  %2023 = vmatprep.mubr.f32.mxu0 %v923_v51  ;;  %2049 = vmatprep.mubr.msk.f32.mxu1 %vm1251_vm0, %v1227_v50 }
  0xd8   : > { %v1016_v58 = vpop.permute.xlu1 %1015  ;;  %v712_v59 = vpop.permute.xlu0 %711 }
  0xd9   : > { %v1228_v60 = vadd.f32 %v1212_v54, %v1180_v56  ;;  %v924_v61 = vadd.f32 %v908_v55, %v876_v57  ;;  %v1053_v2 = vmul.f32 %v1016_v58, %v957_v62  ;;  %v749_v3 = vmul.f32 %v712_v59, %v653_v63  ;;  %v912_v55 = vld [vmem:[%s2454_s17 + $0x68] sm:$0xff]  ;;  %v657_v59 = vld [vmem:[%s2483_s25 + $0x70] sm:$0xff] }
  0xda   : > { %v595_v56 = vshrl.u32 %v594_v45, 7  ;;  %v961_v62 = vld [vmem:[%s2489_s30 + $0x70] sm:$0xff] }
  0xdb   : > { %1261 = vst.msk [vmem:[%s2460_s19 + $0x48] sm:$0xff] %vm1251_vm0, %v1228_v60  ;;  %1244 = vst [vmem:[%s2466_s10 + $0x48] sm:$0xff] %v924_v61  ;;  %2024 = vmatmul.mubr.f32.gmra.mrb[8].mxu0 %v924_v61  ;;  %2050 = vmatmul.mubr.msk.f32.gmra.mrb[8].mxu1 %vm1251_vm0, %v1228_v60 }
  0xdc   : > { %v1021_v0 = vpop.permute.xlu1 %1020  ;;  %v717_v1 = vpop.permute.xlu0 %716 }
  0xdd   : > { %v1054_v12 = vmul.f32 %v1021_v0, %v958_v4  ;;  %v750_v13 = vmul.f32 %v717_v1, %v654_v5  ;;  %v1216_v1 = vld [vmem:[%s2448_s29 + $0x68] sm:$0xff] }
  0xe0   : > { %v1128_v6 = vpop.permute.xlu1 %1127  ;;  %v824_v7 = vpop.permute.xlu0 %823 }
  0xe1   : > { %v1165_v8 = vadd.f32 %v1128_v6, %v1053_v2  ;;  %v861_v9 = vadd.f32 %v824_v7, %v749_v3  ;;  %v609_v2 = vadd.s32 112, %v595_v56 }
  0xe3   : > { %v1181_v14 = vmax.f32 %v1165_v8, 0.0  ;;  %v877_v15 = vmax.f32 %v861_v9, 0.0  ;;  %vm625_vm1 = vcmp.lt.s32.totalorder %v609_v2, 116 }
  0xe4   : > { %v1133_v16 = vpop.permute.xlu1 %1132  ;;  %v829_v17 = vpop.permute.xlu0 %828 }
  0xe5   : > { %v1229_v18 = vadd.f32 %v1213_v10, %v1181_v14  ;;  %v925_v19 = vadd.f32 %v909_v11, %v877_v15  ;;  %v1166_v20 = vadd.f32 %v1133_v16, %v1054_v12  ;;  %v862_v21 = vadd.f32 %v829_v17, %v750_v13  ;;  %v1217_v12 = vld [vmem:[%s2448_s29 + $0x70] sm:$0xff]  ;;  %s1284_s29 = sld [smem:[#allocation2]] }
  0xe6   : > { %v913_v14 = vld [vmem:[%s2454_s17 + $0x70] sm:$0xff] }
  0xe7   : > { %1262 = vst.msk [vmem:[%s2460_s19 + $0x50] sm:$0xff] %vm1251_vm0, %v1229_v18  ;;  %1245 = vst [vmem:[%s2466_s10 + $0x50] sm:$0xff] %v925_v19  ;;  %v1182_v26 = vmax.f32 %v1166_v20, 0.0  ;;  %v878_v27 = vmax.f32 %v862_v21, 0.0  ;;  %2026 = vmatprep.mubr.f32.mxu0 %v925_v19  ;;  %2052 = vmatprep.mubr.msk.f32.mxu1 %vm1251_vm0, %v1229_v18  ;;  %v2616_v20 = vstv %s1465_s16 }
  0xe8   : > { %v1026_v28 = vpop.permute.xlu1 %1025  ;;  %v722_v29 = vpop.permute.xlu0 %721 }
  0xe9   : > { %v1230_v30 = vadd.f32 %v1214_v24, %v1182_v26  ;;  %v926_v31 = vadd.f32 %v910_v25, %v878_v27  ;;  %v1055_v36 = vmul.f32 %v1026_v28, %v959_v32  ;;  %v751_v37 = vmul.f32 %v722_v29, %v655_v33 }
  0xeb   : > { %1263 = vst.msk [vmem:[%s2460_s19 + $0x58] sm:$0xff] %vm1251_vm0, %v1230_v30  ;;  %1246 = vst [vmem:[%s2466_s10 + $0x58] sm:$0xff] %v926_v31  ;;  %2027 = vmatmul.mubr.f32.gmra.mrb[10].mxu0 %v926_v31  ;;  %2053 = vmatmul.mubr.msk.f32.gmra.mrb[10].mxu1 %vm1251_vm0, %v1230_v30  ;;  %v2614_v19 = vstv %s1284_s29 }
  0xec   : > { %v1031_v34 = vpop.permute.xlu1 %1030  ;;  %v727_v35 = vpop.permute.xlu0 %726 }
  0xed   : > { %v752_v46 = vmul.f32 %v727_v35, %v656_v38  ;;  %v1056_v57 = vmul.f32 %v1031_v34, %v960_v49 }
  0xf0   : > { %v1138_v39 = vpop.permute.xlu1 %1137  ;;  %v834_v40 = vpop.permute.xlu0 %833 }
  0xf1   : > { %v1167_v41 = vadd.f32 %v1138_v39, %v1055_v36  ;;  %v863_v42 = vadd.f32 %v834_v40, %v751_v37 }
  0xf3   : > { %v1183_v47 = vmax.f32 %v1167_v41, 0.0  ;;  %v879_v48 = vmax.f32 %v863_v42, 0.0 }
  0xf4   : > { %v839_v50 = vpop.permute.xlu1 %838  ;;  %v732_v51 = vpop.permute.xlu0 %731 }
  0xf5   : > { %v1231_v52 = vadd.f32 %v1215_v43, %v1183_v47  ;;  %v927_v53 = vadd.f32 %v911_v44, %v879_v48  ;;  %v864_v54 = vadd.f32 %v839_v50, %v752_v46  ;;  %v753_v3 = vmul.f32 %v732_v51, %v657_v59 }
  0xf7   : > { %1264 = vst.msk [vmem:[%s2460_s19 + $0x60] sm:$0xff] %vm1251_vm0, %v1231_v52  ;;  %1247 = vst [vmem:[%s2466_s10 + $0x60] sm:$0xff] %v927_v53  ;;  %v880_v58 = vmax.f32 %v864_v54, 0.0  ;;  %2029 = vmatprep.mubr.f32.mxu0 %v927_v53  ;;  %2055 = vmatprep.mubr.msk.f32.mxu1 %vm1251_vm0, %v1231_v52 }
  0xf8   : > { %v1143_v60 = vpop.permute.xlu1 %1142  ;;  %v1036_v61 = vpop.permute.xlu0 %1035 }
  0xf9   : > { %v928_v63 = vadd.f32 %v912_v55, %v880_v58  ;;  %v1168_v0 = vadd.f32 %v1143_v60, %v1056_v57  ;;  %v1057_v5 = vmul.f32 %v1036_v61, %v961_v62 }
  0xfb   : > { %1248 = vst [vmem:[%s2466_s10 + $0x68] sm:$0xff] %v928_v63  ;;  %v1184_v4 = vmax.f32 %v1168_v0, 0.0  ;;  %2030 = vmatmul.mubr.f32.gmra.mrb[12].mxu0 %v928_v63 }
  0xfc   : > { %v1148_v6 = vpop.permute.xlu1 %1147  ;;  %v844_v7 = vpop.permute.xlu0 %843 }
  0xfd   : > { %v1232_v8 = vadd.f32 %v1216_v1, %v1184_v4  ;;  %v1169_v9 = vadd.f32 %v1148_v6, %v1057_v5  ;;  %v865_v10 = vadd.f32 %v844_v7, %v753_v3 }
  0xff   : > { %1265 = vst.msk [vmem:[%s2460_s19 + $0x68] sm:$0xff] %vm1251_vm0, %v1232_v8  ;;  %v1185_v11 = vmax.f32 %v1169_v9, 0.0  ;;  %v881_v13 = vmax.f32 %v865_v10, 0.0  ;;  %2056 = vmatmul.mubr.msk.f32.gmra.mrb[12].mxu1 %vm1251_vm0, %v1232_v8 }
 0x101   : > { %v1201_v15 = vsel %vm625_vm1, %v1185_v11, 0.0  ;;  %v897_v16 = vsel %vm625_vm1, %v881_v13, 0.0 }
 0x102   : > { %v1233_v17 = vadd.f32 %v1217_v12, %v1201_v15  ;;  %v929_v18 = vadd.f32 %v913_v14, %v897_v16 }
 0x104   : > { %1266 = vst.msk [vmem:[%s2460_s19 + $0x70] sm:$0xff] %vm1251_vm0, %v1233_v17  ;;  %1249 = vst [vmem:[%s2466_s10 + $0x70] sm:$0xff] %v929_v18  ;;  %2032 = vmatprep.mubr.f32.mxu0 %v929_v18  ;;  %2058 = vmatprep.mubr.msk.f32.mxu1 %vm1251_vm0, %v1233_v17 }
 0x105   : > { %2033 = vmatmul.mubr.f32.gmra.mrb[14].mxu0 %v2469_v22  ;;  %2059 = vmatmul.mubr.msk.f32.gmra.mrb[14].mxu1 %vm1251_vm0, %v2472_v23 }
 0x16e   : > { %v2013_v21 = vpop.f32.mrb[0].mxu0  ;;  %v2039_v24 = vpop.f32.mrb[0].mxu1 }
 0x16f   : > { %v1358_v25 = vadd.f32 %v2013_v21, %v2614_v19  ;;  %v1587_v26 = vadd.f32 %v2039_v24, %v2616_v20  ;;  %v1352_v27 = vpop.f32.mrb[1].mxu0  ;;  %v1581_v28 = vpop.f32.mrb[1].mxu1 }
 0x170   : > { %v1353_v22 = vadd.f32 %v1352_v27, %v2614_v19  ;;  %v1582_v23 = vadd.f32 %v1581_v28, %v2616_v20 }
 0x171   : > { %v1432_v29 = vmax.f32 %v1358_v25, 0.0  ;;  %v1661_v30 = vmax.f32 %v1587_v26, 0.0 }
 0x172   : > { %v1431_v31 = vmax.f32 %v1353_v22, 0.0  ;;  %v1660_v32 = vmax.f32 %v1582_v23, 0.0 }
 0x173   : > { %1449 = vst.msk [vmem:[%s2624_s18 + $0x8] sm:$0xff] %vm1447_vm2, %v1432_v29 }
 0x174   : > { %1678 = vst.msk [vmem:[%s2630_s21 + $0x8] sm:$0xff] %vm1676_vm3, %v1661_v30  ;;  %1677 = vst.msk [vmem:[%s2630_s21] sm:$0xff] %vm1676_vm3, %v1660_v32 }
 0x175   : > { %1448 = vst.msk [vmem:[%s2624_s18] sm:$0xff] %vm1447_vm2, %v1431_v31 }
 0x17e   : > { %v2016_v33 = vpop.f32.mrb[2].mxu0  ;;  %v2042_v34 = vpop.f32.mrb[2].mxu1 }
 0x17f   : > { %v1368_v35 = vadd.f32 %v2016_v33, %v2614_v19  ;;  %v1597_v36 = vadd.f32 %v2042_v34, %v2616_v20  ;;  %v1362_v37 = vpop.f32.mrb[3].mxu0  ;;  %v1591_v38 = vpop.f32.mrb[3].mxu1 }
 0x180   : > { %v1363_v39 = vadd.f32 %v1362_v37, %v2614_v19  ;;  %v1592_v40 = vadd.f32 %v1591_v38, %v2616_v20 }
 0x181   : > { %v1434_v41 = vmax.f32 %v1368_v35, 0.0  ;;  %v1663_v42 = vmax.f32 %v1597_v36, 0.0 }
 0x182   : > { %v1433_v43 = vmax.f32 %v1363_v39, 0.0  ;;  %v1662_v44 = vmax.f32 %v1592_v40, 0.0 }
 0x183   : > { %1451 = vst.msk [vmem:[%s2624_s18 + $0x18] sm:$0xff] %vm1447_vm2, %v1434_v41 }
 0x184   : > { %1680 = vst.msk [vmem:[%s2630_s21 + $0x18] sm:$0xff] %vm1676_vm3, %v1663_v42  ;;  %1679 = vst.msk [vmem:[%s2630_s21 + $0x10] sm:$0xff] %vm1676_vm3, %v1662_v44 }
 0x185   : > { %1450 = vst.msk [vmem:[%s2624_s18 + $0x10] sm:$0xff] %vm1447_vm2, %v1433_v43 }
 0x18e   : > { %v2019_v45 = vpop.f32.mrb[4].mxu0  ;;  %v2045_v46 = vpop.f32.mrb[4].mxu1 }
 0x18f   : > { %v1378_v47 = vadd.f32 %v2019_v45, %v2614_v19  ;;  %v1607_v48 = vadd.f32 %v2045_v46, %v2616_v20  ;;  %v1372_v49 = vpop.f32.mrb[5].mxu0  ;;  %v1601_v50 = vpop.f32.mrb[5].mxu1 }
 0x190   : > { %v1373_v51 = vadd.f32 %v1372_v49, %v2614_v19  ;;  %v1602_v52 = vadd.f32 %v1601_v50, %v2616_v20 }
 0x191   : > { %v1436_v53 = vmax.f32 %v1378_v47, 0.0  ;;  %v1665_v54 = vmax.f32 %v1607_v48, 0.0 }
 0x192   : > { %v1435_v55 = vmax.f32 %v1373_v51, 0.0  ;;  %v1664_v56 = vmax.f32 %v1602_v52, 0.0 }
 0x193   : > { %1453 = vst.msk [vmem:[%s2624_s18 + $0x28] sm:$0xff] %vm1447_vm2, %v1436_v53 }
 0x194   : > { %1682 = vst.msk [vmem:[%s2630_s21 + $0x28] sm:$0xff] %vm1676_vm3, %v1665_v54  ;;  %1681 = vst.msk [vmem:[%s2630_s21 + $0x20] sm:$0xff] %vm1676_vm3, %v1664_v56 }
 0x195   : > { %1452 = vst.msk [vmem:[%s2624_s18 + $0x20] sm:$0xff] %vm1447_vm2, %v1435_v55 }
 0x19e   : > { %v2022_v57 = vpop.f32.mrb[6].mxu0  ;;  %v2048_v58 = vpop.f32.mrb[6].mxu1 }
 0x19f   : > { %v1388_v59 = vadd.f32 %v2022_v57, %v2614_v19  ;;  %v1617_v60 = vadd.f32 %v2048_v58, %v2616_v20  ;;  %v1382_v61 = vpop.f32.mrb[7].mxu0  ;;  %v1611_v62 = vpop.f32.mrb[7].mxu1 }
 0x1a0   : > { %v1383_v63 = vadd.f32 %v1382_v61, %v2614_v19  ;;  %v1612_v0 = vadd.f32 %v1611_v62, %v2616_v20 }
 0x1a1   : > { %v1438_v1 = vmax.f32 %v1388_v59, 0.0  ;;  %v1667_v2 = vmax.f32 %v1617_v60, 0.0 }
 0x1a2   : > { %v1437_v3 = vmax.f32 %v1383_v63, 0.0  ;;  %v1666_v4 = vmax.f32 %v1612_v0, 0.0 }
 0x1a3   : > { %1455 = vst.msk [vmem:[%s2624_s18 + $0x38] sm:$0xff] %vm1447_vm2, %v1438_v1 }
 0x1a4   : > { %1684 = vst.msk [vmem:[%s2630_s21 + $0x38] sm:$0xff] %vm1676_vm3, %v1667_v2  ;;  %1683 = vst.msk [vmem:[%s2630_s21 + $0x30] sm:$0xff] %vm1676_vm3, %v1666_v4 }
 0x1a5   : > { %1454 = vst.msk [vmem:[%s2624_s18 + $0x30] sm:$0xff] %vm1447_vm2, %v1437_v3 }
 0x1ae   : > { %v2025_v5 = vpop.f32.mrb[8].mxu0  ;;  %v2051_v6 = vpop.f32.mrb[8].mxu1 }
 0x1af   : > { %v1398_v7 = vadd.f32 %v2025_v5, %v2614_v19  ;;  %v1627_v8 = vadd.f32 %v2051_v6, %v2616_v20  ;;  %v1392_v9 = vpop.f32.mrb[9].mxu0  ;;  %v1621_v10 = vpop.f32.mrb[9].mxu1 }
 0x1b0   : > { %v1393_v11 = vadd.f32 %v1392_v9, %v2614_v19  ;;  %v1622_v12 = vadd.f32 %v1621_v10, %v2616_v20 }
 0x1b1   : > { %v1440_v13 = vmax.f32 %v1398_v7, 0.0  ;;  %v1669_v14 = vmax.f32 %v1627_v8, 0.0 }
 0x1b2   : > { %v1439_v15 = vmax.f32 %v1393_v11, 0.0  ;;  %v1668_v16 = vmax.f32 %v1622_v12, 0.0 }
 0x1b3   : > { %1457 = vst.msk [vmem:[%s2624_s18 + $0x48] sm:$0xff] %vm1447_vm2, %v1440_v13 }
 0x1b4   : > { %1686 = vst.msk [vmem:[%s2630_s21 + $0x48] sm:$0xff] %vm1676_vm3, %v1669_v14  ;;  %1685 = vst.msk [vmem:[%s2630_s21 + $0x40] sm:$0xff] %vm1676_vm3, %v1668_v16 }
 0x1b5   : > { %1456 = vst.msk [vmem:[%s2624_s18 + $0x40] sm:$0xff] %vm1447_vm2, %v1439_v15 }
 0x1be   : > { %v2028_v17 = vpop.f32.mrb[10].mxu0  ;;  %v2054_v18 = vpop.f32.mrb[10].mxu1 }
 0x1bf   : > { %v1408_v21 = vadd.f32 %v2028_v17, %v2614_v19  ;;  %v1637_v24 = vadd.f32 %v2054_v18, %v2616_v20  ;;  %v1402_v25 = vpop.f32.mrb[11].mxu0  ;;  %v1631_v26 = vpop.f32.mrb[11].mxu1 }
 0x1c0   : > { %v1403_v27 = vadd.f32 %v1402_v25, %v2614_v19  ;;  %v1632_v28 = vadd.f32 %v1631_v26, %v2616_v20 }
 0x1c1   : > { %v1442_v22 = vmax.f32 %v1408_v21, 0.0  ;;  %v1671_v23 = vmax.f32 %v1637_v24, 0.0 }
 0x1c2   : > { %v1441_v29 = vmax.f32 %v1403_v27, 0.0  ;;  %v1670_v30 = vmax.f32 %v1632_v28, 0.0 }
 0x1c3   : > { %1459 = vst.msk [vmem:[%s2624_s18 + $0x58] sm:$0xff] %vm1447_vm2, %v1442_v22 }
 0x1c4   : > { %1688 = vst.msk [vmem:[%s2630_s21 + $0x58] sm:$0xff] %vm1676_vm3, %v1671_v23  ;;  %1687 = vst.msk [vmem:[%s2630_s21 + $0x50] sm:$0xff] %vm1676_vm3, %v1670_v30 }
 0x1c5   : > { %1458 = vst.msk [vmem:[%s2624_s18 + $0x50] sm:$0xff] %vm1447_vm2, %v1441_v29 }
 0x1ce   : > { %v2031_v31 = vpop.f32.mrb[12].mxu0 }
 0x1cf   : > { %v1418_v32 = vadd.f32 %v2031_v31, %v2614_v19  ;;  %v1412_v33 = vpop.f32.mrb[13].mxu0 }
 0x1d0   : > { %v1413_v34 = vadd.f32 %v1412_v33, %v2614_v19 }
 0x1d1   : > { %v1444_v35 = vmax.f32 %v1418_v32, 0.0 }
 0x1d2   : > { %v1443_v36 = vmax.f32 %v1413_v34, 0.0  ;;  %v2057_v37 = vpop.f32.mrb[12].mxu1 }
 0x1d3   : > { %1461 = vst.msk [vmem:[%s2624_s18 + $0x68] sm:$0xff] %vm1447_vm2, %v1444_v35  ;;  %v1647_v38 = vadd.f32 %v2057_v37, %v2616_v20  ;;  %v1641_v39 = vpop.f32.mrb[13].mxu1 }
 0x1d4   : > { %1460 = vst.msk [vmem:[%s2624_s18 + $0x60] sm:$0xff] %vm1447_vm2, %v1443_v36  ;;  %v1642_v40 = vadd.f32 %v1641_v39, %v2616_v20 }
 0x1d5   : > { %v1673_v41 = vmax.f32 %v1647_v38, 0.0 }
 0x1d6   : > { %v1672_v42 = vmax.f32 %v1642_v40, 0.0 }
 0x1d7   : > { %1690 = vst.msk [vmem:[%s2630_s21 + $0x68] sm:$0xff] %vm1676_vm3, %v1673_v41 }
 0x1d8   : > { %1689 = vst.msk [vmem:[%s2630_s21 + $0x60] sm:$0xff] %vm1676_vm3, %v1672_v42  ;;  %v2034_v43 = vpop.f32.mrb[14].mxu0  ;;  %v2060_v44 = vpop.f32.mrb[14].mxu1 }
 0x1d9   : > { %v1428_v45 = vadd.f32 %v2034_v43, %v2614_v19  ;;  %v1657_v46 = vadd.f32 %v2060_v44, %v2616_v20  ;;  %v1422_v47 = vpop.f32.mrb[15].mxu0  ;;  %v1651_v48 = vpop.f32.mrb[15].mxu1 }
 0x1da   : > { %v1423_v49 = vadd.f32 %v1422_v47, %v2614_v19  ;;  %v1652_v50 = vadd.f32 %v1651_v48, %v2616_v20 }
 0x1db   : > { %v1446_v51 = vmax.f32 %v1428_v45, 0.0  ;;  %v1675_v52 = vmax.f32 %v1657_v46, 0.0 }
 0x1dc   : > { %v1445_v53 = vmax.f32 %v1423_v49, 0.0  ;;  %v1674_v54 = vmax.f32 %v1652_v50, 0.0 }
 0x1dd   : > { %1463 = vst.msk [vmem:[%s2624_s18 + $0x78] sm:$0xff] %vm1447_vm2, %v1446_v51 }
 0x1de   : > { %1692 = vst.msk [vmem:[%s2630_s21 + $0x78] sm:$0xff] %vm1676_vm3, %v1675_v52  ;;  %1691 = vst.msk [vmem:[%s2630_s21 + $0x70] sm:$0xff] %vm1676_vm3, %v1674_v54 }
 0x1df   : > { %1462 = vst.msk [vmem:[%s2624_s18 + $0x70] sm:$0xff] %vm1447_vm2, %v1445_v53 }
 0x1e0 PF: > { %s28_s22 = sadd.s32 1, %s2110_s22  }
 0x1e1   : > { %p25_p4 = scmp.ge.s32.totalorder %s28_s22, 4  }
 0x1e3   :  { %27 = sbr.rel (!%p25_p4) target bundleno = 3 (0x3), region = 143 }

// kernel: anegcn2_forward.9
= control target key start
LH: loop header
LB: loop body
LE: loop exit
PB: predicated region body
PF: predicated region fallthrough
CT: control target
= control target key end

     0   :  { %s3179_s17 = smov 0   ;;  %s3730_s0 = inlined_call_operand.vmem [shape: f32[2,128,8], index: 0, kind: input, shape index: {}]   ;;  %s3731_s1 = inlined_call_operand.vmem [shape: f32[2,128,128], index: 1, kind: input, shape index: {}]   ;;  %s3732_s2 = inlined_call_operand.vmem [shape: f32[8,8], index: 2, kind: input, shape index: {}]   ;;  %s3733_s3 = inlined_call_operand.vmem [shape: f32[1,8], index: 3, kind: input, shape index: {}]   ;;  %s3734_s4 = inlined_call_operand.vmem [shape: f32[128,128], index: 4, kind: input, shape index: {}]   ;;  %s3735_s5 = inlined_call_operand.vmem [shape: f32[1,128], index: 5, kind: input, shape index: {}]   ;;  %s3736_s6 = inlined_call_operand.vmem [shape: f32[128,128], index: 6, kind: input, shape index: {}]   ;;  %s3737_s7 = inlined_call_operand.vmem [shape: f32[1,128], index: 7, kind: input, shape index: {}]   ;;  %s3738_s8 = inlined_call_operand.vmem [shape: f32[8,8], index: 8, kind: input, shape index: {}]   ;;  %s3739_s9 = inlined_call_operand.vmem [shape: f32[1,8], index: 9, kind: input, shape index: {}]   ;;  %s3740_s10 = inlined_call_operand.vmem [shape: f32[2,128,128], index: 10, kind: output, shape index: {0}]   ;;  %s3741_s11 = inlined_call_operand.vmem [shape: f32[2,128,8], index: 11, kind: output, shape index: {1}]  }
   0x1 LB: > { %s2114_s18 = sadd.s32 4294967295, %s3117_s17   ;;  %p2118_p0 = scmp.ge.s32.totalorder %s3117_s17, 1  ;;  %s3117_s17 = sphi %s3179_s17, %s22_s17  }
   0x2   : > { %p350_p1 = scmp.lt.s32.totalorder %s3117_s17, 3 }
   0x4   : > { %p351_p2 = pnand %p2118_p0, %p350_p1 }
   0x5   : > { %v452_v0 = vld [vmem:[%s3732_s2] sm:$0xff] (!%p351_p2)  ;;  %p400_p3 = scmp.lt.s32.totalorder (!%p351_p2), %s2114_s18, 1  ;;  %vm460_vm0 = vcmask (!%p351_p2), 64512   ;;  %v1011_v61 = vld [vmem:[%s3734_s4 + $0x8] sm:$0xff] (!%p351_p2)  ;;  %v1012_v62 = vld [vmem:[%s3734_s4 + $0x10] sm:$0xff] (!%p351_p2) }
   0x6   : > { %354 = sbr.rel (%p351_p2) target bundleno = 1599 (0x63f), region = 60  ;;  %2427 = vmatprep.subr.mxu0 (!%p351_p2), %v452_v0  ;;  %v2127_v18 = vld [vmem:[%s3733_s3] ss:$0 sm:$0xff] (!%p351_p2)  ;;  %vm3237_vm1 = vmpackc.low (!%p351_p2), %vm460_vm0, %vm460_vm0 }
   0x7   : > { %2428 = vmatpush3.msra.mxu0 (!%p351_p2), %v452_v0  ;;  %v1010_v60 = vld [vmem:[%s3734_s4] sm:$0xff] (!%p351_p2)  ;;  %v1013_v0 = vld [vmem:[%s3734_s4 + $0x18] sm:$0xff] (!%p351_p2) }
   0x8   : > { %v2863_v63 = vpack.c.bf16 (!%p351_p2), %v1011_v61, %v1010_v60 }
   0xa   : > { %2864 = vmatprep.subr.bf16.mxu0 (!%p351_p2), %v2863_v63 }
   0xd   : > { %s3745_s18 = smov (!%p400_p3, %s2114_s18), 1 }
   0xe   : > { %s3190_s21 = sshll.u32 %s3745_s18, 7 }
   0xf   : > { %s3196_s24 = scalar_lea.vmem %s3730_s0, %s3190_s21  ;;  %s3424_s29 = scalar_lea.vmem %s3731_s1, %s3190_s21 }
  0x10   : > { %v420_v1 = vld [vmem:[%s3196_s24] sm:$0xff]  ;;  %v421_v2 = vld [vmem:[%s3196_s24 + $0x8] sm:$0xff]  ;;  %v422_v3 = vld [vmem:[%s3196_s24 + $0x10] sm:$0xff]  ;;  %s3668_s19 = scalar_lea.vmem %s3740_s10, %s3190_s21  ;;  %s3693_s26 = scalar_lea.vmem %s3741_s11, %s3190_s21 }
  0x11   : > { %2429 = vmatprep.mubr.msk.f32.mxu0 %vm460_vm0, %v420_v1  ;;  %v3202_v4 = vpack.c.bf16 %v421_v2, %v420_v1  ;;  %v423_v5 = vld [vmem:[%s3196_s24 + $0x18] sm:$0xff]  ;;  %v424_v6 = vld [vmem:[%s3196_s24 + $0x20] sm:$0xff]  ;;  %v425_v7 = vld [vmem:[%s3196_s24 + $0x28] sm:$0xff]  ;;  %v2867_v1 = vpack.c.bf16 %v1013_v0, %v1012_v62 }
  0x12   : > { %2430 = vmatmul.mubr.msk.f32.vlgmr.msra.gmra.mrb[0].mxu0 %vm460_vm0, %v421_v2  ;;  %v426_v8 = vld [vmem:[%s3196_s24 + $0x30] sm:$0xff]  ;;  %v427_v9 = vld [vmem:[%s3196_s24 + $0x38] sm:$0xff]  ;;  %v428_v10 = vld [vmem:[%s3196_s24 + $0x40] sm:$0xff] }
  0x13   : > { %2432 = vmatprep.mubr.msk.f32.mxu0 %vm460_vm0, %v422_v3  ;;  %v429_v11 = vld [vmem:[%s3196_s24 + $0x48] sm:$0xff]  ;;  %v430_v12 = vld [vmem:[%s3196_s24 + $0x50] sm:$0xff]  ;;  %v431_v13 = vld [vmem:[%s3196_s24 + $0x58] sm:$0xff]  ;;  %2866 = vmatpush3.bf16.msra.mxu0 %v2863_v63 }
  0x14   : > { %v432_v14 = vld [vmem:[%s3196_s24 + $0x60] sm:$0xff]  ;;  %v433_v15 = vld [vmem:[%s3196_s24 + $0x68] sm:$0xff]  ;;  %v434_v16 = vld [vmem:[%s3196_s24 + $0x70] sm:$0xff]  ;;  %2868 = vmatprep.subr.bf16.mxu0 %v2867_v1 }
  0x15   : > { %v435_v17 = vld [vmem:[%s3196_s24 + $0x78] sm:$0xff]  ;;  %v1014_v2 = vld [vmem:[%s3734_s4 + $0x20] sm:$0xff]  ;;  %v1015_v3 = vld [vmem:[%s3734_s4 + $0x28] sm:$0xff] }
  0x16   : > { %2433 = vmatmul.mubr.msk.f32.gmra.mrb[2].mxu0 %vm460_vm0, %v423_v5  ;;  %v2871_v5 = vpack.c.bf16 %v1015_v3, %v1014_v2  ;;  %v440_v61 = vld [vmem:[%s3424_s29 + $0x20] sm:$0xff]  ;;  %v441_v62 = vld [vmem:[%s3424_s29 + $0x28] sm:$0xff]  ;;  %v442_v0 = vld [vmem:[%s3424_s29 + $0x30] sm:$0xff] }
  0x17   : > { %2435 = vmatprep.mubr.msk.f32.mxu0 %vm460_vm0, %v424_v6  ;;  %2870 = vmatpush3.bf16.msra.mxu0 %v2867_v1  ;;  %v847_v6 = vlaneseq  ;;  %v2935_v63 = vpack.c.bf16 %v441_v62, %v440_v61  ;;  %v443_v1 = vld [vmem:[%s3424_s29 + $0x38] sm:$0xff]  ;;  %v444_v3 = vld [vmem:[%s3424_s29 + $0x40] sm:$0xff] }
  0x18   : > { %2872 = vmatprep.subr.bf16.mxu0 %v2871_v5  ;;  %v2939_v2 = vpack.c.bf16 %v443_v1, %v442_v0 }
  0x1a   : > { %2436 = vmatmul.mubr.msk.f32.gmra.mrb[4].mxu0 %vm460_vm0, %v425_v7  ;;  %v3307_v7 = vand.u32 127, %v847_v6 }
  0x1b   : > { %2438 = vmatprep.mubr.msk.f32.mxu0 %vm460_vm0, %v426_v8  ;;  %2874 = vmatpush3.bf16.msra.mxu0 %v2871_v5  ;;  %v445_v5 = vld [vmem:[%s3424_s29 + $0x48] sm:$0xff] }
  0x1c   : > { %vm849_vm2 = vcmp.lt.s32.totalorder %v3307_v7, 116  ;;  %v2943_v6 = vpack.c.bf16 %v445_v5, %v444_v3  ;;  %v446_v7 = vld [vmem:[%s3424_s29 + $0x50] sm:$0xff] }
  0x1e   : > { %2439 = vmatmul.mubr.msk.f32.gmra.mrb[6].mxu0 %vm460_vm0, %v427_v9 }
  0x1f   : > { %2441 = vmatprep.mubr.msk.f32.mxu0 %vm460_vm0, %v428_v10 }
  0x22   : > { %2442 = vmatmul.mubr.msk.f32.gmra.mrb[8].mxu0 %vm460_vm0, %v429_v11 }
  0x23   : > { %2444 = vmatprep.mubr.msk.f32.mxu0 %vm460_vm0, %v430_v12 }
  0x26   : > { %2445 = vmatmul.mubr.msk.f32.gmra.mrb[10].mxu0 %vm460_vm0, %v431_v13 }
  0x27   : > { %2447 = vmatprep.mubr.msk.f32.mxu0 %vm460_vm0, %v432_v14 }
  0x2a   : > { %2448 = vmatmul.mubr.msk.f32.gmra.mrb[12].mxu0 %vm460_vm0, %v433_v15 }
  0x2b   : > { %2450 = vmatprep.mubr.msk.f32.mxu0 %vm460_vm0, %v434_v16 }
  0x2e   : > { %2451 = vmatmul.mubr.msk.f32.gmra.mrb[14].mxu0 %vm460_vm0, %v435_v17 }
  0xe5   : > { %v2431_v19 = vpop.f32.mrb[0].mxu0 }
  0xe6   : > { %v581_v20 = vadd.f32 %v2431_v19, %v2127_v18  ;;  %v575_v21 = vpop.f32.mrb[1].mxu0 }
  0xe7   : > { %v576_v22 = vadd.f32 %v2127_v18, %v575_v21 }
  0xe9   : > { %2485 = vmatprep.mubr.msk.f32.mxu1 %vm460_vm0, %v576_v22  ;;  %v2815_v24 = vpack.c.bf16 %v581_v20, %v576_v22  ;;  %v2434_v25 = vpop.f32.mrb[2].mxu0 }
  0xea   : > { %v591_v26 = vadd.f32 %v2434_v25, %v2127_v18  ;;  %v585_v27 = vpop.f32.mrb[3].mxu0  ;;  %v1016_v25 = vld [vmem:[%s3734_s4 + $0x30] sm:$0xff] }
  0xeb   : > { %2817 = vmatprep.subr.msk.bf16.mxu1 %vm3237_vm1, %v2815_v24  ;;  %v586_v28 = vadd.f32 %v2127_v18, %v585_v27 }
  0xec   : > { %2820 = vmatpush3.bf16.xpose.msk.msra.mxu1 %vm3237_vm1, %v2815_v24 }
  0xed   : > { %v2821_v29 = vpack.c.bf16 %v591_v26, %v586_v28  ;;  %v2437_v30 = vpop.f32.mrb[4].mxu0 }
  0xee   : > { %v601_v31 = vadd.f32 %v2437_v30, %v2127_v18  ;;  %v595_v32 = vpop.f32.mrb[5].mxu0 }
  0xef   : > { %2823 = vmatprep.subr.msk.bf16.mxu1 %vm3237_vm1, %v2821_v29  ;;  %v596_v33 = vadd.f32 %v2127_v18, %v595_v32 }
  0xf1   : > { %v2827_v34 = vpack.c.bf16 %v601_v31, %v596_v33  ;;  %v2440_v35 = vpop.f32.mrb[6].mxu0 }
  0xf2   : > { %v611_v36 = vadd.f32 %v2440_v35, %v2127_v18  ;;  %v605_v37 = vpop.f32.mrb[7].mxu0  ;;  %v1019_v35 = vld [vmem:[%s3734_s4 + $0x48] sm:$0xff] }
  0xf3   : > { %v606_v38 = vadd.f32 %v2127_v18, %v605_v37 }
  0xf4   : > { %2826 = vmatpush3.bf16.xpose.msk.msra.mxu1 %vm3237_vm1, %v2821_v29 }
  0xf5   : > { %2829 = vmatprep.subr.msk.bf16.mxu1 %vm3237_vm1, %v2827_v34  ;;  %v2833_v39 = vpack.c.bf16 %v611_v36, %v606_v38  ;;  %v2443_v40 = vpop.f32.mrb[8].mxu0 }
  0xf6   : > { %v621_v41 = vadd.f32 %v2443_v40, %v2127_v18  ;;  %v615_v42 = vpop.f32.mrb[9].mxu0 }
  0xf7   : > { %v616_v43 = vadd.f32 %v2127_v18, %v615_v42  ;;  %v1021_v42 = vld [vmem:[%s3734_s4 + $0x58] sm:$0xff] }
  0xf9   : > { %v2839_v44 = vpack.c.bf16 %v621_v41, %v616_v43  ;;  %v2446_v45 = vpop.f32.mrb[10].mxu0 }
  0xfa   : > { %v631_v46 = vadd.f32 %v2446_v45, %v2127_v18  ;;  %v625_v47 = vpop.f32.mrb[11].mxu0 }
  0xfb   : > { %v626_v48 = vadd.f32 %v2127_v18, %v625_v47 }
  0xfc   : > { %2832 = vmatpush3.bf16.xpose.msk.msra.mxu1 %vm3237_vm1, %v2827_v34  ;;  %v1018_v34 = vld [vmem:[%s3734_s4 + $0x40] sm:$0xff] }
  0xfd   : > { %2835 = vmatprep.subr.msk.bf16.mxu1 %vm3237_vm1, %v2833_v39  ;;  %v2845_v49 = vpack.c.bf16 %v631_v46, %v626_v48  ;;  %v2449_v50 = vpop.f32.mrb[12].mxu0 }
  0xfe   : > { %v641_v51 = vadd.f32 %v2449_v50, %v2127_v18  ;;  %v635_v52 = vpop.f32.mrb[13].mxu0 }
  0xff   : > { %v636_v53 = vadd.f32 %v2127_v18, %v635_v52  ;;  %v1024_v52 = vld [vmem:[%s3734_s4 + $0x70] sm:$0xff] }
 0x101   : > { %v2851_v54 = vpack.c.bf16 %v641_v51, %v636_v53  ;;  %v2452_v55 = vpop.f32.mrb[14].mxu0 }
 0x102   : > { %v651_v56 = vadd.f32 %v2452_v55, %v2127_v18  ;;  %v645_v57 = vpop.f32.mrb[15].mxu0  ;;  %v436_v55 = vld [vmem:[%s3424_s29] sm:$0xff] }
 0x103   : > { %v646_v58 = vadd.f32 %v2127_v18, %v645_v57  ;;  %2541 = vmatprep.mubr.f32.mxu0 %v436_v55 }
 0x104   : > { %2838 = vmatpush3.bf16.xpose.msk.msra.mxu1 %vm3237_vm1, %v2833_v39 }
 0x105   : > { %2841 = vmatprep.subr.msk.bf16.mxu1 %vm3237_vm1, %v2839_v44  ;;  %v2857_v59 = vpack.c.bf16 %v651_v56, %v646_v58 }
 0x10c   : > { %2844 = vmatpush3.bf16.xpose.msk.msra.mxu1 %vm3237_vm1, %v2839_v44 }
 0x10d   : > { %2847 = vmatprep.subr.msk.bf16.mxu1 %vm3237_vm1, %v2845_v49 }
 0x114   : > { %2850 = vmatpush3.bf16.xpose.msk.msra.mxu1 %vm3237_vm1, %v2845_v49  ;;  %v1023_v49 = vld [vmem:[%s3734_s4 + $0x68] sm:$0xff] }
 0x115   : > { %2853 = vmatprep.subr.msk.bf16.mxu1 %vm3237_vm1, %v2851_v54 }
 0x11c   : > { %2856 = vmatpush3.bf16.xpose.msk.msra.mxu1 %vm3237_vm1, %v2851_v54 }
 0x11d   : > { %2859 = vmatprep.subr.msk.bf16.mxu1 %vm3237_vm1, %v2857_v59 }
 0x124   : > { %2862 = vmatpush3.bf16.xpose.msk.msra.mxu1 %vm3237_vm1, %v2857_v59  ;;  %v439_v59 = vld [vmem:[%s3424_s29 + $0x18] sm:$0xff] }
 0x12b   : > { %2486 = vmatmul.mubr.msk.f32.vlgmr.msra.gmra.mrb[0].mxu1 %vm460_vm0, %v581_v20 }
 0x12c   : > { %2488 = vmatprep.mubr.msk.f32.mxu1 %vm460_vm0, %v586_v28 }
 0x12f   : > { %2489 = vmatmul.mubr.msk.f32.gmra.mrb[2].mxu1 %vm460_vm0, %v591_v26  ;;  %v1017_v26 = vld [vmem:[%s3734_s4 + $0x38] sm:$0xff] }
 0x130   : > { %2491 = vmatprep.mubr.msk.f32.mxu1 %vm460_vm0, %v596_v33  ;;  %v2875_v29 = vpack.c.bf16 %v1017_v26, %v1016_v25 }
 0x132   : > { %2876 = vmatprep.subr.bf16.mxu0 %v2875_v29 }
 0x133   : > { %2492 = vmatmul.mubr.msk.f32.gmra.mrb[4].mxu1 %vm460_vm0, %v601_v31  ;;  %2878 = vmatpush3.bf16.msra.mxu0 %v2875_v29 }
 0x134   : > { %2494 = vmatprep.mubr.msk.f32.mxu1 %vm460_vm0, %v606_v38 }
 0x137   : > { %2495 = vmatmul.mubr.msk.f32.gmra.mrb[6].mxu1 %vm460_vm0, %v611_v36  ;;  %v2879_v36 = vpack.c.bf16 %v1019_v35, %v1018_v34 }
 0x138   : > { %2497 = vmatprep.mubr.msk.f32.mxu1 %vm460_vm0, %v616_v43 }
 0x139   : > { %2880 = vmatprep.subr.bf16.mxu0 %v2879_v36 }
 0x13a   : > { %2882 = vmatpush3.bf16.msra.mxu0 %v2879_v36 }
 0x13b   : > { %2498 = vmatmul.mubr.msk.f32.gmra.mrb[8].mxu1 %vm460_vm0, %v621_v41  ;;  %v1020_v41 = vld [vmem:[%s3734_s4 + $0x50] sm:$0xff] }
 0x13c   : > { %2500 = vmatprep.mubr.msk.f32.mxu1 %vm460_vm0, %v626_v48  ;;  %v2883_v43 = vpack.c.bf16 %v1021_v42, %v1020_v41  ;;  %v1022_v48 = vld [vmem:[%s3734_s4 + $0x60] sm:$0xff] }
 0x13d   : > { %v2887_v50 = vpack.c.bf16 %v1023_v49, %v1022_v48 }
 0x13e   : > { %2884 = vmatprep.subr.bf16.mxu0 %v2883_v43 }
 0x13f   : > { %2501 = vmatmul.mubr.msk.f32.gmra.mrb[10].mxu1 %vm460_vm0, %v631_v46  ;;  %2886 = vmatpush3.bf16.msra.mxu0 %v2883_v43 }
 0x140   : > { %2503 = vmatprep.mubr.msk.f32.mxu1 %vm460_vm0, %v636_v53  ;;  %2888 = vmatprep.subr.bf16.mxu0 %v2887_v50  ;;  %v1025_v53 = vld [vmem:[%s3734_s4 + $0x78] sm:$0xff] }
 0x141   : > { %v2891_v54 = vpack.c.bf16 %v1025_v53, %v1024_v52 }
 0x143   : > { %2504 = vmatmul.mubr.msk.f32.gmra.mrb[12].mxu1 %vm460_vm0, %v641_v51  ;;  %2890 = vmatpush3.bf16.msra.mxu0 %v2887_v50 }
 0x144   : > { %2506 = vmatprep.mubr.msk.f32.mxu1 %vm460_vm0, %v646_v58  ;;  %2892 = vmatprep.subr.bf16.mxu0 %v2891_v54  ;;  %v438_v58 = vld [vmem:[%s3424_s29 + $0x10] sm:$0xff] }
 0x145   : > { %v2931_v60 = vpack.c.bf16 %v439_v59, %v438_v58 }
 0x147   : > { %2507 = vmatmul.mubr.msk.f32.gmra.mrb[14].mxu1 %vm460_vm0, %v651_v56  ;;  %2894 = vmatpush3.bf16.msra.mxu0 %v2891_v54  ;;  %v437_v56 = vld [vmem:[%s3424_s29 + $0x8] sm:$0xff] }
 0x148   : > { %v2927_v57 = vpack.c.bf16 %v437_v56, %v436_v55 }
 0x14a   : > { %2542 = vmatmul.mubr.f32.vlgmr.msra.gmra.mrb[16].mxu0 %v437_v56  ;;  %2928 = vmatprep.subr.bf16.mxu1 %v2927_v57 }
 0x14b   : > { %2544 = vmatprep.mubr.f32.mxu0 %v438_v58  ;;  %2930 = vmatpush3.bf16.msra.mxu1 %v2927_v57 }
 0x14c   : > { %2932 = vmatprep.subr.bf16.mxu1 %v2931_v60 }
 0x14e   : > { %2545 = vmatmul.mubr.f32.gmra.mrb[18].mxu0 %v439_v59 }
 0x14f   : > { %2547 = vmatprep.mubr.f32.mxu0 %v440_v61  ;;  %2934 = vmatpush3.bf16.msra.mxu1 %v2931_v60 }
 0x150   : > { %2936 = vmatprep.subr.bf16.mxu1 %v2935_v63 }
 0x152   : > { %2548 = vmatmul.mubr.f32.gmra.mrb[20].mxu0 %v441_v62 }
 0x153   : > { %2550 = vmatprep.mubr.f32.mxu0 %v442_v0  ;;  %2938 = vmatpush3.bf16.msra.mxu1 %v2935_v63 }
 0x154   : > { %2940 = vmatprep.subr.bf16.mxu1 %v2939_v2 }
 0x156   : > { %2551 = vmatmul.mubr.f32.gmra.mrb[22].mxu0 %v443_v1 }
 0x157   : > { %2553 = vmatprep.mubr.f32.mxu0 %v444_v3  ;;  %2942 = vmatpush3.bf16.msra.mxu1 %v2939_v2 }
 0x158   : > { %2944 = vmatprep.subr.bf16.mxu1 %v2943_v6 }
 0x15a   : > { %2554 = vmatmul.mubr.f32.gmra.mrb[24].mxu0 %v445_v5 }
 0x15b   : > { %2556 = vmatprep.mubr.f32.mxu0 %v446_v7  ;;  %2946 = vmatpush3.bf16.msra.mxu1 %v2943_v6 }
 0x1fe   : > { %v2487_v8 = vpop.f32.mrb[0].mxu1 }
 0x1ff   : > { %v768_v9 = vpop.f32.mrb[1].mxu1  ;;  %v3317_v13 = vsel %vm849_vm2, %v2487_v8, -1e+30  ;;  %v447_v8 = vld [vmem:[%s3424_s29 + $0x58] sm:$0xff] }
 0x200   : > { %v3312_v10 = vsel %vm849_vm2, %v768_v9, -1e+30  ;;  %v2947_v9 = vpack.c.bf16 %v447_v8, %v446_v7  ;;  %2557 = vmatmul.mubr.f32.gmra.mrb[26].mxu0 %v447_v8 }
 0x201   : > { %866 = vmax.xlane.f32.xlu0 %v3312_v10 }
 0x202   : > { %v2490_v11 = vpop.f32.mrb[2].mxu1  ;;  %2948 = vmatprep.subr.bf16.mxu1 %v2947_v9 }
 0x203   : > { %v778_v12 = vpop.f32.mrb[3].mxu1  ;;  %v3327_v17 = vsel %vm849_vm2, %v2490_v11, -1e+30  ;;  %v448_v11 = vld [vmem:[%s3424_s29 + $0x60] sm:$0xff]  ;;  %2950 = vmatpush3.bf16.msra.mxu1 %v2947_v9 }
 0x204   : > { %v3321_v14 = vsel %vm849_vm2, %v778_v12, -1e+30  ;;  %v449_v12 = vld [vmem:[%s3424_s29 + $0x68] sm:$0xff]  ;;  %2559 = vmatprep.mubr.f32.mxu0 %v448_v11 }
 0x205   : > { %868 = vmax.xlane.f32.xlu0 %v3317_v13  ;;  %870 = vmax.xlane.f32.xlu1 %v3321_v14 }
 0x206   : > { %v2493_v15 = vpop.f32.mrb[4].mxu1  ;;  %2560 = vmatmul.mubr.f32.gmra.mrb[28].mxu0 %v449_v12 }
 0x207   : > { %v788_v16 = vpop.f32.mrb[5].mxu1  ;;  %v3337_v21 = vsel %vm849_vm2, %v2493_v15, -1e+30  ;;  %v2951_v15 = vpack.c.bf16 %v449_v12, %v448_v11 }
 0x208   : > { %v3331_v18 = vsel %vm849_vm2, %v788_v16, -1e+30  ;;  %v450_v16 = vld [vmem:[%s3424_s29 + $0x70] sm:$0xff] }
 0x209   : > { %872 = vmax.xlane.f32.xlu1 %v3327_v17  ;;  %874 = vmax.xlane.f32.xlu0 %v3331_v18 }
 0x20a   : > { %v2496_v19 = vpop.f32.mrb[6].mxu1  ;;  %2562 = vmatprep.mubr.f32.mxu0 %v450_v16  ;;  %2952 = vmatprep.subr.bf16.mxu1 %v2951_v15 }
 0x20b   : > { %v798_v20 = vpop.f32.mrb[7].mxu1  ;;  %v3353_v27 = vsel %vm849_vm2, %v2496_v19, -1e+30  ;;  %v451_v19 = vld [vmem:[%s3424_s29 + $0x78] sm:$0xff]  ;;  %2954 = vmatpush3.bf16.msra.mxu1 %v2951_v15 }
 0x20c   : > { %v3341_v22 = vsel %vm849_vm2, %v798_v20, -1e+30  ;;  %v2955_v20 = vpack.c.bf16 %v451_v19, %v450_v16  ;;  %2563 = vmatmul.mubr.f32.gmra.mrb[30].mxu0 %v451_v19 }
 0x20d   : > { %876 = vmax.xlane.f32.xlu1 %v3337_v21  ;;  %878 = vmax.xlane.f32.xlu0 %v3341_v22 }
 0x20e   : > { %v2499_v23 = vpop.f32.mrb[8].mxu1  ;;  %2956 = vmatprep.subr.bf16.mxu1 %v2955_v20 }
 0x20f   : > { %v808_v24 = vpop.f32.mrb[9].mxu1  ;;  %v3363_v32 = vsel %vm849_vm2, %v2499_v23, -1e+30  ;;  %2958 = vmatpush3.bf16.msra.mxu1 %v2955_v20 }
 0x210   : > { %v3357_v28 = vsel %vm849_vm2, %v808_v24, -1e+30  ;;  %2960 = vmatprep.subr.bf16.mxu1 %v3202_v4 }
 0x211   : > { %880 = vmax.xlane.f32.xlu1 %v3353_v27  ;;  %882 = vmax.xlane.f32.xlu0 %v3357_v28 }
 0x212   : > { %v2502_v30 = vpop.f32.mrb[10].mxu1 }
 0x213   : > { %v818_v31 = vpop.f32.mrb[11].mxu1  ;;  %v3379_v39 = vsel %vm849_vm2, %v2502_v30, -1e+30 }
 0x214   : > { %v3367_v33 = vsel %vm849_vm2, %v818_v31, -1e+30 }
 0x215   : > { %884 = vmax.xlane.f32.xlu1 %v3363_v32  ;;  %886 = vmax.xlane.f32.xlu0 %v3367_v33 }
 0x216   : > { %v2505_v37 = vpop.f32.mrb[12].mxu1 }
 0x217   : > { %v828_v38 = vpop.f32.mrb[13].mxu1  ;;  %v3395_v46 = vsel %vm849_vm2, %v2505_v37, -1e+30 }
 0x218   : > { %v3383_v40 = vsel %vm849_vm2, %v828_v38, -1e+30 }
 0x219   : > { %888 = vmax.xlane.f32.xlu1 %v3379_v39  ;;  %890 = vmax.xlane.f32.xlu0 %v3383_v40 }
 0x21a   : > { %v2508_v44 = vpop.f32.mrb[14].mxu1 }
 0x21b   : > { %v838_v45 = vpop.f32.mrb[15].mxu1  ;;  %v3411_v51 = vsel %vm849_vm2, %v2508_v44, -1e+30 }
 0x21c   : > { %v3399_v47 = vsel %vm849_vm2, %v838_v45, -1e+30 }
 0x21d   : > { %892 = vmax.xlane.f32.xlu1 %v3395_v46  ;;  %894 = vmax.xlane.f32.xlu0 %v3399_v47 }
 0x221   : > { %896 = vmax.xlane.f32.xlu1 %v3411_v51 }
 0x28e   : > { %v867_v23 = vpop.xlane.xlu0 %866 }
 0x28f   : > { %v898_v24 = vsub.f32 %v3312_v10, %v867_v23 }
 0x291   : > { %v914_v25 = vmul.f32 1.442695, %v898_v24  ;;  %v2176_v24 = vld [vmem:[%s3735_s5] ss:$0 sm:$0xff] }
 0x292   : > { %v869_v26 = vpop.xlane.xlu0 %868  ;;  %v871_v29 = vpop.xlane.xlu1 %870 }
 0x293   : > { %3033 = vpow2.f32 %v914_v25  ;;  %v899_v30 = vsub.f32 %v3317_v13, %v869_v26  ;;  %v900_v31 = vsub.f32 %v3321_v14, %v871_v29  ;;  %v2543_v25 = vpop.f32.mrb[16].mxu0 }
 0x294   : > { %v3510_v26 = vadd.f32 %v2543_v25, %v2176_v24  ;;  %v1099_v29 = vpop.f32.mrb[17].mxu0 }
 0x295   : > { %v916_v34 = vmul.f32 1.442695, %v899_v30  ;;  %v918_v35 = vmul.f32 1.442695, %v900_v31  ;;  %v1100_v30 = vadd.f32 %v2176_v24, %v1099_v29  ;;  %v2546_v31 = vpop.f32.mrb[18].mxu0 }
 0x296   : > { %v873_v36 = vpop.xlane.xlu1 %872  ;;  %v875_v37 = vpop.xlane.xlu0 %874 }
 0x297   : > { %3035 = vpow2.f32 %v916_v34  ;;  %v901_v38 = vsub.f32 %v3327_v17, %v873_v36  ;;  %v902_v41 = vsub.f32 %v3331_v18, %v875_v37  ;;  %2597 = vmatprep.mubr.f32.mxu0 %v1100_v30  ;;  %v3512_v34 = vadd.f32 %v2546_v31, %v2176_v24 }
 0x298   : > { %3037 = vpow2.f32 %v918_v35  ;;  %v1109_v35 = vpop.f32.mrb[19].mxu0 }
 0x299   : > { %v920_v42 = vmul.f32 1.442695, %v901_v38  ;;  %v922_v10 = vmul.f32 1.442695, %v902_v41  ;;  %v3514_v36 = vadd.f32 %v2176_v24, %v1109_v35  ;;  %v2549_v37 = vpop.f32.mrb[20].mxu0 }
 0x29a   : > { %v877_v43 = vpop.xlane.xlu1 %876  ;;  %v879_v44 = vpop.xlane.xlu0 %878  ;;  %v3516_v38 = vadd.f32 %v2549_v37, %v2176_v24 }
 0x29b   : > { %3039 = vpow2.f32 %v920_v42  ;;  %v903_v45 = vsub.f32 %v3337_v21, %v877_v43  ;;  %v904_v13 = vsub.f32 %v3341_v22, %v879_v44  ;;  %v1119_v41 = vpop.f32.mrb[21].mxu0 }
 0x29c   : > { %3041 = vpow2.f32 %v922_v10  ;;  %v3518_v42 = vadd.f32 %v2176_v24, %v1119_v41  ;;  %v2552_v10 = vpop.f32.mrb[22].mxu0 }
 0x29d   : > { %v3450_v14 = vpop.eup %3033  ;;  %v924_v48 = vmul.f32 1.442695, %v903_v45  ;;  %v926_v49 = vmul.f32 1.442695, %v904_v13  ;;  %v3520_v43 = vadd.f32 %v2552_v10, %v2176_v24  ;;  %v1129_v44 = vpop.f32.mrb[23].mxu0 }
 0x29e   : > { %v881_v50 = vpop.xlane.xlu1 %880  ;;  %v883_v52 = vpop.xlane.xlu0 %882  ;;  %946 = vadd.xlane.f32.xlu0 %v3450_v14  ;;  %v3522_v45 = vadd.f32 %v2176_v24, %v1129_v44 }
 0x29f   : > { %3043 = vpow2.f32 %v924_v48  ;;  %v905_v17 = vsub.f32 %v3353_v27, %v881_v50  ;;  %v906_v18 = vsub.f32 %v3357_v28, %v883_v52  ;;  %v2555_v13 = vpop.f32.mrb[24].mxu0 }
 0x2a0   : > { %3045 = vpow2.f32 %v926_v49  ;;  %v3524_v48 = vadd.f32 %v2555_v13, %v2176_v24  ;;  %v1139_v49 = vpop.f32.mrb[25].mxu0 }
 0x2a1   : > { %v3455_v53 = vpop.eup %3035  ;;  %v928_v21 = vmul.f32 1.442695, %v905_v17  ;;  %v930_v54 = vmul.f32 1.442695, %v906_v18  ;;  %v3526_v50 = vadd.f32 %v2176_v24, %v1139_v49 }
 0x2a2   : > { %v3457_v22 = vpop.eup %3037  ;;  %v885_v55 = vpop.xlane.xlu1 %884  ;;  %948 = vadd.xlane.f32.xlu1 %v3455_v53 }
 0x2a3   : > { %v887_v56 = vpop.xlane.xlu0 %886  ;;  %3047 = vpow2.f32 %v928_v21  ;;  %v907_v57 = vsub.f32 %v3363_v32, %v885_v55  ;;  %950 = vadd.xlane.f32.xlu0 %v3457_v22 }
 0x2a4   : > { %v908_v58 = vsub.f32 %v3367_v33, %v887_v56  ;;  %3049 = vpow2.f32 %v930_v54 }
 0x2a5   : > { %v3463_v27 = vpop.eup %3039  ;;  %v932_v28 = vmul.f32 1.442695, %v907_v57 }
 0x2a6   : > { %v934_v59 = vmul.f32 1.442695, %v908_v58  ;;  %v3465_v60 = vpop.eup %3041  ;;  %v889_v61 = vpop.xlane.xlu1 %888  ;;  %952 = vadd.xlane.f32.xlu1 %v3463_v27 }
 0x2a7   : > { %v891_v62 = vpop.xlane.xlu0 %890  ;;  %3051 = vpow2.f32 %v932_v28  ;;  %v909_v63 = vsub.f32 %v3379_v39, %v889_v61  ;;  %954 = vadd.xlane.f32.xlu0 %v3465_v60 }
 0x2a8   : > { %v910_v32 = vsub.f32 %v3383_v40, %v891_v62  ;;  %3053 = vpow2.f32 %v934_v59 }
 0x2a9   : > { %v3471_v33 = vpop.eup %3043  ;;  %v936_v0 = vmul.f32 1.442695, %v909_v63 }
 0x2aa   : > { %v938_v1 = vmul.f32 1.442695, %v910_v32  ;;  %v3473_v2 = vpop.eup %3045  ;;  %v893_v3 = vpop.xlane.xlu1 %892  ;;  %956 = vadd.xlane.f32.xlu1 %v3471_v33 }
 0x2ab   : > { %v895_v5 = vpop.xlane.xlu0 %894  ;;  %3055 = vpow2.f32 %v936_v0  ;;  %v911_v6 = vsub.f32 %v3395_v46, %v893_v3  ;;  %958 = vadd.xlane.f32.xlu0 %v3473_v2 }
 0x2ac   : > { %v912_v39 = vsub.f32 %v3399_v47, %v895_v5  ;;  %3057 = vpow2.f32 %v938_v1 }
 0x2ad   : > { %v3479_v40 = vpop.eup %3047  ;;  %v940_v7 = vmul.f32 1.442695, %v911_v6 }
 0x2ae   : > { %v942_v8 = vmul.f32 1.442695, %v912_v39  ;;  %v3481_v9 = vpop.eup %3049  ;;  %960 = vadd.xlane.f32.xlu1 %v3479_v40  ;;  %v897_v11 = vpop.xlane.xlu1 %896 }
 0x2af   : > { %3059 = vpow2.f32 %v940_v7  ;;  %v913_v12 = vsub.f32 %v3411_v51, %v897_v11  ;;  %962 = vadd.xlane.f32.xlu0 %v3481_v9 }
 0x2b0   : > { %3061 = vpow2.f32 %v942_v8 }
 0x2b1   : > { %v3486_v46 = vpop.eup %3051  ;;  %v944_v15 = vmul.f32 1.442695, %v913_v12 }
 0x2b2   : > { %v3488_v47 = vpop.eup %3053  ;;  %964 = vadd.xlane.f32.xlu1 %v3486_v46 }
 0x2b3   : > { %3063 = vpow2.f32 %v944_v15  ;;  %966 = vadd.xlane.f32.xlu0 %v3488_v47 }
 0x2b5   : > { %v3492_v16 = vpop.eup %3055 }
 0x2b6   : > { %v3494_v19 = vpop.eup %3057  ;;  %968 = vadd.xlane.f32.xlu1 %v3492_v16 }
 0x2b7   : > { %970 = vadd.xlane.f32.xlu0 %v3494_v19 }
 0x2b9   : > { %v3498_v51 = vpop.eup %3059 }
 0x2ba   : > { %v3500_v20 = vpop.eup %3061  ;;  %972 = vadd.xlane.f32.xlu1 %v3498_v51 }
 0x2bb   : > { %974 = vadd.xlane.f32.xlu0 %v3500_v20 }
 0x2bd   : > { %v3504_v23 = vpop.eup %3063 }
 0x2be   : > { %976 = vadd.xlane.f32.xlu1 %v3504_v23 }
 0x2d3   : > { %v2558_v52 = vpop.f32.mrb[26].mxu0 }
 0x2d4   : > { %v3528_v17 = vadd.f32 %v2558_v52, %v2176_v24  ;;  %v1149_v18 = vpop.f32.mrb[27].mxu0 }
 0x2d5   : > { %v3530_v21 = vadd.f32 %v2176_v24, %v1149_v18 }
 0x2d9   : > { %v2561_v54 = vpop.f32.mrb[28].mxu0 }
 0x2da   : > { %v3532_v55 = vadd.f32 %v2561_v54, %v2176_v24  ;;  %v1159_v56 = vpop.f32.mrb[29].mxu0 }
 0x2db   : > { %v3534_v57 = vadd.f32 %v2176_v24, %v1159_v56 }
 0x2df   : > { %v2564_v58 = vpop.f32.mrb[30].mxu0 }
 0x2e0   : > { %v3536_v28 = vadd.f32 %v2564_v58, %v2176_v24  ;;  %v1169_v59 = vpop.f32.mrb[31].mxu0 }
 0x2e1   : > { %v3538_v61 = vadd.f32 %v2176_v24, %v1169_v59 }
 0x32b   : > { %v947_v62 = vpop.xlane.xlu0 %946 }
 0x32c   : > { %3065 = vrcp.f32 %v947_v62 }
 0x32f   : > { %v949_v63 = vpop.xlane.xlu1 %948 }
 0x330   : > { %3067 = vrcp.f32 %v949_v63  ;;  %v951_v32 = vpop.xlane.xlu0 %950 }
 0x331   : > { %3069 = vrcp.f32 %v951_v32 }
 0x333   : > { %v953_v0 = vpop.xlane.xlu1 %952 }
 0x334   : > { %3071 = vrcp.f32 %v953_v0  ;;  %v955_v1 = vpop.xlane.xlu0 %954 }
 0x335   : > { %3073 = vrcp.f32 %v955_v1 }
 0x336   : > { %v3066_v5 = vpop.eup %3065 }
 0x337   : > { %v957_v3 = vpop.xlane.xlu1 %956  ;;  %v994_v7 = vmul.f32 %v3066_v5, %v3450_v14 }
 0x338   : > { %3075 = vrcp.f32 %v957_v3  ;;  %v959_v12 = vpop.xlane.xlu0 %958 }
 0x33a   : > { %v3068_v6 = vpop.eup %3067 }
 0x33b   : > { %v961_v39 = vpop.xlane.xlu1 %960  ;;  %v995_v8 = vmul.f32 %v3068_v6, %v3455_v53  ;;  %v3070_v11 = vpop.eup %3069 }
 0x33c   : > { %3077 = vrcp.f32 %v961_v39  ;;  %v996_v25 = vmul.f32 %v3070_v11, %v3457_v22  ;;  %v963_v53 = vpop.xlane.xlu0 %962 }
 0x33d   : > { %v2895_v15 = vpack.c.bf16 %v995_v8, %v994_v7  ;;  %3079 = vrcp.f32 %v959_v12  ;;  %v1626_v12 = vld [vmem:[%s3736_s6 + $0x68] sm:$0xff] }
 0x33e   : > { %v3072_v24 = vpop.eup %3071 }
 0x33f   : > { %2896 = vmatprep.subr.bf16.mxu0 %v2895_v15  ;;  %v997_v29 = vmul.f32 %v3072_v24, %v3463_v27  ;;  %v3074_v30 = vpop.eup %3073  ;;  %v965_v37 = vpop.xlane.xlu1 %964  ;;  %v1627_v24 = vld [vmem:[%s3736_s6 + $0x70] sm:$0xff] }
 0x340   : > { %2898 = vmatpush3.bf16.xpose.msra.mxu0 %v2895_v15  ;;  %v998_v41 = vmul.f32 %v3074_v30, %v3465_v60  ;;  %3081 = vrcp.f32 %v965_v37  ;;  %v967_v49 = vpop.xlane.xlu0 %966  ;;  %v3098_v37 = vld [vmem:[%s3196_s24 + $0x18] sm:$0xff] }
 0x341   : > { %v2899_v31 = vpack.c.bf16 %v997_v29, %v996_v25  ;;  %3083 = vrcp.f32 %v963_v53  ;;  %v1628_v25 = vld [vmem:[%s3736_s6 + $0x78] sm:$0xff] }
 0x342   : > { %v3076_v35 = vpop.eup %3075  ;;  %v3019_v29 = vpack.c.bf16 %v1628_v25, %v1627_v24 }
 0x343   : > { %2900 = vmatprep.subr.bf16.mxu0 %v2899_v31  ;;  %v999_v14 = vmul.f32 %v3076_v35, %v3471_v33  ;;  %v969_v27 = vpop.xlane.xlu1 %968  ;;  %v3097_v35 = vld [vmem:[%s3196_s24 + $0x10] sm:$0xff] }
 0x344   : > { %3085 = vrcp.f32 %v969_v27  ;;  %v971_v58 = vpop.xlane.xlu0 %970 }
 0x345   : > { %v2903_v10 = vpack.c.bf16 %v999_v14, %v998_v41  ;;  %3087 = vrcp.f32 %v967_v49  ;;  %v2963_v14 = vpack.c.bf16 %v3098_v37, %v3097_v35  ;;  %v3101_v49 = vld [vmem:[%s3196_s24 + $0x30] sm:$0xff] }
 0x346   : > { %v3078_v44 = vpop.eup %3077 }
 0x347   : > { %v3080_v22 = vpop.eup %3079  ;;  %v1001_v13 = vmul.f32 %v3078_v44, %v3479_v40  ;;  %v973_v33 = vpop.xlane.xlu1 %972  ;;  %v3100_v44 = vld [vmem:[%s3196_s24 + $0x28] sm:$0xff] }
 0x348   : > { %2902 = vmatpush3.bf16.xpose.msra.mxu0 %v2899_v31  ;;  %v1000_v52 = vmul.f32 %v3080_v22, %v3473_v2  ;;  %3089 = vrcp.f32 %v973_v33  ;;  %v975_v0 = vpop.xlane.xlu0 %974  ;;  %v3104_v33 = vld [vmem:[%s3196_s24 + $0x48] sm:$0xff] }
 0x349   : > { %2904 = vmatprep.subr.bf16.mxu0 %v2903_v10  ;;  %3091 = vrcp.f32 %v971_v58 }
 0x34a   : > { %v2907_v18 = vpack.c.bf16 %v1001_v13, %v1000_v52  ;;  %v3082_v54 = vpop.eup %3081  ;;  %v3102_v52 = vld [vmem:[%s3196_s24 + $0x38] sm:$0xff] }
 0x34b   : > { %v3084_v60 = vpop.eup %3083  ;;  %v1003_v56 = vmul.f32 %v3082_v54, %v3486_v46  ;;  %v977_v40 = vpop.xlane.xlu1 %976 }
 0x34c   : > { %v1002_v59 = vmul.f32 %v3084_v60, %v3481_v9  ;;  %3093 = vrcp.f32 %v977_v40  ;;  %v3103_v60 = vld [vmem:[%s3196_s24 + $0x40] sm:$0xff] }
 0x34d   : > { %3095 = vrcp.f32 %v975_v0  ;;  %v3107_v0 = vld [vmem:[%s3196_s24 + $0x60] sm:$0xff] }
 0x34e   : > { %v2911_v62 = vpack.c.bf16 %v1003_v56, %v1002_v59  ;;  %v3086_v63 = vpop.eup %3085  ;;  %v2975_v56 = vpack.c.bf16 %v3104_v33, %v3103_v60 }
 0x34f   : > { %v3088_v2 = vpop.eup %3087  ;;  %v1005_v32 = vmul.f32 %v3086_v63, %v3492_v16  ;;  %v3106_v63 = vld [vmem:[%s3196_s24 + $0x58] sm:$0xff] }
 0x350   : > { %2906 = vmatpush3.bf16.xpose.msra.mxu0 %v2903_v10  ;;  %v1004_v1 = vmul.f32 %v3088_v2, %v3488_v47  ;;  %v3099_v10 = vld [vmem:[%s3196_s24 + $0x20] sm:$0xff] }
 0x351   : > { %2908 = vmatprep.subr.bf16.mxu0 %v2907_v18  ;;  %v2967_v22 = vpack.c.bf16 %v3100_v44, %v3099_v10 }
 0x352   : > { %v2915_v3 = vpack.c.bf16 %v1005_v32, %v1004_v1  ;;  %v3090_v5 = vpop.eup %3089  ;;  %v3108_v1 = vld [vmem:[%s3196_s24 + $0x68] sm:$0xff] }
 0x353   : > { %v3092_v9 = vpop.eup %3091  ;;  %v1007_v46 = vmul.f32 %v3090_v5, %v3498_v51  ;;  %v1614_v51 = vld [vmem:[%s3736_s6 + $0x8] sm:$0xff] }
 0x354   : > { %v1006_v6 = vmul.f32 %v3092_v9, %v3494_v19  ;;  %v1613_v19 = vld [vmem:[%s3736_s6] sm:$0xff] }
 0x356   : > { %v2919_v39 = vpack.c.bf16 %v1007_v46, %v1006_v6  ;;  %v3094_v7 = vpop.eup %3093  ;;  %v3109_v46 = vld [vmem:[%s3196_s24 + $0x70] sm:$0xff]  ;;  %v3110_v6 = vld [vmem:[%s3196_s24 + $0x78] sm:$0xff] }
 0x357   : > { %v3096_v8 = vpop.eup %3095  ;;  %v1009_v16 = vmul.f32 %v3094_v7, %v3504_v23  ;;  %v2991_v23 = vpack.c.bf16 %v1614_v51, %v1613_v19 }
 0x358   : > { %2910 = vmatpush3.bf16.xpose.msra.mxu0 %v2907_v18  ;;  %v1008_v47 = vmul.f32 %v3096_v8, %v3500_v20  ;;  %v1615_v20 = vld [vmem:[%s3736_s6 + $0x10] sm:$0xff]  ;;  %v2971_v18 = vpack.c.bf16 %v3102_v52, %v3101_v49 }
 0x359   : > { %2912 = vmatprep.subr.bf16.mxu0 %v2911_v62 }
 0x35a   : > { %v2923_v11 = vpack.c.bf16 %v1009_v16, %v1008_v47  ;;  %v1797_v16 = vld [vmem:[%s3738_s8] sm:$0xff] }
 0x360   : > { %2914 = vmatpush3.bf16.xpose.msra.mxu0 %v2911_v62  ;;  %v3105_v62 = vld [vmem:[%s3196_s24 + $0x50] sm:$0xff] }
 0x361   : > { %2916 = vmatprep.subr.bf16.mxu0 %v2915_v3  ;;  %v2979_v2 = vpack.c.bf16 %v3106_v63, %v3105_v62 }
 0x368   : > { %2918 = vmatpush3.bf16.xpose.msra.mxu0 %v2915_v3  ;;  %v2983_v3 = vpack.c.bf16 %v3108_v1, %v3107_v0 }
 0x369   : > { %2920 = vmatprep.subr.bf16.mxu0 %v2919_v39 }
 0x370   : > { %2922 = vmatpush3.bf16.xpose.msra.mxu0 %v2919_v39  ;;  %v2987_v39 = vpack.c.bf16 %v3110_v6, %v3109_v46 }
 0x371   : > { %2924 = vmatprep.subr.bf16.mxu0 %v2923_v11 }
 0x378   : > { %2926 = vmatpush3.bf16.xpose.msra.mxu0 %v2923_v11 }
 0x379   : > { %2992 = vmatprep.subr.bf16.mxu0 %v2991_v23 }
 0x37f   : > { %2598 = vmatmul.mubr.f32.vlgmr.msra.gmra.mrb[32].mxu0 %v3510_v26  ;;  %v1616_v26 = vld [vmem:[%s3736_s6 + $0x18] sm:$0xff] }
 0x380   : > { %2600 = vmatprep.mubr.f32.mxu0 %v3514_v36  ;;  %v1617_v36 = vld [vmem:[%s3736_s6 + $0x20] sm:$0xff]  ;;  %2994 = vmatpush3.bf16.msra.mxu0 %v2991_v23 }
 0x383   : > { %2601 = vmatmul.mubr.f32.gmra.mrb[34].mxu0 %v3512_v34  ;;  %v2995_v34 = vpack.c.bf16 %v1616_v26, %v1615_v20 }
 0x384   : > { %2603 = vmatprep.mubr.f32.mxu0 %v3518_v42 }
 0x385   : > { %2996 = vmatprep.subr.bf16.mxu0 %v2995_v34 }
 0x386   : > { %2998 = vmatpush3.bf16.msra.mxu0 %v2995_v34 }
 0x387   : > { %2604 = vmatmul.mubr.f32.gmra.mrb[36].mxu0 %v3516_v38  ;;  %v1618_v38 = vld [vmem:[%s3736_s6 + $0x28] sm:$0xff] }
 0x388   : > { %2606 = vmatprep.mubr.f32.mxu0 %v3522_v45  ;;  %v2999_v42 = vpack.c.bf16 %v1618_v38, %v1617_v36  ;;  %v1620_v45 = vld [vmem:[%s3736_s6 + $0x38] sm:$0xff] }
 0x38a   : > { %3000 = vmatprep.subr.bf16.mxu0 %v2999_v42 }
 0x38b   : > { %2607 = vmatmul.mubr.f32.gmra.mrb[38].mxu0 %v3520_v43  ;;  %v1619_v43 = vld [vmem:[%s3736_s6 + $0x30] sm:$0xff] }
 0x38c   : > { %2609 = vmatprep.mubr.f32.mxu0 %v3526_v50  ;;  %v1621_v50 = vld [vmem:[%s3736_s6 + $0x40] sm:$0xff]  ;;  %3002 = vmatpush3.bf16.msra.mxu0 %v2999_v42 }
 0x38f   : > { %2610 = vmatmul.mubr.f32.gmra.mrb[40].mxu0 %v3524_v48  ;;  %v3003_v48 = vpack.c.bf16 %v1620_v45, %v1619_v43 }
 0x390   : > { %2612 = vmatprep.mubr.f32.mxu0 %v3530_v21 }
 0x391   : > { %3004 = vmatprep.subr.bf16.mxu0 %v3003_v48 }
 0x392   : > { %3006 = vmatpush3.bf16.msra.mxu0 %v3003_v48 }
 0x393   : > { %2613 = vmatmul.mubr.f32.gmra.mrb[42].mxu0 %v3528_v17  ;;  %v1622_v17 = vld [vmem:[%s3736_s6 + $0x48] sm:$0xff] }
 0x394   : > { %2615 = vmatprep.mubr.f32.mxu0 %v3534_v57  ;;  %v3007_v21 = vpack.c.bf16 %v1622_v17, %v1621_v50  ;;  %v1624_v57 = vld [vmem:[%s3736_s6 + $0x58] sm:$0xff] }
 0x396   : > { %3008 = vmatprep.subr.bf16.mxu0 %v3007_v21 }
 0x397   : > { %2616 = vmatmul.mubr.f32.gmra.mrb[44].mxu0 %v3532_v55  ;;  %v1623_v55 = vld [vmem:[%s3736_s6 + $0x50] sm:$0xff] }
 0x398   : > { %2618 = vmatprep.mubr.f32.mxu0 %v3538_v61  ;;  %v1625_v61 = vld [vmem:[%s3736_s6 + $0x60] sm:$0xff]  ;;  %3010 = vmatpush3.bf16.msra.mxu0 %v3007_v21 }
 0x399   : > { %v3015_v15 = vpack.c.bf16 %v1626_v12, %v1625_v61 }
 0x39b   : > { %2619 = vmatmul.mubr.f32.gmra.mrb[46].mxu0 %v3536_v28  ;;  %v3011_v28 = vpack.c.bf16 %v1624_v57, %v1623_v55 }
 0x39d   : > { %3012 = vmatprep.subr.bf16.mxu0 %v3011_v28 }
 0x39e   : > { %3014 = vmatpush3.bf16.msra.mxu0 %v3011_v28 }
 0x39f   : > { %3016 = vmatprep.subr.bf16.mxu0 %v3015_v15 }
 0x3a2   : > { %3018 = vmatpush3.bf16.msra.mxu0 %v3015_v15 }
 0x3a3   : > { %3020 = vmatprep.subr.bf16.mxu0 %v3019_v29 }
 0x3a6   : > { %3022 = vmatpush3.bf16.msra.mxu0 %v3019_v29 }
 0x3a7   : > { %2789 = vmatprep.subr.mxu0 %v1797_v16 }
 0x452   : > { %v3619_v30 = vpop.f32.mrb[32].mxu0 }
 0x453   : > { %v3621_v31 = vpop.f32.mrb[33].mxu0 }
 0x454   : > { %2653 = vmatprep.mubr.f32.mxu1 %v3621_v31 }
 0x455   : > { %2654 = vmatmul.mubr.f32.vlgmr.msra.gmra.mrb[16].mxu1 %v3619_v30 }
 0x456   : > { %2962 = vmatpush3.bf16.msra.mxu1 %v3202_v4  ;;  %v2602_v53 = vpop.f32.mrb[34].mxu0 }
 0x457   : > { %v1254_v41 = vpop.f32.mrb[35].mxu0  ;;  %2964 = vmatprep.subr.bf16.mxu1 %v2963_v14 }
 0x458   : > { %2656 = vmatprep.mubr.f32.mxu1 %v1254_v41 }
 0x459   : > { %2657 = vmatmul.mubr.f32.gmra.mrb[18].mxu1 %v2602_v53 }
 0x45a   : > { %2966 = vmatpush3.bf16.msra.mxu1 %v2963_v14  ;;  %v2605_v27 = vpop.f32.mrb[36].mxu0 }
 0x45b   : > { %v1264_v13 = vpop.f32.mrb[37].mxu0  ;;  %2968 = vmatprep.subr.bf16.mxu1 %v2967_v22 }
 0x45c   : > { %2659 = vmatprep.mubr.f32.mxu1 %v1264_v13 }
 0x45d   : > { %2660 = vmatmul.mubr.f32.gmra.mrb[20].mxu1 %v2605_v27 }
 0x45e   : > { %2970 = vmatpush3.bf16.msra.mxu1 %v2967_v22  ;;  %v2608_v4 = vpop.f32.mrb[38].mxu0 }
 0x45f   : > { %v1274_v54 = vpop.f32.mrb[39].mxu0  ;;  %2972 = vmatprep.subr.bf16.mxu1 %v2971_v18 }
 0x460   : > { %2662 = vmatprep.mubr.f32.mxu1 %v1274_v54 }
 0x461   : > { %2663 = vmatmul.mubr.f32.gmra.mrb[22].mxu1 %v2608_v4 }
 0x462   : > { %2974 = vmatpush3.bf16.msra.mxu1 %v2971_v18  ;;  %v2611_v58 = vpop.f32.mrb[40].mxu0 }
 0x463   : > { %v1284_v59 = vpop.f32.mrb[41].mxu0  ;;  %2976 = vmatprep.subr.bf16.mxu1 %v2975_v56 }
 0x464   : > { %2665 = vmatprep.mubr.f32.mxu1 %v1284_v59 }
 0x465   : > { %2666 = vmatmul.mubr.f32.gmra.mrb[24].mxu1 %v2611_v58 }
 0x466   : > { %2978 = vmatpush3.bf16.msra.mxu1 %v2975_v56  ;;  %v2614_v40 = vpop.f32.mrb[42].mxu0 }
 0x467   : > { %v1294_v32 = vpop.f32.mrb[43].mxu0  ;;  %2980 = vmatprep.subr.bf16.mxu1 %v2979_v2 }
 0x468   : > { %2668 = vmatprep.mubr.f32.mxu1 %v1294_v32 }
 0x469   : > { %2669 = vmatmul.mubr.f32.gmra.mrb[26].mxu1 %v2614_v40 }
 0x46a   : > { %2982 = vmatpush3.bf16.msra.mxu1 %v2979_v2  ;;  %v2617_v5 = vpop.f32.mrb[44].mxu0 }
 0x46b   : > { %v1304_v9 = vpop.f32.mrb[45].mxu0  ;;  %2984 = vmatprep.subr.bf16.mxu1 %v2983_v3 }
 0x46c   : > { %2671 = vmatprep.mubr.f32.mxu1 %v1304_v9 }
 0x46d   : > { %2672 = vmatmul.mubr.f32.gmra.mrb[28].mxu1 %v2617_v5 }
 0x46e   : > { %2986 = vmatpush3.bf16.msra.mxu1 %v2983_v3  ;;  %v2620_v7 = vpop.f32.mrb[46].mxu0 }
 0x46f   : > { %v1314_v8 = vpop.f32.mrb[47].mxu0  ;;  %2988 = vmatprep.subr.bf16.mxu1 %v2987_v39 }
 0x470   : > { %2674 = vmatprep.mubr.f32.mxu1 %v1314_v8 }
 0x471   : > { %2675 = vmatmul.mubr.f32.gmra.mrb[30].mxu1 %v2620_v7 }
 0x472   : > { %2990 = vmatpush3.bf16.msra.mxu1 %v2987_v39  ;;  %2709 = vmatprep.mubr.f32.mxu1 %v3621_v31 }
 0x473   : > { %3023 = vmatprep.subr.mxu1 %v1797_v16 }
 0x475   : > { %2710 = vmatmul.mubr.f32.vlgmr.msra.gmra.mrb[32].mxu1 %v3619_v30 }
 0x476   : > { %2712 = vmatprep.mubr.f32.mxu1 %v1254_v41  ;;  %3024 = vmatpush3.msra.mxu1 %v1797_v16  ;;  %v2177_v41 = vld [vmem:[%s3737_s7] ss:$0 sm:$0xff] }
 0x479   : > { %2713 = vmatmul.mubr.f32.gmra.mrb[34].mxu1 %v2602_v53 }
 0x47a   : > { %2715 = vmatprep.mubr.f32.mxu1 %v1264_v13 }
 0x47d   : > { %2716 = vmatmul.mubr.f32.gmra.mrb[36].mxu1 %v2605_v27 }
 0x47e   : > { %2718 = vmatprep.mubr.f32.mxu1 %v1274_v54 }
 0x481   : > { %2719 = vmatmul.mubr.f32.gmra.mrb[38].mxu1 %v2608_v4 }
 0x482   : > { %2721 = vmatprep.mubr.f32.mxu1 %v1284_v59 }
 0x485   : > { %2722 = vmatmul.mubr.f32.gmra.mrb[40].mxu1 %v2611_v58 }
 0x486   : > { %2724 = vmatprep.mubr.f32.mxu1 %v1294_v32 }
 0x489   : > { %2725 = vmatmul.mubr.f32.gmra.mrb[42].mxu1 %v2614_v40 }
 0x48a   : > { %2727 = vmatprep.mubr.f32.mxu1 %v1304_v9 }
 0x48d   : > { %2728 = vmatmul.mubr.f32.gmra.mrb[44].mxu1 %v2617_v5 }
 0x48e   : > { %2730 = vmatprep.mubr.f32.mxu1 %v1314_v8 }
 0x491   : > { %2731 = vmatmul.mubr.f32.gmra.mrb[46].mxu1 %v2620_v7 }
 0x528   : > { %v2655_v47 = vpop.f32.mrb[16].mxu1 }
 0x529   : > { %v1389_v11 = vpop.f32.mrb[17].mxu1 }
 0x52a   : > { %2765 = vmatprep.mubr.f32.mxu0 %v1389_v11  ;;  %v2178_v11 = vld [vmem:[%s3739_s9] ss:$0 sm:$0xff] }
 0x52b   : > { %2766 = vmatmul.mubr.f32.vlgmr.msra.gmra.mrb[48].mxu0 %v2655_v47 }
 0x52c   : > { %v2658_v19 = vpop.f32.mrb[18].mxu1  ;;  %2790 = vmatpush3.msra.mxu0 %v1797_v16 }
 0x52d   : > { %v1399_v51 = vpop.f32.mrb[19].mxu1 }
 0x52e   : > { %2768 = vmatprep.mubr.f32.mxu0 %v1399_v51 }
 0x52f   : > { %2769 = vmatmul.mubr.f32.gmra.mrb[50].mxu0 %v2658_v19 }
 0x530   : > { %v2661_v20 = vpop.f32.mrb[20].mxu1 }
 0x531   : > { %v1409_v23 = vpop.f32.mrb[21].mxu1 }
 0x532   : > { %2771 = vmatprep.mubr.f32.mxu0 %v1409_v23 }
 0x533   : > { %2772 = vmatmul.mubr.f32.gmra.mrb[52].mxu0 %v2661_v20 }
 0x534   : > { %v2664_v26 = vpop.f32.mrb[22].mxu1 }
 0x535   : > { %v1419_v34 = vpop.f32.mrb[23].mxu1 }
 0x536   : > { %2774 = vmatprep.mubr.f32.mxu0 %v1419_v34 }
 0x537   : > { %2775 = vmatmul.mubr.f32.gmra.mrb[54].mxu0 %v2664_v26 }
 0x538   : > { %v2667_v36 = vpop.f32.mrb[24].mxu1 }
 0x539   : > { %v1429_v38 = vpop.f32.mrb[25].mxu1 }
 0x53a   : > { %2777 = vmatprep.mubr.f32.mxu0 %v1429_v38 }
 0x53b   : > { %2778 = vmatmul.mubr.f32.gmra.mrb[56].mxu0 %v2667_v36 }
 0x53c   : > { %v2670_v42 = vpop.f32.mrb[26].mxu1 }
 0x53d   : > { %v1439_v43 = vpop.f32.mrb[27].mxu1 }
 0x53e   : > { %2780 = vmatprep.mubr.f32.mxu0 %v1439_v43 }
 0x53f   : > { %2781 = vmatmul.mubr.f32.gmra.mrb[58].mxu0 %v2670_v42 }
 0x540   : > { %v2673_v45 = vpop.f32.mrb[28].mxu1 }
 0x541   : > { %v1449_v48 = vpop.f32.mrb[29].mxu1 }
 0x542   : > { %2783 = vmatprep.mubr.f32.mxu0 %v1449_v48 }
 0x543   : > { %2784 = vmatmul.mubr.f32.gmra.mrb[60].mxu0 %v2673_v45 }
 0x544   : > { %v2676_v50 = vpop.f32.mrb[30].mxu1 }
 0x545   : > { %v1459_v17 = vpop.f32.mrb[31].mxu1 }
 0x546   : > { %2786 = vmatprep.mubr.f32.mxu0 %v1459_v17 }
 0x547   : > { %2787 = vmatmul.mubr.f32.gmra.mrb[62].mxu0 %v2676_v50 }
 0x548   : > { %v2711_v21 = vpop.f32.mrb[32].mxu1 }
 0x549   : > { %v1534_v55 = vpop.f32.mrb[33].mxu1 }
 0x54a   : > { %2791 = vmatprep.mubr.msk.f32.mxu0 %vm460_vm0, %v1534_v55 }
 0x54b   : > { %2792 = vmatmul.mubr.msk.f32.vlgmr.msra.gmra.mrb[64].mxu0 %vm460_vm0, %v2711_v21 }
 0x54c   : > { %v2714_v57 = vpop.f32.mrb[34].mxu1 }
 0x54d   : > { %v1544_v28 = vpop.f32.mrb[35].mxu1 }
 0x54e   : > { %2794 = vmatprep.mubr.msk.f32.mxu0 %vm460_vm0, %v1544_v28 }
 0x54f   : > { %2795 = vmatmul.mubr.msk.f32.gmra.mrb[66].mxu0 %vm460_vm0, %v2714_v57 }
 0x550   : > { %v2717_v61 = vpop.f32.mrb[36].mxu1 }
 0x551   : > { %v1554_v12 = vpop.f32.mrb[37].mxu1 }
 0x552   : > { %2797 = vmatprep.mubr.msk.f32.mxu0 %vm460_vm0, %v1554_v12 }
 0x553   : > { %2798 = vmatmul.mubr.msk.f32.gmra.mrb[68].mxu0 %vm460_vm0, %v2717_v61 }
 0x554   : > { %v2720_v15 = vpop.f32.mrb[38].mxu1 }
 0x555   : > { %v1564_v24 = vpop.f32.mrb[39].mxu1 }
 0x556   : > { %2800 = vmatprep.mubr.msk.f32.mxu1 %vm460_vm0, %v1564_v24 }
 0x557   : > { %2801 = vmatmul.mubr.msk.f32.vlgmr.msra.gmra.mrb[48].mxu1 %vm460_vm0, %v2720_v15 }
 0x558   : > { %v2723_v25 = vpop.f32.mrb[40].mxu1 }
 0x559   : > { %v1574_v29 = vpop.f32.mrb[41].mxu1 }
 0x55a   : > { %2803 = vmatprep.mubr.msk.f32.mxu1 %vm460_vm0, %v1574_v29 }
 0x55b   : > { %2804 = vmatmul.mubr.msk.f32.gmra.mrb[50].mxu1 %vm460_vm0, %v2723_v25 }
 0x55c   : > { %v2726_v30 = vpop.f32.mrb[42].mxu1 }
 0x55d   : > { %v1584_v31 = vpop.f32.mrb[43].mxu1 }
 0x55e   : > { %2806 = vmatprep.mubr.msk.f32.mxu1 %vm460_vm0, %v1584_v31 }
 0x55f   : > { %2807 = vmatmul.mubr.msk.f32.gmra.mrb[52].mxu1 %vm460_vm0, %v2726_v30 }
 0x560   : > { %v2729_v35 = vpop.f32.mrb[44].mxu1 }
 0x561   : > { %v1594_v37 = vpop.f32.mrb[45].mxu1 }
 0x562   : > { %2809 = vmatprep.mubr.msk.f32.mxu1 %vm460_vm0, %v1594_v37 }
 0x563   : > { %2810 = vmatmul.mubr.msk.f32.gmra.mrb[54].mxu1 %vm460_vm0, %v2729_v35 }
 0x564   : > { %v2732_v14 = vpop.f32.mrb[46].mxu1 }
 0x565   : > { %v1604_v53 = vpop.f32.mrb[47].mxu1 }
 0x566   : > { %2812 = vmatprep.mubr.msk.f32.mxu1 %vm460_vm0, %v1604_v53 }
 0x567   : > { %2813 = vmatmul.mubr.msk.f32.gmra.mrb[56].mxu1 %vm460_vm0, %v2732_v14 }
 0x5fe   : > { %v2767_v10 = vpop.f32.mrb[48].mxu0 }
 0x5ff   : > { %v1708_v44 = vadd.f32 %v2767_v10, %v2177_v41  ;;  %v1702_v22 = vpop.f32.mrb[49].mxu0 }
 0x600   : > { %v1703_v27 = vadd.f32 %v2177_v41, %v1702_v22 }
 0x601   : > { %1782 = vst [vmem:[%s3668_s19 + $0x8] sm:$0xff] %v1708_v44 }
 0x602   : > { %1781 = vst [vmem:[%s3668_s19] sm:$0xff] %v1703_v27  ;;  %v2770_v13 = vpop.f32.mrb[50].mxu0 }
 0x603   : > { %v1718_v49 = vadd.f32 %v2770_v13, %v2177_v41  ;;  %v1712_v52 = vpop.f32.mrb[51].mxu0 }
 0x604   : > { %v1713_v18 = vadd.f32 %v2177_v41, %v1712_v52 }
 0x605   : > { %1784 = vst [vmem:[%s3668_s19 + $0x18] sm:$0xff] %v1718_v49 }
 0x606   : > { %1783 = vst [vmem:[%s3668_s19 + $0x10] sm:$0xff] %v1713_v18  ;;  %v2773_v4 = vpop.f32.mrb[52].mxu0 }
 0x607   : > { %v1728_v54 = vadd.f32 %v2773_v4, %v2177_v41  ;;  %v1722_v60 = vpop.f32.mrb[53].mxu0 }
 0x608   : > { %v1723_v33 = vadd.f32 %v2177_v41, %v1722_v60 }
 0x609   : > { %1786 = vst [vmem:[%s3668_s19 + $0x28] sm:$0xff] %v1728_v54 }
 0x60a   : > { %1785 = vst [vmem:[%s3668_s19 + $0x20] sm:$0xff] %v1723_v33  ;;  %v2776_v56 = vpop.f32.mrb[54].mxu0 }
 0x60b   : > { %v1738_v58 = vadd.f32 %v2776_v56, %v2177_v41  ;;  %v1732_v59 = vpop.f32.mrb[55].mxu0 }
 0x60c   : > { %v1733_v62 = vadd.f32 %v2177_v41, %v1732_v59 }
 0x60d   : > { %1788 = vst [vmem:[%s3668_s19 + $0x38] sm:$0xff] %v1738_v58 }
 0x60e   : > { %1787 = vst [vmem:[%s3668_s19 + $0x30] sm:$0xff] %v1733_v62  ;;  %v2779_v63 = vpop.f32.mrb[56].mxu0 }
 0x60f   : > { %v1748_v2 = vadd.f32 %v2779_v63, %v2177_v41  ;;  %v1742_v40 = vpop.f32.mrb[57].mxu0 }
 0x610   : > { %v1743_v32 = vadd.f32 %v2177_v41, %v1742_v40 }
 0x611   : > { %1790 = vst [vmem:[%s3668_s19 + $0x48] sm:$0xff] %v1748_v2 }
 0x612   : > { %1789 = vst [vmem:[%s3668_s19 + $0x40] sm:$0xff] %v1743_v32  ;;  %v2782_v0 = vpop.f32.mrb[58].mxu0 }
 0x613   : > { %v1758_v1 = vadd.f32 %v2782_v0, %v2177_v41  ;;  %v1752_v3 = vpop.f32.mrb[59].mxu0 }
 0x614   : > { %v1753_v5 = vadd.f32 %v2177_v41, %v1752_v3 }
 0x615   : > { %1792 = vst [vmem:[%s3668_s19 + $0x58] sm:$0xff] %v1758_v1 }
 0x616   : > { %1791 = vst [vmem:[%s3668_s19 + $0x50] sm:$0xff] %v1753_v5  ;;  %v2785_v9 = vpop.f32.mrb[60].mxu0 }
 0x617   : > { %v1768_v46 = vadd.f32 %v2785_v9, %v2177_v41  ;;  %v1762_v6 = vpop.f32.mrb[61].mxu0 }
 0x618   : > { %v1763_v39 = vadd.f32 %v2177_v41, %v1762_v6 }
 0x619   : > { %1794 = vst [vmem:[%s3668_s19 + $0x68] sm:$0xff] %v1768_v46 }
 0x61a   : > { %1793 = vst [vmem:[%s3668_s19 + $0x60] sm:$0xff] %v1763_v39  ;;  %v2788_v7 = vpop.f32.mrb[62].mxu0 }
 0x61b   : > { %v1778_v8 = vadd.f32 %v2788_v7, %v2177_v41  ;;  %v1772_v16 = vpop.f32.mrb[63].mxu0 }
 0x61c   : > { %v1773_v47 = vadd.f32 %v2177_v41, %v1772_v16 }
 0x61d   : > { %1796 = vst [vmem:[%s3668_s19 + $0x78] sm:$0xff] %v1778_v8 }
 0x61e   : > { %1795 = vst [vmem:[%s3668_s19 + $0x70] sm:$0xff] %v1773_v47  ;;  %v2793_v19 = vpop.f32.mrb[64].mxu0 }
 0x61f   : > { %v1925_v51 = vadd.f32 %v2793_v19, %v2178_v11  ;;  %v1919_v20 = vpop.f32.mrb[65].mxu0 }
 0x620   : > { %v1920_v23 = vadd.f32 %v2178_v11, %v1919_v20 }
 0x621   : > { %1999 = vst.msk [vmem:[%s3693_s26 + $0x8] sm:$0xff] %vm460_vm0, %v1925_v51 }
 0x622   : > { %1998 = vst.msk [vmem:[%s3693_s26] sm:$0xff] %vm460_vm0, %v1920_v23  ;;  %v2796_v26 = vpop.f32.mrb[66].mxu0 }
 0x623   : > { %v1935_v34 = vadd.f32 %v2796_v26, %v2178_v11  ;;  %v1929_v36 = vpop.f32.mrb[67].mxu0 }
 0x624   : > { %v1930_v38 = vadd.f32 %v2178_v11, %v1929_v36 }
 0x625   : > { %2001 = vst.msk [vmem:[%s3693_s26 + $0x18] sm:$0xff] %vm460_vm0, %v1935_v34 }
 0x626   : > { %2000 = vst.msk [vmem:[%s3693_s26 + $0x10] sm:$0xff] %vm460_vm0, %v1930_v38  ;;  %v2799_v42 = vpop.f32.mrb[68].mxu0 }
 0x627   : > { %v1945_v43 = vadd.f32 %v2799_v42, %v2178_v11  ;;  %v1939_v45 = vpop.f32.mrb[69].mxu0 }
 0x628   : > { %v1940_v48 = vadd.f32 %v2178_v11, %v1939_v45 }
 0x629   : > { %2003 = vst.msk [vmem:[%s3693_s26 + $0x28] sm:$0xff] %vm460_vm0, %v1945_v43 }
 0x62a   : > { %2002 = vst.msk [vmem:[%s3693_s26 + $0x20] sm:$0xff] %vm460_vm0, %v1940_v48  ;;  %v2802_v50 = vpop.f32.mrb[48].mxu1 }
 0x62b   : > { %v1955_v17 = vadd.f32 %v2802_v50, %v2178_v11  ;;  %v1949_v21 = vpop.f32.mrb[49].mxu1 }
 0x62c   : > { %v1950_v55 = vadd.f32 %v2178_v11, %v1949_v21 }
 0x62d   : > { %2005 = vst.msk [vmem:[%s3693_s26 + $0x38] sm:$0xff] %vm460_vm0, %v1955_v17 }
 0x62e   : > { %2004 = vst.msk [vmem:[%s3693_s26 + $0x30] sm:$0xff] %vm460_vm0, %v1950_v55  ;;  %v2805_v57 = vpop.f32.mrb[50].mxu1 }
 0x62f   : > { %v1965_v28 = vadd.f32 %v2805_v57, %v2178_v11  ;;  %v1959_v61 = vpop.f32.mrb[51].mxu1 }
 0x630   : > { %v1960_v12 = vadd.f32 %v2178_v11, %v1959_v61 }
 0x631   : > { %2007 = vst.msk [vmem:[%s3693_s26 + $0x48] sm:$0xff] %vm460_vm0, %v1965_v28 }
 0x632   : > { %2006 = vst.msk [vmem:[%s3693_s26 + $0x40] sm:$0xff] %vm460_vm0, %v1960_v12  ;;  %v2808_v15 = vpop.f32.mrb[52].mxu1 }
 0x633   : > { %v1975_v24 = vadd.f32 %v2808_v15, %v2178_v11  ;;  %v1969_v25 = vpop.f32.mrb[53].mxu1 }
 0x634   : > { %v1970_v29 = vadd.f32 %v2178_v11, %v1969_v25 }
 0x635   : > { %2009 = vst.msk [vmem:[%s3693_s26 + $0x58] sm:$0xff] %vm460_vm0, %v1975_v24 }
 0x636   : > { %2008 = vst.msk [vmem:[%s3693_s26 + $0x50] sm:$0xff] %vm460_vm0, %v1970_v29  ;;  %v2811_v30 = vpop.f32.mrb[54].mxu1 }
 0x637   : > { %v1985_v31 = vadd.f32 %v2811_v30, %v2178_v11  ;;  %v1979_v35 = vpop.f32.mrb[55].mxu1 }
 0x638   : > { %v1980_v37 = vadd.f32 %v2178_v11, %v1979_v35 }
 0x639   : > { %2011 = vst.msk [vmem:[%s3693_s26 + $0x68] sm:$0xff] %vm460_vm0, %v1985_v31 }
 0x63a   : > { %2010 = vst.msk [vmem:[%s3693_s26 + $0x60] sm:$0xff] %vm460_vm0, %v1980_v37  ;;  %v2814_v14 = vpop.f32.mrb[56].mxu1 }
 0x63b   : > { %v1995_v53 = vadd.f32 %v2814_v14, %v2178_v11  ;;  %v1989_v41 = vpop.f32.mrb[57].mxu1 }
 0x63c   : > { %v1990_v10 = vadd.f32 %v2178_v11, %v1989_v41 }
 0x63d   : > { %2013 = vst.msk [vmem:[%s3693_s26 + $0x78] sm:$0xff] %vm460_vm0, %v1995_v53 }
 0x63e   : > { %2012 = vst.msk [vmem:[%s3693_s26 + $0x70] sm:$0xff] %vm460_vm0, %v1990_v10 }
 0x63f PF: > { %s22_s17 = sadd.s32 1, %s3117_s17  }
 0x640   : > { %p19_p4 = scmp.ge.s32.totalorder %s22_s17, 4  }
 0x642   :  { %21 = sbr.rel (!%p19_p4) target bundleno = 1 (0x1), region = 105 }

// kernel: anegcn2_forward.10
= control target key start
LH: loop header
LB: loop body
LE: loop exit
PB: predicated region body
PF: predicated region fallthrough
CT: control target
= control target key end

     0   :  { %s3022_s0 = inlined_call_operand.vmem [shape: f32[2,128,128], index: 0, kind: input, shape index: {}]   ;;  %s3023_s1 = inlined_call_operand.vmem [shape: f32[2,128,8], index: 1, kind: input, shape index: {}]   ;;  %s3024_s2 = inlined_call_operand.vmem [shape: f32[2,128,128], index: 2, kind: input, shape index: {}]   ;;  %s3025_s3 = inlined_call_operand.vmem [shape: f32[2,128,8], index: 3, kind: input, shape index: {}]   ;;  %s3026_s4 = inlined_call_operand.vmem [shape: f32[128,1], index: 4, kind: input, shape index: {}]   ;;  %s3027_s5 = inlined_call_operand.vmem [shape: f32[128,1], index: 5, kind: input, shape index: {}]   ;;  %s3028_s6 = inlined_call_operand.vmem [shape: f32[128,1], index: 6, kind: input, shape index: {}]   ;;  %s3029_s7 = inlined_call_operand.vmem [shape: f32[128,1], index: 7, kind: input, shape index: {}]   ;;  %s3030_s8 = inlined_call_operand.vmem [shape: f32[128,3], index: 8, kind: input, shape index: {}]   ;;  %s3031_s9 = inlined_call_operand.vmem [shape: f32[8,1], index: 9, kind: input, shape index: {}]   ;;  %s3032_s10 = inlined_call_operand.<no memory space> [shape: f32[1], index: 10, kind: input, shape index: {}]   ;;  %s3033_s11 = inlined_call_operand.<no memory space> [shape: f32[1], index: 11, kind: input, shape index: {}]   ;;  %s3034_s12 = inlined_call_operand.hbm [shape: f32[2,128,128], index: 12, kind: output, shape index: {0}]   ;;  %s3035_s13 = inlined_call_operand.hbm [shape: f32[2,128,8], index: 13, kind: output, shape index: {1}]   ;;  %s3036_s14 = inlined_call_operand.vmem [shape: f32[2,128,3], index: 14, kind: output, shape index: {2}]   ;;  %s3037_s15 = inlined_call_operand.vmem [shape: f32[2,128,1], index: 15, kind: output, shape index: {3}]  }
   0x1   :  { %3042 = sst [smem:[#allocation13_spill]] %s3022_s0 }
   0x2   :  { %3043 = sst [smem:[#allocation14_spill]] %s3023_s1 }
   0x3   :  { %3044 = sst [smem:[#allocation15_spill]] %s3024_s2 }
   0x4   :  { %3045 = sst [smem:[#allocation16_spill]] %s3025_s3 }
   0x5   :  { %3046 = sst [smem:[#allocation17_spill]] %s3026_s4 }
   0x6   :  { %21 = sst [smem:[#allocation2]] %s3032_s10 }
   0x7   :  { %22 = sst [smem:[#allocation3]] %s3033_s11 }
   0x8   :  { %23 = vsyncpa [#allocation5], 0 }
   0x9   :  { %25 = vsyncpa [#allocation5 + $0x1], 0 }
   0xa   :  { %26 = vsyncpa [#allocation7], 0 }
   0xb   :  { %28 = vsyncpa [#allocation7 + $0x1], 0  ;;  %s2369_s22 = smov 0   ;;  %s2371_s23 = smov 0  }
   0xc   :  { %s2373_s24 = smov 0   ;;  %s2375_s25 = smov 0  }
   0xd LB: > { %3047 = sst [smem:[#allocation10_spill]] %s2272_s24  ;;  %s2390_s10 = sadd.s32 4294967295, %s2276_s25   ;;  %s2276_s25 = sphi %s2375_s25, %s3059_s25   ;;  %s2272_s24 = sphi %s2373_s24, %s3061_s24   ;;  %s2268_s23 = sphi %s2371_s23, %s3063_s23   ;;  %s2264_s22 = sphi %s2369_s22, %s3062_s22  }
   0xe   : > { %s1920_s11 = sadd.s32 4294967294, %s2276_s25   ;;  %s2394_s26 = sadd.s32 1, %s2276_s25  }
   0xf   : > { %3048 = sst [smem:[#allocation11_spill]] %s2394_s26  ;;  %s313_s27 = sadd.s32 1, %s2272_s24 }
  0x10   : > { %s310_s28 = ssub.s32 %s2276_s25, %s2394_s26  ;;  %p323_p0 = scmp.ne.s32.totalorder %s2272_s24, %s2268_s23 }
  0x11   : > { %p311_p1 = scmp.eq.s32.totalorder %s310_s28, 0  ;;  %p324_p2 = scmp.eq.s32.totalorder %s2390_s10, 1 }
  0x12   : > { %p329_p3 = scmp.ne.s32.totalorder %s2268_s23, %s2264_s22  ;;  %p330_p4 = scmp.eq.s32.totalorder %s1920_s11, 1 }
  0x13   : > { %s2405_s29 = scalar_select %p311_p1, %s2272_s24, %s313_s27  }
  0x14   : > { %p2407_p5 = por %p324_p2, %p323_p0  ;;  %p2411_p6 = por %p330_p4, %p329_p3 }
  0x15   : > { %3049 = sst [smem:[#allocation12_spill]] %s2405_s29  ;;  %p1923_p7 = scmp.ge.s32.totalorder %s2276_s25, 1 }
  0x16   : > { %p482_p8 = scmp.lt.s32.totalorder %s2276_s25, 3 }
  0x18   : > { %p483_p9 = pnand %p1923_p7, %p482_p8 }
  0x19   : > { %s3052_s4 = sld [smem:[#allocation17_spill]] (!%p483_p9)  ;;  %v2278_v2 = vmov (!%p483_p9), 0   ;;  %v928_v3 = vld [vmem:[%s3028_s6 + $0x8] sm:$0xff] (!%p483_p9)  ;;  %v927_v4 = vld [vmem:[%s3028_s6] sm:$0xff] (!%p483_p9)  ;;  %v929_v9 = vld [vmem:[%s3028_s6 + $0x10] sm:$0xff] (!%p483_p9)  ;;  %p560_p10 = scmp.lt.s32.totalorder (!%p483_p9), %s2390_s10, 1 }
  0x1a   : > { %486 = sbr.rel (%p483_p9) target bundleno = 503 (0x1f7), region = 68  ;;  %2181 = vset.pattern.permute.xlu1 (!%p483_p9), %v2278_v2  ;;  %2180 = vset.pattern.permute.xlu0 (!%p483_p9), %v2278_v2  ;;  %v1055_v5 = vld [vmem:[%s3029_s7] sm:$0xff] (!%p483_p9)  ;;  %v1056_v7 = vld [vmem:[%s3029_s7 + $0x8] sm:$0xff] (!%p483_p9)  ;;  %v930_v11 = vld [vmem:[%s3028_s6 + $0x18] sm:$0xff] (!%p483_p9)  ;;  %s2651_s29 = sand.u32 (!%p483_p9), 1, %s2268_s23   ;;  %vm1247_vm0 = vcmask (!%p483_p9), 64512  }
  0x1b   : > { %v751_v6 = vld [vmem:[%s3027_s5] sm:$0xff] (!%p483_p9)  ;;  %v752_v8 = vld [vmem:[%s3027_s5 + $0x8] sm:$0xff] (!%p483_p9)  ;;  %v1266_v16 = vld [vmem:[%s3030_s8 + $0x10] sm:$0xff] (!%p483_p9)  ;;  %s1924_s21 = sshll.u32 (!%p483_p9), %s2651_s29, 7  ;;  %s3053_s3 = sld [smem:[#allocation16_spill]] (!%p483_p9) }
  0x1c   : > { %v1264_v13 = vld [vmem:[%s3030_s8] sm:$0xff] (!%p483_p9)  ;;  %v1265_v14 = vld [vmem:[%s3030_s8 + $0x8] sm:$0xff] (!%p483_p9)  ;;  %v1267_v17 = vld [vmem:[%s3030_s8 + $0x18] sm:$0xff] (!%p483_p9)  ;;  %s3054_s2 = sld [smem:[#allocation15_spill]] (!%p483_p9)  ;;  %s2674_s20 = scalar_lea.vmem (!%p483_p9), [#allocation4], %s1924_s21 }
  0x1d   : > { %v2101_v15 = vpack.c.bf16 (!%p483_p9), %v1265_v14, %v1264_v13  ;;  %v2105_v18 = vpack.c.bf16 (!%p483_p9), %v1267_v17, %v1266_v16  ;;  %v1268_v19 = vld [vmem:[%s3030_s8 + $0x20] sm:$0xff] (!%p483_p9)  ;;  %v1269_v20 = vld [vmem:[%s3030_s8 + $0x28] sm:$0xff] (!%p483_p9)  ;;  %v1057_v21 = vld [vmem:[%s3029_s7 + $0x10] sm:$0xff] (!%p483_p9)  ;;  %s3055_s0 = sld [smem:[#allocation13_spill]] (!%p483_p9)  ;;  %s3056_s1 = sld [smem:[#allocation14_spill]] (!%p483_p9) }
  0x1e   : > { %v753_v22 = vld [vmem:[%s3027_s5 + $0x10] sm:$0xff] (!%p483_p9)  ;;  %v2109_v23 = vpack.c.bf16 (!%p483_p9), %v1269_v20, %v1268_v19  ;;  %v1271_v25 = vld [vmem:[%s3030_s8 + $0x38] sm:$0xff] (!%p483_p9)  ;;  %v1460_v28 = vld [vmem:[%s3031_s9] sm:$0xff] (!%p483_p9) }
  0x1f   : > { %v624_v0 = vld [vmem:[%s3052_s4 + $0x8] sm:$0xff] (!%p483_p9)  ;;  %v623_v1 = vld [vmem:[%s3052_s4] sm:$0xff] (!%p483_p9)  ;;  %v625_v10 = vld [vmem:[%s3052_s4 + $0x10] sm:$0xff] (!%p483_p9)  ;;  %2102 = vmatprep.subr.bf16.mxu0 (!%p483_p9), %v2101_v15  ;;  %2075 = vmatprep.subr.mxu1 (!%p483_p9), %v1460_v28 }
  0x20   : > { %662 = vperm.xlu1 (!%p483_p9), %2181, %v624_v0   ;;  %657 = vperm.xlu0 (!%p483_p9), %2180, %v623_v1   ;;  %v626_v12 = vld [vmem:[%s3052_s4 + $0x18] sm:$0xff] (!%p483_p9)  ;;  %v1270_v24 = vld [vmem:[%s3030_s8 + $0x30] sm:$0xff] (!%p483_p9)  ;;  %v1272_v30 = vld [vmem:[%s3030_s8 + $0x40] sm:$0xff] (!%p483_p9) }
  0x21   : > { %2104 = vmatpush3.bf16.msra.mxu0 %v2101_v15  ;;  %v1058_v26 = vld [vmem:[%s3029_s7 + $0x18] sm:$0xff]  ;;  %v2113_v29 = vpack.c.bf16 %v1271_v25, %v1270_v24  ;;  %v1273_v31 = vld [vmem:[%s3030_s8 + $0x48] sm:$0xff]  ;;  %v931_v32 = vld [vmem:[%s3028_s6 + $0x20] sm:$0xff]  ;;  %2076 = vmatpush3.msra.mxu1 %v1460_v28  ;;  %s561_s24 = scalar_select %p560_p10, %s2390_s10, 1 }
  0x22   : > { %2106 = vmatprep.subr.bf16.mxu0 %v2105_v18  ;;  %v754_v27 = vld [vmem:[%s3027_s5 + $0x18] sm:$0xff]  ;;  %v627_v33 = vld [vmem:[%s3052_s4 + $0x20] sm:$0xff]  ;;  %v2117_v34 = vpack.c.bf16 %v1273_v31, %v1272_v30  ;;  %v1274_v35 = vld [vmem:[%s3030_s8 + $0x50] sm:$0xff] }
  0x23   : > { %v1275_v36 = vld [vmem:[%s3030_s8 + $0x58] sm:$0xff]  ;;  %v932_v37 = vld [vmem:[%s3028_s6 + $0x28] sm:$0xff]  ;;  %v1276_v40 = vld [vmem:[%s3030_s8 + $0x60] sm:$0xff]  ;;  %s2654_s11 = sshll.u32 %s561_s24, 7  ;;  %s2678_s24 = scalar_lea.vmem [#allocation6], %s1924_s21 }
  0x24   : > { %966 = vperm.xlu1 %2181, %v928_v3   ;;  %961 = vperm.xlu0 %2180, %v927_v4   ;;  %v628_v38 = vld [vmem:[%s3052_s4 + $0x28] sm:$0xff]  ;;  %v2121_v39 = vpack.c.bf16 %v1275_v36, %v1274_v35  ;;  %v1059_v42 = vld [vmem:[%s3029_s7 + $0x20] sm:$0xff]  ;;  %v1278_v45 = vld [vmem:[%s3030_s8 + $0x70] sm:$0xff]  ;;  %s2660_s17 = scalar_lea.vmem %s3053_s3, %s2654_s11  ;;  %s2666_s19 = scalar_lea.vmem %s3054_s2, %s2654_s11 }
  0x25   : > { %2108 = vmatpush3.bf16.msra.mxu0 %v2105_v18  ;;  %v1277_v41 = vld [vmem:[%s3030_s8 + $0x68] sm:$0xff]  ;;  %v755_v43 = vld [vmem:[%s3027_s5 + $0x20] sm:$0xff]  ;;  %v1279_v46 = vld [vmem:[%s3030_s8 + $0x78] sm:$0xff]  ;;  %s2687_s26 = scalar_lea.vmem %s3055_s0, %s2654_s11  ;;  %s2693_s21 = scalar_lea.vmem %s3056_s1, %s2654_s11 }
  0x26   : > { %2110 = vmatprep.subr.bf16.mxu0 %v2109_v23  ;;  %v2125_v44 = vpack.c.bf16 %v1277_v41, %v1276_v40  ;;  %v1060_v47 = vld [vmem:[%s3029_s7 + $0x28] sm:$0xff]  ;;  %v2129_v49 = vpack.c.bf16 %v1279_v46, %v1278_v45  ;;  %v933_v50 = vld [vmem:[%s3028_s6 + $0x30] sm:$0xff]  ;;  %v934_v52 = vld [vmem:[%s3028_s6 + $0x38] sm:$0xff]  ;;  %s3041_s2 = sshll.u32 %s2390_s10, 11 }
  0x27   : > { %v756_v48 = vld [vmem:[%s3027_s5 + $0x28] sm:$0xff]  ;;  %v629_v51 = vld [vmem:[%s3052_s4 + $0x30] sm:$0xff]  ;;  %v630_v53 = vld [vmem:[%s3052_s4 + $0x38] sm:$0xff]  ;;  %s2825_s28 = scalar_lea.hbm %s3034_s12, %s3041_s2 }
  0x28   : > { %1073 = vperm.xlu1 %2181, %v1055_v5   ;;  %769 = vperm.xlu0 %2180, %v751_v6   ;;  %v1061_v54 = vld [vmem:[%s3029_s7 + $0x30] sm:$0xff]  ;;  %v1062_v56 = vld [vmem:[%s3029_s7 + $0x38] sm:$0xff]  ;;  %v935_v58 = vld [vmem:[%s3028_s6 + $0x40] sm:$0xff] }
  0x29   : > { %2112 = vmatpush3.bf16.msra.mxu0 %v2109_v23  ;;  %v757_v55 = vld [vmem:[%s3027_s5 + $0x30] sm:$0xff]  ;;  %v758_v57 = vld [vmem:[%s3027_s5 + $0x38] sm:$0xff]  ;;  %v631_v59 = vld [vmem:[%s3052_s4 + $0x40] sm:$0xff] }
  0x2a   : > { %2114 = vmatprep.subr.bf16.mxu0 %v2113_v29  ;;  %v936_v60 = vld [vmem:[%s3028_s6 + $0x48] sm:$0xff]  ;;  %v1063_v62 = vld [vmem:[%s3029_s7 + $0x40] sm:$0xff]  ;;  %v937_v2 = vld [vmem:[%s3028_s6 + $0x50] sm:$0xff] }
  0x2b   : > { %v632_v61 = vld [vmem:[%s3052_s4 + $0x48] sm:$0xff]  ;;  %v759_v63 = vld [vmem:[%s3027_s5 + $0x40] sm:$0xff]  ;;  %v633_v3 = vld [vmem:[%s3052_s4 + $0x50] sm:$0xff] }
  0x2c   : > { %1078 = vperm.xlu1 %2181, %v1056_v7   ;;  %774 = vperm.xlu0 %2180, %v752_v8   ;;  %v1064_v0 = vld [vmem:[%s3029_s7 + $0x48] sm:$0xff]  ;;  %v938_v4 = vld [vmem:[%s3028_s6 + $0x58] sm:$0xff]  ;;  %v1065_v6 = vld [vmem:[%s3029_s7 + $0x50] sm:$0xff] }
  0x2d   : > { %2116 = vmatpush3.bf16.msra.mxu0 %v2113_v29  ;;  %v760_v1 = vld [vmem:[%s3027_s5 + $0x48] sm:$0xff]  ;;  %v634_v5 = vld [vmem:[%s3052_s4 + $0x58] sm:$0xff]  ;;  %v761_v7 = vld [vmem:[%s3027_s5 + $0x50] sm:$0xff] }
  0x2e   : > { %2118 = vmatprep.subr.bf16.mxu0 %v2117_v34  ;;  %v1066_v8 = vld [vmem:[%s3029_s7 + $0x58] sm:$0xff]  ;;  %v636_v13 = vld [vmem:[%s3052_s4 + $0x68] sm:$0xff]  ;;  %v1067_v14 = vld [vmem:[%s3029_s7 + $0x60] sm:$0xff] }
  0x2f   : > { %v763_v15 = vld [vmem:[%s3027_s5 + $0x60] sm:$0xff]  ;;  %v764_v16 = vld [vmem:[%s3027_s5 + $0x68] sm:$0xff]  ;;  %v637_v17 = vld [vmem:[%s3052_s4 + $0x70] sm:$0xff] }
  0x30   : > { %971 = vperm.xlu1 %2181, %v929_v9   ;;  %667 = vperm.xlu0 %2180, %v625_v10   ;;  %v762_v9 = vld [vmem:[%s3027_s5 + $0x58] sm:$0xff]  ;;  %v939_v10 = vld [vmem:[%s3028_s6 + $0x60] sm:$0xff]  ;;  %v1068_v18 = vld [vmem:[%s3029_s7 + $0x68] sm:$0xff] }
  0x31   : > { %2120 = vmatpush3.bf16.msra.mxu0 %v2117_v34  ;;  %v941_v19 = vld [vmem:[%s3028_s6 + $0x70] sm:$0xff]  ;;  %v2672_v23 = vld [vmem:[%s2660_s17 + $0x78] sm:$0xff]  ;;  %v943_v29 = vld [vmem:[%s2693_s21] sm:$0xff] }
  0x32   : > { %2122 = vmatprep.subr.bf16.mxu0 %v2121_v39  ;;  %v1069_v20 = vld [vmem:[%s3029_s7 + $0x70] sm:$0xff]  ;;  %1263 = vst.msk [vmem:[%s2678_s24 + $0x78] sm:$0xff] %vm1247_vm0, %v2672_v23 }
  0x34   : > { %976 = vperm.xlu1 %2181, %v930_v11   ;;  %672 = vperm.xlu0 %2180, %v626_v12   ;;  %v635_v11 = vld [vmem:[%s3052_s4 + $0x60] sm:$0xff]  ;;  %v940_v12 = vld [vmem:[%s3028_s6 + $0x68] sm:$0xff] }
  0x35   : > { %2124 = vmatpush3.bf16.msra.mxu0 %v2121_v39  ;;  %v1199_v39 = vld [vmem:[%s2660_s17] sm:$0xff] }
  0x36   : > { %2126 = vmatprep.subr.bf16.mxu0 %v2125_v44 }
  0x38   : > { %1083 = vperm.xlu1 %2181, %v1057_v21   ;;  %779 = vperm.xlu0 %2180, %v753_v22   ;;  %v765_v21 = vld [vmem:[%s3027_s5 + $0x70] sm:$0xff]  ;;  %v2669_v22 = vld [vmem:[%s2666_s19 + $0x78] sm:$0xff] }
  0x39   : > { %2128 = vmatpush3.bf16.msra.mxu0 %v2125_v44  ;;  %1246 = vst [vmem:[%s2674_s20 + $0x78] sm:$0xff] %v2669_v22 }
  0x3a   : > { %2130 = vmatprep.subr.bf16.mxu0 %v2129_v49 }
  0x3c   : > { %1088 = vperm.xlu1 %2181, %v1058_v26   ;;  %784 = vperm.xlu0 %2180, %v754_v27   ;;  %v639_v26 = vld [vmem:[%s2687_s26] sm:$0xff] }
  0x3d   : > { %2132 = vmatpush3.bf16.msra.mxu0 %v2129_v49 }
  0x40   : > { %981 = vperm.xlu1 %2181, %v931_v32   ;;  %677 = vperm.xlu0 %2180, %v627_v33   ;;  %v640_v32 = vld [vmem:[%s2687_s26 + $0x8] sm:$0xff] }
  0x41   : > { %v944_v33 = vld [vmem:[%s2693_s21 + $0x8] sm:$0xff] }
  0x44   : > { %986 = vperm.xlu1 %2181, %v932_v37   ;;  %682 = vperm.xlu0 %2180, %v628_v38   ;;  %v895_v38 = vld [vmem:[%s2666_s19] sm:$0xff] }
  0x48   : > { %1093 = vperm.xlu1 %2181, %v1059_v42   ;;  %789 = vperm.xlu0 %2180, %v755_v43  }
  0x4c   : > { %1098 = vperm.xlu1 %2181, %v1060_v47   ;;  %794 = vperm.xlu0 %2180, %v756_v48  }
  0x50   : > { %991 = vperm.xlu1 %2181, %v933_v50   ;;  %687 = vperm.xlu0 %2180, %v629_v51   ;;  %v1200_v50 = vld [vmem:[%s2660_s17 + $0x8] sm:$0xff] }
  0x51   : > { %v896_v51 = vld [vmem:[%s2666_s19 + $0x8] sm:$0xff] }
  0x54   : > { %996 = vperm.xlu1 %2181, %v934_v52   ;;  %692 = vperm.xlu0 %2180, %v630_v53  }
  0x58   : > { %1103 = vperm.xlu1 %2181, %v1061_v54   ;;  %799 = vperm.xlu0 %2180, %v757_v55  }
  0x5c   : > { %1108 = vperm.xlu1 %2181, %v1062_v56   ;;  %804 = vperm.xlu0 %2180, %v758_v57  }
  0x60   : > { %1001 = vperm.xlu1 %2181, %v935_v58   ;;  %697 = vperm.xlu0 %2180, %v631_v59   ;;  %v945_v58 = vld [vmem:[%s2693_s21 + $0x10] sm:$0xff] }
  0x61   : > { %v641_v59 = vld [vmem:[%s2687_s26 + $0x10] sm:$0xff] }
  0x64   : > { %1006 = vperm.xlu1 %2181, %v936_v60   ;;  %702 = vperm.xlu0 %2180, %v632_v61  }
  0x68   : > { %1113 = vperm.xlu1 %2181, %v1063_v62   ;;  %809 = vperm.xlu0 %2180, %v759_v63  }
  0x6c   : > { %1118 = vperm.xlu1 %2181, %v1064_v0   ;;  %814 = vperm.xlu0 %2180, %v760_v1   ;;  %v946_v0 = vld [vmem:[%s2693_s21 + $0x18] sm:$0xff] }
  0x6d   : > { %v642_v1 = vld [vmem:[%s2687_s26 + $0x18] sm:$0xff] }
  0x70   : > { %1011 = vperm.xlu1 %2181, %v937_v2   ;;  %707 = vperm.xlu0 %2180, %v633_v3  }
  0x74   : > { %1016 = vperm.xlu1 %2181, %v938_v4   ;;  %712 = vperm.xlu0 %2180, %v634_v5  }
  0x78   : > { %1123 = vperm.xlu1 %2181, %v1065_v6   ;;  %819 = vperm.xlu0 %2180, %v761_v7   ;;  %v1201_v6 = vld [vmem:[%s2660_s17 + $0x10] sm:$0xff] }
  0x79   : > { %v897_v7 = vld [vmem:[%s2666_s19 + $0x10] sm:$0xff] }
  0x7c   : > { %1128 = vperm.xlu1 %2181, %v1066_v8   ;;  %824 = vperm.xlu0 %2180, %v762_v9  }
  0x80   : > { %1021 = vperm.xlu1 %2181, %v939_v10   ;;  %717 = vperm.xlu0 %2180, %v635_v11  }
  0x84   : > { %1026 = vperm.xlu1 %2181, %v940_v12   ;;  %722 = vperm.xlu0 %2180, %v636_v13  }
  0x88   : > { %1133 = vperm.xlu1 %2181, %v1067_v14   ;;  %829 = vperm.xlu0 %2180, %v763_v15  }
  0x8c   : > { %834 = vperm.xlu1 %2181, %v764_v16   ;;  %727 = vperm.xlu0 %2180, %v637_v17  }
  0x90   : > { %1138 = vperm.xlu1 %2181, %v1068_v18   ;;  %1031 = vperm.xlu0 %2180, %v941_v19   ;;  %v1202_v18 = vld [vmem:[%s2660_s17 + $0x18] sm:$0xff] }
  0x91   : > { %v898_v19 = vld [vmem:[%s2666_s19 + $0x18] sm:$0xff] }
  0x94   : > { %1143 = vperm.xlu1 %2181, %v1069_v20   ;;  %839 = vperm.xlu0 %2180, %v765_v21  }
  0x9f   : > { %v663_v24 = vpop.permute.xlu1 %662  ;;  %v658_v25 = vpop.permute.xlu0 %657 }
  0xa0   : > { %v735_v30 = vmul.f32 %v658_v25, %v639_v26  ;;  %v736_v40 = vmul.f32 %v663_v24, %v640_v32 }
  0xa3   : > { %v967_v27 = vpop.permute.xlu1 %966  ;;  %v962_v28 = vpop.permute.xlu0 %961 }
  0xa4   : > { %v1039_v31 = vmul.f32 %v962_v28, %v943_v29  ;;  %v1040_v41 = vmul.f32 %v967_v27, %v944_v33  ;;  %v947_v28 = vld [vmem:[%s2693_s21 + $0x20] sm:$0xff] }
  0xa5   : > { %v643_v29 = vld [vmem:[%s2687_s26 + $0x20] sm:$0xff] }
  0xa7   : > { %v1074_v34 = vpop.permute.xlu1 %1073  ;;  %v770_v35 = vpop.permute.xlu0 %769 }
  0xa8   : > { %v1151_v36 = vadd.f32 %v1074_v34, %v1039_v31  ;;  %v847_v37 = vadd.f32 %v770_v35, %v735_v30  ;;  %v948_v34 = vld [vmem:[%s2693_s21 + $0x28] sm:$0xff] }
  0xa9   : > { %v644_v35 = vld [vmem:[%s2687_s26 + $0x28] sm:$0xff] }
  0xaa   : > { %v1167_v42 = vmax.f32 %v1151_v36, 0.0  ;;  %v863_v43 = vmax.f32 %v847_v37, 0.0 }
  0xab   : > { %v1079_v44 = vpop.permute.xlu1 %1078  ;;  %v775_v45 = vpop.permute.xlu0 %774 }
  0xac   : > { %v1152_v46 = vadd.f32 %v1079_v44, %v1040_v41  ;;  %v848_v47 = vadd.f32 %v775_v45, %v736_v40  ;;  %v911_v48 = vadd.f32 %v895_v38, %v863_v43  ;;  %v1215_v49 = vadd.f32 %v1199_v39, %v1167_v42  ;;  %v1203_v40 = vld [vmem:[%s2660_s17 + $0x20] sm:$0xff] }
  0xad   : > { %v899_v41 = vld [vmem:[%s2666_s19 + $0x20] sm:$0xff] }
  0xae   : > { %v1168_v52 = vmax.f32 %v1152_v46, 0.0  ;;  %v864_v53 = vmax.f32 %v848_v47, 0.0  ;;  %1231 = vst [vmem:[%s2674_s20] sm:$0xff] %v911_v48  ;;  %2051 = vmatprep.mubr.f32.mxu0 %v911_v48  ;;  %1248 = vst.msk [vmem:[%s2678_s24] sm:$0xff] %vm1247_vm0, %v1215_v49  ;;  %2077 = vmatprep.mubr.msk.f32.mxu1 %vm1247_vm0, %v1215_v49 }
  0xaf   : > { %v972_v54 = vpop.permute.xlu1 %971  ;;  %v668_v55 = vpop.permute.xlu0 %667 }
  0xb0   : > { %v1216_v56 = vadd.f32 %v1200_v50, %v1168_v52  ;;  %v912_v57 = vadd.f32 %v896_v51, %v864_v53  ;;  %v1041_v62 = vmul.f32 %v972_v54, %v945_v58  ;;  %v737_v63 = vmul.f32 %v668_v55, %v641_v59  ;;  %v1204_v52 = vld [vmem:[%s2660_s17 + $0x28] sm:$0xff] }
  0xb1   : > { %v900_v53 = vld [vmem:[%s2666_s19 + $0x28] sm:$0xff] }
  0xb2   : > { %1249 = vst.msk [vmem:[%s2678_s24 + $0x8] sm:$0xff] %vm1247_vm0, %v1216_v56  ;;  %1232 = vst [vmem:[%s2674_s20 + $0x8] sm:$0xff] %v912_v57  ;;  %2052 = vmatmul.mubr.f32.vlgmr.msra.gmra.mrb[0].mxu0 %v912_v57  ;;  %2078 = vmatmul.mubr.msk.f32.vlgmr.msra.gmra.mrb[0].mxu1 %vm1247_vm0, %v1216_v56 }
  0xb3   : > { %v977_v60 = vpop.permute.xlu1 %976  ;;  %v673_v61 = vpop.permute.xlu0 %672 }
  0xb4   : > { %v1042_v8 = vmul.f32 %v977_v60, %v946_v0  ;;  %v738_v9 = vmul.f32 %v673_v61, %v642_v1  ;;  %v949_v60 = vld [vmem:[%s2693_s21 + $0x30] sm:$0xff] }
  0xb5   : > { %v645_v61 = vld [vmem:[%s2687_s26 + $0x30] sm:$0xff] }
  0xb7   : > { %v1084_v2 = vpop.permute.xlu1 %1083  ;;  %v780_v3 = vpop.permute.xlu0 %779 }
  0xb8   : > { %v1153_v4 = vadd.f32 %v1084_v2, %v1041_v62  ;;  %v849_v5 = vadd.f32 %v780_v3, %v737_v63  ;;  %v950_v2 = vld [vmem:[%s2693_s21 + $0x38] sm:$0xff] }
  0xb9   : > { %v646_v3 = vld [vmem:[%s2687_s26 + $0x38] sm:$0xff] }
  0xba   : > { %v1169_v10 = vmax.f32 %v1153_v4, 0.0  ;;  %v865_v11 = vmax.f32 %v849_v5, 0.0 }
  0xbb   : > { %v1089_v12 = vpop.permute.xlu1 %1088  ;;  %v785_v13 = vpop.permute.xlu0 %784 }
  0xbc   : > { %v1217_v14 = vadd.f32 %v1201_v6, %v1169_v10  ;;  %v913_v15 = vadd.f32 %v897_v7, %v865_v11  ;;  %v1154_v16 = vadd.f32 %v1089_v12, %v1042_v8  ;;  %v850_v17 = vadd.f32 %v785_v13, %v738_v9  ;;  %v1205_v8 = vld [vmem:[%s2660_s17 + $0x30] sm:$0xff] }
  0xbd   : > { %v901_v9 = vld [vmem:[%s2666_s19 + $0x30] sm:$0xff] }
  0xbe   : > { %1250 = vst.msk [vmem:[%s2678_s24 + $0x10] sm:$0xff] %vm1247_vm0, %v1217_v14  ;;  %1233 = vst [vmem:[%s2674_s20 + $0x10] sm:$0xff] %v913_v15  ;;  %v1170_v20 = vmax.f32 %v1154_v16, 0.0  ;;  %v866_v21 = vmax.f32 %v850_v17, 0.0  ;;  %2054 = vmatprep.mubr.f32.mxu0 %v913_v15  ;;  %2080 = vmatprep.mubr.msk.f32.mxu1 %vm1247_vm0, %v1217_v14 }
  0xbf   : > { %v982_v24 = vpop.permute.xlu1 %981  ;;  %v678_v25 = vpop.permute.xlu0 %677 }
  0xc0   : > { %v1218_v26 = vadd.f32 %v1202_v18, %v1170_v20  ;;  %v914_v27 = vadd.f32 %v898_v19, %v866_v21  ;;  %v1043_v32 = vmul.f32 %v982_v24, %v947_v28  ;;  %v739_v33 = vmul.f32 %v678_v25, %v643_v29  ;;  %v1206_v20 = vld [vmem:[%s2660_s17 + $0x38] sm:$0xff] }
  0xc1   : > { %v902_v21 = vld [vmem:[%s2666_s19 + $0x38] sm:$0xff] }
  0xc2   : > { %1251 = vst.msk [vmem:[%s2678_s24 + $0x18] sm:$0xff] %vm1247_vm0, %v1218_v26  ;;  %1234 = vst [vmem:[%s2674_s20 + $0x18] sm:$0xff] %v914_v27  ;;  %2055 = vmatmul.mubr.f32.gmra.mrb[2].mxu0 %v914_v27  ;;  %2081 = vmatmul.mubr.msk.f32.gmra.mrb[2].mxu1 %vm1247_vm0, %v1218_v26 }
  0xc3   : > { %v987_v30 = vpop.permute.xlu1 %986  ;;  %v683_v31 = vpop.permute.xlu0 %682 }
  0xc4   : > { %v1044_v42 = vmul.f32 %v987_v30, %v948_v34  ;;  %v740_v43 = vmul.f32 %v683_v31, %v644_v35  ;;  %v951_v30 = vld [vmem:[%s2693_s21 + $0x40] sm:$0xff] }
  0xc5   : > { %v647_v31 = vld [vmem:[%s2687_s26 + $0x40] sm:$0xff] }
  0xc7   : > { %v1094_v36 = vpop.permute.xlu1 %1093  ;;  %v790_v37 = vpop.permute.xlu0 %789 }
  0xc8   : > { %v1155_v38 = vadd.f32 %v1094_v36, %v1043_v32  ;;  %v851_v39 = vadd.f32 %v790_v37, %v739_v33  ;;  %v952_v36 = vld [vmem:[%s2693_s21 + $0x48] sm:$0xff] }
  0xc9   : > { %v648_v37 = vld [vmem:[%s2687_s26 + $0x48] sm:$0xff] }
  0xca   : > { %v1171_v44 = vmax.f32 %v1155_v38, 0.0  ;;  %v867_v45 = vmax.f32 %v851_v39, 0.0 }
  0xcb   : > { %v1099_v46 = vpop.permute.xlu1 %1098  ;;  %v795_v47 = vpop.permute.xlu0 %794 }
  0xcc   : > { %v1219_v48 = vadd.f32 %v1203_v40, %v1171_v44  ;;  %v915_v49 = vadd.f32 %v899_v41, %v867_v45  ;;  %v1156_v50 = vadd.f32 %v1099_v46, %v1044_v42  ;;  %v852_v51 = vadd.f32 %v795_v47, %v740_v43  ;;  %v1207_v42 = vld [vmem:[%s2660_s17 + $0x40] sm:$0xff] }
  0xcd   : > { %v903_v43 = vld [vmem:[%s2666_s19 + $0x40] sm:$0xff] }
  0xce   : > { %1252 = vst.msk [vmem:[%s2678_s24 + $0x20] sm:$0xff] %vm1247_vm0, %v1219_v48  ;;  %1235 = vst [vmem:[%s2674_s20 + $0x20] sm:$0xff] %v915_v49  ;;  %v1172_v54 = vmax.f32 %v1156_v50, 0.0  ;;  %v868_v55 = vmax.f32 %v852_v51, 0.0  ;;  %2057 = vmatprep.mubr.f32.mxu0 %v915_v49  ;;  %2083 = vmatprep.mubr.msk.f32.mxu1 %vm1247_vm0, %v1219_v48 }
  0xcf   : > { %v992_v56 = vpop.permute.xlu1 %991  ;;  %v688_v57 = vpop.permute.xlu0 %687 }
  0xd0   : > { %v1220_v58 = vadd.f32 %v1204_v52, %v1172_v54  ;;  %v916_v59 = vadd.f32 %v900_v53, %v868_v55  ;;  %v1045_v0 = vmul.f32 %v992_v56, %v949_v60  ;;  %v741_v1 = vmul.f32 %v688_v57, %v645_v61  ;;  %v1208_v54 = vld [vmem:[%s2660_s17 + $0x48] sm:$0xff] }
  0xd1   : > { %v904_v55 = vld [vmem:[%s2666_s19 + $0x48] sm:$0xff] }
  0xd2   : > { %1253 = vst.msk [vmem:[%s2678_s24 + $0x28] sm:$0xff] %vm1247_vm0, %v1220_v58  ;;  %1236 = vst [vmem:[%s2674_s20 + $0x28] sm:$0xff] %v916_v59  ;;  %2058 = vmatmul.mubr.f32.gmra.mrb[4].mxu0 %v916_v59  ;;  %2084 = vmatmul.mubr.msk.f32.gmra.mrb[4].mxu1 %vm1247_vm0, %v1220_v58 }
  0xd3   : > { %v997_v62 = vpop.permute.xlu1 %996  ;;  %v693_v63 = vpop.permute.xlu0 %692 }
  0xd4   : > { %v1046_v10 = vmul.f32 %v997_v62, %v950_v2  ;;  %v742_v11 = vmul.f32 %v693_v63, %v646_v3  ;;  %v953_v62 = vld [vmem:[%s2693_s21 + $0x50] sm:$0xff] }
  0xd5   : > { %v649_v63 = vld [vmem:[%s2687_s26 + $0x50] sm:$0xff] }
  0xd7   : > { %v1104_v4 = vpop.permute.xlu1 %1103  ;;  %v800_v5 = vpop.permute.xlu0 %799 }
  0xd8   : > { %v1157_v6 = vadd.f32 %v1104_v4, %v1045_v0  ;;  %v853_v7 = vadd.f32 %v800_v5, %v741_v1  ;;  %v954_v4 = vld [vmem:[%s2693_s21 + $0x58] sm:$0xff] }
  0xd9   : > { %v650_v5 = vld [vmem:[%s2687_s26 + $0x58] sm:$0xff] }
  0xda   : > { %v1173_v12 = vmax.f32 %v1157_v6, 0.0  ;;  %v869_v13 = vmax.f32 %v853_v7, 0.0 }
  0xdb   : > { %v1109_v14 = vpop.permute.xlu1 %1108  ;;  %v805_v15 = vpop.permute.xlu0 %804 }
  0xdc   : > { %v1221_v16 = vadd.f32 %v1205_v8, %v1173_v12  ;;  %v917_v17 = vadd.f32 %v901_v9, %v869_v13  ;;  %v1158_v18 = vadd.f32 %v1109_v14, %v1046_v10  ;;  %v854_v19 = vadd.f32 %v805_v15, %v742_v11  ;;  %v1209_v10 = vld [vmem:[%s2660_s17 + $0x50] sm:$0xff] }
  0xdd   : > { %v905_v11 = vld [vmem:[%s2666_s19 + $0x50] sm:$0xff] }
  0xde   : > { %1254 = vst.msk [vmem:[%s2678_s24 + $0x30] sm:$0xff] %vm1247_vm0, %v1221_v16  ;;  %1237 = vst [vmem:[%s2674_s20 + $0x30] sm:$0xff] %v917_v17  ;;  %v1174_v24 = vmax.f32 %v1158_v18, 0.0  ;;  %v870_v25 = vmax.f32 %v854_v19, 0.0  ;;  %2060 = vmatprep.mubr.f32.mxu0 %v917_v17  ;;  %2086 = vmatprep.mubr.msk.f32.mxu1 %vm1247_vm0, %v1221_v16 }
  0xdf   : > { %v1002_v26 = vpop.permute.xlu1 %1001  ;;  %v698_v27 = vpop.permute.xlu0 %697 }
  0xe0   : > { %v1222_v28 = vadd.f32 %v1206_v20, %v1174_v24  ;;  %v918_v29 = vadd.f32 %v902_v21, %v870_v25  ;;  %v1047_v34 = vmul.f32 %v1002_v26, %v951_v30  ;;  %v743_v35 = vmul.f32 %v698_v27, %v647_v31  ;;  %v1210_v24 = vld [vmem:[%s2660_s17 + $0x58] sm:$0xff] }
  0xe1   : > { %v906_v25 = vld [vmem:[%s2666_s19 + $0x58] sm:$0xff] }
  0xe2   : > { %1255 = vst.msk [vmem:[%s2678_s24 + $0x38] sm:$0xff] %vm1247_vm0, %v1222_v28  ;;  %1238 = vst [vmem:[%s2674_s20 + $0x38] sm:$0xff] %v918_v29  ;;  %2061 = vmatmul.mubr.f32.gmra.mrb[6].mxu0 %v918_v29  ;;  %2087 = vmatmul.mubr.msk.f32.gmra.mrb[6].mxu1 %vm1247_vm0, %v1222_v28 }
  0xe3   : > { %v1007_v32 = vpop.permute.xlu1 %1006  ;;  %v703_v33 = vpop.permute.xlu0 %702 }
  0xe4   : > { %v1048_v44 = vmul.f32 %v1007_v32, %v952_v36  ;;  %v744_v45 = vmul.f32 %v703_v33, %v648_v37  ;;  %v955_v32 = vld [vmem:[%s2693_s21 + $0x60] sm:$0xff] }
  0xe5   : > { %v651_v33 = vld [vmem:[%s2687_s26 + $0x60] sm:$0xff] }
  0xe7   : > { %v1114_v38 = vpop.permute.xlu1 %1113  ;;  %v810_v39 = vpop.permute.xlu0 %809 }
  0xe8   : > { %v1159_v40 = vadd.f32 %v1114_v38, %v1047_v34  ;;  %v855_v41 = vadd.f32 %v810_v39, %v743_v35  ;;  %v652_v38 = vld [vmem:[%s2687_s26 + $0x68] sm:$0xff] }
  0xea   : > { %v1175_v46 = vmax.f32 %v1159_v40, 0.0  ;;  %v871_v47 = vmax.f32 %v855_v41, 0.0 }
  0xeb   : > { %v1119_v48 = vpop.permute.xlu1 %1118  ;;  %v815_v49 = vpop.permute.xlu0 %814 }
  0xec   : > { %v1223_v50 = vadd.f32 %v1207_v42, %v1175_v46  ;;  %v919_v51 = vadd.f32 %v903_v43, %v871_v47  ;;  %v1160_v52 = vadd.f32 %v1119_v48, %v1048_v44  ;;  %v856_v53 = vadd.f32 %v815_v49, %v744_v45  ;;  %v1211_v43 = vld [vmem:[%s2660_s17 + $0x60] sm:$0xff]  ;;  %v956_v49 = vld [vmem:[%s2693_s21 + $0x68] sm:$0xff] }
  0xed   : > { %v907_v44 = vld [vmem:[%s2666_s19 + $0x60] sm:$0xff]  ;;  %v590_v45 = vlaneseq }
  0xee   : > { %1256 = vst.msk [vmem:[%s2678_s24 + $0x40] sm:$0xff] %vm1247_vm0, %v1223_v50  ;;  %1239 = vst [vmem:[%s2674_s20 + $0x40] sm:$0xff] %v919_v51  ;;  %v1176_v56 = vmax.f32 %v1160_v52, 0.0  ;;  %v872_v57 = vmax.f32 %v856_v53, 0.0  ;;  %2063 = vmatprep.mubr.f32.mxu0 %v919_v51  ;;  %2089 = vmatprep.mubr.msk.f32.mxu1 %vm1247_vm0, %v1223_v50 }
  0xef   : > { %v1012_v58 = vpop.permute.xlu1 %1011  ;;  %v708_v59 = vpop.permute.xlu0 %707 }
  0xf0   : > { %v1224_v60 = vadd.f32 %v1208_v54, %v1176_v56  ;;  %v920_v61 = vadd.f32 %v904_v55, %v872_v57  ;;  %v1049_v2 = vmul.f32 %v1012_v58, %v953_v62  ;;  %v745_v3 = vmul.f32 %v708_v59, %v649_v63  ;;  %v908_v55 = vld [vmem:[%s2666_s19 + $0x68] sm:$0xff]  ;;  %v653_v59 = vld [vmem:[%s2687_s26 + $0x70] sm:$0xff] }
  0xf1   : > { %v591_v56 = vshrl.u32 %v590_v45, 7  ;;  %v957_v62 = vld [vmem:[%s2693_s21 + $0x70] sm:$0xff]  ;;  %s2279_s21 = smov [#allocation4]  }
  0xf2   : > { %1257 = vst.msk [vmem:[%s2678_s24 + $0x48] sm:$0xff] %vm1247_vm0, %v1224_v60  ;;  %1240 = vst [vmem:[%s2674_s20 + $0x48] sm:$0xff] %v920_v61  ;;  %2064 = vmatmul.mubr.f32.gmra.mrb[8].mxu0 %v920_v61  ;;  %2090 = vmatmul.mubr.msk.f32.gmra.mrb[8].mxu1 %vm1247_vm0, %v1224_v60  ;;  %s2186_s0 = sshll.u32 %s2279_s21, 4  ;;  %s2187_s0 = int_to_ptr.vmem [resolvable:$false] %s2186_s0 }
  0xf3   : > { %v1017_v0 = vpop.permute.xlu1 %1016  ;;  %v713_v1 = vpop.permute.xlu0 %712 }
  0xf4   : > { %v1050_v12 = vmul.f32 %v1017_v0, %v954_v4  ;;  %v746_v13 = vmul.f32 %v713_v1, %v650_v5  ;;  %v1212_v1 = vld [vmem:[%s2660_s17 + $0x68] sm:$0xff] }
  0xf7   : > { %v1124_v6 = vpop.permute.xlu1 %1123  ;;  %v820_v7 = vpop.permute.xlu0 %819 }
  0xf8   : > { %v1161_v8 = vadd.f32 %v1124_v6, %v1049_v2  ;;  %v857_v9 = vadd.f32 %v820_v7, %v745_v3  ;;  %v605_v2 = vadd.s32 112, %v591_v56 }
  0xfa   : > { %v1177_v14 = vmax.f32 %v1161_v8, 0.0  ;;  %v873_v15 = vmax.f32 %v857_v9, 0.0  ;;  %vm621_vm1 = vcmp.lt.s32.totalorder %v605_v2, 116 }
  0xfb   : > { %v1129_v16 = vpop.permute.xlu1 %1128  ;;  %v825_v17 = vpop.permute.xlu0 %824 }
  0xfc   : > { %v1225_v18 = vadd.f32 %v1209_v10, %v1177_v14  ;;  %v921_v19 = vadd.f32 %v905_v11, %v873_v15  ;;  %v1162_v20 = vadd.f32 %v1129_v16, %v1050_v12  ;;  %v858_v21 = vadd.f32 %v825_v17, %v746_v13  ;;  %v1213_v12 = vld [vmem:[%s2660_s17 + $0x70] sm:$0xff]  ;;  %s1718_s17 = sshll.u32 %s2674_s20, 4  ;;  %s2827_s17 = int_to_ptr.vmem [resolvable:$true] %s1718_s17 }
  0xfd   : > { %v909_v14 = vld [vmem:[%s2666_s19 + $0x70] sm:$0xff]  ;;  %s2182_s18 = scalar_lea.vmem %s2827_s17, 2048  ;;  %p2189_p0 = scmp.lt.s32.totalorder %s2827_s17, %s2187_s0 }
  0xfe   : > { %1258 = vst.msk [vmem:[%s2678_s24 + $0x50] sm:$0xff] %vm1247_vm0, %v1225_v18  ;;  %1241 = vst [vmem:[%s2674_s20 + $0x50] sm:$0xff] %v921_v19  ;;  %v1178_v26 = vmax.f32 %v1162_v20, 0.0  ;;  %v874_v27 = vmax.f32 %v858_v21, 0.0  ;;  %2066 = vmatprep.mubr.f32.mxu0 %v921_v19  ;;  %2092 = vmatprep.mubr.msk.f32.mxu1 %vm1247_vm0, %v1225_v18  ;;  %p2183_p11 = scmp.ne.s32.totalorder %s2827_s17, %s2182_s18 }
  0xff   : > { %v1022_v28 = vpop.permute.xlu1 %1021  ;;  %v718_v29 = vpop.permute.xlu0 %717 }
 0x100   : > { %v1226_v30 = vadd.f32 %v1210_v24, %v1178_v26  ;;  %v922_v31 = vadd.f32 %v906_v25, %v874_v27  ;;  %v1051_v36 = vmul.f32 %v1022_v28, %v955_v32  ;;  %v747_v37 = vmul.f32 %v718_v29, %v651_v33  ;;  %p2184_p12 = pnand %p2183_p11, %p2407_p5 }
 0x102   : > { %1259 = vst.msk [vmem:[%s2678_s24 + $0x58] sm:$0xff] %vm1247_vm0, %v1226_v30  ;;  %1242 = vst [vmem:[%s2674_s20 + $0x58] sm:$0xff] %v922_v31  ;;  %2067 = vmatmul.mubr.f32.gmra.mrb[10].mxu0 %v922_v31  ;;  %2093 = vmatmul.mubr.msk.f32.gmra.mrb[10].mxu1 %vm1247_vm0, %v1226_v30  ;;  %p2185_p13 = pneg %p2184_p12 }
 0x103   : > { %v1027_v34 = vpop.permute.xlu1 %1026  ;;  %v723_v35 = vpop.permute.xlu0 %722 }
 0x104   : > { %v748_v46 = vmul.f32 %v723_v35, %v652_v38  ;;  %v1052_v57 = vmul.f32 %v1027_v34, %v956_v49 }
 0x107   : > { %v1134_v39 = vpop.permute.xlu1 %1133  ;;  %v830_v40 = vpop.permute.xlu0 %829 }
 0x108   : > { %v1163_v41 = vadd.f32 %v1134_v39, %v1051_v36  ;;  %v859_v42 = vadd.f32 %v830_v40, %v747_v37 }
 0x10a   : > { %v1179_v47 = vmax.f32 %v1163_v41, 0.0  ;;  %v875_v48 = vmax.f32 %v859_v42, 0.0 }
 0x10b   : > { %v835_v50 = vpop.permute.xlu1 %834  ;;  %v728_v51 = vpop.permute.xlu0 %727 }
 0x10c   : > { %v1227_v52 = vadd.f32 %v1211_v43, %v1179_v47  ;;  %v923_v53 = vadd.f32 %v907_v44, %v875_v48  ;;  %v860_v54 = vadd.f32 %v835_v50, %v748_v46  ;;  %v749_v3 = vmul.f32 %v728_v51, %v653_v59 }
 0x10e   : > { %1260 = vst.msk [vmem:[%s2678_s24 + $0x60] sm:$0xff] %vm1247_vm0, %v1227_v52  ;;  %1243 = vst [vmem:[%s2674_s20 + $0x60] sm:$0xff] %v923_v53  ;;  %v876_v58 = vmax.f32 %v860_v54, 0.0  ;;  %2069 = vmatprep.mubr.f32.mxu0 %v923_v53  ;;  %2095 = vmatprep.mubr.msk.f32.mxu1 %vm1247_vm0, %v1227_v52 }
 0x10f   : > { %v1139_v60 = vpop.permute.xlu1 %1138  ;;  %v1032_v61 = vpop.permute.xlu0 %1031 }
 0x110   : > { %v924_v63 = vadd.f32 %v908_v55, %v876_v58  ;;  %v1164_v0 = vadd.f32 %v1139_v60, %v1052_v57  ;;  %v1053_v5 = vmul.f32 %v1032_v61, %v957_v62 }
 0x112   : > { %1244 = vst [vmem:[%s2674_s20 + $0x68] sm:$0xff] %v924_v63  ;;  %v1180_v4 = vmax.f32 %v1164_v0, 0.0  ;;  %2070 = vmatmul.mubr.f32.gmra.mrb[12].mxu0 %v924_v63 }
 0x113   : > { %v1144_v6 = vpop.permute.xlu1 %1143  ;;  %v840_v7 = vpop.permute.xlu0 %839 }
 0x114   : > { %v1228_v8 = vadd.f32 %v1212_v1, %v1180_v4  ;;  %v1165_v9 = vadd.f32 %v1144_v6, %v1053_v5  ;;  %v861_v10 = vadd.f32 %v840_v7, %v749_v3 }
 0x116   : > { %1261 = vst.msk [vmem:[%s2678_s24 + $0x68] sm:$0xff] %vm1247_vm0, %v1228_v8  ;;  %v1181_v11 = vmax.f32 %v1165_v9, 0.0  ;;  %v877_v13 = vmax.f32 %v861_v10, 0.0  ;;  %2096 = vmatmul.mubr.msk.f32.gmra.mrb[12].mxu1 %vm1247_vm0, %v1228_v8 }
 0x118   : > { %v1197_v15 = vsel %vm621_vm1, %v1181_v11, 0.0  ;;  %v893_v16 = vsel %vm621_vm1, %v877_v13, 0.0 }
 0x119   : > { %v1229_v17 = vadd.f32 %v1213_v12, %v1197_v15  ;;  %v925_v18 = vadd.f32 %v909_v14, %v893_v16 }
 0x11b   : > { %1262 = vst.msk [vmem:[%s2678_s24 + $0x70] sm:$0xff] %vm1247_vm0, %v1229_v17  ;;  %1245 = vst [vmem:[%s2674_s20 + $0x70] sm:$0xff] %v925_v18  ;;  %2072 = vmatprep.mubr.f32.mxu0 %v925_v18  ;;  %2098 = vmatprep.mubr.msk.f32.mxu1 %vm1247_vm0, %v1229_v17  ;;  %s2188_s20 = scalar_lea.vmem %s2187_s0, 4096 }
 0x11c   : > { %2073 = vmatmul.mubr.f32.gmra.mrb[14].mxu0 %v2669_v22  ;;  %2099 = vmatmul.mubr.msk.f32.gmra.mrb[14].mxu1 %vm1247_vm0, %v2672_v23  ;;  %p2190_p1 = scmp.lt.s32.totalorder %s2188_s20, %s2182_s18 }
 0x11e   : > { %p2191_p2 = por %p2190_p1, %p2189_p0 }
 0x120   : > { %p2192_p3 = pnand %p2191_p2, %p2185_p13 }
 0x122   : > { %2195 = shalt.err (!%p2192_p3)
}
 0x123   : > { %s2196_s19 = scalar_lea.hbm %s2825_s28, 2048  ;;  %s2200_s21 = scalar_lea.hbm %s3034_s12, 4096 }
 0x124   : > { %p2197_p4 = scmp.ne.s32.totalorder %s2825_s28, %s2196_s19  ;;  %p2201_p9 = scmp.lt.u32.totalorder %s2825_s28, %s3034_s12 }
 0x125   : > { %p2202_p10 = scmp.lt.u32.totalorder %s2200_s21, %s2196_s19  ;;  %p2204_p12 = scmp.lt.u32.totalorder %s2196_s19, %s2825_s28 }
 0x126   : > { %p2198_p7 = pnand %p2197_p4, %p2407_p5 }
 0x127   : > { %p2203_p11 = por %p2202_p10, %p2201_p9 }
 0x128   : > { %p2199_p8 = pneg %p2198_p7 }
 0x129   : > { %p2205_p13 = por %p2204_p12, %p2203_p11 }
 0x12b   : > { %p2206_p0 = pnand %p2205_p13, %p2199_p8 }
 0x12d   : > { %2209 = shalt.err (!%p2206_p0)
}
 0x12e   : > { %s2280_s18 = smov 128   ;;  %s2281_s2 = smov 8  }
 0x12f   : > { %s3057_s26 = scalar_lea.sflag [#allocation5], %s2651_s29  ;;  %s3058_s20 = sshll.u32 %s2390_s10, 11 }
 0x130   : > { %2133 = dma.vmem_to_hbm [thread:$0]  (%p2407_p5), %s2827_s17, 2048, %s2825_s28, %s3057_s26, %s2280_s18, %s2280_s18, %s2281_s2  }
 0x131   : > { %s2861_s21 = scalar_lea.hbm %s3035_s13, %s3058_s20  ;;  %s1734_s0 = sshll.u32 %s2678_s24, 4  ;;  %s2864_s0 = int_to_ptr.vmem [resolvable:$true] %s1734_s0 }
 0x132   : > { %s1695_s1 = scalar_lea.sflag [#allocation7], %s2651_s29  ;;  %s2210_s3 = scalar_lea.vmem %s2864_s0, 2048 }
 0x133   : > { %p2211_p1 = scmp.ne.s32.totalorder %s2864_s0, %s2210_s3  ;;  %s2282_s4 = smov [#allocation6]  }
 0x134   : > { %s2214_s17 = sshll.u32 %s2282_s4, 4  ;;  %s2215_s17 = int_to_ptr.vmem [resolvable:$false] %s2214_s17 }
 0x135   : > { %p2212_p2 = pnand %p2211_p1, %p2407_p5  ;;  %s2216_s10 = scalar_lea.vmem %s2215_s17, 4096 }
 0x136   : > { %p2217_p4 = scmp.lt.s32.totalorder %s2864_s0, %s2215_s17  ;;  %p2218_p7 = scmp.lt.s32.totalorder %s2216_s10, %s2210_s3 }
 0x137   : > { %p2213_p3 = pneg %p2212_p2 }
 0x138   : > { %p2219_p8 = por %p2218_p7, %p2217_p4 }
 0x13a   : > { %p2220_p9 = pnand %p2219_p8, %p2213_p3 }
 0x13c   : > { %2223 = shalt.err (!%p2220_p9)
}
 0x13d   : > { %s2224_s24 = scalar_lea.hbm %s2861_s21, 2048  ;;  %s2228_s4 = scalar_lea.hbm %s3035_s13, 4096 }
 0x13e   : > { %p2225_p10 = scmp.ne.s32.totalorder %s2861_s21, %s2224_s24  ;;  %p2229_p13 = scmp.lt.u32.totalorder %s2861_s21, %s3035_s13 }
 0x13f   : > { %p2230_p0 = scmp.lt.u32.totalorder %s2228_s4, %s2224_s24  ;;  %p2232_p2 = scmp.lt.u32.totalorder %s2224_s24, %s2861_s21 }
 0x140   : > { %p2226_p11 = pnand %p2225_p10, %p2407_p5 }
 0x141   : > { %p2231_p1 = por %p2230_p0, %p2229_p13 }
 0x142   : > { %p2227_p12 = pneg %p2226_p11 }
 0x143   : > { %p2233_p3 = por %p2232_p2, %p2231_p1 }
 0x145   : > { %p2234_p4 = pnand %p2233_p3, %p2227_p12 }
 0x147   : > { %2237 = shalt.err (!%p2234_p4)
}
 0x148   : > { %2134 = dma.vmem_to_hbm [thread:$0]  (%p2407_p5), %s2864_s0, 2048, %s2861_s21, %s1695_s1, %s2280_s18, %s2280_s18, %s2281_s2   ;;  %vm1443_vm2 = vcmask 23552   ;;  %vm1672_vm3 = vcmask 7168  }
 0x149   : > { %s1280_s3 = sld [smem:[#allocation2]]  ;;  %s2903_s17 = scalar_lea.vmem %s3036_s14, %s2654_s11 }
 0x14a   : > { %s1461_s27 = sld [smem:[#allocation3]]  ;;  %s2909_s2 = scalar_lea.vmem %s3037_s15, %s2654_s11 }
 0x14f   : > { %v2893_v22 = vstv %s1280_s3 }
 0x150   : > { %v2895_v23 = vstv %s1461_s27 }
 0x185   : > { %v2053_v19 = vpop.f32.mrb[0].mxu0  ;;  %v2079_v20 = vpop.f32.mrb[0].mxu1 }
 0x186   : > { %v1354_v21 = vadd.f32 %v2053_v19, %v2893_v22  ;;  %v1583_v24 = vadd.f32 %v2079_v20, %v2895_v23  ;;  %v1348_v25 = vpop.f32.mrb[1].mxu0  ;;  %v1577_v26 = vpop.f32.mrb[1].mxu1 }
 0x187   : > { %v1349_v27 = vadd.f32 %v1348_v25, %v2893_v22  ;;  %v1578_v28 = vadd.f32 %v1577_v26, %v2895_v23 }
 0x188   : > { %v1428_v29 = vmax.f32 %v1354_v21, 0.0  ;;  %v1657_v30 = vmax.f32 %v1583_v24, 0.0 }
 0x189   : > { %v1427_v31 = vmax.f32 %v1349_v27, 0.0  ;;  %v1656_v32 = vmax.f32 %v1578_v28, 0.0 }
 0x18a   : > { %1445 = vst.msk [vmem:[%s2903_s17 + $0x8] sm:$0xff] %vm1443_vm2, %v1428_v29 }
 0x18b   : > { %1674 = vst.msk [vmem:[%s2909_s2 + $0x8] sm:$0xff] %vm1672_vm3, %v1657_v30  ;;  %1673 = vst.msk [vmem:[%s2909_s2] sm:$0xff] %vm1672_vm3, %v1656_v32 }
 0x18c   : > { %1444 = vst.msk [vmem:[%s2903_s17] sm:$0xff] %vm1443_vm2, %v1427_v31 }
 0x195   : > { %v2056_v33 = vpop.f32.mrb[2].mxu0  ;;  %v2082_v34 = vpop.f32.mrb[2].mxu1 }
 0x196   : > { %v1364_v35 = vadd.f32 %v2056_v33, %v2893_v22  ;;  %v1593_v36 = vadd.f32 %v2082_v34, %v2895_v23  ;;  %v1358_v37 = vpop.f32.mrb[3].mxu0  ;;  %v1587_v38 = vpop.f32.mrb[3].mxu1 }
 0x197   : > { %v1359_v39 = vadd.f32 %v1358_v37, %v2893_v22  ;;  %v1588_v40 = vadd.f32 %v1587_v38, %v2895_v23 }
 0x198   : > { %v1430_v41 = vmax.f32 %v1364_v35, 0.0  ;;  %v1659_v42 = vmax.f32 %v1593_v36, 0.0 }
 0x199   : > { %v1429_v43 = vmax.f32 %v1359_v39, 0.0  ;;  %v1658_v44 = vmax.f32 %v1588_v40, 0.0 }
 0x19a   : > { %1447 = vst.msk [vmem:[%s2903_s17 + $0x18] sm:$0xff] %vm1443_vm2, %v1430_v41 }
 0x19b   : > { %1676 = vst.msk [vmem:[%s2909_s2 + $0x18] sm:$0xff] %vm1672_vm3, %v1659_v42  ;;  %1675 = vst.msk [vmem:[%s2909_s2 + $0x10] sm:$0xff] %vm1672_vm3, %v1658_v44 }
 0x19c   : > { %1446 = vst.msk [vmem:[%s2903_s17 + $0x10] sm:$0xff] %vm1443_vm2, %v1429_v43 }
 0x1a5   : > { %v2059_v45 = vpop.f32.mrb[4].mxu0  ;;  %v2085_v46 = vpop.f32.mrb[4].mxu1 }
 0x1a6   : > { %v1374_v47 = vadd.f32 %v2059_v45, %v2893_v22  ;;  %v1603_v48 = vadd.f32 %v2085_v46, %v2895_v23  ;;  %v1368_v49 = vpop.f32.mrb[5].mxu0  ;;  %v1597_v50 = vpop.f32.mrb[5].mxu1 }
 0x1a7   : > { %v1369_v51 = vadd.f32 %v1368_v49, %v2893_v22  ;;  %v1598_v52 = vadd.f32 %v1597_v50, %v2895_v23 }
 0x1a8   : > { %v1432_v53 = vmax.f32 %v1374_v47, 0.0  ;;  %v1661_v54 = vmax.f32 %v1603_v48, 0.0 }
 0x1a9   : > { %v1431_v55 = vmax.f32 %v1369_v51, 0.0  ;;  %v1660_v56 = vmax.f32 %v1598_v52, 0.0 }
 0x1aa   : > { %1449 = vst.msk [vmem:[%s2903_s17 + $0x28] sm:$0xff] %vm1443_vm2, %v1432_v53 }
 0x1ab   : > { %1678 = vst.msk [vmem:[%s2909_s2 + $0x28] sm:$0xff] %vm1672_vm3, %v1661_v54  ;;  %1677 = vst.msk [vmem:[%s2909_s2 + $0x20] sm:$0xff] %vm1672_vm3, %v1660_v56 }
 0x1ac   : > { %1448 = vst.msk [vmem:[%s2903_s17 + $0x20] sm:$0xff] %vm1443_vm2, %v1431_v55 }
 0x1b5   : > { %v2062_v57 = vpop.f32.mrb[6].mxu0  ;;  %v2088_v58 = vpop.f32.mrb[6].mxu1 }
 0x1b6   : > { %v1384_v59 = vadd.f32 %v2062_v57, %v2893_v22  ;;  %v1613_v60 = vadd.f32 %v2088_v58, %v2895_v23  ;;  %v1378_v61 = vpop.f32.mrb[7].mxu0  ;;  %v1607_v62 = vpop.f32.mrb[7].mxu1 }
 0x1b7   : > { %v1379_v63 = vadd.f32 %v1378_v61, %v2893_v22  ;;  %v1608_v0 = vadd.f32 %v1607_v62, %v2895_v23 }
 0x1b8   : > { %v1434_v1 = vmax.f32 %v1384_v59, 0.0  ;;  %v1663_v2 = vmax.f32 %v1613_v60, 0.0 }
 0x1b9   : > { %v1433_v3 = vmax.f32 %v1379_v63, 0.0  ;;  %v1662_v4 = vmax.f32 %v1608_v0, 0.0 }
 0x1ba   : > { %1451 = vst.msk [vmem:[%s2903_s17 + $0x38] sm:$0xff] %vm1443_vm2, %v1434_v1 }
 0x1bb   : > { %1680 = vst.msk [vmem:[%s2909_s2 + $0x38] sm:$0xff] %vm1672_vm3, %v1663_v2  ;;  %1679 = vst.msk [vmem:[%s2909_s2 + $0x30] sm:$0xff] %vm1672_vm3, %v1662_v4 }
 0x1bc   : > { %1450 = vst.msk [vmem:[%s2903_s17 + $0x30] sm:$0xff] %vm1443_vm2, %v1433_v3 }
 0x1c5   : > { %v2065_v5 = vpop.f32.mrb[8].mxu0  ;;  %v2091_v6 = vpop.f32.mrb[8].mxu1 }
 0x1c6   : > { %v1394_v7 = vadd.f32 %v2065_v5, %v2893_v22  ;;  %v1623_v8 = vadd.f32 %v2091_v6, %v2895_v23  ;;  %v1388_v9 = vpop.f32.mrb[9].mxu0  ;;  %v1617_v10 = vpop.f32.mrb[9].mxu1 }
 0x1c7   : > { %v1389_v11 = vadd.f32 %v1388_v9, %v2893_v22  ;;  %v1618_v12 = vadd.f32 %v1617_v10, %v2895_v23 }
 0x1c8   : > { %v1436_v13 = vmax.f32 %v1394_v7, 0.0  ;;  %v1665_v14 = vmax.f32 %v1623_v8, 0.0 }
 0x1c9   : > { %v1435_v15 = vmax.f32 %v1389_v11, 0.0  ;;  %v1664_v16 = vmax.f32 %v1618_v12, 0.0 }
 0x1ca   : > { %1453 = vst.msk [vmem:[%s2903_s17 + $0x48] sm:$0xff] %vm1443_vm2, %v1436_v13 }
 0x1cb   : > { %1682 = vst.msk [vmem:[%s2909_s2 + $0x48] sm:$0xff] %vm1672_vm3, %v1665_v14  ;;  %1681 = vst.msk [vmem:[%s2909_s2 + $0x40] sm:$0xff] %vm1672_vm3, %v1664_v16 }
 0x1cc   : > { %1452 = vst.msk [vmem:[%s2903_s17 + $0x40] sm:$0xff] %vm1443_vm2, %v1435_v15 }
 0x1d5   : > { %v2068_v17 = vpop.f32.mrb[10].mxu0  ;;  %v2094_v18 = vpop.f32.mrb[10].mxu1 }
 0x1d6   : > { %v1404_v19 = vadd.f32 %v2068_v17, %v2893_v22  ;;  %v1633_v20 = vadd.f32 %v2094_v18, %v2895_v23  ;;  %v1398_v21 = vpop.f32.mrb[11].mxu0  ;;  %v1627_v24 = vpop.f32.mrb[11].mxu1 }
 0x1d7   : > { %v1399_v25 = vadd.f32 %v1398_v21, %v2893_v22  ;;  %v1628_v26 = vadd.f32 %v1627_v24, %v2895_v23 }
 0x1d8   : > { %v1438_v27 = vmax.f32 %v1404_v19, 0.0  ;;  %v1667_v28 = vmax.f32 %v1633_v20, 0.0 }
 0x1d9   : > { %v1437_v29 = vmax.f32 %v1399_v25, 0.0  ;;  %v1666_v30 = vmax.f32 %v1628_v26, 0.0 }
 0x1da   : > { %1455 = vst.msk [vmem:[%s2903_s17 + $0x58] sm:$0xff] %vm1443_vm2, %v1438_v27 }
 0x1db   : > { %1684 = vst.msk [vmem:[%s2909_s2 + $0x58] sm:$0xff] %vm1672_vm3, %v1667_v28  ;;  %1683 = vst.msk [vmem:[%s2909_s2 + $0x50] sm:$0xff] %vm1672_vm3, %v1666_v30 }
 0x1dc   : > { %1454 = vst.msk [vmem:[%s2903_s17 + $0x50] sm:$0xff] %vm1443_vm2, %v1437_v29 }
 0x1e5   : > { %v2071_v31 = vpop.f32.mrb[12].mxu0 }
 0x1e6   : > { %v1414_v32 = vadd.f32 %v2071_v31, %v2893_v22  ;;  %v1408_v33 = vpop.f32.mrb[13].mxu0 }
 0x1e7   : > { %v1409_v34 = vadd.f32 %v1408_v33, %v2893_v22 }
 0x1e8   : > { %v1440_v35 = vmax.f32 %v1414_v32, 0.0 }
 0x1e9   : > { %v1439_v36 = vmax.f32 %v1409_v34, 0.0  ;;  %v2097_v37 = vpop.f32.mrb[12].mxu1 }
 0x1ea   : > { %1457 = vst.msk [vmem:[%s2903_s17 + $0x68] sm:$0xff] %vm1443_vm2, %v1440_v35  ;;  %v1643_v38 = vadd.f32 %v2097_v37, %v2895_v23  ;;  %v1637_v39 = vpop.f32.mrb[13].mxu1 }
 0x1eb   : > { %1456 = vst.msk [vmem:[%s2903_s17 + $0x60] sm:$0xff] %vm1443_vm2, %v1439_v36  ;;  %v1638_v40 = vadd.f32 %v1637_v39, %v2895_v23 }
 0x1ec   : > { %v1669_v41 = vmax.f32 %v1643_v38, 0.0 }
 0x1ed   : > { %v1668_v42 = vmax.f32 %v1638_v40, 0.0 }
 0x1ee   : > { %1686 = vst.msk [vmem:[%s2909_s2 + $0x68] sm:$0xff] %vm1672_vm3, %v1669_v41 }
 0x1ef   : > { %1685 = vst.msk [vmem:[%s2909_s2 + $0x60] sm:$0xff] %vm1672_vm3, %v1668_v42  ;;  %v2074_v43 = vpop.f32.mrb[14].mxu0  ;;  %v2100_v44 = vpop.f32.mrb[14].mxu1 }
 0x1f0   : > { %v1424_v45 = vadd.f32 %v2074_v43, %v2893_v22  ;;  %v1653_v46 = vadd.f32 %v2100_v44, %v2895_v23  ;;  %v1418_v47 = vpop.f32.mrb[15].mxu0  ;;  %v1647_v48 = vpop.f32.mrb[15].mxu1 }
 0x1f1   : > { %v1419_v49 = vadd.f32 %v1418_v47, %v2893_v22  ;;  %v1648_v50 = vadd.f32 %v1647_v48, %v2895_v23 }
 0x1f2   : > { %v1442_v51 = vmax.f32 %v1424_v45, 0.0  ;;  %v1671_v52 = vmax.f32 %v1653_v46, 0.0 }
 0x1f3   : > { %v1441_v53 = vmax.f32 %v1419_v49, 0.0  ;;  %v1670_v54 = vmax.f32 %v1648_v50, 0.0 }
 0x1f4   : > { %1459 = vst.msk [vmem:[%s2903_s17 + $0x78] sm:$0xff] %vm1443_vm2, %v1442_v51 }
 0x1f5   : > { %1688 = vst.msk [vmem:[%s2909_s2 + $0x78] sm:$0xff] %vm1672_vm3, %v1671_v52  ;;  %1687 = vst.msk [vmem:[%s2909_s2 + $0x70] sm:$0xff] %vm1672_vm3, %v1670_v54 }
 0x1f6   : > { %1458 = vst.msk [vmem:[%s2903_s17 + $0x70] sm:$0xff] %vm1443_vm2, %v1441_v53 }
 0x1f7 PF: > { %p2144_p5 = scmp.ge.s32.totalorder %s2276_s25, 2  ;;  %s1755_s11 = sand.u32 1, %s2264_s22  }
 0x1f8   : > { %s1756_s21 = scalar_lea.sflag [#allocation5], %s1755_s11 }
 0x1f9   : > { %p2138_p7 = pnand %p2144_p5, %p2411_p6 }
 0x1fb   : > { %2255 = dma.done.wait (!%p2138_p7), %s1756_s21, 2048  }
 0x1fc   : > { %2257 = vsyncadd (!%p2138_p7), %s1756_s21, 4294965248  ;;  %s1765_s0 = scalar_lea.sflag [#allocation7], %s1755_s11 }
 0x1fd   : > { %2259 = dma.done.wait (!%p2138_p7), %s1765_s0, 2048  }
 0x1fe   : > { %2261 = vsyncadd (!%p2138_p7), %s1765_s0, 4294965248  ;;  %s3059_s25 = sld [smem:[#allocation11_spill]]  ;;  %s3060_s10 = sld [smem:[#allocation10_spill]] }
 0x1ff   : > { %s3061_s24 = sld [smem:[#allocation12_spill]]  ;;  %s3062_s22 = smov %s2268_s23 }
 0x204   : > { %p31_p8 = scmp.ge.s32.totalorder %s3059_s25, 4   ;;  %s3063_s23 = smov %s3060_s10 }
 0x206   :  { %33 = sbr.rel (!%p31_p8) target bundleno = 13 (0xd), region = 153 }
 0x20d   :  { %1786 = vsyncpa [#allocation5], 1 }
 0x20e   :  { %1788 = vsyncpa [#allocation5 + $0x1], 1 }
 0x20f   :  { %1789 = vsyncpa [#allocation7], 1 }
 0x210   :  { %1791 = vsyncpa [#allocation7 + $0x1], 1 }

// kernel: anegcn2_forward.11
= control target key start
LH: loop header
LB: loop body
LE: loop exit
PB: predicated region body
PF: predicated region fallthrough
CT: control target
= control target key end

     0   :  { %v6832_v32 = vmov 1983009808   ;;  %v32_v34 = vlaneseq  ;;  %s9524_s0 = inlined_call_operand.vmem [shape: f32[2,1392], index: 0, kind: input, shape index: {}]   ;;  %s9525_s1 = inlined_call_operand.vmem [shape: bf16[1392,1024], index: 1, kind: input, shape index: {}]   ;;  %s9526_s2 = inlined_call_operand.vmem [shape: f32[1,1024], index: 2, kind: input, shape index: {}]   ;;  %s9527_s3 = inlined_call_operand.vmem [shape: f32[1024,2], index: 3, kind: input, shape index: {}]   ;;  %s9528_s4 = inlined_call_operand.vmem [shape: f32[1,2], index: 4, kind: input, shape index: {}]   ;;  %s9529_s5 = inlined_call_operand.hbm [shape: f32[2,2], index: 5, kind: output, shape index: {}]  }
   0x1   :  { %v100_v0 = vld [vmem:[%s9525_s1] sm:$0xff]  ;;  %v101_v2 = vld [vmem:[%s9525_s1 + $0x8] sm:$0xff]  ;;  %v30_v33 = vunpack.c.l.s4 %v6832_v32 }
   0x2   :  { %v104_v1 = vld [vmem:[%s9525_s1 + $0x20] sm:$0xff]  ;;  %v105_v4 = vld [vmem:[%s9525_s1 + $0x28] sm:$0xff]  ;;  %v6931_v44 = vshrl.u32 %v32_v34, 7 }
   0x3   :  { %v5746_v3 = vcombine.high %v100_v0, %v104_v1  ;;  %v5745_v5 = vcombine.low %v100_v0, %v104_v1  ;;  %v108_v6 = vld [vmem:[%s9525_s1 + $0x40] sm:$0xff]  ;;  %v5748_v8 = vcombine.high %v101_v2, %v105_v4  ;;  %v5747_v9 = vcombine.low %v101_v2, %v105_v4  ;;  %v109_v11 = vld [vmem:[%s9525_s1 + $0x48] sm:$0xff] }
   0x4   :  { %v112_v7 = vld [vmem:[%s9525_s1 + $0x60] sm:$0xff]  ;;  %v113_v12 = vld [vmem:[%s9525_s1 + $0x68] sm:$0xff]  ;;  %v31_v43 = vunpack.c.0.s8 %v30_v33 }
   0x5   :  { %v5754_v10 = vcombine.high %v108_v6, %v112_v7  ;;  %v116_v13 = vld [vmem:[%s9525_s1 + $0x80] sm:$0xff]  ;;  %4322 = vmatprep.subr.bf16.mxu0 %v5746_v3  ;;  %v5756_v14 = vcombine.high %v109_v11, %v113_v12  ;;  %v117_v16 = vld [vmem:[%s9525_s1 + $0x88] sm:$0xff]  ;;  %4568 = vmatprep.subr.bf16.mxu1 %v5748_v8  ;;  %v5753_v18 = vcombine.low %v108_v6, %v112_v7 }
   0x6   :  { %v120_v15 = vld [vmem:[%s9525_s1 + $0xa0] sm:$0xff]  ;;  %v121_v17 = vld [vmem:[%s9525_s1 + $0xa8] sm:$0xff]  ;;  %4323 = vmatpush1.bf16.msra.mxu0 %v5745_v5  ;;  %4569 = vmatpush1.bf16.msra.mxu1 %v5747_v9  ;;  %v5755_v19 = vcombine.low %v109_v11, %v113_v12  ;;  %v6946_v53 = vsub.s32 %v31_v43, %v6931_v44 }
   0x7   :  { %4324 = vmatprep.subr.bf16.mxu0 %v5754_v10  ;;  %v5762_v20 = vcombine.high %v116_v13, %v120_v15  ;;  %4570 = vmatprep.subr.bf16.mxu1 %v5756_v14  ;;  %v5764_v21 = vcombine.high %v117_v16, %v121_v17  ;;  %v124_v22 = vld [vmem:[%s9525_s1 + $0xc0] sm:$0xff]  ;;  %v125_v24 = vld [vmem:[%s9525_s1 + $0xc8] sm:$0xff]  ;;  %v5761_v26 = vcombine.low %v116_v13, %v120_v15 }
   0x8   :  { %v128_v23 = vld [vmem:[%s9525_s1 + $0xe0] sm:$0xff]  ;;  %v129_v25 = vld [vmem:[%s9525_s1 + $0xe8] sm:$0xff]  ;;  %v5763_v27 = vcombine.low %v117_v16, %v121_v17 }
   0x9   :  { %v5770_v28 = vcombine.high %v124_v22, %v128_v23  ;;  %v5772_v29 = vcombine.high %v125_v24, %v129_v25  ;;  %v132_v30 = vld [vmem:[%s9525_s1 + $0x100] sm:$0xff]  ;;  %v133_v35 = vld [vmem:[%s9525_s1 + $0x108] sm:$0xff]  ;;  %v5769_v37 = vcombine.low %v124_v22, %v128_v23  ;;  %v5771_v38 = vcombine.low %v125_v24, %v129_v25 }
   0xa   :  { %4325 = vmatpush1.bf16.msra.mxu0 %v5753_v18  ;;  %4571 = vmatpush1.bf16.msra.mxu1 %v5755_v19  ;;  %v136_v31 = vld [vmem:[%s9525_s1 + $0x120] sm:$0xff]  ;;  %v137_v36 = vld [vmem:[%s9525_s1 + $0x128] sm:$0xff] }
   0xb   :  { %4326 = vmatprep.subr.bf16.mxu0 %v5762_v20  ;;  %4572 = vmatprep.subr.bf16.mxu1 %v5764_v21  ;;  %v5778_v39 = vcombine.high %v132_v30, %v136_v31  ;;  %v5780_v40 = vcombine.high %v133_v35, %v137_v36  ;;  %v140_v41 = vld [vmem:[%s9525_s1 + $0x140] sm:$0xff]  ;;  %v141_v45 = vld [vmem:[%s9525_s1 + $0x148] sm:$0xff]  ;;  %v5777_v47 = vcombine.low %v132_v30, %v136_v31 }
   0xc   :  { %v144_v42 = vld [vmem:[%s9525_s1 + $0x160] sm:$0xff]  ;;  %v145_v46 = vld [vmem:[%s9525_s1 + $0x168] sm:$0xff]  ;;  %v5779_v48 = vcombine.low %v133_v35, %v137_v36 }
   0xd   :  { %v5786_v49 = vcombine.high %v140_v41, %v144_v42  ;;  %v5788_v50 = vcombine.high %v141_v45, %v145_v46  ;;  %v148_v51 = vld [vmem:[%s9525_s1 + $0x180] sm:$0xff]  ;;  %v149_v54 = vld [vmem:[%s9525_s1 + $0x188] sm:$0xff]  ;;  %v5785_v56 = vcombine.low %v140_v41, %v144_v42  ;;  %v5787_v57 = vcombine.low %v141_v45, %v145_v46 }
   0xe   :  { %4327 = vmatpush1.bf16.msra.mxu0 %v5761_v26  ;;  %4573 = vmatpush1.bf16.msra.mxu1 %v5763_v27  ;;  %v152_v52 = vld [vmem:[%s9525_s1 + $0x1a0] sm:$0xff]  ;;  %v153_v55 = vld [vmem:[%s9525_s1 + $0x1a8] sm:$0xff] }
   0xf   :  { %4328 = vmatprep.subr.bf16.mxu0 %v5770_v28  ;;  %4574 = vmatprep.subr.bf16.mxu1 %v5772_v29  ;;  %v5794_v58 = vcombine.high %v148_v51, %v152_v52  ;;  %v6957_v59 = vld [vmem:[%s9524_s0] sm:$0xff]  ;;  %v5796_v60 = vcombine.high %v149_v54, %v153_v55  ;;  %v157_v0 = vld [vmem:[%s9525_s1 + $0x1c8] sm:$0xff]  ;;  %v5793_v2 = vcombine.low %v148_v51, %v152_v52 }
  0x10   :  { %v156_v61 = vld [vmem:[%s9525_s1 + $0x1c0] sm:$0xff]  ;;  %v6967_v63 = vrot.slane %v6957_v59, %v6946_v53  ;;  %v161_v1 = vld [vmem:[%s9525_s1 + $0x1e8] sm:$0xff]  ;;  %v5795_v4 = vcombine.low %v149_v54, %v153_v55 }
  0x11   :  { %v160_v62 = vld [vmem:[%s9525_s1 + $0x1e0] sm:$0xff]  ;;  %v5804_v6 = vcombine.high %v157_v0, %v161_v1  ;;  %v165_v10 = vld [vmem:[%s9525_s1 + $0x208] sm:$0xff]  ;;  %v5803_v13 = vcombine.low %v157_v0, %v161_v1 }
  0x12   :  { %4329 = vmatpush1.bf16.msra.mxu0 %v5769_v37  ;;  %4575 = vmatpush1.bf16.msra.mxu1 %v5771_v38  ;;  %v43_v3 = vcombine.high %v6967_v63, %v6967_v63  ;;  %v5802_v5 = vcombine.high %v156_v61, %v160_v62  ;;  %v164_v7 = vld [vmem:[%s9525_s1 + $0x200] sm:$0xff]  ;;  %v169_v11 = vld [vmem:[%s9525_s1 + $0x228] sm:$0xff]  ;;  %v5801_v12 = vcombine.low %v156_v61, %v160_v62 }
  0x13   :  { %4330 = vmatprep.subr.bf16.mxu0 %v5778_v39  ;;  %4576 = vmatprep.subr.bf16.mxu1 %v5780_v40  ;;  %v168_v8 = vld [vmem:[%s9525_s1 + $0x220] sm:$0xff]  ;;  %v5812_v15 = vcombine.high %v165_v10, %v169_v11  ;;  %v173_v18 = vld [vmem:[%s9525_s1 + $0x248] sm:$0xff]  ;;  %v5811_v21 = vcombine.low %v165_v10, %v169_v11 }
  0x14   :  { %v6983_v9 = vpack.c.bf16 %v43_v3, %v43_v3  ;;  %v5810_v14 = vcombine.high %v164_v7, %v168_v8  ;;  %v172_v16 = vld [vmem:[%s9525_s1 + $0x240] sm:$0xff]  ;;  %v177_v19 = vld [vmem:[%s9525_s1 + $0x268] sm:$0xff]  ;;  %v5809_v20 = vcombine.low %v164_v7, %v168_v8 }
  0x15   :  { %v176_v17 = vld [vmem:[%s9525_s1 + $0x260] sm:$0xff]  ;;  %v5820_v23 = vcombine.high %v173_v18, %v177_v19  ;;  %v181_v26 = vld [vmem:[%s9525_s1 + $0x288] sm:$0xff]  ;;  %v5819_v29 = vcombine.low %v173_v18, %v177_v19 }
  0x16   :  { %4331 = vmatpush1.bf16.msra.mxu0 %v5777_v47  ;;  %4577 = vmatpush1.bf16.msra.mxu1 %v5779_v48  ;;  %v5818_v22 = vcombine.high %v172_v16, %v176_v17  ;;  %v180_v24 = vld [vmem:[%s9525_s1 + $0x280] sm:$0xff]  ;;  %v185_v27 = vld [vmem:[%s9525_s1 + $0x2a8] sm:$0xff]  ;;  %v5817_v28 = vcombine.low %v172_v16, %v176_v17 }
  0x17   :  { %4332 = vmatprep.subr.bf16.mxu0 %v5786_v49  ;;  %4578 = vmatprep.subr.bf16.mxu1 %v5788_v50  ;;  %v184_v25 = vld [vmem:[%s9525_s1 + $0x2a0] sm:$0xff]  ;;  %v5828_v31 = vcombine.high %v181_v26, %v185_v27  ;;  %v189_v34 = vld [vmem:[%s9525_s1 + $0x2c8] sm:$0xff]  ;;  %v5827_v37 = vcombine.low %v181_v26, %v185_v27 }
  0x18   :  { %4354 = vmatprep.mubr.bf16.mxu0 %v6983_v9  ;;  %4600 = vmatprep.mubr.bf16.mxu1 %v6983_v9  ;;  %v5826_v30 = vcombine.high %v180_v24, %v184_v25  ;;  %v188_v32 = vld [vmem:[%s9525_s1 + $0x2c0] sm:$0xff]  ;;  %v193_v35 = vld [vmem:[%s9525_s1 + $0x2e8] sm:$0xff]  ;;  %v5825_v36 = vcombine.low %v180_v24, %v184_v25  ;;  %v7104_v25 = vpack.c.bf16 %v6967_v63, %v6967_v63 }
  0x19   :  { %v192_v33 = vld [vmem:[%s9525_s1 + $0x2e0] sm:$0xff]  ;;  %v5836_v39 = vcombine.high %v189_v34, %v193_v35  ;;  %v197_v42 = vld [vmem:[%s9525_s1 + $0x308] sm:$0xff]  ;;  %v5835_v46 = vcombine.low %v189_v34, %v193_v35 }
  0x1a   :  { %4333 = vmatpush1.bf16.msra.mxu0 %v5785_v56  ;;  %4579 = vmatpush1.bf16.msra.mxu1 %v5787_v57  ;;  %v5834_v38 = vcombine.high %v188_v32, %v192_v33  ;;  %v196_v40 = vld [vmem:[%s9525_s1 + $0x300] sm:$0xff]  ;;  %v201_v43 = vld [vmem:[%s9525_s1 + $0x328] sm:$0xff]  ;;  %v5833_v45 = vcombine.low %v188_v32, %v192_v33 }
  0x1b   :  { %4334 = vmatprep.subr.bf16.mxu0 %v5794_v58  ;;  %4580 = vmatprep.subr.bf16.mxu1 %v5796_v60  ;;  %v200_v41 = vld [vmem:[%s9525_s1 + $0x320] sm:$0xff]  ;;  %v5844_v48 = vcombine.high %v197_v42, %v201_v43  ;;  %v205_v51 = vld [vmem:[%s9525_s1 + $0x348] sm:$0xff]  ;;  %v5843_v55 = vcombine.low %v197_v42, %v201_v43 }
  0x1c   :  { %v5842_v47 = vcombine.high %v196_v40, %v200_v41  ;;  %v204_v49 = vld [vmem:[%s9525_s1 + $0x340] sm:$0xff]  ;;  %v209_v52 = vld [vmem:[%s9525_s1 + $0x368] sm:$0xff]  ;;  %v5841_v54 = vcombine.low %v196_v40, %v200_v41 }
  0x1d   :  { %v208_v50 = vld [vmem:[%s9525_s1 + $0x360] sm:$0xff]  ;;  %v5852_v57 = vcombine.high %v205_v51, %v209_v52  ;;  %v213_v61 = vld [vmem:[%s9525_s1 + $0x388] sm:$0xff]  ;;  %v5851_v1 = vcombine.low %v205_v51, %v209_v52 }
  0x1e   :  { %4335 = vmatpush1.bf16.msra.mxu0 %v5793_v2  ;;  %4581 = vmatpush1.bf16.msra.mxu1 %v5795_v4  ;;  %v5850_v56 = vcombine.high %v204_v49, %v208_v50  ;;  %v212_v58 = vld [vmem:[%s9525_s1 + $0x380] sm:$0xff]  ;;  %v217_v62 = vld [vmem:[%s9525_s1 + $0x3a8] sm:$0xff]  ;;  %v5849_v0 = vcombine.low %v204_v49, %v208_v50 }
  0x1f   :  { %4336 = vmatprep.subr.bf16.mxu0 %v5802_v5  ;;  %4582 = vmatprep.subr.bf16.mxu1 %v5804_v6  ;;  %v216_v60 = vld [vmem:[%s9525_s1 + $0x3a0] sm:$0xff]  ;;  %v5860_v3 = vcombine.high %v213_v61, %v217_v62  ;;  %v28_v6 = vcombine.high %v6957_v59, %v6957_v59  ;;  %v221_v7 = vld [vmem:[%s9525_s1 + $0x3c8] sm:$0xff]  ;;  %v5859_v11 = vcombine.low %v213_v61, %v217_v62 }
  0x20   :  { %v5858_v2 = vcombine.high %v212_v58, %v216_v60  ;;  %v220_v4 = vld [vmem:[%s9525_s1 + $0x3c0] sm:$0xff]  ;;  %v225_v8 = vld [vmem:[%s9525_s1 + $0x3e8] sm:$0xff]  ;;  %v5857_v10 = vcombine.low %v212_v58, %v216_v60 }
  0x21   :  { %v224_v5 = vld [vmem:[%s9525_s1 + $0x3e0] sm:$0xff]  ;;  %v229_v16 = vld [vmem:[%s9525_s1 + $0x408] sm:$0xff]  ;;  %v5867_v19 = vcombine.low %v221_v7, %v225_v8 }
  0x22   :  { %4337 = vmatpush1.bf16.msra.mxu0 %v5801_v12  ;;  %4583 = vmatpush1.bf16.msra.mxu1 %v5803_v13  ;;  %v5866_v12 = vcombine.high %v220_v4, %v224_v5  ;;  %v5868_v13 = vcombine.high %v221_v7, %v225_v8  ;;  %v228_v59 = vld [vmem:[%s9525_s1 + $0x400] sm:$0xff]  ;;  %v233_v17 = vld [vmem:[%s9525_s1 + $0x428] sm:$0xff]  ;;  %v5865_v18 = vcombine.low %v220_v4, %v224_v5 }
  0x23   :  { %4338 = vmatprep.subr.bf16.mxu0 %v5810_v14  ;;  %4584 = vmatprep.subr.bf16.mxu1 %v5812_v15  ;;  %v232_v14 = vld [vmem:[%s9525_s1 + $0x420] sm:$0xff]  ;;  %v7086_v15 = vrot.slane %v28_v6, %v6946_v53  ;;  %v237_v26 = vld [vmem:[%s9525_s1 + $0x448] sm:$0xff] }
  0x24   :  { %v241_v27 = vld [vmem:[%s9525_s1 + $0x468] sm:$0xff] }
  0x25   :  { %v44_v24 = vcombine.high %v7086_v15, %v7086_v15 }
  0x26   :  { %4339 = vmatpush1.bf16.msra.mxu0 %v5809_v20  ;;  %4585 = vmatpush1.bf16.msra.mxu1 %v5811_v21  ;;  %v5874_v20 = vcombine.high %v228_v59, %v232_v14  ;;  %v5876_v21 = vcombine.high %v229_v16, %v233_v17 }
  0x27   :  { %4340 = vmatprep.subr.bf16.mxu0 %v5818_v22  ;;  %4586 = vmatprep.subr.bf16.mxu1 %v5820_v23  ;;  %v236_v22 = vld [vmem:[%s9525_s1 + $0x440] sm:$0xff] }
  0x28   :  { %v240_v23 = vld [vmem:[%s9525_s1 + $0x460] sm:$0xff] }
  0x2a   :  { %4341 = vmatpush1.bf16.msra.mxu0 %v5817_v28  ;;  %4587 = vmatpush1.bf16.msra.mxu1 %v5819_v29  ;;  %v5873_v28 = vcombine.low %v228_v59, %v232_v14 }
  0x2b   :  { %4342 = vmatprep.subr.bf16.mxu0 %v5826_v30  ;;  %4588 = vmatprep.subr.bf16.mxu1 %v5828_v31 }
  0x2e   :  { %4343 = vmatpush1.bf16.msra.mxu0 %v5825_v36  ;;  %4589 = vmatpush1.bf16.msra.mxu1 %v5827_v37 }
  0x2f   :  { %4344 = vmatprep.subr.bf16.mxu0 %v5834_v38  ;;  %4590 = vmatprep.subr.bf16.mxu1 %v5836_v39 }
  0x32   :  { %4345 = vmatpush1.bf16.msra.mxu0 %v5833_v45  ;;  %4591 = vmatpush1.bf16.msra.mxu1 %v5835_v46 }
  0x33   :  { %4346 = vmatprep.subr.bf16.mxu0 %v5842_v47  ;;  %4592 = vmatprep.subr.bf16.mxu1 %v5844_v48 }
  0x36   :  { %4347 = vmatpush1.bf16.msra.mxu0 %v5841_v54  ;;  %4593 = vmatpush1.bf16.msra.mxu1 %v5843_v55 }
  0x37   :  { %4348 = vmatprep.subr.bf16.mxu0 %v5850_v56  ;;  %4594 = vmatprep.subr.bf16.mxu1 %v5852_v57 }
  0x3a   :  { %4349 = vmatpush1.bf16.msra.mxu0 %v5849_v0  ;;  %4595 = vmatpush1.bf16.msra.mxu1 %v5851_v1 }
  0x3b   :  { %4350 = vmatprep.subr.bf16.mxu0 %v5858_v2  ;;  %4596 = vmatprep.subr.bf16.mxu1 %v5860_v3 }
  0x3e   :  { %4351 = vmatpush1.bf16.msra.mxu0 %v5857_v10  ;;  %4597 = vmatpush1.bf16.msra.mxu1 %v5859_v11 }
  0x3f   :  { %4352 = vmatprep.subr.bf16.mxu0 %v5866_v12  ;;  %4598 = vmatprep.subr.bf16.mxu1 %v5868_v13 }
  0x42   :  { %4353 = vmatpush1.bf16.msra.mxu0 %v5865_v18 }
  0x43   :  { %10 = vsyncpa [#allocation3], 0  ;;  %4599 = vmatpush1.bf16.msra.mxu1 %v5867_v19  ;;  %4363 = vmatprep.subr.bf16.mxu0 %v5874_v20  ;;  %v5875_v29 = vcombine.low %v229_v16, %v233_v17  ;;  %v5882_v30 = vcombine.high %v236_v22, %v240_v23  ;;  %v5884_v31 = vcombine.high %v237_v26, %v241_v27  ;;  %v244_v63 = vld [vmem:[%s9525_s1 + $0x480] sm:$0xff]  ;;  %v245_v34 = vld [vmem:[%s9525_s1 + $0x488] sm:$0xff]  ;;  %vm4318_vm0 = vcmask 916480   ;;  %s6834_s12 = smov [#allocation2]  }
  0x44   :  { %4609 = vmatprep.subr.bf16.mxu1 %v5876_v21  ;;  %v248_v32 = vld [vmem:[%s9525_s1 + $0x4a0] sm:$0xff]  ;;  %v7118_v33 = vpack.c.bf16 %v44_v24, %v44_v24  ;;  %v249_v35 = vld [vmem:[%s9525_s1 + $0x4a8] sm:$0xff]  ;;  %v5881_v36 = vcombine.low %v236_v22, %v240_v23  ;;  %v5883_v37 = vcombine.low %v237_v26, %v241_v27  ;;  %s5737_s13 = sshll.u32 %s6834_s12, 4  ;;  %vm5729_vm1 = vcmask 9216   ;;  %s5738_s13 = int_to_ptr.vmem [resolvable:$true] %s5737_s13 }
  0x45   :  { %4355 = vmatmul.mubr.bf16.vlgmr.msra.gmra.mrb[0].mxu0 %v7104_v25  ;;  %v5890_v38 = vcombine.high %v244_v63, %v248_v32  ;;  %v5892_v39 = vcombine.high %v245_v34, %v249_v35  ;;  %v252_v40 = vld [vmem:[%s9525_s1 + $0x4c0] sm:$0xff]  ;;  %v253_v42 = vld [vmem:[%s9525_s1 + $0x4c8] sm:$0xff]  ;;  %v5889_v45 = vcombine.low %v244_v63, %v248_v32  ;;  %v5891_v46 = vcombine.low %v245_v34, %v249_v35  ;;  %p6813_p1 = scmp.lt.s32.totalorder %s5738_s13, %s5738_s13 }
  0x46   :  { %4364 = vmatpush1.bf16.msra.mxu0 %v5873_v28  ;;  %4601 = vmatmul.mubr.bf16.vlgmr.msra.gmra.mrb[0].mxu1 %v7104_v25  ;;  %v256_v41 = vld [vmem:[%s9525_s1 + $0x4e0] sm:$0xff]  ;;  %v257_v43 = vld [vmem:[%s9525_s1 + $0x4e8] sm:$0xff] }
  0x47   :  { %4610 = vmatpush1.bf16.msra.mxu1 %v5875_v29  ;;  %4365 = vmatprep.subr.bf16.mxu0 %v5882_v30  ;;  %v5898_v47 = vcombine.high %v252_v40, %v256_v41  ;;  %v5900_v48 = vcombine.high %v253_v42, %v257_v43  ;;  %v260_v49 = vld [vmem:[%s9525_s1 + $0x500] sm:$0xff]  ;;  %v261_v51 = vld [vmem:[%s9525_s1 + $0x508] sm:$0xff]  ;;  %v5897_v54 = vcombine.low %v252_v40, %v256_v41 }
  0x48   :  { %4611 = vmatprep.subr.bf16.mxu1 %v5884_v31  ;;  %4395 = vmatprep.mubr.bf16.mxu0 %v7118_v33  ;;  %v264_v50 = vld [vmem:[%s9525_s1 + $0x520] sm:$0xff]  ;;  %v265_v52 = vld [vmem:[%s9525_s1 + $0x528] sm:$0xff]  ;;  %v5899_v55 = vcombine.low %v253_v42, %v257_v43 }
  0x49   :  { %4641 = vmatprep.mubr.bf16.mxu1 %v7118_v33  ;;  %v5906_v56 = vcombine.high %v260_v49, %v264_v50  ;;  %v5908_v57 = vcombine.high %v261_v51, %v265_v52  ;;  %v268_v58 = vld [vmem:[%s9525_s1 + $0x540] sm:$0xff]  ;;  %v269_v61 = vld [vmem:[%s9525_s1 + $0x548] sm:$0xff]  ;;  %v5905_v0 = vcombine.low %v260_v49, %v264_v50  ;;  %v5907_v1 = vcombine.low %v261_v51, %v265_v52 }
  0x4a   :  { %4366 = vmatpush1.bf16.msra.mxu0 %v5881_v36  ;;  %v272_v60 = vld [vmem:[%s9525_s1 + $0x560] sm:$0xff]  ;;  %v273_v62 = vld [vmem:[%s9525_s1 + $0x568] sm:$0xff] }
  0x4b   :  { %4612 = vmatpush1.bf16.msra.mxu1 %v5883_v37  ;;  %4367 = vmatprep.subr.bf16.mxu0 %v5890_v38  ;;  %v5914_v2 = vcombine.high %v268_v58, %v272_v60  ;;  %v5916_v3 = vcombine.high %v269_v61, %v273_v62  ;;  %v276_v4 = vld [vmem:[%s9525_s1 + $0x580] sm:$0xff]  ;;  %v277_v6 = vld [vmem:[%s9525_s1 + $0x588] sm:$0xff]  ;;  %v5913_v8 = vcombine.low %v268_v58, %v272_v60 }
  0x4c   :  { %4613 = vmatprep.subr.bf16.mxu1 %v5892_v39  ;;  %v280_v5 = vld [vmem:[%s9525_s1 + $0x5a0] sm:$0xff]  ;;  %v281_v7 = vld [vmem:[%s9525_s1 + $0x5a8] sm:$0xff]  ;;  %v5915_v10 = vcombine.low %v269_v61, %v273_v62 }
  0x4d   :  { %v5922_v11 = vcombine.high %v276_v4, %v280_v5  ;;  %v5924_v12 = vcombine.high %v277_v6, %v281_v7  ;;  %v284_v13 = vld [vmem:[%s9525_s1 + $0x5c0] sm:$0xff]  ;;  %v285_v14 = vld [vmem:[%s9525_s1 + $0x5c8] sm:$0xff]  ;;  %v5921_v17 = vcombine.low %v276_v4, %v280_v5  ;;  %v5923_v18 = vcombine.low %v277_v6, %v281_v7 }
  0x4e   :  { %4368 = vmatpush1.bf16.msra.mxu0 %v5889_v45  ;;  %v288_v59 = vld [vmem:[%s9525_s1 + $0x5e0] sm:$0xff]  ;;  %v289_v16 = vld [vmem:[%s9525_s1 + $0x5e8] sm:$0xff] }
  0x4f   :  { %4614 = vmatpush1.bf16.msra.mxu1 %v5891_v46  ;;  %4369 = vmatprep.subr.bf16.mxu0 %v5898_v47  ;;  %v5930_v19 = vcombine.high %v284_v13, %v288_v59  ;;  %v5932_v20 = vcombine.high %v285_v14, %v289_v16  ;;  %v292_v21 = vld [vmem:[%s9525_s1 + $0x600] sm:$0xff]  ;;  %v293_v23 = vld [vmem:[%s9525_s1 + $0x608] sm:$0xff]  ;;  %v5929_v26 = vcombine.low %v284_v13, %v288_v59 }
  0x50   :  { %4615 = vmatprep.subr.bf16.mxu1 %v5900_v48  ;;  %v296_v22 = vld [vmem:[%s9525_s1 + $0x620] sm:$0xff]  ;;  %v297_v24 = vld [vmem:[%s9525_s1 + $0x628] sm:$0xff]  ;;  %v5931_v27 = vcombine.low %v285_v14, %v289_v16 }
  0x51   :  { %v5938_v28 = vcombine.high %v292_v21, %v296_v22  ;;  %v5940_v29 = vcombine.high %v293_v23, %v297_v24  ;;  %v300_v30 = vld [vmem:[%s9525_s1 + $0x640] sm:$0xff]  ;;  %v301_v63 = vld [vmem:[%s9525_s1 + $0x648] sm:$0xff]  ;;  %v5937_v34 = vcombine.low %v292_v21, %v296_v22  ;;  %v5939_v35 = vcombine.low %v293_v23, %v297_v24 }
  0x52   :  { %4370 = vmatpush1.bf16.msra.mxu0 %v5897_v54  ;;  %v304_v31 = vld [vmem:[%s9525_s1 + $0x660] sm:$0xff]  ;;  %v305_v32 = vld [vmem:[%s9525_s1 + $0x668] sm:$0xff] }
  0x53   :  { %4616 = vmatpush1.bf16.msra.mxu1 %v5899_v55  ;;  %4371 = vmatprep.subr.bf16.mxu0 %v5906_v56  ;;  %v5946_v36 = vcombine.high %v300_v30, %v304_v31  ;;  %v5948_v37 = vcombine.high %v301_v63, %v305_v32  ;;  %v308_v38 = vld [vmem:[%s9525_s1 + $0x680] sm:$0xff]  ;;  %v309_v40 = vld [vmem:[%s9525_s1 + $0x688] sm:$0xff]  ;;  %v5945_v42 = vcombine.low %v300_v30, %v304_v31 }
  0x54   :  { %4617 = vmatprep.subr.bf16.mxu1 %v5908_v57  ;;  %v312_v39 = vld [vmem:[%s9525_s1 + $0x6a0] sm:$0xff]  ;;  %v313_v41 = vld [vmem:[%s9525_s1 + $0x6a8] sm:$0xff]  ;;  %v5947_v43 = vcombine.low %v301_v63, %v305_v32 }
  0x55   :  { %v5954_v45 = vcombine.high %v308_v38, %v312_v39  ;;  %v5956_v46 = vcombine.high %v309_v40, %v313_v41  ;;  %v316_v47 = vld [vmem:[%s9525_s1 + $0x6c0] sm:$0xff]  ;;  %v317_v49 = vld [vmem:[%s9525_s1 + $0x6c8] sm:$0xff]  ;;  %v5953_v51 = vcombine.low %v308_v38, %v312_v39  ;;  %v5955_v52 = vcombine.low %v309_v40, %v313_v41 }
  0x56   :  { %4372 = vmatpush1.bf16.msra.mxu0 %v5905_v0  ;;  %v320_v48 = vld [vmem:[%s9525_s1 + $0x6e0] sm:$0xff]  ;;  %v321_v50 = vld [vmem:[%s9525_s1 + $0x6e8] sm:$0xff]  ;;  %v7317_v41 = vpack.c.bf16 %v7086_v15, %v7086_v15 }
  0x57   :  { %4618 = vmatpush1.bf16.msra.mxu1 %v5907_v1  ;;  %4373 = vmatprep.subr.bf16.mxu0 %v5914_v2  ;;  %v5962_v54 = vcombine.high %v316_v47, %v320_v48  ;;  %v5964_v55 = vcombine.high %v317_v49, %v321_v50  ;;  %v324_v56 = vld [vmem:[%s9525_s1 + $0x700] sm:$0xff]  ;;  %v325_v58 = vld [vmem:[%s9525_s1 + $0x708] sm:$0xff]  ;;  %v5961_v61 = vcombine.low %v316_v47, %v320_v48 }
  0x58   :  { %4619 = vmatprep.subr.bf16.mxu1 %v5916_v3  ;;  %v328_v57 = vld [vmem:[%s9525_s1 + $0x720] sm:$0xff]  ;;  %v329_v60 = vld [vmem:[%s9525_s1 + $0x728] sm:$0xff]  ;;  %v5963_v62 = vcombine.low %v317_v49, %v321_v50 }
  0x59   :  { %v5970_v0 = vcombine.high %v324_v56, %v328_v57  ;;  %v5972_v1 = vcombine.high %v325_v58, %v329_v60  ;;  %v332_v2 = vld [vmem:[%s9525_s1 + $0x740] sm:$0xff]  ;;  %v333_v4 = vld [vmem:[%s9525_s1 + $0x748] sm:$0xff]  ;;  %v5969_v6 = vcombine.low %v324_v56, %v328_v57  ;;  %v5971_v7 = vcombine.low %v325_v58, %v329_v60 }
  0x5a   :  { %4374 = vmatpush1.bf16.msra.mxu0 %v5913_v8  ;;  %v336_v3 = vld [vmem:[%s9525_s1 + $0x760] sm:$0xff]  ;;  %v337_v5 = vld [vmem:[%s9525_s1 + $0x768] sm:$0xff] }
  0x5b   :  { %4620 = vmatpush1.bf16.msra.mxu1 %v5915_v10  ;;  %4375 = vmatprep.subr.bf16.mxu0 %v5922_v11  ;;  %v5978_v8 = vcombine.high %v332_v2, %v336_v3  ;;  %v5980_v10 = vcombine.high %v333_v4, %v337_v5  ;;  %v340_v11 = vld [vmem:[%s9525_s1 + $0x780] sm:$0xff]  ;;  %v341_v13 = vld [vmem:[%s9525_s1 + $0x788] sm:$0xff]  ;;  %v5977_v14 = vcombine.low %v332_v2, %v336_v3 }
  0x5c   :  { %4621 = vmatprep.subr.bf16.mxu1 %v5924_v12  ;;  %v344_v12 = vld [vmem:[%s9525_s1 + $0x7a0] sm:$0xff]  ;;  %v345_v59 = vld [vmem:[%s9525_s1 + $0x7a8] sm:$0xff]  ;;  %v5979_v16 = vcombine.low %v333_v4, %v337_v5 }
  0x5d   :  { %v349_v21 = vld [vmem:[%s9525_s1 + $0x7c8] sm:$0xff]  ;;  %v5985_v24 = vcombine.low %v340_v11, %v344_v12  ;;  %v360_v30 = vld [vmem:[%s9525_s1 + $0x820] sm:$0xff] }
  0x5e   :  { %4376 = vmatpush1.bf16.msra.mxu0 %v5921_v17  ;;  %v5986_v17 = vcombine.high %v340_v11, %v344_v12  ;;  %v353_v22 = vld [vmem:[%s9525_s1 + $0x7e8] sm:$0xff]  ;;  %v364_v38 = vld [vmem:[%s9525_s1 + $0x840] sm:$0xff] }
  0x5f   :  { %4622 = vmatpush1.bf16.msra.mxu1 %v5923_v18  ;;  %4377 = vmatprep.subr.bf16.mxu0 %v5930_v19  ;;  %v5988_v18 = vcombine.high %v341_v13, %v345_v59  ;;  %v348_v19 = vld [vmem:[%s9525_s1 + $0x7c0] sm:$0xff]  ;;  %v7289_v23 = vld [vmem:[%s9524_s0 + $0x8] sm:$0xff] }
  0x60   :  { %4623 = vmatprep.subr.bf16.mxu1 %v5932_v20  ;;  %v352_v20 = vld [vmem:[%s9525_s1 + $0x7e0] sm:$0xff]  ;;  %v7299_v31 = vrot.slane %v7289_v23, %v6946_v53  ;;  %v357_v63 = vld [vmem:[%s9525_s1 + $0x808] sm:$0xff] }
  0x61   :  { %v361_v32 = vld [vmem:[%s9525_s1 + $0x828] sm:$0xff]  ;;  %v368_v39 = vld [vmem:[%s9525_s1 + $0x860] sm:$0xff] }
  0x62   :  { %4378 = vmatpush1.bf16.msra.mxu0 %v5929_v26  ;;  %v5987_v26 = vcombine.low %v341_v13, %v345_v59  ;;  %v60_v40 = vcombine.high %v7299_v31, %v7299_v31  ;;  %v6010_v47 = vcombine.high %v364_v38, %v368_v39  ;;  %v372_v15 = vld [vmem:[%s9525_s1 + $0x880] sm:$0xff] }
  0x63   :  { %4624 = vmatpush1.bf16.msra.mxu1 %v5931_v27  ;;  %4379 = vmatprep.subr.bf16.mxu0 %v5938_v28  ;;  %v5994_v27 = vcombine.high %v348_v19, %v352_v20  ;;  %v5996_v28 = vcombine.high %v349_v21, %v353_v22  ;;  %v376_v49 = vld [vmem:[%s9525_s1 + $0x8a0] sm:$0xff] }
  0x64   :  { %4625 = vmatprep.subr.bf16.mxu1 %v5940_v29  ;;  %v356_v29 = vld [vmem:[%s9525_s1 + $0x800] sm:$0xff]  ;;  %v7331_v50 = vpack.c.bf16 %v60_v40, %v60_v40  ;;  %v6018_v56 = vcombine.high %v372_v15, %v376_v49 }
  0x65   :  { %v380_v58 = vld [vmem:[%s9525_s1 + $0x8c0] sm:$0xff] }
  0x66   :  { %4380 = vmatpush1.bf16.msra.mxu0 %v5937_v34  ;;  %v5993_v34 = vcombine.low %v348_v19, %v352_v20  ;;  %v384_v60 = vld [vmem:[%s9525_s1 + $0x8e0] sm:$0xff] }
  0x67   :  { %4626 = vmatpush1.bf16.msra.mxu1 %v5939_v35  ;;  %4381 = vmatprep.subr.bf16.mxu0 %v5946_v36  ;;  %v5995_v35 = vcombine.low %v349_v21, %v353_v22  ;;  %v6002_v36 = vcombine.high %v356_v29, %v360_v30  ;;  %v6026_v2 = vcombine.high %v380_v58, %v384_v60  ;;  %v388_v4 = vld [vmem:[%s9525_s1 + $0x900] sm:$0xff] }
  0x68   :  { %4627 = vmatprep.subr.bf16.mxu1 %v5948_v37  ;;  %v6004_v37 = vcombine.high %v357_v63, %v361_v32  ;;  %v392_v5 = vld [vmem:[%s9525_s1 + $0x920] sm:$0xff] }
  0x69   :  { %v6034_v11 = vcombine.high %v388_v4, %v392_v5  ;;  %v396_v13 = vld [vmem:[%s9525_s1 + $0x940] sm:$0xff] }
  0x6a   :  { %4382 = vmatpush1.bf16.msra.mxu0 %v5945_v42  ;;  %v365_v42 = vld [vmem:[%s9525_s1 + $0x848] sm:$0xff]  ;;  %v400_v59 = vld [vmem:[%s9525_s1 + $0x960] sm:$0xff] }
  0x6b   :  { %4628 = vmatpush1.bf16.msra.mxu1 %v5947_v43  ;;  %4383 = vmatprep.subr.bf16.mxu0 %v5954_v45  ;;  %v369_v43 = vld [vmem:[%s9525_s1 + $0x868] sm:$0xff]  ;;  %v6001_v45 = vcombine.low %v356_v29, %v360_v30  ;;  %v6042_v19 = vcombine.high %v396_v13, %v400_v59  ;;  %v404_v21 = vld [vmem:[%s9525_s1 + $0x980] sm:$0xff] }
  0x6c   :  { %4629 = vmatprep.subr.bf16.mxu1 %v5956_v46  ;;  %v6003_v46 = vcombine.low %v357_v63, %v361_v32  ;;  %v6012_v48 = vcombine.high %v365_v42, %v369_v43  ;;  %v408_v22 = vld [vmem:[%s9525_s1 + $0x9a0] sm:$0xff] }
  0x6d   :  { %v6050_v29 = vcombine.high %v404_v21, %v408_v22  ;;  %v412_v63 = vld [vmem:[%s9525_s1 + $0x9c0] sm:$0xff] }
  0x6e   :  { %4384 = vmatpush1.bf16.msra.mxu0 %v5953_v51  ;;  %v373_v51 = vld [vmem:[%s9525_s1 + $0x888] sm:$0xff]  ;;  %v416_v32 = vld [vmem:[%s9525_s1 + $0x9e0] sm:$0xff] }
  0x6f   :  { %4630 = vmatpush1.bf16.msra.mxu1 %v5955_v52  ;;  %4385 = vmatprep.subr.bf16.mxu0 %v5962_v54  ;;  %v377_v52 = vld [vmem:[%s9525_s1 + $0x8a8] sm:$0xff]  ;;  %v6009_v54 = vcombine.low %v364_v38, %v368_v39  ;;  %v6058_v38 = vcombine.high %v412_v63, %v416_v32  ;;  %v420_v40 = vld [vmem:[%s9525_s1 + $0xa00] sm:$0xff] }
  0x70   :  { %4631 = vmatprep.subr.bf16.mxu1 %v5964_v55  ;;  %v6011_v55 = vcombine.low %v365_v42, %v369_v43  ;;  %v6020_v57 = vcombine.high %v373_v51, %v377_v52  ;;  %v424_v42 = vld [vmem:[%s9525_s1 + $0xa20] sm:$0xff]  ;;  %v421_v43 = vld [vmem:[%s9525_s1 + $0xa08] sm:$0xff] }
  0x72   :  { %4386 = vmatpush1.bf16.msra.mxu0 %v5961_v61  ;;  %v381_v61 = vld [vmem:[%s9525_s1 + $0x8c8] sm:$0xff] }
  0x73   :  { %4632 = vmatpush1.bf16.msra.mxu1 %v5963_v62  ;;  %4387 = vmatprep.subr.bf16.mxu0 %v5970_v0  ;;  %v385_v62 = vld [vmem:[%s9525_s1 + $0x8e8] sm:$0xff]  ;;  %v6017_v0 = vcombine.low %v372_v15, %v376_v49  ;;  %v428_v49 = vld [vmem:[%s9525_s1 + $0xa40] sm:$0xff] }
  0x74   :  { %4633 = vmatprep.subr.bf16.mxu1 %v5972_v1  ;;  %v6019_v1 = vcombine.low %v373_v51, %v377_v52  ;;  %v6028_v3 = vcombine.high %v381_v61, %v385_v62  ;;  %v432_v51 = vld [vmem:[%s9525_s1 + $0xa60] sm:$0xff]  ;;  %v429_v52 = vld [vmem:[%s9525_s1 + $0xa48] sm:$0xff] }
  0x76   :  { %4388 = vmatpush1.bf16.msra.mxu0 %v5969_v6  ;;  %v389_v6 = vld [vmem:[%s9525_s1 + $0x908] sm:$0xff] }
  0x77   :  { %4634 = vmatpush1.bf16.msra.mxu1 %v5971_v7  ;;  %4389 = vmatprep.subr.bf16.mxu0 %v5978_v8  ;;  %v393_v7 = vld [vmem:[%s9525_s1 + $0x928] sm:$0xff]  ;;  %v6025_v8 = vcombine.low %v380_v58, %v384_v60  ;;  %v436_v60 = vld [vmem:[%s9525_s1 + $0xa80] sm:$0xff] }
  0x78   :  { %4635 = vmatprep.subr.bf16.mxu1 %v5980_v10  ;;  %v6027_v10 = vcombine.low %v381_v61, %v385_v62  ;;  %v6036_v12 = vcombine.high %v389_v6, %v393_v7  ;;  %v440_v61 = vld [vmem:[%s9525_s1 + $0xaa0] sm:$0xff]  ;;  %v437_v62 = vld [vmem:[%s9525_s1 + $0xa88] sm:$0xff] }
  0x7a   :  { %4390 = vmatpush1.bf16.msra.mxu0 %v5977_v14  ;;  %v397_v14 = vld [vmem:[%s9525_s1 + $0x948] sm:$0xff] }
  0x7b   :  { %4636 = vmatpush1.bf16.msra.mxu1 %v5979_v16  ;;  %4391 = vmatprep.subr.bf16.mxu0 %v5986_v17  ;;  %v401_v16 = vld [vmem:[%s9525_s1 + $0x968] sm:$0xff]  ;;  %v6033_v17 = vcombine.low %v388_v4, %v392_v5  ;;  %v444_v5 = vld [vmem:[%s9525_s1 + $0xac0] sm:$0xff] }
  0x7c   :  { %4637 = vmatprep.subr.bf16.mxu1 %v5988_v18  ;;  %v6035_v18 = vcombine.low %v389_v6, %v393_v7  ;;  %v6044_v20 = vcombine.high %v397_v14, %v401_v16  ;;  %v448_v6 = vld [vmem:[%s9525_s1 + $0xae0] sm:$0xff]  ;;  %v445_v7 = vld [vmem:[%s9525_s1 + $0xac8] sm:$0xff] }
  0x7e   :  { %4392 = vmatpush1.bf16.msra.mxu0 %v5985_v24  ;;  %v405_v24 = vld [vmem:[%s9525_s1 + $0x988] sm:$0xff] }
  0x7f   :  { %4638 = vmatpush1.bf16.msra.mxu1 %v5987_v26  ;;  %4393 = vmatprep.subr.bf16.mxu0 %v5994_v27  ;;  %v409_v26 = vld [vmem:[%s9525_s1 + $0x9a8] sm:$0xff]  ;;  %v6041_v27 = vcombine.low %v396_v13, %v400_v59  ;;  %v452_v59 = vld [vmem:[%s9525_s1 + $0xb00] sm:$0xff] }
  0x80   :  { %4639 = vmatprep.subr.bf16.mxu1 %v5996_v28  ;;  %v6043_v28 = vcombine.low %v397_v14, %v401_v16  ;;  %v6052_v30 = vcombine.high %v405_v24, %v409_v26  ;;  %v456_v14 = vld [vmem:[%s9525_s1 + $0xb20] sm:$0xff]  ;;  %v453_v16 = vld [vmem:[%s9525_s1 + $0xb08] sm:$0xff] }
  0x82   :  { %4394 = vmatpush1.bf16.msra.mxu0 %v5993_v34  ;;  %v413_v34 = vld [vmem:[%s9525_s1 + $0x9c8] sm:$0xff] }
  0x83   :  { %4640 = vmatpush1.bf16.msra.mxu1 %v5995_v35  ;;  %4404 = vmatprep.subr.bf16.mxu0 %v6002_v36  ;;  %v417_v35 = vld [vmem:[%s9525_s1 + $0x9e8] sm:$0xff]  ;;  %v6049_v36 = vcombine.low %v404_v21, %v408_v22  ;;  %v460_v22 = vld [vmem:[%s9525_s1 + $0xb40] sm:$0xff] }
  0x84   :  { %4650 = vmatprep.subr.bf16.mxu1 %v6004_v37  ;;  %v6051_v37 = vcombine.low %v405_v24, %v409_v26  ;;  %v6060_v39 = vcombine.high %v413_v34, %v417_v35  ;;  %v464_v24 = vld [vmem:[%s9525_s1 + $0xb60] sm:$0xff]  ;;  %v461_v26 = vld [vmem:[%s9525_s1 + $0xb48] sm:$0xff] }
  0x85   :  { %4396 = vmatmul.mubr.bf16.vlgmr.msra.gmra.mrb[0].mxu0 %v7317_v41 }
  0x86   :  { %4405 = vmatpush1.bf16.msra.mxu0 %v6001_v45  ;;  %4642 = vmatmul.mubr.bf16.vlgmr.msra.gmra.mrb[0].mxu1 %v7317_v41  ;;  %v425_v45 = vld [vmem:[%s9525_s1 + $0xa28] sm:$0xff] }
  0x87   :  { %4651 = vmatpush1.bf16.msra.mxu1 %v6003_v46  ;;  %4406 = vmatprep.subr.bf16.mxu0 %v6010_v47  ;;  %v6057_v46 = vcombine.low %v412_v63, %v416_v32  ;;  %v6059_v47 = vcombine.low %v413_v34, %v417_v35  ;;  %v6068_v15 = vcombine.high %v421_v43, %v425_v45  ;;  %v468_v32 = vld [vmem:[%s9525_s1 + $0xb80] sm:$0xff]  ;;  %v469_v35 = vld [vmem:[%s9525_s1 + $0xb88] sm:$0xff] }
  0x88   :  { %4652 = vmatprep.subr.bf16.mxu1 %v6012_v48  ;;  %4436 = vmatprep.mubr.bf16.mxu0 %v7331_v50  ;;  %v6066_v48 = vcombine.high %v420_v40, %v424_v42  ;;  %v472_v34 = vld [vmem:[%s9525_s1 + $0xba0] sm:$0xff] }
  0x89   :  { %4682 = vmatprep.mubr.bf16.mxu1 %v7331_v50 }
  0x8a   :  { %4407 = vmatpush1.bf16.msra.mxu0 %v6009_v54  ;;  %v433_v54 = vld [vmem:[%s9525_s1 + $0xa68] sm:$0xff] }
  0x8b   :  { %4653 = vmatpush1.bf16.msra.mxu1 %v6011_v55  ;;  %4408 = vmatprep.subr.bf16.mxu0 %v6018_v56  ;;  %v6065_v55 = vcombine.low %v420_v40, %v424_v42  ;;  %v6067_v56 = vcombine.low %v421_v43, %v425_v45  ;;  %v6076_v58 = vcombine.high %v429_v52, %v433_v54  ;;  %v476_v42 = vld [vmem:[%s9525_s1 + $0xbc0] sm:$0xff] }
  0x8c   :  { %4654 = vmatprep.subr.bf16.mxu1 %v6020_v57  ;;  %v6074_v57 = vcombine.high %v428_v49, %v432_v51  ;;  %v480_v43 = vld [vmem:[%s9525_s1 + $0xbe0] sm:$0xff]  ;;  %v45_v45 = vcombine.high %v7289_v23, %v7289_v23 }
  0x8d   :  { %v484_v23 = vld [vmem:[%s9525_s1 + $0xc00] sm:$0xff] }
  0x8e   :  { %4409 = vmatpush1.bf16.msra.mxu0 %v6017_v0  ;;  %v441_v0 = vld [vmem:[%s9525_s1 + $0xaa8] sm:$0xff] }
  0x8f   :  { %4655 = vmatpush1.bf16.msra.mxu1 %v6019_v1  ;;  %4410 = vmatprep.subr.bf16.mxu0 %v6026_v2  ;;  %v6073_v1 = vcombine.low %v428_v49, %v432_v51  ;;  %v6075_v2 = vcombine.low %v429_v52, %v433_v54  ;;  %v6084_v4 = vcombine.high %v437_v62, %v441_v0  ;;  %v488_v52 = vld [vmem:[%s9525_s1 + $0xc20] sm:$0xff] }
  0x90   :  { %4656 = vmatprep.subr.bf16.mxu1 %v6028_v3  ;;  %v6082_v3 = vcombine.high %v436_v60, %v440_v61  ;;  %v6122_v49 = vcombine.high %v476_v42, %v480_v43  ;;  %v7508_v54 = vrot.slane %v45_v45, %v6946_v53 }
  0x92   :  { %4411 = vmatpush1.bf16.msra.mxu0 %v6025_v8  ;;  %v449_v8 = vld [vmem:[%s9525_s1 + $0xae8] sm:$0xff] }
  0x93   :  { %4657 = vmatpush1.bf16.msra.mxu1 %v6027_v10  ;;  %4412 = vmatprep.subr.bf16.mxu0 %v6034_v11  ;;  %v6081_v10 = vcombine.low %v436_v60, %v440_v61  ;;  %v6083_v11 = vcombine.low %v437_v62, %v441_v0  ;;  %v6092_v13 = vcombine.high %v445_v7, %v449_v8  ;;  %v492_v62 = vld [vmem:[%s9525_s1 + $0xc40] sm:$0xff] }
  0x94   :  { %4658 = vmatprep.subr.bf16.mxu1 %v6036_v12  ;;  %v6090_v12 = vcombine.high %v444_v5, %v448_v6  ;;  %v6130_v60 = vcombine.high %v484_v23, %v488_v52  ;;  %v496_v0 = vld [vmem:[%s9525_s1 + $0xc60] sm:$0xff] }
  0x96   :  { %4413 = vmatpush1.bf16.msra.mxu0 %v6033_v17  ;;  %v457_v17 = vld [vmem:[%s9525_s1 + $0xb28] sm:$0xff] }
  0x97   :  { %4659 = vmatpush1.bf16.msra.mxu1 %v6035_v18  ;;  %4414 = vmatprep.subr.bf16.mxu0 %v6042_v19  ;;  %v6089_v18 = vcombine.low %v444_v5, %v448_v6  ;;  %v6091_v19 = vcombine.low %v445_v7, %v449_v8  ;;  %v6100_v21 = vcombine.high %v453_v16, %v457_v17 }
  0x98   :  { %4660 = vmatprep.subr.bf16.mxu1 %v6044_v20  ;;  %v6098_v20 = vcombine.high %v452_v59, %v456_v14  ;;  %v6129_v5 = vcombine.low %v484_v23, %v488_v52  ;;  %v6138_v7 = vcombine.high %v492_v62, %v496_v0 }
  0x9a   :  { %4415 = vmatpush1.bf16.msra.mxu0 %v6041_v27  ;;  %v465_v27 = vld [vmem:[%s9525_s1 + $0xb68] sm:$0xff] }
  0x9b   :  { %4661 = vmatpush1.bf16.msra.mxu1 %v6043_v28  ;;  %4416 = vmatprep.subr.bf16.mxu0 %v6050_v29  ;;  %v6097_v28 = vcombine.low %v452_v59, %v456_v14  ;;  %v6099_v29 = vcombine.low %v453_v16, %v457_v17  ;;  %v6108_v63 = vcombine.high %v461_v26, %v465_v27 }
  0x9c   :  { %4662 = vmatprep.subr.bf16.mxu1 %v6052_v30  ;;  %v6106_v30 = vcombine.high %v460_v22, %v464_v24  ;;  %v6137_v59 = vcombine.low %v492_v62, %v496_v0 }
  0x9e   :  { %4417 = vmatpush1.bf16.msra.mxu0 %v6049_v36  ;;  %v473_v36 = vld [vmem:[%s9525_s1 + $0xba8] sm:$0xff] }
  0x9f   :  { %4663 = vmatpush1.bf16.msra.mxu1 %v6051_v37  ;;  %4418 = vmatprep.subr.bf16.mxu0 %v6058_v38  ;;  %v6105_v37 = vcombine.low %v460_v22, %v464_v24  ;;  %v6107_v38 = vcombine.low %v461_v26, %v465_v27  ;;  %v6116_v40 = vcombine.high %v469_v35, %v473_v36 }
  0xa0   :  { %4664 = vmatprep.subr.bf16.mxu1 %v6060_v39  ;;  %v6114_v39 = vcombine.high %v468_v32, %v472_v34 }
  0xa2   :  { %4419 = vmatpush1.bf16.msra.mxu0 %v6057_v46  ;;  %v477_v46 = vld [vmem:[%s9525_s1 + $0xbc8] sm:$0xff] }
  0xa3   :  { %4665 = vmatpush1.bf16.msra.mxu1 %v6059_v47  ;;  %4420 = vmatprep.subr.bf16.mxu0 %v6066_v48  ;;  %v481_v47 = vld [vmem:[%s9525_s1 + $0xbe8] sm:$0xff]  ;;  %v6113_v48 = vcombine.low %v468_v32, %v472_v34 }
  0xa4   :  { %4666 = vmatprep.subr.bf16.mxu1 %v6068_v15  ;;  %v6115_v15 = vcombine.low %v469_v35, %v473_v36  ;;  %v6124_v51 = vcombine.high %v477_v46, %v481_v47 }
  0xa6   :  { %4421 = vmatpush1.bf16.msra.mxu0 %v6065_v55  ;;  %v485_v55 = vld [vmem:[%s9525_s1 + $0xc08] sm:$0xff] }
  0xa7   :  { %4667 = vmatpush1.bf16.msra.mxu1 %v6067_v56  ;;  %4422 = vmatprep.subr.bf16.mxu0 %v6074_v57  ;;  %v489_v56 = vld [vmem:[%s9525_s1 + $0xc28] sm:$0xff]  ;;  %v6121_v57 = vcombine.low %v476_v42, %v480_v43 }
  0xa8   :  { %4668 = vmatprep.subr.bf16.mxu1 %v6076_v58  ;;  %v6123_v58 = vcombine.low %v477_v46, %v481_v47  ;;  %v6132_v61 = vcombine.high %v485_v55, %v489_v56  ;;  %v6131_v6 = vcombine.low %v485_v55, %v489_v56  ;;  %v532_v47 = vld [vmem:[%s9525_s1 + $0xd80] sm:$0xff] }
  0xa9   :  { %v540_v56 = vld [vmem:[%s9525_s1 + $0xdc0] sm:$0xff] }
  0xaa   :  { %4423 = vmatpush1.bf16.msra.mxu0 %v6073_v1  ;;  %v61_v1 = vcombine.high %v7508_v54, %v7508_v54 }
  0xab   :  { %4669 = vmatpush1.bf16.msra.mxu1 %v6075_v2  ;;  %4424 = vmatprep.subr.bf16.mxu0 %v6082_v3  ;;  %v7526_v2 = vpack.c.bf16 %v7299_v31, %v7299_v31  ;;  %v493_v3 = vld [vmem:[%s9525_s1 + $0xc48] sm:$0xff]  ;;  %v500_v31 = vld [vmem:[%s9525_s1 + $0xc80] sm:$0xff] }
  0xac   :  { %4670 = vmatprep.subr.bf16.mxu1 %v6084_v4  ;;  %v497_v4 = vld [vmem:[%s9525_s1 + $0xc68] sm:$0xff] }
  0xad   :  { %v6140_v8 = vcombine.high %v493_v3, %v497_v4  ;;  %v6139_v14 = vcombine.low %v493_v3, %v497_v4  ;;  %v548_v3 = vld [vmem:[%s9525_s1 + $0xe00] sm:$0xff] }
  0xae   :  { %4425 = vmatpush1.bf16.msra.mxu0 %v6081_v10  ;;  %v504_v10 = vld [vmem:[%s9525_s1 + $0xca0] sm:$0xff] }
  0xaf   :  { %4671 = vmatpush1.bf16.msra.mxu1 %v6083_v11  ;;  %4426 = vmatprep.subr.bf16.mxu0 %v6090_v12  ;;  %v7540_v11 = vpack.c.bf16 %v61_v1, %v61_v1  ;;  %v501_v12 = vld [vmem:[%s9525_s1 + $0xc88] sm:$0xff]  ;;  %v6146_v16 = vcombine.high %v500_v31, %v504_v10  ;;  %v6145_v22 = vcombine.low %v500_v31, %v504_v10  ;;  %v552_v4 = vld [vmem:[%s9525_s1 + $0xe20] sm:$0xff] }
  0xb0   :  { %4672 = vmatprep.subr.bf16.mxu1 %v6092_v13  ;;  %v505_v13 = vld [vmem:[%s9525_s1 + $0xca8] sm:$0xff]  ;;  %v6194_v31 = vcombine.high %v548_v3, %v552_v4 }
  0xb1   :  { %v6148_v17 = vcombine.high %v501_v12, %v505_v13  ;;  %v6147_v24 = vcombine.low %v501_v12, %v505_v13  ;;  %v556_v12 = vld [vmem:[%s9525_s1 + $0xe40] sm:$0xff] }
  0xb2   :  { %4427 = vmatpush1.bf16.msra.mxu0 %v6089_v18  ;;  %v508_v18 = vld [vmem:[%s9525_s1 + $0xcc0] sm:$0xff] }
  0xb3   :  { %4673 = vmatpush1.bf16.msra.mxu1 %v6091_v19  ;;  %4428 = vmatprep.subr.bf16.mxu0 %v6098_v20  ;;  %v512_v19 = vld [vmem:[%s9525_s1 + $0xce0] sm:$0xff]  ;;  %v509_v20 = vld [vmem:[%s9525_s1 + $0xcc8] sm:$0xff] }
  0xb4   :  { %4674 = vmatprep.subr.bf16.mxu1 %v6100_v21  ;;  %v513_v21 = vld [vmem:[%s9525_s1 + $0xce8] sm:$0xff]  ;;  %v6154_v26 = vcombine.high %v508_v18, %v512_v19  ;;  %v6153_v32 = vcombine.low %v508_v18, %v512_v19  ;;  %v560_v13 = vld [vmem:[%s9525_s1 + $0xe60] sm:$0xff] }
  0xb5   :  { %v6156_v27 = vcombine.high %v509_v20, %v513_v21  ;;  %v6155_v34 = vcombine.low %v509_v20, %v513_v21  ;;  %v6202_v18 = vcombine.high %v556_v12, %v560_v13  ;;  %v564_v20 = vld [vmem:[%s9525_s1 + $0xe80] sm:$0xff] }
  0xb6   :  { %4429 = vmatpush1.bf16.msra.mxu0 %v6097_v28  ;;  %v516_v28 = vld [vmem:[%s9525_s1 + $0xd00] sm:$0xff] }
  0xb7   :  { %4675 = vmatpush1.bf16.msra.mxu1 %v6099_v29  ;;  %4430 = vmatprep.subr.bf16.mxu0 %v6106_v30  ;;  %v520_v29 = vld [vmem:[%s9525_s1 + $0xd20] sm:$0xff]  ;;  %v517_v30 = vld [vmem:[%s9525_s1 + $0xd08] sm:$0xff] }
  0xb8   :  { %4676 = vmatprep.subr.bf16.mxu1 %v6108_v63  ;;  %v521_v63 = vld [vmem:[%s9525_s1 + $0xd28] sm:$0xff]  ;;  %v6162_v35 = vcombine.high %v516_v28, %v520_v29  ;;  %v6161_v42 = vcombine.low %v516_v28, %v520_v29  ;;  %v568_v21 = vld [vmem:[%s9525_s1 + $0xea0] sm:$0xff] }
  0xb9   :  { %v6164_v36 = vcombine.high %v517_v30, %v521_v63  ;;  %v6163_v43 = vcombine.low %v517_v30, %v521_v63  ;;  %v6210_v28 = vcombine.high %v564_v20, %v568_v21  ;;  %v572_v30 = vld [vmem:[%s9525_s1 + $0xec0] sm:$0xff] }
  0xba   :  { %4431 = vmatpush1.bf16.msra.mxu0 %v6105_v37  ;;  %v524_v37 = vld [vmem:[%s9525_s1 + $0xd40] sm:$0xff] }
  0xbb   :  { %4677 = vmatpush1.bf16.msra.mxu1 %v6107_v38  ;;  %4432 = vmatprep.subr.bf16.mxu0 %v6114_v39  ;;  %v528_v38 = vld [vmem:[%s9525_s1 + $0xd60] sm:$0xff]  ;;  %v525_v39 = vld [vmem:[%s9525_s1 + $0xd48] sm:$0xff] }
  0xbc   :  { %4678 = vmatprep.subr.bf16.mxu1 %v6116_v40  ;;  %v529_v40 = vld [vmem:[%s9525_s1 + $0xd68] sm:$0xff]  ;;  %v6170_v45 = vcombine.high %v524_v37, %v528_v38  ;;  %v576_v63 = vld [vmem:[%s9525_s1 + $0xee0] sm:$0xff] }
  0xbd   :  { %v6172_v46 = vcombine.high %v525_v39, %v529_v40  ;;  %v6171_v23 = vcombine.low %v525_v39, %v529_v40  ;;  %v580_v39 = vld [vmem:[%s9525_s1 + $0xf00] sm:$0xff] }
  0xbe   :  { %4433 = vmatpush1.bf16.msra.mxu0 %v6113_v48  ;;  %v536_v48 = vld [vmem:[%s9525_s1 + $0xda0] sm:$0xff] }
  0xbf   :  { %4679 = vmatpush1.bf16.msra.mxu1 %v6115_v15  ;;  %4434 = vmatprep.subr.bf16.mxu0 %v6122_v49  ;;  %v533_v15 = vld [vmem:[%s9525_s1 + $0xd88] sm:$0xff]  ;;  %v6178_v52 = vcombine.high %v532_v47, %v536_v48  ;;  %v584_v40 = vld [vmem:[%s9525_s1 + $0xf20] sm:$0xff] }
  0xc0   :  { %4680 = vmatprep.subr.bf16.mxu1 %v6124_v51  ;;  %v537_v49 = vld [vmem:[%s9525_s1 + $0xda8] sm:$0xff]  ;;  %v6169_v51 = vcombine.low %v524_v37, %v528_v38  ;;  %v6218_v37 = vcombine.high %v572_v30, %v576_v63 }
  0xc1   :  { %v6180_v55 = vcombine.high %v533_v15, %v537_v49  ;;  %v6179_v62 = vcombine.low %v533_v15, %v537_v49  ;;  %v588_v15 = vld [vmem:[%s9525_s1 + $0xf40] sm:$0xff] }
  0xc2   :  { %4435 = vmatpush1.bf16.msra.mxu0 %v6121_v57  ;;  %v544_v57 = vld [vmem:[%s9525_s1 + $0xde0] sm:$0xff] }
  0xc3   :  { %4681 = vmatpush1.bf16.msra.mxu1 %v6123_v58  ;;  %4445 = vmatprep.subr.bf16.mxu0 %v6130_v60  ;;  %v541_v58 = vld [vmem:[%s9525_s1 + $0xdc8] sm:$0xff]  ;;  %v6186_v0 = vcombine.high %v540_v56, %v544_v57  ;;  %v592_v49 = vld [vmem:[%s9525_s1 + $0xf60] sm:$0xff] }
  0xc4   :  { %4691 = vmatprep.subr.bf16.mxu1 %v6132_v61  ;;  %v545_v60 = vld [vmem:[%s9525_s1 + $0xde8] sm:$0xff]  ;;  %v6177_v61 = vcombine.low %v532_v47, %v536_v48  ;;  %v6226_v47 = vcombine.high %v580_v39, %v584_v40 }
  0xc5   :  { %4437 = vmatmul.mubr.bf16.vlgmr.msra.gmra.mrb[0].mxu0 %v7526_v2  ;;  %v6188_v1 = vcombine.high %v541_v58, %v545_v60 }
  0xc6   :  { %4446 = vmatpush1.bf16.msra.mxu0 %v6129_v5  ;;  %4683 = vmatmul.mubr.bf16.vlgmr.msra.gmra.mrb[0].mxu1 %v7526_v2  ;;  %v549_v5 = vld [vmem:[%s9525_s1 + $0xe08] sm:$0xff] }
  0xc7   :  { %4692 = vmatpush1.bf16.msra.mxu1 %v6131_v6  ;;  %4447 = vmatprep.subr.bf16.mxu0 %v6138_v7  ;;  %v553_v6 = vld [vmem:[%s9525_s1 + $0xe28] sm:$0xff]  ;;  %v6185_v7 = vcombine.low %v540_v56, %v544_v57  ;;  %v6234_v56 = vcombine.high %v588_v15, %v592_v49 }
  0xc8   :  { %4693 = vmatprep.subr.bf16.mxu1 %v6140_v8  ;;  %4477 = vmatprep.mubr.bf16.mxu0 %v7540_v11  ;;  %v6187_v8 = vcombine.low %v541_v58, %v545_v60  ;;  %v6196_v10 = vcombine.high %v549_v5, %v553_v6  ;;  %v596_v58 = vld [vmem:[%s9525_s1 + $0xf80] sm:$0xff] }
  0xc9   :  { %4723 = vmatprep.mubr.bf16.mxu1 %v7540_v11  ;;  %v600_v60 = vld [vmem:[%s9525_s1 + $0xfa0] sm:$0xff] }
  0xca   :  { %4448 = vmatpush1.bf16.msra.mxu0 %v6137_v59  ;;  %v557_v59 = vld [vmem:[%s9525_s1 + $0xe48] sm:$0xff] }
  0xcb   :  { %4694 = vmatpush1.bf16.msra.mxu1 %v6139_v14  ;;  %4449 = vmatprep.subr.bf16.mxu0 %v6146_v16  ;;  %v561_v14 = vld [vmem:[%s9525_s1 + $0xe68] sm:$0xff]  ;;  %v6193_v16 = vcombine.low %v548_v3, %v552_v4  ;;  %v6242_v3 = vcombine.high %v596_v58, %v600_v60 }
  0xcc   :  { %4695 = vmatprep.subr.bf16.mxu1 %v6148_v17  ;;  %v6195_v17 = vcombine.low %v549_v5, %v553_v6  ;;  %v6204_v19 = vcombine.high %v557_v59, %v561_v14  ;;  %v604_v5 = vld [vmem:[%s9525_s1 + $0xfc0] sm:$0xff] }
  0xcd   :  { %v608_v6 = vld [vmem:[%s9525_s1 + $0xfe0] sm:$0xff] }
  0xce   :  { %4450 = vmatpush1.bf16.msra.mxu0 %v6145_v22  ;;  %v565_v22 = vld [vmem:[%s9525_s1 + $0xe88] sm:$0xff] }
  0xcf   :  { %4696 = vmatpush1.bf16.msra.mxu1 %v6147_v24  ;;  %4451 = vmatprep.subr.bf16.mxu0 %v6154_v26  ;;  %v569_v24 = vld [vmem:[%s9525_s1 + $0xea8] sm:$0xff]  ;;  %v6201_v26 = vcombine.low %v556_v12, %v560_v13  ;;  %v6250_v13 = vcombine.high %v604_v5, %v608_v6 }
  0xd0   :  { %4697 = vmatprep.subr.bf16.mxu1 %v6156_v27  ;;  %v6203_v27 = vcombine.low %v557_v59, %v561_v14  ;;  %v6212_v29 = vcombine.high %v565_v22, %v569_v24  ;;  %v612_v14 = vld [vmem:[%s9525_s1 + $0x1000] sm:$0xff] }
  0xd2   :  { %4452 = vmatpush1.bf16.msra.mxu0 %v6153_v32  ;;  %v573_v32 = vld [vmem:[%s9525_s1 + $0xec8] sm:$0xff] }
  0xd3   :  { %4698 = vmatpush1.bf16.msra.mxu1 %v6155_v34  ;;  %4453 = vmatprep.subr.bf16.mxu0 %v6162_v35  ;;  %v577_v34 = vld [vmem:[%s9525_s1 + $0xee8] sm:$0xff]  ;;  %v6209_v35 = vcombine.low %v564_v20, %v568_v21  ;;  %v6249_v20 = vcombine.low %v604_v5, %v608_v6 }
  0xd4   :  { %4699 = vmatprep.subr.bf16.mxu1 %v6164_v36  ;;  %v6211_v36 = vcombine.low %v565_v22, %v569_v24  ;;  %v6220_v38 = vcombine.high %v573_v32, %v577_v34  ;;  %v653_v5 = vld [vmem:[%s9525_s1 + $0x1148] sm:$0xff] }
  0xd5   :  { %v657_v6 = vld [vmem:[%s9525_s1 + $0x1168] sm:$0xff] }
  0xd6   :  { %4454 = vmatpush1.bf16.msra.mxu0 %v6161_v42  ;;  %v581_v42 = vld [vmem:[%s9525_s1 + $0xf08] sm:$0xff] }
  0xd7   :  { %4700 = vmatpush1.bf16.msra.mxu1 %v6163_v43  ;;  %4455 = vmatprep.subr.bf16.mxu0 %v6170_v45  ;;  %v585_v43 = vld [vmem:[%s9525_s1 + $0xf28] sm:$0xff]  ;;  %v6217_v45 = vcombine.low %v572_v30, %v576_v63 }
  0xd8   :  { %4701 = vmatprep.subr.bf16.mxu1 %v6172_v46  ;;  %v6219_v46 = vcombine.low %v573_v32, %v577_v34  ;;  %v6228_v48 = vcombine.high %v581_v42, %v585_v43  ;;  %v621_v30 = vld [vmem:[%s9525_s1 + $0x1048] sm:$0xff] }
  0xd9   :  { %v625_v63 = vld [vmem:[%s9525_s1 + $0x1068] sm:$0xff] }
  0xda   :  { %4456 = vmatpush1.bf16.msra.mxu0 %v6169_v51  ;;  %v589_v51 = vld [vmem:[%s9525_s1 + $0xf48] sm:$0xff] }
  0xdb   :  { %4702 = vmatpush1.bf16.msra.mxu1 %v6171_v23  ;;  %4457 = vmatprep.subr.bf16.mxu0 %v6178_v52  ;;  %v593_v23 = vld [vmem:[%s9525_s1 + $0xf68] sm:$0xff]  ;;  %v6225_v52 = vcombine.low %v580_v39, %v584_v40 }
  0xdc   :  { %4703 = vmatprep.subr.bf16.mxu1 %v6180_v55  ;;  %v6227_v55 = vcombine.low %v581_v42, %v585_v43  ;;  %v6236_v57 = vcombine.high %v589_v51, %v593_v23  ;;  %v629_v39 = vld [vmem:[%s9525_s1 + $0x1088] sm:$0xff]  ;;  %v6267_v43 = vcombine.low %v621_v30, %v625_v63 }
  0xdd   :  { %v633_v40 = vld [vmem:[%s9525_s1 + $0x10a8] sm:$0xff] }
  0xde   :  { %4458 = vmatpush1.bf16.msra.mxu0 %v6177_v61  ;;  %v597_v61 = vld [vmem:[%s9525_s1 + $0xf88] sm:$0xff] }
  0xdf   :  { %4704 = vmatpush1.bf16.msra.mxu1 %v6179_v62  ;;  %4459 = vmatprep.subr.bf16.mxu0 %v6186_v0  ;;  %v601_v62 = vld [vmem:[%s9525_s1 + $0xfa8] sm:$0xff]  ;;  %v6233_v0 = vcombine.low %v588_v15, %v592_v49 }
  0xe0   :  { %4705 = vmatprep.subr.bf16.mxu1 %v6188_v1  ;;  %v6235_v1 = vcombine.low %v589_v51, %v593_v23  ;;  %v6244_v4 = vcombine.high %v597_v61, %v601_v62  ;;  %v6243_v12 = vcombine.low %v597_v61, %v601_v62  ;;  %v637_v15 = vld [vmem:[%s9525_s1 + $0x10c8] sm:$0xff]  ;;  %v6275_v23 = vcombine.low %v629_v39, %v633_v40 }
  0xe1   :  { %v641_v49 = vld [vmem:[%s9525_s1 + $0x10e8] sm:$0xff] }
  0xe2   :  { %4460 = vmatpush1.bf16.msra.mxu0 %v6185_v7  ;;  %v605_v7 = vld [vmem:[%s9525_s1 + $0xfc8] sm:$0xff]  ;;  %v6283_v62 = vcombine.low %v637_v15, %v641_v49 }
  0xe3   :  { %4706 = vmatpush1.bf16.msra.mxu1 %v6187_v8  ;;  %4461 = vmatprep.subr.bf16.mxu0 %v6194_v31  ;;  %v609_v8 = vld [vmem:[%s9525_s1 + $0xfe8] sm:$0xff]  ;;  %v7711_v31 = vld [vmem:[%s9524_s0 + $0x10] sm:$0x3f] }
  0xe4   :  { %4707 = vmatprep.subr.bf16.mxu1 %v6196_v10  ;;  %v6241_v10 = vcombine.low %v596_v58, %v600_v60  ;;  %v6252_v59 = vcombine.high %v605_v7, %v609_v8  ;;  %v6251_v21 = vcombine.low %v605_v7, %v609_v8  ;;  %v645_v58 = vld [vmem:[%s9525_s1 + $0x1108] sm:$0xff] }
  0xe5   :  { %v649_v60 = vld [vmem:[%s9525_s1 + $0x1128] sm:$0xff] }
  0xe6   :  { %4462 = vmatpush1.bf16.msra.mxu0 %v6193_v16  ;;  %v616_v16 = vld [vmem:[%s9525_s1 + $0x1020] sm:$0xff]  ;;  %v6291_v8 = vcombine.low %v645_v58, %v649_v60 }
  0xe7   :  { %4708 = vmatpush1.bf16.msra.mxu1 %v6195_v17  ;;  %4463 = vmatprep.subr.bf16.mxu0 %v6202_v18  ;;  %v7721_v17 = vrot.slane %v7711_v31, %v6946_v53  ;;  %v613_v18 = vld [vmem:[%s9525_s1 + $0x1008] sm:$0xff]  ;;  %v6258_v22 = vcombine.high %v612_v14, %v616_v16  ;;  %v6257_v32 = vcombine.low %v612_v14, %v616_v16 }
  0xe8   :  { %4709 = vmatprep.subr.bf16.mxu1 %v6204_v19  ;;  %v617_v19 = vld [vmem:[%s9525_s1 + $0x1028] sm:$0xff] }
  0xe9   :  { %v6260_v24 = vcombine.high %v613_v18, %v617_v19  ;;  %v6259_v34 = vcombine.low %v613_v18, %v617_v19  ;;  %v661_v14 = vld [vmem:[%s9525_s1 + $0x1188] sm:$0xff]  ;;  %v6299_v19 = vcombine.low %v653_v5, %v657_v6 }
  0xea   :  { %4464 = vmatpush1.bf16.msra.mxu0 %v6201_v26  ;;  %v620_v26 = vld [vmem:[%s9525_s1 + $0x1040] sm:$0xff]  ;;  %v665_v16 = vld [vmem:[%s9525_s1 + $0x11a8] sm:$0xff] }
  0xeb   :  { %4710 = vmatpush1.bf16.msra.mxu1 %v6203_v27  ;;  %4465 = vmatprep.subr.bf16.mxu0 %v6210_v28  ;;  %v624_v27 = vld [vmem:[%s9525_s1 + $0x1060] sm:$0xff]  ;;  %v77_v28 = vcombine.high %v7721_v17, %v7721_v17 }
  0xec   :  { %4711 = vmatprep.subr.bf16.mxu1 %v6212_v29  ;;  %v7739_v29 = vpack.c.bf16 %v7508_v54, %v7508_v54  ;;  %v628_v54 = vld [vmem:[%s9525_s1 + $0x1080] sm:$0xff]  ;;  %v6265_v42 = vcombine.low %v620_v26, %v624_v27 }
  0xee   :  { %4466 = vmatpush1.bf16.msra.mxu0 %v6209_v35  ;;  %v6266_v35 = vcombine.high %v620_v26, %v624_v27  ;;  %v669_v26 = vld [vmem:[%s9525_s1 + $0x11c8] sm:$0xff] }
  0xef   :  { %4712 = vmatpush1.bf16.msra.mxu1 %v6211_v36  ;;  %4467 = vmatprep.subr.bf16.mxu0 %v6218_v37  ;;  %v6268_v36 = vcombine.high %v621_v30, %v625_v63  ;;  %v632_v37 = vld [vmem:[%s9525_s1 + $0x10a0] sm:$0xff]  ;;  %v673_v27 = vld [vmem:[%s9525_s1 + $0x11e8] sm:$0xff]  ;;  %v6307_v30 = vcombine.low %v661_v14, %v665_v16 }
  0xf0   :  { %4713 = vmatprep.subr.bf16.mxu1 %v6220_v38  ;;  %v7753_v38 = vpack.c.bf16 %v77_v28, %v77_v28  ;;  %v6273_v51 = vcombine.low %v628_v54, %v632_v37 }
  0xf2   :  { %4468 = vmatpush1.bf16.msra.mxu0 %v6217_v45  ;;  %v6274_v45 = vcombine.high %v628_v54, %v632_v37  ;;  %v681_v54 = vld [vmem:[%s9525_s1 + $0x1228] sm:$0xff] }
  0xf3   :  { %4714 = vmatpush1.bf16.msra.mxu1 %v6219_v46  ;;  %4469 = vmatprep.subr.bf16.mxu0 %v6226_v47  ;;  %v6276_v46 = vcombine.high %v629_v39, %v633_v40  ;;  %v636_v47 = vld [vmem:[%s9525_s1 + $0x10c0] sm:$0xff]  ;;  %v6315_v39 = vcombine.low %v669_v26, %v673_v27 }
  0xf4   :  { %4715 = vmatprep.subr.bf16.mxu1 %v6228_v48  ;;  %v640_v48 = vld [vmem:[%s9525_s1 + $0x10e0] sm:$0xff] }
  0xf5   :  { %v6281_v61 = vcombine.low %v636_v47, %v640_v48 }
  0xf6   :  { %4470 = vmatpush1.bf16.msra.mxu0 %v6225_v52  ;;  %v6282_v52 = vcombine.high %v636_v47, %v640_v48  ;;  %v689_v47 = vld [vmem:[%s9525_s1 + $0x1268] sm:$0xff] }
  0xf7   :  { %4716 = vmatpush1.bf16.msra.mxu1 %v6227_v55  ;;  %4471 = vmatprep.subr.bf16.mxu0 %v6234_v56  ;;  %v6284_v55 = vcombine.high %v637_v15, %v641_v49  ;;  %v644_v56 = vld [vmem:[%s9525_s1 + $0x1100] sm:$0xff] }
  0xf8   :  { %4717 = vmatprep.subr.bf16.mxu1 %v6236_v57  ;;  %v648_v57 = vld [vmem:[%s9525_s1 + $0x1120] sm:$0xff] }
  0xf9   :  { %v6289_v7 = vcombine.low %v644_v56, %v648_v57 }
  0xfa   :  { %4472 = vmatpush1.bf16.msra.mxu0 %v6233_v0  ;;  %v6290_v0 = vcombine.high %v644_v56, %v648_v57  ;;  %v697_v56 = vld [vmem:[%s9525_s1 + $0x12a8] sm:$0xff] }
  0xfb   :  { %4718 = vmatpush1.bf16.msra.mxu1 %v6235_v1  ;;  %4473 = vmatprep.subr.bf16.mxu0 %v6242_v3  ;;  %v6292_v1 = vcombine.high %v645_v58, %v649_v60  ;;  %v652_v3 = vld [vmem:[%s9525_s1 + $0x1140] sm:$0xff] }
  0xfc   :  { %4719 = vmatprep.subr.bf16.mxu1 %v6244_v4  ;;  %v656_v4 = vld [vmem:[%s9525_s1 + $0x1160] sm:$0xff] }
  0xfd   :  { %v6297_v18 = vcombine.low %v652_v3, %v656_v4 }
  0xfe   :  { %4474 = vmatpush1.bf16.msra.mxu0 %v6241_v10  ;;  %v6298_v10 = vcombine.high %v652_v3, %v656_v4  ;;  %v705_v3 = vld [vmem:[%s9525_s1 + $0x12e8] sm:$0xff] }
  0xff   :  { %4720 = vmatpush1.bf16.msra.mxu1 %v6243_v12  ;;  %4475 = vmatprep.subr.bf16.mxu0 %v6250_v13  ;;  %v6300_v12 = vcombine.high %v653_v5, %v657_v6  ;;  %v660_v13 = vld [vmem:[%s9525_s1 + $0x1180] sm:$0xff] }
 0x100   :  { %4721 = vmatprep.subr.bf16.mxu1 %v6252_v59  ;;  %v664_v59 = vld [vmem:[%s9525_s1 + $0x11a0] sm:$0xff] }
 0x101   :  { %v6305_v28 = vcombine.low %v660_v13, %v664_v59 }
 0x102   :  { %4476 = vmatpush1.bf16.msra.mxu0 %v6249_v20  ;;  %v6306_v20 = vcombine.high %v660_v13, %v664_v59  ;;  %v713_v13 = vld [vmem:[%s9525_s1 + $0x1328] sm:$0xff] }
 0x103   :  { %4722 = vmatpush1.bf16.msra.mxu1 %v6251_v21  ;;  %4486 = vmatprep.subr.bf16.mxu0 %v6258_v22  ;;  %v6308_v21 = vcombine.high %v661_v14, %v665_v16  ;;  %v668_v22 = vld [vmem:[%s9525_s1 + $0x11c0] sm:$0xff] }
 0x104   :  { %4732 = vmatprep.subr.bf16.mxu1 %v6260_v24  ;;  %v672_v24 = vld [vmem:[%s9525_s1 + $0x11e0] sm:$0xff] }
 0x105   :  { %4478 = vmatmul.mubr.bf16.vlgmr.msra.gmra.mrb[0].mxu0 %v7739_v29  ;;  %v6314_v63 = vcombine.high %v668_v22, %v672_v24  ;;  %v6313_v37 = vcombine.low %v668_v22, %v672_v24  ;;  %v721_v22 = vld [vmem:[%s9525_s1 + $0x1368] sm:$0xff] }
 0x106   :  { %4487 = vmatpush1.bf16.msra.mxu0 %v6257_v32  ;;  %4724 = vmatmul.mubr.bf16.vlgmr.msra.gmra.mrb[0].mxu1 %v7739_v29  ;;  %v6316_v32 = vcombine.high %v669_v26, %v673_v27 }
 0x107   :  { %4733 = vmatpush1.bf16.msra.mxu1 %v6259_v34  ;;  %4488 = vmatprep.subr.bf16.mxu0 %v6266_v35  ;;  %v676_v34 = vld [vmem:[%s9525_s1 + $0x1200] sm:$0xff] }
 0x108   :  { %4734 = vmatprep.subr.bf16.mxu1 %v6268_v36  ;;  %4518 = vmatprep.mubr.bf16.mxu0 %v7753_v38  ;;  %v680_v35 = vld [vmem:[%s9525_s1 + $0x1220] sm:$0xff]  ;;  %v677_v36 = vld [vmem:[%s9525_s1 + $0x1208] sm:$0xff] }
 0x109   :  { %4764 = vmatprep.mubr.bf16.mxu1 %v7753_v38  ;;  %v6322_v40 = vcombine.high %v676_v34, %v680_v35  ;;  %v6321_v48 = vcombine.low %v676_v34, %v680_v35  ;;  %v6323_v15 = vcombine.low %v677_v36, %v681_v54  ;;  %v729_v34 = vld [vmem:[%s9525_s1 + $0x13a8] sm:$0xff] }
 0x10a   :  { %4489 = vmatpush1.bf16.msra.mxu0 %v6265_v42  ;;  %v6324_v42 = vcombine.high %v677_v36, %v681_v54 }
 0x10b   :  { %4735 = vmatpush1.bf16.msra.mxu1 %v6267_v43  ;;  %4490 = vmatprep.subr.bf16.mxu0 %v6274_v45  ;;  %v684_v43 = vld [vmem:[%s9525_s1 + $0x1240] sm:$0xff] }
 0x10c   :  { %4736 = vmatprep.subr.bf16.mxu1 %v6276_v46  ;;  %v688_v45 = vld [vmem:[%s9525_s1 + $0x1260] sm:$0xff]  ;;  %v685_v46 = vld [vmem:[%s9525_s1 + $0x1248] sm:$0xff] }
 0x10d   :  { %v6330_v49 = vcombine.high %v684_v43, %v688_v45  ;;  %v6329_v57 = vcombine.low %v684_v43, %v688_v45  ;;  %v6331_v58 = vcombine.low %v685_v46, %v689_v47  ;;  %v737_v43 = vld [vmem:[%s9525_s1 + $0x13e8] sm:$0xff] }
 0x10e   :  { %4491 = vmatpush1.bf16.msra.mxu0 %v6273_v51  ;;  %v6332_v51 = vcombine.high %v685_v46, %v689_v47 }
 0x10f   :  { %4737 = vmatpush1.bf16.msra.mxu1 %v6275_v23  ;;  %4492 = vmatprep.subr.bf16.mxu0 %v6282_v52  ;;  %v692_v23 = vld [vmem:[%s9525_s1 + $0x1280] sm:$0xff] }
 0x110   :  { %4738 = vmatprep.subr.bf16.mxu1 %v6284_v55  ;;  %v696_v52 = vld [vmem:[%s9525_s1 + $0x12a0] sm:$0xff]  ;;  %v693_v55 = vld [vmem:[%s9525_s1 + $0x1288] sm:$0xff] }
 0x111   :  { %v6338_v60 = vcombine.high %v692_v23, %v696_v52  ;;  %v6337_v4 = vcombine.low %v692_v23, %v696_v52  ;;  %v6339_v5 = vcombine.low %v693_v55, %v697_v56  ;;  %v745_v23 = vld [vmem:[%s9525_s1 + $0x1428] sm:$0xff] }
 0x112   :  { %4493 = vmatpush1.bf16.msra.mxu0 %v6281_v61  ;;  %v6340_v61 = vcombine.high %v693_v55, %v697_v56 }
 0x113   :  { %4739 = vmatpush1.bf16.msra.mxu1 %v6283_v62  ;;  %4494 = vmatprep.subr.bf16.mxu0 %v6290_v0  ;;  %v700_v62 = vld [vmem:[%s9525_s1 + $0x12c0] sm:$0xff] }
 0x114   :  { %4740 = vmatprep.subr.bf16.mxu1 %v6292_v1  ;;  %v704_v0 = vld [vmem:[%s9525_s1 + $0x12e0] sm:$0xff]  ;;  %v701_v1 = vld [vmem:[%s9525_s1 + $0x12c8] sm:$0xff] }
 0x115   :  { %v6346_v6 = vcombine.high %v700_v62, %v704_v0  ;;  %v6345_v59 = vcombine.low %v700_v62, %v704_v0  ;;  %v6347_v14 = vcombine.low %v701_v1, %v705_v3  ;;  %v749_v62 = vld [vmem:[%s9525_s1 + $0x1448] sm:$0xff] }
 0x116   :  { %4495 = vmatpush1.bf16.msra.mxu0 %v6289_v7  ;;  %v6348_v7 = vcombine.high %v701_v1, %v705_v3  ;;  %v753_v0 = vld [vmem:[%s9525_s1 + $0x1468] sm:$0xff] }
 0x117   :  { %4741 = vmatpush1.bf16.msra.mxu1 %v6291_v8  ;;  %4496 = vmatprep.subr.bf16.mxu0 %v6298_v10  ;;  %v708_v8 = vld [vmem:[%s9525_s1 + $0x1300] sm:$0xff] }
 0x118   :  { %4742 = vmatprep.subr.bf16.mxu1 %v6300_v12  ;;  %v712_v10 = vld [vmem:[%s9525_s1 + $0x1320] sm:$0xff]  ;;  %v709_v12 = vld [vmem:[%s9525_s1 + $0x1308] sm:$0xff] }
 0x119   :  { %v6354_v16 = vcombine.high %v708_v8, %v712_v10  ;;  %v6353_v24 = vcombine.low %v708_v8, %v712_v10  ;;  %v6355_v26 = vcombine.low %v709_v12, %v713_v13  ;;  %v761_v8 = vld [vmem:[%s9525_s1 + $0x14a8] sm:$0xff] }
 0x11a   :  { %4497 = vmatpush1.bf16.msra.mxu0 %v6297_v18  ;;  %v6356_v18 = vcombine.high %v709_v12, %v713_v13  ;;  %v6395_v12 = vcombine.low %v749_v62, %v753_v0 }
 0x11b   :  { %4743 = vmatpush1.bf16.msra.mxu1 %v6299_v19  ;;  %4498 = vmatprep.subr.bf16.mxu0 %v6306_v20  ;;  %v716_v19 = vld [vmem:[%s9525_s1 + $0x1340] sm:$0xff] }
 0x11c   :  { %4744 = vmatprep.subr.bf16.mxu1 %v6308_v21  ;;  %v720_v20 = vld [vmem:[%s9525_s1 + $0x1360] sm:$0xff]  ;;  %v717_v21 = vld [vmem:[%s9525_s1 + $0x1348] sm:$0xff] }
 0x11d   :  { %v6362_v27 = vcombine.high %v716_v19, %v720_v20  ;;  %v6361_v35 = vcombine.low %v716_v19, %v720_v20  ;;  %v6363_v36 = vcombine.low %v717_v21, %v721_v22  ;;  %v765_v19 = vld [vmem:[%s9525_s1 + $0x14c8] sm:$0xff] }
 0x11e   :  { %4499 = vmatpush1.bf16.msra.mxu0 %v6305_v28  ;;  %v6364_v28 = vcombine.high %v717_v21, %v721_v22  ;;  %v769_v20 = vld [vmem:[%s9525_s1 + $0x14e8] sm:$0xff] }
 0x11f   :  { %4745 = vmatpush1.bf16.msra.mxu1 %v6307_v30  ;;  %4500 = vmatprep.subr.bf16.mxu0 %v6314_v63  ;;  %v724_v30 = vld [vmem:[%s9525_s1 + $0x1380] sm:$0xff] }
 0x120   :  { %4746 = vmatprep.subr.bf16.mxu1 %v6316_v32  ;;  %v728_v63 = vld [vmem:[%s9525_s1 + $0x13a0] sm:$0xff]  ;;  %v725_v32 = vld [vmem:[%s9525_s1 + $0x1388] sm:$0xff] }
 0x121   :  { %v6370_v54 = vcombine.high %v724_v30, %v728_v63  ;;  %v6369_v45 = vcombine.low %v724_v30, %v728_v63  ;;  %v6371_v46 = vcombine.low %v725_v32, %v729_v34  ;;  %v773_v30 = vld [vmem:[%s9525_s1 + $0x1508] sm:$0xff] }
 0x122   :  { %4501 = vmatpush1.bf16.msra.mxu0 %v6313_v37  ;;  %v6372_v37 = vcombine.high %v725_v32, %v729_v34  ;;  %v777_v63 = vld [vmem:[%s9525_s1 + $0x1528] sm:$0xff]  ;;  %v6411_v34 = vcombine.low %v765_v19, %v769_v20 }
 0x123   :  { %4747 = vmatpush1.bf16.msra.mxu1 %v6315_v39  ;;  %4502 = vmatprep.subr.bf16.mxu0 %v6322_v40  ;;  %v732_v39 = vld [vmem:[%s9525_s1 + $0x13c0] sm:$0xff] }
 0x124   :  { %4748 = vmatprep.subr.bf16.mxu1 %v6324_v42  ;;  %v736_v40 = vld [vmem:[%s9525_s1 + $0x13e0] sm:$0xff]  ;;  %v733_v42 = vld [vmem:[%s9525_s1 + $0x13c8] sm:$0xff] }
 0x125   :  { %v6378_v47 = vcombine.high %v732_v39, %v736_v40  ;;  %v6377_v52 = vcombine.low %v732_v39, %v736_v40  ;;  %v6379_v55 = vcombine.low %v733_v42, %v737_v43  ;;  %v781_v39 = vld [vmem:[%s9525_s1 + $0x1548] sm:$0xff] }
 0x126   :  { %4503 = vmatpush1.bf16.msra.mxu0 %v6321_v48  ;;  %v6380_v48 = vcombine.high %v733_v42, %v737_v43  ;;  %v785_v40 = vld [vmem:[%s9525_s1 + $0x1568] sm:$0xff]  ;;  %v6419_v43 = vcombine.low %v773_v30, %v777_v63 }
 0x127   :  { %4749 = vmatpush1.bf16.msra.mxu1 %v6323_v15  ;;  %4504 = vmatprep.subr.bf16.mxu0 %v6330_v49  ;;  %v740_v15 = vld [vmem:[%s9525_s1 + $0x1400] sm:$0xff] }
 0x128   :  { %4750 = vmatprep.subr.bf16.mxu1 %v6332_v51  ;;  %v744_v49 = vld [vmem:[%s9525_s1 + $0x1420] sm:$0xff]  ;;  %v741_v51 = vld [vmem:[%s9525_s1 + $0x1408] sm:$0xff] }
 0x129   :  { %v6386_v56 = vcombine.high %v740_v15, %v744_v49  ;;  %v6385_v1 = vcombine.low %v740_v15, %v744_v49  ;;  %v6387_v3 = vcombine.low %v741_v51, %v745_v23  ;;  %v62_v15 = vcombine.high %v7711_v31, %v7711_v31  ;;  %v789_v49 = vld [vmem:[%s9525_s1 + $0x1588] sm:$0xff]  ;;  %v102_v31 = vld [vmem:[%s9525_s1 + $0x10] sm:$0xff] }
 0x12a   :  { %4505 = vmatpush1.bf16.msra.mxu0 %v6329_v57  ;;  %v6388_v57 = vcombine.high %v741_v51, %v745_v23  ;;  %v793_v51 = vld [vmem:[%s9525_s1 + $0x15a8] sm:$0xff] }
 0x12b   :  { %4751 = vmatpush1.bf16.msra.mxu1 %v6331_v58  ;;  %4506 = vmatprep.subr.bf16.mxu0 %v6338_v60  ;;  %v748_v58 = vld [vmem:[%s9525_s1 + $0x1440] sm:$0xff] }
 0x12c   :  { %4752 = vmatprep.subr.bf16.mxu1 %v6340_v61  ;;  %v752_v60 = vld [vmem:[%s9525_s1 + $0x1460] sm:$0xff]  ;;  %v7941_v61 = vpack.c.bf16 %v7721_v17, %v7721_v17 }
 0x12d   :  { %v756_v17 = vld [vmem:[%s9525_s1 + $0x1480] sm:$0xff]  ;;  %v6393_v10 = vcombine.low %v748_v58, %v752_v60 }
 0x12e   :  { %4507 = vmatpush1.bf16.msra.mxu0 %v6337_v4  ;;  %v6394_v4 = vcombine.high %v748_v58, %v752_v60  ;;  %v76_v58 = vrot.slane %v62_v15, %v6946_v53  ;;  %v103_v60 = vld [vmem:[%s9525_s1 + $0x18] sm:$0xff]  ;;  %v110_v53 = vld [vmem:[%s9525_s1 + $0x50] sm:$0xff] }
 0x12f   :  { %4753 = vmatpush1.bf16.msra.mxu1 %v6339_v5  ;;  %4508 = vmatprep.subr.bf16.mxu0 %v6346_v6  ;;  %v6396_v5 = vcombine.high %v749_v62, %v753_v0  ;;  %v760_v6 = vld [vmem:[%s9525_s1 + $0x14a0] sm:$0xff]  ;;  %v107_v62 = vld [vmem:[%s9525_s1 + $0x38] sm:$0xff] }
 0x130   :  { %4754 = vmatprep.subr.bf16.mxu1 %v6348_v7  ;;  %v757_v7 = vld [vmem:[%s9525_s1 + $0x1488] sm:$0xff]  ;;  %v6402_v13 = vcombine.high %v756_v17, %v760_v6  ;;  %v6401_v21 = vcombine.low %v756_v17, %v760_v6  ;;  %v8034_v17 = vpack.c.bf16 %v76_v58, %v76_v58  ;;  %v111_v6 = vld [vmem:[%s9525_s1 + $0x58] sm:$0xff] }
 0x131   :  { %v6403_v22 = vcombine.low %v757_v7, %v761_v8 }
 0x132   :  { %4509 = vmatpush1.bf16.msra.mxu0 %v6345_v59  ;;  %v6404_v59 = vcombine.high %v757_v7, %v761_v8  ;;  %v115_v7 = vld [vmem:[%s9525_s1 + $0x78] sm:$0xff] }
 0x133   :  { %4755 = vmatpush1.bf16.msra.mxu1 %v6347_v14  ;;  %4510 = vmatprep.subr.bf16.mxu0 %v6354_v16  ;;  %v764_v14 = vld [vmem:[%s9525_s1 + $0x14c0] sm:$0xff] }
 0x134   :  { %4756 = vmatprep.subr.bf16.mxu1 %v6356_v18  ;;  %v768_v16 = vld [vmem:[%s9525_s1 + $0x14e0] sm:$0xff]  ;;  %v6833_v18 = vmov 0  }
 0x135   :  { %v6409_v32 = vcombine.low %v764_v14, %v768_v16 }
 0x136   :  { %4511 = vmatpush1.bf16.msra.mxu0 %v6353_v24  ;;  %v6410_v24 = vcombine.high %v764_v14, %v768_v16  ;;  %v122_v14 = vld [vmem:[%s9525_s1 + $0xb0] sm:$0xff]  ;;  %v119_v16 = vld [vmem:[%s9525_s1 + $0x98] sm:$0xff] }
 0x137   :  { %4757 = vmatpush1.bf16.msra.mxu1 %v6355_v26  ;;  %4512 = vmatprep.subr.bf16.mxu0 %v6362_v27  ;;  %v6412_v26 = vcombine.high %v765_v19, %v769_v20  ;;  %v772_v27 = vld [vmem:[%s9525_s1 + $0x1500] sm:$0xff]  ;;  %v123_v19 = vld [vmem:[%s9525_s1 + $0xb8] sm:$0xff] }
 0x138   :  { %4758 = vmatprep.subr.bf16.mxu1 %v6364_v28  ;;  %v776_v28 = vld [vmem:[%s9525_s1 + $0x1520] sm:$0xff] }
 0x139   :  { %v6417_v42 = vcombine.low %v772_v27, %v776_v28 }
 0x13a   :  { %4513 = vmatpush1.bf16.msra.mxu0 %v6361_v35  ;;  %v6418_v35 = vcombine.high %v772_v27, %v776_v28  ;;  %v130_v27 = vld [vmem:[%s9525_s1 + $0xf0] sm:$0xff]  ;;  %v127_v28 = vld [vmem:[%s9525_s1 + $0xd8] sm:$0xff] }
 0x13b   :  { %4759 = vmatpush1.bf16.msra.mxu1 %v6363_v36  ;;  %4514 = vmatprep.subr.bf16.mxu0 %v6370_v54  ;;  %v6420_v36 = vcombine.high %v773_v30, %v777_v63  ;;  %v780_v54 = vld [vmem:[%s9525_s1 + $0x1540] sm:$0xff]  ;;  %v131_v30 = vld [vmem:[%s9525_s1 + $0xf8] sm:$0xff] }
 0x13c   :  { %4760 = vmatprep.subr.bf16.mxu1 %v6372_v37  ;;  %v784_v37 = vld [vmem:[%s9525_s1 + $0x1560] sm:$0xff] }
 0x13d   :  { %v6425_v23 = vcombine.low %v780_v54, %v784_v37 }
 0x13e   :  { %4515 = vmatpush1.bf16.msra.mxu0 %v6369_v45  ;;  %v6426_v45 = vcombine.high %v780_v54, %v784_v37  ;;  %v138_v54 = vld [vmem:[%s9525_s1 + $0x130] sm:$0xff]  ;;  %v139_v37 = vld [vmem:[%s9525_s1 + $0x138] sm:$0xff] }
 0x13f   :  { %4761 = vmatpush1.bf16.msra.mxu1 %v6371_v46  ;;  %4516 = vmatprep.subr.bf16.mxu0 %v6378_v47  ;;  %v6428_v46 = vcombine.high %v781_v39, %v785_v40  ;;  %v788_v47 = vld [vmem:[%s9525_s1 + $0x1580] sm:$0xff] }
 0x140   :  { %4762 = vmatprep.subr.bf16.mxu1 %v6380_v48  ;;  %v792_v48 = vld [vmem:[%s9525_s1 + $0x15a0] sm:$0xff] }
 0x141   :  { %v6433_v0 = vcombine.low %v788_v47, %v792_v48 }
 0x142   :  { %4517 = vmatpush1.bf16.msra.mxu0 %v6377_v52  ;;  %v6427_v52 = vcombine.low %v781_v39, %v785_v40  ;;  %v5775_v40 = vcombine.low %v127_v28, %v131_v30 }
 0x143   :  { %4763 = vmatpush1.bf16.msra.mxu1 %v6379_v55  ;;  %4527 = vmatprep.subr.bf16.mxu0 %v6386_v56  ;;  %v6434_v55 = vcombine.high %v788_v47, %v792_v48  ;;  %v6436_v56 = vcombine.high %v789_v49, %v793_v51  ;;  %v143_v47 = vld [vmem:[%s9525_s1 + $0x158] sm:$0xff] }
 0x144   :  { %4773 = vmatprep.subr.bf16.mxu1 %v6388_v57  ;;  %v106_v57 = vld [vmem:[%s9525_s1 + $0x30] sm:$0xff]  ;;  %v147_v48 = vld [vmem:[%s9525_s1 + $0x178] sm:$0xff] }
 0x145   :  { %4519 = vmatmul.mubr.bf16.vlgmr.msra.gmra.mrb[0].mxu0 %v7941_v61  ;;  %v5749_v8 = vcombine.low %v102_v31, %v106_v57  ;;  %v5791_v58 = vcombine.low %v143_v47, %v147_v48 }
 0x146   :  { %4528 = vmatpush1.bf16.msra.mxu0 %v6385_v1  ;;  %4765 = vmatmul.mubr.bf16.vlgmr.msra.gmra.mrb[0].mxu1 %v7941_v61  ;;  %v6435_v1 = vcombine.low %v789_v49, %v793_v51 }
 0x147   :  { %4774 = vmatpush1.bf16.msra.mxu1 %v6387_v3  ;;  %4529 = vmatprep.subr.bf16.mxu0 %v6394_v4  ;;  %v5750_v3 = vcombine.high %v102_v31, %v106_v57  ;;  %v5752_v4 = vcombine.high %v103_v60, %v107_v62  ;;  %v155_v31 = vld [vmem:[%s9525_s1 + $0x1b8] sm:$0xff] }
 0x148   :  { %4775 = vmatprep.subr.bf16.mxu1 %v6396_v5  ;;  %4559 = vmatprep.mubr.bf16.mxu0 %v6833_v18  ;;  %v114_v5 = vld [vmem:[%s9525_s1 + $0x70] sm:$0xff] }
 0x149   :  { %4805 = vmatprep.mubr.bf16.mxu1 %v6833_v18  ;;  %v5757_v20 = vcombine.low %v110_v53, %v114_v5 }
 0x14a   :  { %4530 = vmatpush1.bf16.msra.mxu0 %v6393_v10  ;;  %v5751_v10 = vcombine.low %v103_v60, %v107_v62 }
 0x14b   :  { %4776 = vmatpush1.bf16.msra.mxu1 %v6395_v12  ;;  %4531 = vmatprep.subr.bf16.mxu0 %v6402_v13  ;;  %v5758_v12 = vcombine.high %v110_v53, %v114_v5  ;;  %v5760_v13 = vcombine.high %v111_v6, %v115_v7 }
 0x14c   :  { %4777 = vmatprep.subr.bf16.mxu1 %v6404_v59  ;;  %v118_v59 = vld [vmem:[%s9525_s1 + $0x90] sm:$0xff] }
 0x14d   :  { %v5765_v63 = vcombine.low %v118_v59, %v122_v14 }
 0x14e   :  { %4532 = vmatpush1.bf16.msra.mxu0 %v6401_v21  ;;  %v5759_v21 = vcombine.low %v111_v6, %v115_v7 }
 0x14f   :  { %4778 = vmatpush1.bf16.msra.mxu1 %v6403_v22  ;;  %4533 = vmatprep.subr.bf16.mxu0 %v6410_v24  ;;  %v5766_v22 = vcombine.high %v118_v59, %v122_v14  ;;  %v5768_v24 = vcombine.high %v119_v16, %v123_v19 }
 0x150   :  { %4779 = vmatprep.subr.bf16.mxu1 %v6412_v26  ;;  %v126_v26 = vld [vmem:[%s9525_s1 + $0xd0] sm:$0xff] }
 0x151   :  { %v5773_v39 = vcombine.low %v126_v26, %v130_v27 }
 0x152   :  { %4534 = vmatpush1.bf16.msra.mxu0 %v6409_v32  ;;  %v5767_v32 = vcombine.low %v119_v16, %v123_v19 }
 0x153   :  { %4780 = vmatpush1.bf16.msra.mxu1 %v6411_v34  ;;  %4535 = vmatprep.subr.bf16.mxu0 %v6418_v35  ;;  %v5774_v34 = vcombine.high %v126_v26, %v130_v27  ;;  %v5776_v35 = vcombine.high %v127_v28, %v131_v30 }
 0x154   :  { %4781 = vmatprep.subr.bf16.mxu1 %v6420_v36  ;;  %v134_v36 = vld [vmem:[%s9525_s1 + $0x110] sm:$0xff] }
 0x155   :  { %v5781_v15 = vcombine.low %v134_v36, %v138_v54 }
 0x156   :  { %4536 = vmatpush1.bf16.msra.mxu0 %v6417_v42  ;;  %v5782_v42 = vcombine.high %v134_v36, %v138_v54 }
 0x157   :  { %4782 = vmatpush1.bf16.msra.mxu1 %v6419_v43  ;;  %4537 = vmatprep.subr.bf16.mxu0 %v6426_v45  ;;  %v142_v45 = vld [vmem:[%s9525_s1 + $0x150] sm:$0xff] }
 0x158   :  { %4783 = vmatprep.subr.bf16.mxu1 %v6428_v46  ;;  %v146_v46 = vld [vmem:[%s9525_s1 + $0x170] sm:$0xff] }
 0x159   :  { %v5790_v51 = vcombine.high %v142_v45, %v146_v46  ;;  %v5789_v57 = vcombine.low %v142_v45, %v146_v46 }
 0x15a   :  { %4538 = vmatpush1.bf16.msra.mxu0 %v6425_v23  ;;  %v5792_v23 = vcombine.high %v143_v47, %v147_v48 }
 0x15b   :  { %4784 = vmatpush1.bf16.msra.mxu1 %v6427_v52  ;;  %4539 = vmatprep.subr.bf16.mxu0 %v6434_v55  ;;  %v150_v52 = vld [vmem:[%s9525_s1 + $0x190] sm:$0xff] }
 0x15c   :  { %4785 = vmatprep.subr.bf16.mxu1 %v6436_v56  ;;  %v154_v55 = vld [vmem:[%s9525_s1 + $0x1b0] sm:$0xff]  ;;  %v151_v56 = vld [vmem:[%s9525_s1 + $0x198] sm:$0xff] }
 0x15d   :  { %v5798_v60 = vcombine.high %v150_v52, %v154_v55  ;;  %v5800_v62 = vcombine.high %v151_v56, %v155_v31  ;;  %v5797_v53 = vcombine.low %v150_v52, %v154_v55  ;;  %v5799_v5 = vcombine.low %v151_v56, %v155_v31 }
 0x15e   :  { %4540 = vmatpush1.bf16.msra.mxu0 %v6433_v0  ;;  %v158_v0 = vld [vmem:[%s9525_s1 + $0x1d0] sm:$0xff] }
 0x15f   :  { %4786 = vmatpush1.bf16.msra.mxu1 %v6435_v1  ;;  %4814 = vmatprep.subr.bf16.mxu0 %v5750_v3  ;;  %v162_v1 = vld [vmem:[%s9525_s1 + $0x1f0] sm:$0xff]  ;;  %v159_v3 = vld [vmem:[%s9525_s1 + $0x1d8] sm:$0xff] }
 0x160   :  { %5060 = vmatprep.subr.bf16.mxu1 %v5752_v4  ;;  %v163_v4 = vld [vmem:[%s9525_s1 + $0x1f8] sm:$0xff]  ;;  %v5806_v6 = vcombine.high %v158_v0, %v162_v1  ;;  %v5805_v59 = vcombine.low %v158_v0, %v162_v1 }
 0x161   :  { %6441 = vmatmul.mubr.msk.bf16.vlgmr.msra.gmra.mrb[0].mxu0 %vm4318_vm0, %v8034_v17  ;;  %v5808_v7 = vcombine.high %v159_v3, %v163_v4  ;;  %v5807_v14 = vcombine.low %v159_v3, %v163_v4 }
 0x162   :  { %6442 = vmatmul.mubr.msk.bf16.vlgmr.msra.gmra.mrb[0].mxu1 %vm4318_vm0, %v8034_v17  ;;  %4815 = vmatpush1.bf16.msra.mxu0 %v5749_v8  ;;  %v166_v8 = vld [vmem:[%s9525_s1 + $0x210] sm:$0xff] }
 0x163   :  { %5061 = vmatpush1.bf16.msra.mxu1 %v5751_v10  ;;  %4816 = vmatprep.subr.bf16.mxu0 %v5758_v12  ;;  %v170_v10 = vld [vmem:[%s9525_s1 + $0x230] sm:$0xff]  ;;  %v167_v12 = vld [vmem:[%s9525_s1 + $0x218] sm:$0xff] }
 0x164   :  { %5062 = vmatprep.subr.bf16.mxu1 %v5760_v13  ;;  %4846 = vmatprep.mubr.bf16.mxu0 %v6983_v9  ;;  %v171_v13 = vld [vmem:[%s9525_s1 + $0x238] sm:$0xff]  ;;  %v5814_v16 = vcombine.high %v166_v8, %v170_v10  ;;  %v5813_v26 = vcombine.low %v166_v8, %v170_v10 }
 0x165   :  { %5092 = vmatprep.mubr.bf16.mxu1 %v6983_v9  ;;  %v135_v9 = vld [vmem:[%s9525_s1 + $0x118] sm:$0xff]  ;;  %v5816_v19 = vcombine.high %v167_v12, %v171_v13  ;;  %v5815_v27 = vcombine.low %v167_v12, %v171_v13 }
 0x166   :  { %4817 = vmatpush1.bf16.msra.mxu0 %v5757_v20  ;;  %v5784_v43 = vcombine.high %v135_v9, %v139_v37  ;;  %v5783_v49 = vcombine.low %v135_v9, %v139_v37  ;;  %v174_v20 = vld [vmem:[%s9525_s1 + $0x250] sm:$0xff] }
 0x167   :  { %5063 = vmatpush1.bf16.msra.mxu1 %v5759_v21  ;;  %4818 = vmatprep.subr.bf16.mxu0 %v5766_v22  ;;  %v178_v21 = vld [vmem:[%s9525_s1 + $0x270] sm:$0xff]  ;;  %v175_v22 = vld [vmem:[%s9525_s1 + $0x258] sm:$0xff] }
 0x168   :  { %5064 = vmatprep.subr.bf16.mxu1 %v5768_v24  ;;  %v179_v24 = vld [vmem:[%s9525_s1 + $0x278] sm:$0xff]  ;;  %v5822_v28 = vcombine.high %v174_v20, %v178_v21  ;;  %v5821_v36 = vcombine.low %v174_v20, %v178_v21 }
 0x169   :  { %v5824_v30 = vcombine.high %v175_v22, %v179_v24  ;;  %v5823_v54 = vcombine.low %v175_v22, %v179_v24 }
 0x16a   :  { %4819 = vmatpush1.bf16.msra.mxu0 %v5765_v63  ;;  %v182_v63 = vld [vmem:[%s9525_s1 + $0x290] sm:$0xff] }
 0x16b   :  { %5065 = vmatpush1.bf16.msra.mxu1 %v5767_v32  ;;  %4820 = vmatprep.subr.bf16.mxu0 %v5774_v34  ;;  %v186_v32 = vld [vmem:[%s9525_s1 + $0x2b0] sm:$0xff]  ;;  %v183_v34 = vld [vmem:[%s9525_s1 + $0x298] sm:$0xff] }
 0x16c   :  { %5066 = vmatprep.subr.bf16.mxu1 %v5776_v35  ;;  %v187_v35 = vld [vmem:[%s9525_s1 + $0x2b8] sm:$0xff]  ;;  %v5830_v9 = vcombine.high %v182_v63, %v186_v32  ;;  %v5829_v45 = vcombine.low %v182_v63, %v186_v32 }
 0x16d   :  { %v5832_v37 = vcombine.high %v183_v34, %v187_v35  ;;  %v5831_v46 = vcombine.low %v183_v34, %v187_v35 }
 0x16e   :  { %4821 = vmatpush1.bf16.msra.mxu0 %v5773_v39  ;;  %v190_v39 = vld [vmem:[%s9525_s1 + $0x2d0] sm:$0xff] }
 0x16f   :  { %5067 = vmatpush1.bf16.msra.mxu1 %v5775_v40  ;;  %4822 = vmatprep.subr.bf16.mxu0 %v5782_v42  ;;  %v194_v40 = vld [vmem:[%s9525_s1 + $0x2f0] sm:$0xff]  ;;  %v191_v42 = vld [vmem:[%s9525_s1 + $0x2d8] sm:$0xff] }
 0x170   :  { %5068 = vmatprep.subr.bf16.mxu1 %v5784_v43  ;;  %v195_v43 = vld [vmem:[%s9525_s1 + $0x2f8] sm:$0xff]  ;;  %v5838_v47 = vcombine.high %v190_v39, %v194_v40  ;;  %v5837_v52 = vcombine.low %v190_v39, %v194_v40 }
 0x171   :  { %v5840_v48 = vcombine.high %v191_v42, %v195_v43  ;;  %v5839_v55 = vcombine.low %v191_v42, %v195_v43 }
 0x172   :  { %4823 = vmatpush1.bf16.msra.mxu0 %v5781_v15  ;;  %v198_v15 = vld [vmem:[%s9525_s1 + $0x310] sm:$0xff] }
 0x173   :  { %5069 = vmatpush1.bf16.msra.mxu1 %v5783_v49  ;;  %4824 = vmatprep.subr.bf16.mxu0 %v5790_v51  ;;  %v202_v49 = vld [vmem:[%s9525_s1 + $0x330] sm:$0xff]  ;;  %v199_v51 = vld [vmem:[%s9525_s1 + $0x318] sm:$0xff] }
 0x174   :  { %5070 = vmatprep.subr.bf16.mxu1 %v5792_v23  ;;  %v203_v23 = vld [vmem:[%s9525_s1 + $0x338] sm:$0xff]  ;;  %v5846_v56 = vcombine.high %v198_v15, %v202_v49  ;;  %v5845_v0 = vcombine.low %v198_v15, %v202_v49 }
 0x175   :  { %v5848_v31 = vcombine.high %v199_v51, %v203_v23  ;;  %v5847_v1 = vcombine.low %v199_v51, %v203_v23 }
 0x176   :  { %4825 = vmatpush1.bf16.msra.mxu0 %v5789_v57  ;;  %v206_v57 = vld [vmem:[%s9525_s1 + $0x350] sm:$0xff] }
 0x177   :  { %5071 = vmatpush1.bf16.msra.mxu1 %v5791_v58  ;;  %4826 = vmatprep.subr.bf16.mxu0 %v5798_v60  ;;  %v210_v58 = vld [vmem:[%s9525_s1 + $0x370] sm:$0xff]  ;;  %v207_v60 = vld [vmem:[%s9525_s1 + $0x358] sm:$0xff] }
 0x178   :  { %5072 = vmatprep.subr.bf16.mxu1 %v5800_v62  ;;  %v211_v62 = vld [vmem:[%s9525_s1 + $0x378] sm:$0xff]  ;;  %v5854_v3 = vcombine.high %v206_v57, %v210_v58  ;;  %v5853_v8 = vcombine.low %v206_v57, %v210_v58 }
 0x179   :  { %v5856_v4 = vcombine.high %v207_v60, %v211_v62  ;;  %v5855_v10 = vcombine.low %v207_v60, %v211_v62  ;;  %v262_v62 = vld [vmem:[%s9525_s1 + $0x510] sm:$0xff] }
 0x17a   :  { %4827 = vmatpush1.bf16.msra.mxu0 %v5797_v53  ;;  %v214_v53 = vld [vmem:[%s9525_s1 + $0x390] sm:$0xff] }
 0x17b   :  { %5073 = vmatpush1.bf16.msra.mxu1 %v5799_v5  ;;  %4828 = vmatprep.subr.bf16.mxu0 %v5806_v6  ;;  %v218_v5 = vld [vmem:[%s9525_s1 + $0x3b0] sm:$0xff]  ;;  %v215_v6 = vld [vmem:[%s9525_s1 + $0x398] sm:$0xff] }
 0x17c   :  { %5074 = vmatprep.subr.bf16.mxu1 %v5808_v7  ;;  %v219_v7 = vld [vmem:[%s9525_s1 + $0x3b8] sm:$0xff]  ;;  %v5862_v12 = vcombine.high %v214_v53, %v218_v5  ;;  %v5861_v20 = vcombine.low %v214_v53, %v218_v5 }
 0x17d   :  { %v5864_v13 = vcombine.high %v215_v6, %v219_v7  ;;  %v5863_v21 = vcombine.low %v215_v6, %v219_v7  ;;  %v270_v6 = vld [vmem:[%s9525_s1 + $0x550] sm:$0xff] }
 0x17e   :  { %4829 = vmatpush1.bf16.msra.mxu0 %v5805_v59  ;;  %v222_v59 = vld [vmem:[%s9525_s1 + $0x3d0] sm:$0xff] }
 0x17f   :  { %5075 = vmatpush1.bf16.msra.mxu1 %v5807_v14  ;;  %4830 = vmatprep.subr.bf16.mxu0 %v5814_v16  ;;  %v226_v14 = vld [vmem:[%s9525_s1 + $0x3f0] sm:$0xff]  ;;  %v223_v16 = vld [vmem:[%s9525_s1 + $0x3d8] sm:$0xff] }
 0x180   :  { %5076 = vmatprep.subr.bf16.mxu1 %v5816_v19  ;;  %v227_v19 = vld [vmem:[%s9525_s1 + $0x3f8] sm:$0xff]  ;;  %v5870_v22 = vcombine.high %v222_v59, %v226_v14  ;;  %v5869_v63 = vcombine.low %v222_v59, %v226_v14  ;;  %v274_v7 = vld [vmem:[%s9525_s1 + $0x570] sm:$0xff] }
 0x181   :  { %v5872_v24 = vcombine.high %v223_v16, %v227_v19  ;;  %v5871_v32 = vcombine.low %v223_v16, %v227_v19  ;;  %v5918_v59 = vcombine.high %v270_v6, %v274_v7  ;;  %v278_v16 = vld [vmem:[%s9525_s1 + $0x590] sm:$0xff] }
 0x182   :  { %4831 = vmatpush1.bf16.msra.mxu0 %v5813_v26  ;;  %v230_v26 = vld [vmem:[%s9525_s1 + $0x410] sm:$0xff] }
 0x183   :  { %5077 = vmatpush1.bf16.msra.mxu1 %v5815_v27  ;;  %4832 = vmatprep.subr.bf16.mxu0 %v5822_v28  ;;  %v234_v27 = vld [vmem:[%s9525_s1 + $0x430] sm:$0xff]  ;;  %v231_v28 = vld [vmem:[%s9525_s1 + $0x418] sm:$0xff] }
 0x184   :  { %5078 = vmatprep.subr.bf16.mxu1 %v5824_v30  ;;  %v235_v30 = vld [vmem:[%s9525_s1 + $0x438] sm:$0xff]  ;;  %v5878_v34 = vcombine.high %v230_v26, %v234_v27  ;;  %v5877_v39 = vcombine.low %v230_v26, %v234_v27  ;;  %v282_v19 = vld [vmem:[%s9525_s1 + $0x5b0] sm:$0xff] }
 0x185   :  { %v5880_v35 = vcombine.high %v231_v28, %v235_v30  ;;  %v5879_v40 = vcombine.low %v231_v28, %v235_v30  ;;  %v5926_v26 = vcombine.high %v278_v16, %v282_v19  ;;  %v286_v28 = vld [vmem:[%s9525_s1 + $0x5d0] sm:$0xff] }
 0x186   :  { %4833 = vmatpush1.bf16.msra.mxu0 %v5821_v36  ;;  %v238_v36 = vld [vmem:[%s9525_s1 + $0x450] sm:$0xff] }
 0x187   :  { %5079 = vmatpush1.bf16.msra.mxu1 %v5823_v54  ;;  %4834 = vmatprep.subr.bf16.mxu0 %v5830_v9  ;;  %v242_v54 = vld [vmem:[%s9525_s1 + $0x470] sm:$0xff]  ;;  %v239_v9 = vld [vmem:[%s9525_s1 + $0x458] sm:$0xff] }
 0x188   :  { %5080 = vmatprep.subr.bf16.mxu1 %v5832_v37  ;;  %v243_v37 = vld [vmem:[%s9525_s1 + $0x478] sm:$0xff]  ;;  %v5886_v42 = vcombine.high %v238_v36, %v242_v54  ;;  %v5885_v15 = vcombine.low %v238_v36, %v242_v54  ;;  %v290_v30 = vld [vmem:[%s9525_s1 + $0x5f0] sm:$0xff] }
 0x189   :  { %v5888_v43 = vcombine.high %v239_v9, %v243_v37  ;;  %v5887_v49 = vcombine.low %v239_v9, %v243_v37  ;;  %v5934_v36 = vcombine.high %v286_v28, %v290_v30  ;;  %v294_v9 = vld [vmem:[%s9525_s1 + $0x610] sm:$0xff] }
 0x18a   :  { %4835 = vmatpush1.bf16.msra.mxu0 %v5829_v45  ;;  %v246_v45 = vld [vmem:[%s9525_s1 + $0x490] sm:$0xff] }
 0x18b   :  { %5081 = vmatpush1.bf16.msra.mxu1 %v5831_v46  ;;  %4836 = vmatprep.subr.bf16.mxu0 %v5838_v47  ;;  %v250_v46 = vld [vmem:[%s9525_s1 + $0x4b0] sm:$0xff]  ;;  %v247_v47 = vld [vmem:[%s9525_s1 + $0x498] sm:$0xff] }
 0x18c   :  { %5082 = vmatprep.subr.bf16.mxu1 %v5840_v48  ;;  %v251_v48 = vld [vmem:[%s9525_s1 + $0x4b8] sm:$0xff]  ;;  %v5894_v51 = vcombine.high %v246_v45, %v250_v46  ;;  %v298_v37 = vld [vmem:[%s9525_s1 + $0x630] sm:$0xff] }
 0x18d   :  { %v5896_v23 = vcombine.high %v247_v47, %v251_v48  ;;  %v5895_v57 = vcombine.low %v247_v47, %v251_v48  ;;  %v302_v47 = vld [vmem:[%s9525_s1 + $0x650] sm:$0xff] }
 0x18e   :  { %4837 = vmatpush1.bf16.msra.mxu0 %v5837_v52  ;;  %v254_v52 = vld [vmem:[%s9525_s1 + $0x4d0] sm:$0xff] }
 0x18f   :  { %5083 = vmatpush1.bf16.msra.mxu1 %v5839_v55  ;;  %4838 = vmatprep.subr.bf16.mxu0 %v5846_v56  ;;  %v258_v55 = vld [vmem:[%s9525_s1 + $0x4f0] sm:$0xff]  ;;  %v259_v56 = vld [vmem:[%s9525_s1 + $0x4f8] sm:$0xff] }
 0x190   :  { %5084 = vmatprep.subr.bf16.mxu1 %v5848_v31  ;;  %v5893_v31 = vcombine.low %v246_v45, %v250_v46  ;;  %v5902_v58 = vcombine.high %v254_v52, %v258_v55  ;;  %v5942_v45 = vcombine.high %v294_v9, %v298_v37  ;;  %v306_v48 = vld [vmem:[%s9525_s1 + $0x670] sm:$0xff] }
 0x192   :  { %4839 = vmatpush1.bf16.msra.mxu0 %v5845_v0  ;;  %v266_v0 = vld [vmem:[%s9525_s1 + $0x530] sm:$0xff] }
 0x193   :  { %5085 = vmatpush1.bf16.msra.mxu1 %v5847_v1  ;;  %4840 = vmatprep.subr.bf16.mxu0 %v5854_v3  ;;  %v267_v1 = vld [vmem:[%s9525_s1 + $0x538] sm:$0xff]  ;;  %v5901_v3 = vcombine.low %v254_v52, %v258_v55  ;;  %v5910_v53 = vcombine.high %v262_v62, %v266_v0  ;;  %v5950_v52 = vcombine.high %v302_v47, %v306_v48 }
 0x194   :  { %5086 = vmatprep.subr.bf16.mxu1 %v5856_v4 }
 0x196   :  { %4841 = vmatpush1.bf16.msra.mxu0 %v5853_v8  ;;  %v271_v8 = vld [vmem:[%s9525_s1 + $0x558] sm:$0xff] }
 0x197   :  { %5087 = vmatpush1.bf16.msra.mxu1 %v5855_v10  ;;  %4842 = vmatprep.subr.bf16.mxu0 %v5862_v12  ;;  %v275_v10 = vld [vmem:[%s9525_s1 + $0x578] sm:$0xff]  ;;  %v5909_v12 = vcombine.low %v262_v62, %v266_v0 }
 0x198   :  { %5088 = vmatprep.subr.bf16.mxu1 %v5864_v13  ;;  %v5920_v14 = vcombine.high %v271_v8, %v275_v10 }
 0x19a   :  { %4843 = vmatpush1.bf16.msra.mxu0 %v5861_v20  ;;  %v279_v20 = vld [vmem:[%s9525_s1 + $0x598] sm:$0xff] }
 0x19b   :  { %5089 = vmatpush1.bf16.msra.mxu1 %v5863_v21  ;;  %4844 = vmatprep.subr.bf16.mxu0 %v5870_v22  ;;  %v283_v21 = vld [vmem:[%s9525_s1 + $0x5b8] sm:$0xff]  ;;  %v5917_v22 = vcombine.low %v270_v6, %v274_v7 }
 0x19c   :  { %5090 = vmatprep.subr.bf16.mxu1 %v5872_v24  ;;  %v5919_v24 = vcombine.low %v271_v8, %v275_v10  ;;  %v5928_v27 = vcombine.high %v279_v20, %v283_v21  ;;  %v326_v8 = vld [vmem:[%s9525_s1 + $0x710] sm:$0xff] }
 0x19d   :  { %v330_v10 = vld [vmem:[%s9525_s1 + $0x730] sm:$0xff] }
 0x19e   :  { %4845 = vmatpush1.bf16.msra.mxu0 %v5869_v63  ;;  %v287_v63 = vld [vmem:[%s9525_s1 + $0x5d8] sm:$0xff] }
 0x19f   :  { %5091 = vmatpush1.bf16.msra.mxu1 %v5871_v32  ;;  %4855 = vmatprep.subr.bf16.mxu0 %v5878_v34  ;;  %v291_v32 = vld [vmem:[%s9525_s1 + $0x5f8] sm:$0xff]  ;;  %v5925_v34 = vcombine.low %v278_v16, %v282_v19  ;;  %v5974_v16 = vcombine.high %v326_v8, %v330_v10 }
 0x1a0   :  { %5101 = vmatprep.subr.bf16.mxu1 %v5880_v35  ;;  %v5927_v35 = vcombine.low %v279_v20, %v283_v21  ;;  %v5936_v54 = vcombine.high %v287_v63, %v291_v32  ;;  %v334_v20 = vld [vmem:[%s9525_s1 + $0x750] sm:$0xff] }
 0x1a1   :  { %4847 = vmatmul.mubr.bf16.vlgmr.msra.gmra.mrb[4].mxu0 %v7104_v25  ;;  %v338_v21 = vld [vmem:[%s9525_s1 + $0x770] sm:$0xff] }
 0x1a2   :  { %4856 = vmatpush1.bf16.msra.mxu0 %v5877_v39  ;;  %5093 = vmatmul.mubr.bf16.vlgmr.msra.gmra.mrb[4].mxu1 %v7104_v25  ;;  %v255_v25 = vld [vmem:[%s9525_s1 + $0x4d8] sm:$0xff] }
 0x1a3   :  { %5102 = vmatpush1.bf16.msra.mxu1 %v5879_v40  ;;  %4857 = vmatprep.subr.bf16.mxu0 %v5886_v42  ;;  %v5904_v60 = vcombine.high %v255_v25, %v259_v56  ;;  %v5903_v4 = vcombine.low %v255_v25, %v259_v56  ;;  %v295_v39 = vld [vmem:[%s9525_s1 + $0x618] sm:$0xff]  ;;  %v5933_v42 = vcombine.low %v286_v28, %v290_v30  ;;  %v310_v25 = vld [vmem:[%s9525_s1 + $0x690] sm:$0xff] }
 0x1a4   :  { %5103 = vmatprep.subr.bf16.mxu1 %v5888_v43  ;;  %4887 = vmatprep.mubr.bf16.mxu0 %v7118_v33  ;;  %v299_v40 = vld [vmem:[%s9525_s1 + $0x638] sm:$0xff]  ;;  %v5935_v43 = vcombine.low %v287_v63, %v291_v32  ;;  %v314_v56 = vld [vmem:[%s9525_s1 + $0x6b0] sm:$0xff]  ;;  %v5982_v28 = vcombine.high %v334_v20, %v338_v21 }
 0x1a5   :  { %5133 = vmatprep.mubr.bf16.mxu1 %v7118_v33  ;;  %v263_v33 = vld [vmem:[%s9525_s1 + $0x518] sm:$0xff]  ;;  %v5944_v46 = vcombine.high %v295_v39, %v299_v40  ;;  %v5958_v62 = vcombine.high %v310_v25, %v314_v56  ;;  %v342_v63 = vld [vmem:[%s9525_s1 + $0x790] sm:$0xff] }
 0x1a6   :  { %4858 = vmatpush1.bf16.msra.mxu0 %v5885_v15  ;;  %v5912_v5 = vcombine.high %v263_v33, %v267_v1  ;;  %v5911_v13 = vcombine.low %v263_v33, %v267_v1  ;;  %v303_v15 = vld [vmem:[%s9525_s1 + $0x658] sm:$0xff]  ;;  %v318_v33 = vld [vmem:[%s9525_s1 + $0x6d0] sm:$0xff] }
 0x1a7   :  { %5104 = vmatpush1.bf16.msra.mxu1 %v5887_v49  ;;  %4859 = vmatprep.subr.bf16.mxu0 %v5894_v51  ;;  %v307_v49 = vld [vmem:[%s9525_s1 + $0x678] sm:$0xff]  ;;  %v5941_v51 = vcombine.low %v294_v9, %v298_v37  ;;  %v322_v1 = vld [vmem:[%s9525_s1 + $0x6f0] sm:$0xff] }
 0x1a8   :  { %5105 = vmatprep.subr.bf16.mxu1 %v5896_v23  ;;  %v5943_v23 = vcombine.low %v295_v39, %v299_v40  ;;  %v5952_v55 = vcombine.high %v303_v15, %v307_v49  ;;  %v5966_v6 = vcombine.high %v318_v33, %v322_v1  ;;  %v346_v32 = vld [vmem:[%s9525_s1 + $0x7b0] sm:$0xff] }
 0x1a9   :  { %v5990_v9 = vcombine.high %v342_v63, %v346_v32  ;;  %v350_v39 = vld [vmem:[%s9525_s1 + $0x7d0] sm:$0xff] }
 0x1aa   :  { %4860 = vmatpush1.bf16.msra.mxu0 %v5893_v31  ;;  %v311_v31 = vld [vmem:[%s9525_s1 + $0x698] sm:$0xff]  ;;  %v354_v40 = vld [vmem:[%s9525_s1 + $0x7f0] sm:$0xff] }
 0x1ab   :  { %5106 = vmatpush1.bf16.msra.mxu1 %v5895_v57  ;;  %4861 = vmatprep.subr.bf16.mxu0 %v5902_v58  ;;  %v315_v57 = vld [vmem:[%s9525_s1 + $0x6b8] sm:$0xff]  ;;  %v5949_v58 = vcombine.low %v302_v47, %v306_v48  ;;  %v5998_v47 = vcombine.high %v350_v39, %v354_v40 }
 0x1ac   :  { %5107 = vmatprep.subr.bf16.mxu1 %v5904_v60  ;;  %v5951_v60 = vcombine.low %v303_v15, %v307_v49  ;;  %v5960_v0 = vcombine.high %v311_v31, %v315_v57  ;;  %v358_v15 = vld [vmem:[%s9525_s1 + $0x810] sm:$0xff] }
 0x1ad   :  { %v362_v49 = vld [vmem:[%s9525_s1 + $0x830] sm:$0xff] }
 0x1ae   :  { %4862 = vmatpush1.bf16.msra.mxu0 %v5901_v3  ;;  %v319_v3 = vld [vmem:[%s9525_s1 + $0x6d8] sm:$0xff] }
 0x1af   :  { %5108 = vmatpush1.bf16.msra.mxu1 %v5903_v4  ;;  %4863 = vmatprep.subr.bf16.mxu0 %v5910_v53  ;;  %v323_v4 = vld [vmem:[%s9525_s1 + $0x6f8] sm:$0xff]  ;;  %v5957_v53 = vcombine.low %v310_v25, %v314_v56  ;;  %v6006_v25 = vcombine.high %v358_v15, %v362_v49 }
 0x1b0   :  { %5109 = vmatprep.subr.bf16.mxu1 %v5912_v5  ;;  %v5959_v5 = vcombine.low %v311_v31, %v315_v57  ;;  %v5968_v7 = vcombine.high %v319_v3, %v323_v4  ;;  %v366_v31 = vld [vmem:[%s9525_s1 + $0x850] sm:$0xff] }
 0x1b1   :  { %v370_v57 = vld [vmem:[%s9525_s1 + $0x870] sm:$0xff] }
 0x1b2   :  { %4864 = vmatpush1.bf16.msra.mxu0 %v5909_v12  ;;  %v327_v12 = vld [vmem:[%s9525_s1 + $0x718] sm:$0xff] }
 0x1b3   :  { %5110 = vmatpush1.bf16.msra.mxu1 %v5911_v13  ;;  %4865 = vmatprep.subr.bf16.mxu0 %v5918_v59  ;;  %v331_v13 = vld [vmem:[%s9525_s1 + $0x738] sm:$0xff]  ;;  %v5965_v59 = vcombine.low %v318_v33, %v322_v1  ;;  %v6014_v33 = vcombine.high %v366_v31, %v370_v57 }
 0x1b4   :  { %5111 = vmatprep.subr.bf16.mxu1 %v5920_v14  ;;  %v5967_v14 = vcombine.low %v319_v3, %v323_v4  ;;  %v5976_v19 = vcombine.high %v327_v12, %v331_v13  ;;  %v374_v3 = vld [vmem:[%s9525_s1 + $0x890] sm:$0xff] }
 0x1b5   :  { %v378_v4 = vld [vmem:[%s9525_s1 + $0x8b0] sm:$0xff] }
 0x1b6   :  { %4866 = vmatpush1.bf16.msra.mxu0 %v5917_v22  ;;  %v335_v22 = vld [vmem:[%s9525_s1 + $0x758] sm:$0xff] }
 0x1b7   :  { %5112 = vmatpush1.bf16.msra.mxu1 %v5919_v24  ;;  %4867 = vmatprep.subr.bf16.mxu0 %v5926_v26  ;;  %v339_v24 = vld [vmem:[%s9525_s1 + $0x778] sm:$0xff]  ;;  %v5973_v26 = vcombine.low %v326_v8, %v330_v10  ;;  %v6022_v8 = vcombine.high %v374_v3, %v378_v4 }
 0x1b8   :  { %5113 = vmatprep.subr.bf16.mxu1 %v5928_v27  ;;  %v5975_v27 = vcombine.low %v327_v12, %v331_v13  ;;  %v5984_v30 = vcombine.high %v335_v22, %v339_v24  ;;  %v382_v12 = vld [vmem:[%s9525_s1 + $0x8d0] sm:$0xff] }
 0x1b9   :  { %v386_v13 = vld [vmem:[%s9525_s1 + $0x8f0] sm:$0xff] }
 0x1ba   :  { %4868 = vmatpush1.bf16.msra.mxu0 %v5925_v34  ;;  %v343_v34 = vld [vmem:[%s9525_s1 + $0x798] sm:$0xff] }
 0x1bb   :  { %5114 = vmatpush1.bf16.msra.mxu1 %v5927_v35  ;;  %4869 = vmatprep.subr.bf16.mxu0 %v5934_v36  ;;  %v347_v35 = vld [vmem:[%s9525_s1 + $0x7b8] sm:$0xff]  ;;  %v5981_v36 = vcombine.low %v334_v20, %v338_v21  ;;  %v390_v21 = vld [vmem:[%s9525_s1 + $0x910] sm:$0xff] }
 0x1bc   :  { %5115 = vmatprep.subr.bf16.mxu1 %v5936_v54  ;;  %v5983_v54 = vcombine.low %v335_v22, %v339_v24  ;;  %v5992_v37 = vcombine.high %v343_v34, %v347_v35  ;;  %v394_v22 = vld [vmem:[%s9525_s1 + $0x930] sm:$0xff]  ;;  %v395_v24 = vld [vmem:[%s9525_s1 + $0x938] sm:$0xff] }
 0x1be   :  { %4870 = vmatpush1.bf16.msra.mxu0 %v5933_v42  ;;  %v351_v42 = vld [vmem:[%s9525_s1 + $0x7d8] sm:$0xff] }
 0x1bf   :  { %5116 = vmatpush1.bf16.msra.mxu1 %v5935_v43  ;;  %4871 = vmatprep.subr.bf16.mxu0 %v5942_v45  ;;  %v355_v43 = vld [vmem:[%s9525_s1 + $0x7f8] sm:$0xff]  ;;  %v5989_v45 = vcombine.low %v342_v63, %v346_v32  ;;  %v398_v63 = vld [vmem:[%s9525_s1 + $0x950] sm:$0xff] }
 0x1c0   :  { %5117 = vmatprep.subr.bf16.mxu1 %v5944_v46  ;;  %v5991_v46 = vcombine.low %v343_v34, %v347_v35  ;;  %v6000_v48 = vcombine.high %v351_v42, %v355_v43  ;;  %v402_v32 = vld [vmem:[%s9525_s1 + $0x970] sm:$0xff]  ;;  %v399_v34 = vld [vmem:[%s9525_s1 + $0x958] sm:$0xff] }
 0x1c1   :  { %v403_v35 = vld [vmem:[%s9525_s1 + $0x978] sm:$0xff] }
 0x1c2   :  { %4872 = vmatpush1.bf16.msra.mxu0 %v5941_v51  ;;  %v359_v51 = vld [vmem:[%s9525_s1 + $0x818] sm:$0xff] }
 0x1c3   :  { %5118 = vmatpush1.bf16.msra.mxu1 %v5943_v23  ;;  %4873 = vmatprep.subr.bf16.mxu0 %v5950_v52  ;;  %v363_v23 = vld [vmem:[%s9525_s1 + $0x838] sm:$0xff]  ;;  %v5997_v52 = vcombine.low %v350_v39, %v354_v40  ;;  %v406_v39 = vld [vmem:[%s9525_s1 + $0x990] sm:$0xff] }
 0x1c4   :  { %5119 = vmatprep.subr.bf16.mxu1 %v5952_v55  ;;  %v5999_v55 = vcombine.low %v351_v42, %v355_v43  ;;  %v6008_v56 = vcombine.high %v359_v51, %v363_v23  ;;  %v410_v40 = vld [vmem:[%s9525_s1 + $0x9b0] sm:$0xff]  ;;  %v407_v42 = vld [vmem:[%s9525_s1 + $0x998] sm:$0xff] }
 0x1c5   :  { %v411_v43 = vld [vmem:[%s9525_s1 + $0x9b8] sm:$0xff] }
 0x1c6   :  { %4874 = vmatpush1.bf16.msra.mxu0 %v5949_v58  ;;  %v367_v58 = vld [vmem:[%s9525_s1 + $0x858] sm:$0xff] }
 0x1c7   :  { %5120 = vmatpush1.bf16.msra.mxu1 %v5951_v60  ;;  %4875 = vmatprep.subr.bf16.mxu0 %v5958_v62  ;;  %v371_v60 = vld [vmem:[%s9525_s1 + $0x878] sm:$0xff]  ;;  %v6005_v62 = vcombine.low %v358_v15, %v362_v49  ;;  %v414_v15 = vld [vmem:[%s9525_s1 + $0x9d0] sm:$0xff] }
 0x1c8   :  { %5121 = vmatprep.subr.bf16.mxu1 %v5960_v0  ;;  %v6007_v0 = vcombine.low %v359_v51, %v363_v23  ;;  %v6016_v1 = vcombine.high %v367_v58, %v371_v60  ;;  %v418_v49 = vld [vmem:[%s9525_s1 + $0x9f0] sm:$0xff]  ;;  %v415_v51 = vld [vmem:[%s9525_s1 + $0x9d8] sm:$0xff] }
 0x1c9   :  { %v419_v23 = vld [vmem:[%s9525_s1 + $0x9f8] sm:$0xff] }
 0x1ca   :  { %4876 = vmatpush1.bf16.msra.mxu0 %v5957_v53  ;;  %v375_v53 = vld [vmem:[%s9525_s1 + $0x898] sm:$0xff] }
 0x1cb   :  { %5122 = vmatpush1.bf16.msra.mxu1 %v5959_v5  ;;  %4877 = vmatprep.subr.bf16.mxu0 %v5966_v6  ;;  %v379_v5 = vld [vmem:[%s9525_s1 + $0x8b8] sm:$0xff]  ;;  %v6013_v6 = vcombine.low %v366_v31, %v370_v57  ;;  %v422_v31 = vld [vmem:[%s9525_s1 + $0xa10] sm:$0xff] }
 0x1cc   :  { %5123 = vmatprep.subr.bf16.mxu1 %v5968_v7  ;;  %v6015_v7 = vcombine.low %v367_v58, %v371_v60  ;;  %v6024_v10 = vcombine.high %v375_v53, %v379_v5  ;;  %v426_v57 = vld [vmem:[%s9525_s1 + $0xa30] sm:$0xff]  ;;  %v423_v58 = vld [vmem:[%s9525_s1 + $0xa18] sm:$0xff] }
 0x1cd   :  { %v427_v60 = vld [vmem:[%s9525_s1 + $0xa38] sm:$0xff] }
 0x1ce   :  { %4878 = vmatpush1.bf16.msra.mxu0 %v5965_v59  ;;  %v387_v59 = vld [vmem:[%s9525_s1 + $0x8f8] sm:$0xff] }
 0x1cf   :  { %5124 = vmatpush1.bf16.msra.mxu1 %v5967_v14  ;;  %4879 = vmatprep.subr.bf16.mxu0 %v5974_v16  ;;  %v6021_v14 = vcombine.low %v374_v3, %v378_v4  ;;  %v6023_v16 = vcombine.low %v375_v53, %v379_v5  ;;  %v430_v3 = vld [vmem:[%s9525_s1 + $0xa50] sm:$0xff]  ;;  %v431_v53 = vld [vmem:[%s9525_s1 + $0xa58] sm:$0xff] }
 0x1d0   :  { %5125 = vmatprep.subr.bf16.mxu1 %v5976_v19  ;;  %v6030_v19 = vcombine.high %v382_v12, %v386_v13  ;;  %v434_v4 = vld [vmem:[%s9525_s1 + $0xa70] sm:$0xff]  ;;  %v435_v5 = vld [vmem:[%s9525_s1 + $0xa78] sm:$0xff] }
 0x1d2   :  { %4880 = vmatpush1.bf16.msra.mxu0 %v5973_v26  ;;  %v6029_v26 = vcombine.low %v382_v12, %v386_v13  ;;  %v438_v12 = vld [vmem:[%s9525_s1 + $0xa90] sm:$0xff] }
 0x1d3   :  { %5126 = vmatpush1.bf16.msra.mxu1 %v5975_v27  ;;  %4881 = vmatprep.subr.bf16.mxu0 %v5982_v28  ;;  %v6038_v28 = vcombine.high %v390_v21, %v394_v22  ;;  %v442_v13 = vld [vmem:[%s9525_s1 + $0xab0] sm:$0xff] }
 0x1d4   :  { %5127 = vmatprep.subr.bf16.mxu1 %v5984_v30 }
 0x1d6   :  { %4882 = vmatpush1.bf16.msra.mxu0 %v5981_v36  ;;  %v6037_v36 = vcombine.low %v390_v21, %v394_v22  ;;  %v446_v21 = vld [vmem:[%s9525_s1 + $0xad0] sm:$0xff] }
 0x1d7   :  { %5128 = vmatpush1.bf16.msra.mxu1 %v5983_v54  ;;  %4883 = vmatprep.subr.bf16.mxu0 %v5990_v9  ;;  %v6046_v9 = vcombine.high %v398_v63, %v402_v32  ;;  %v450_v22 = vld [vmem:[%s9525_s1 + $0xaf0] sm:$0xff] }
 0x1d8   :  { %5129 = vmatprep.subr.bf16.mxu1 %v5992_v37  ;;  %v6048_v37 = vcombine.high %v399_v34, %v403_v35 }
 0x1da   :  { %4884 = vmatpush1.bf16.msra.mxu0 %v5989_v45  ;;  %v6045_v45 = vcombine.low %v398_v63, %v402_v32  ;;  %v454_v63 = vld [vmem:[%s9525_s1 + $0xb10] sm:$0xff] }
 0x1db   :  { %5130 = vmatpush1.bf16.msra.mxu1 %v5991_v46  ;;  %4885 = vmatprep.subr.bf16.mxu0 %v5998_v47  ;;  %v6047_v46 = vcombine.low %v399_v34, %v403_v35  ;;  %v6054_v47 = vcombine.high %v406_v39, %v410_v40  ;;  %v458_v32 = vld [vmem:[%s9525_s1 + $0xb30] sm:$0xff]  ;;  %v455_v34 = vld [vmem:[%s9525_s1 + $0xb18] sm:$0xff] }
 0x1dc   :  { %5131 = vmatprep.subr.bf16.mxu1 %v6000_v48  ;;  %v6056_v48 = vcombine.high %v407_v42, %v411_v43  ;;  %v459_v35 = vld [vmem:[%s9525_s1 + $0xb38] sm:$0xff] }
 0x1de   :  { %4886 = vmatpush1.bf16.msra.mxu0 %v5997_v52  ;;  %v6053_v52 = vcombine.low %v406_v39, %v410_v40  ;;  %v462_v39 = vld [vmem:[%s9525_s1 + $0xb50] sm:$0xff] }
 0x1df   :  { %5132 = vmatpush1.bf16.msra.mxu1 %v5999_v55  ;;  %4896 = vmatprep.subr.bf16.mxu0 %v6006_v25  ;;  %v6055_v55 = vcombine.low %v407_v42, %v411_v43  ;;  %v6062_v25 = vcombine.high %v414_v15, %v418_v49  ;;  %v466_v40 = vld [vmem:[%s9525_s1 + $0xb70] sm:$0xff]  ;;  %v463_v42 = vld [vmem:[%s9525_s1 + $0xb58] sm:$0xff] }
 0x1e0   :  { %5142 = vmatprep.subr.bf16.mxu1 %v6008_v56  ;;  %v6064_v56 = vcombine.high %v415_v51, %v419_v23  ;;  %v467_v43 = vld [vmem:[%s9525_s1 + $0xb78] sm:$0xff] }
 0x1e1   :  { %4888 = vmatmul.mubr.bf16.vlgmr.msra.gmra.mrb[4].mxu0 %v7317_v41 }
 0x1e2   :  { %4897 = vmatpush1.bf16.msra.mxu0 %v6005_v62  ;;  %5134 = vmatmul.mubr.bf16.vlgmr.msra.gmra.mrb[4].mxu1 %v7317_v41  ;;  %v383_v41 = vld [vmem:[%s9525_s1 + $0x8d8] sm:$0xff]  ;;  %v6061_v62 = vcombine.low %v414_v15, %v418_v49  ;;  %v470_v15 = vld [vmem:[%s9525_s1 + $0xb90] sm:$0xff] }
 0x1e3   :  { %5143 = vmatpush1.bf16.msra.mxu1 %v6007_v0  ;;  %4898 = vmatprep.subr.bf16.mxu0 %v6014_v33  ;;  %v6032_v20 = vcombine.high %v383_v41, %v387_v59  ;;  %v6031_v27 = vcombine.low %v383_v41, %v387_v59  ;;  %v6063_v0 = vcombine.low %v415_v51, %v419_v23  ;;  %v439_v41 = vld [vmem:[%s9525_s1 + $0xa98] sm:$0xff]  ;;  %v474_v49 = vld [vmem:[%s9525_s1 + $0xbb0] sm:$0xff] }
 0x1e4   :  { %5144 = vmatprep.subr.bf16.mxu1 %v6016_v1  ;;  %4928 = vmatprep.mubr.bf16.mxu0 %v7331_v50  ;;  %v6070_v33 = vcombine.high %v422_v31, %v426_v57  ;;  %v6072_v1 = vcombine.high %v423_v58, %v427_v60  ;;  %v443_v59 = vld [vmem:[%s9525_s1 + $0xab8] sm:$0xff] }
 0x1e5   :  { %5174 = vmatprep.mubr.bf16.mxu1 %v7331_v50  ;;  %v391_v50 = vld [vmem:[%s9525_s1 + $0x918] sm:$0xff] }
 0x1e6   :  { %4899 = vmatpush1.bf16.msra.mxu0 %v6013_v6  ;;  %v6040_v30 = vcombine.high %v391_v50, %v395_v24  ;;  %v6039_v54 = vcombine.low %v391_v50, %v395_v24  ;;  %v6069_v6 = vcombine.low %v422_v31, %v426_v57  ;;  %v447_v50 = vld [vmem:[%s9525_s1 + $0xad8] sm:$0xff]  ;;  %v478_v31 = vld [vmem:[%s9525_s1 + $0xbd0] sm:$0xff] }
 0x1e7   :  { %5145 = vmatpush1.bf16.msra.mxu1 %v6015_v7  ;;  %4900 = vmatprep.subr.bf16.mxu0 %v6022_v8  ;;  %v6071_v7 = vcombine.low %v423_v58, %v427_v60  ;;  %v6078_v8 = vcombine.high %v430_v3, %v434_v4  ;;  %v451_v24 = vld [vmem:[%s9525_s1 + $0xaf8] sm:$0xff]  ;;  %v482_v57 = vld [vmem:[%s9525_s1 + $0xbf0] sm:$0xff] }
 0x1e8   :  { %5146 = vmatprep.subr.bf16.mxu1 %v6024_v10  ;;  %v6080_v10 = vcombine.high %v431_v53, %v435_v5  ;;  %v471_v51 = vld [vmem:[%s9525_s1 + $0xb98] sm:$0xff] }
 0x1e9   :  { %v475_v23 = vld [vmem:[%s9525_s1 + $0xbb8] sm:$0xff] }
 0x1ea   :  { %4901 = vmatpush1.bf16.msra.mxu0 %v6021_v14  ;;  %v6077_v14 = vcombine.low %v430_v3, %v434_v4  ;;  %v479_v58 = vld [vmem:[%s9525_s1 + $0xbd8] sm:$0xff]  ;;  %v486_v3 = vld [vmem:[%s9525_s1 + $0xc10] sm:$0xff] }
 0x1eb   :  { %5147 = vmatpush1.bf16.msra.mxu1 %v6023_v16  ;;  %4902 = vmatprep.subr.bf16.mxu0 %v6030_v19  ;;  %v6079_v16 = vcombine.low %v431_v53, %v435_v5  ;;  %v6086_v19 = vcombine.high %v438_v12, %v442_v13  ;;  %v483_v60 = vld [vmem:[%s9525_s1 + $0xbf8] sm:$0xff]  ;;  %v490_v4 = vld [vmem:[%s9525_s1 + $0xc30] sm:$0xff] }
 0x1ec   :  { %5148 = vmatprep.subr.bf16.mxu1 %v6032_v20  ;;  %v6088_v20 = vcombine.high %v439_v41, %v443_v59  ;;  %v487_v53 = vld [vmem:[%s9525_s1 + $0xc18] sm:$0xff] }
 0x1ed   :  { %v491_v5 = vld [vmem:[%s9525_s1 + $0xc38] sm:$0xff] }
 0x1ee   :  { %4903 = vmatpush1.bf16.msra.mxu0 %v6029_v26  ;;  %v6085_v26 = vcombine.low %v438_v12, %v442_v13  ;;  %v494_v12 = vld [vmem:[%s9525_s1 + $0xc50] sm:$0xff] }
 0x1ef   :  { %5149 = vmatpush1.bf16.msra.mxu1 %v6031_v27  ;;  %4904 = vmatprep.subr.bf16.mxu0 %v6038_v28  ;;  %v6087_v27 = vcombine.low %v439_v41, %v443_v59  ;;  %v6094_v28 = vcombine.high %v446_v21, %v450_v22  ;;  %v498_v13 = vld [vmem:[%s9525_s1 + $0xc70] sm:$0xff]  ;;  %v495_v41 = vld [vmem:[%s9525_s1 + $0xc58] sm:$0xff] }
 0x1f0   :  { %5150 = vmatprep.subr.bf16.mxu1 %v6040_v30  ;;  %v6096_v30 = vcombine.high %v447_v50, %v451_v24  ;;  %v499_v59 = vld [vmem:[%s9525_s1 + $0xc78] sm:$0xff] }
 0x1f2   :  { %4905 = vmatpush1.bf16.msra.mxu0 %v6037_v36  ;;  %v6093_v36 = vcombine.low %v446_v21, %v450_v22  ;;  %v502_v21 = vld [vmem:[%s9525_s1 + $0xc90] sm:$0xff] }
 0x1f3   :  { %5151 = vmatpush1.bf16.msra.mxu1 %v6039_v54  ;;  %4906 = vmatprep.subr.bf16.mxu0 %v6046_v9  ;;  %v6095_v54 = vcombine.low %v447_v50, %v451_v24  ;;  %v6102_v9 = vcombine.high %v454_v63, %v458_v32  ;;  %v506_v22 = vld [vmem:[%s9525_s1 + $0xcb0] sm:$0xff]  ;;  %v503_v50 = vld [vmem:[%s9525_s1 + $0xc98] sm:$0xff] }
 0x1f4   :  { %5152 = vmatprep.subr.bf16.mxu1 %v6048_v37  ;;  %v6104_v37 = vcombine.high %v455_v34, %v459_v35  ;;  %v507_v24 = vld [vmem:[%s9525_s1 + $0xcb8] sm:$0xff] }
 0x1f6   :  { %4907 = vmatpush1.bf16.msra.mxu0 %v6045_v45  ;;  %v6101_v45 = vcombine.low %v454_v63, %v458_v32  ;;  %v510_v63 = vld [vmem:[%s9525_s1 + $0xcd0] sm:$0xff] }
 0x1f7   :  { %5153 = vmatpush1.bf16.msra.mxu1 %v6047_v46  ;;  %4908 = vmatprep.subr.bf16.mxu0 %v6054_v47  ;;  %v6103_v46 = vcombine.low %v455_v34, %v459_v35  ;;  %v6110_v47 = vcombine.high %v462_v39, %v466_v40  ;;  %v514_v32 = vld [vmem:[%s9525_s1 + $0xcf0] sm:$0xff]  ;;  %v515_v34 = vld [vmem:[%s9525_s1 + $0xcf8] sm:$0xff]  ;;  %v6149_v35 = vcombine.low %v502_v21, %v506_v22 }
 0x1f8   :  { %5154 = vmatprep.subr.bf16.mxu1 %v6056_v48  ;;  %v6112_v48 = vcombine.high %v463_v42, %v467_v43 }
 0x1fa   :  { %4909 = vmatpush1.bf16.msra.mxu0 %v6053_v52  ;;  %v6109_v52 = vcombine.low %v462_v39, %v466_v40  ;;  %v522_v39 = vld [vmem:[%s9525_s1 + $0xd30] sm:$0xff]  ;;  %v523_v40 = vld [vmem:[%s9525_s1 + $0xd38] sm:$0xff] }
 0x1fb   :  { %5155 = vmatpush1.bf16.msra.mxu1 %v6055_v55  ;;  %4910 = vmatprep.subr.bf16.mxu0 %v6062_v25  ;;  %v6111_v55 = vcombine.low %v463_v42, %v467_v43  ;;  %v6118_v25 = vcombine.high %v470_v15, %v474_v49  ;;  %v6157_v42 = vcombine.low %v510_v63, %v514_v32 }
 0x1fc   :  { %5156 = vmatprep.subr.bf16.mxu1 %v6064_v56  ;;  %v6120_v56 = vcombine.high %v471_v51, %v475_v23 }
 0x1fe   :  { %4911 = vmatpush1.bf16.msra.mxu0 %v6061_v62  ;;  %v6117_v62 = vcombine.low %v470_v15, %v474_v49  ;;  %v527_v15 = vld [vmem:[%s9525_s1 + $0xd58] sm:$0xff] }
 0x1ff   :  { %5157 = vmatpush1.bf16.msra.mxu1 %v6063_v0  ;;  %4912 = vmatprep.subr.bf16.mxu0 %v6070_v33  ;;  %v6119_v0 = vcombine.low %v471_v51, %v475_v23  ;;  %v6126_v33 = vcombine.high %v478_v31, %v482_v57  ;;  %v531_v49 = vld [vmem:[%s9525_s1 + $0xd78] sm:$0xff] }
 0x200   :  { %5158 = vmatprep.subr.bf16.mxu1 %v6072_v1  ;;  %v6128_v1 = vcombine.high %v479_v58, %v483_v60 }
 0x202   :  { %4913 = vmatpush1.bf16.msra.mxu0 %v6069_v6  ;;  %v6125_v6 = vcombine.low %v478_v31, %v482_v57  ;;  %v535_v31 = vld [vmem:[%s9525_s1 + $0xd98] sm:$0xff] }
 0x203   :  { %5159 = vmatpush1.bf16.msra.mxu1 %v6071_v7  ;;  %4914 = vmatprep.subr.bf16.mxu0 %v6078_v8  ;;  %v6127_v7 = vcombine.low %v479_v58, %v483_v60  ;;  %v6134_v8 = vcombine.high %v486_v3, %v490_v4  ;;  %v539_v57 = vld [vmem:[%s9525_s1 + $0xdb8] sm:$0xff]  ;;  %v6175_v60 = vcombine.low %v527_v15, %v531_v49 }
 0x204   :  { %5160 = vmatprep.subr.bf16.mxu1 %v6080_v10  ;;  %v6136_v10 = vcombine.high %v487_v53, %v491_v5 }
 0x206   :  { %4915 = vmatpush1.bf16.msra.mxu0 %v6077_v14  ;;  %v6133_v14 = vcombine.low %v486_v3, %v490_v4  ;;  %v546_v3 = vld [vmem:[%s9525_s1 + $0xdf0] sm:$0xff] }
 0x207   :  { %5161 = vmatpush1.bf16.msra.mxu1 %v6079_v16  ;;  %4916 = vmatprep.subr.bf16.mxu0 %v6086_v19  ;;  %v6135_v16 = vcombine.low %v487_v53, %v491_v5  ;;  %v6142_v19 = vcombine.high %v494_v12, %v498_v13  ;;  %v543_v5 = vld [vmem:[%s9525_s1 + $0xdd8] sm:$0xff] }
 0x208   :  { %5162 = vmatprep.subr.bf16.mxu1 %v6088_v20  ;;  %v6144_v20 = vcombine.high %v495_v41, %v499_v59 }
 0x20a   :  { %4917 = vmatpush1.bf16.msra.mxu0 %v6085_v26  ;;  %v6141_v26 = vcombine.low %v494_v12, %v498_v13 }
 0x20b   :  { %5163 = vmatpush1.bf16.msra.mxu1 %v6087_v27  ;;  %4918 = vmatprep.subr.bf16.mxu0 %v6094_v28  ;;  %v6143_v27 = vcombine.low %v495_v41, %v499_v59  ;;  %v6150_v28 = vcombine.high %v502_v21, %v506_v22  ;;  %v6183_v41 = vcombine.low %v535_v31, %v539_v57  ;;  %v551_v21 = vld [vmem:[%s9525_s1 + $0xe18] sm:$0xff] }
 0x20c   :  { %5164 = vmatprep.subr.bf16.mxu1 %v6096_v30  ;;  %v6152_v30 = vcombine.high %v503_v50, %v507_v24  ;;  %v555_v22 = vld [vmem:[%s9525_s1 + $0xe38] sm:$0xff] }
 0x20e   :  { %4919 = vmatpush1.bf16.msra.mxu0 %v6093_v36  ;;  %v6151_v36 = vcombine.low %v503_v50, %v507_v24 }
 0x20f   :  { %5165 = vmatpush1.bf16.msra.mxu1 %v6095_v54  ;;  %4920 = vmatprep.subr.bf16.mxu0 %v6102_v9  ;;  %v6158_v54 = vcombine.high %v510_v63, %v514_v32  ;;  %v559_v63 = vld [vmem:[%s9525_s1 + $0xe58] sm:$0xff] }
 0x210   :  { %5166 = vmatprep.subr.bf16.mxu1 %v6104_v37  ;;  %v518_v37 = vld [vmem:[%s9525_s1 + $0xd10] sm:$0xff]  ;;  %v563_v32 = vld [vmem:[%s9525_s1 + $0xe78] sm:$0xff] }
 0x211   :  { %v6165_v51 = vcombine.low %v518_v37, %v522_v39 }
 0x212   :  { %4921 = vmatpush1.bf16.msra.mxu0 %v6101_v45  ;;  %v6166_v45 = vcombine.high %v518_v37, %v522_v39  ;;  %v567_v37 = vld [vmem:[%s9525_s1 + $0xe98] sm:$0xff] }
 0x213   :  { %5167 = vmatpush1.bf16.msra.mxu1 %v6103_v46  ;;  %4922 = vmatprep.subr.bf16.mxu0 %v6110_v47  ;;  %v526_v47 = vld [vmem:[%s9525_s1 + $0xd50] sm:$0xff]  ;;  %v571_v39 = vld [vmem:[%s9525_s1 + $0xeb8] sm:$0xff] }
 0x214   :  { %5168 = vmatprep.subr.bf16.mxu1 %v6112_v48  ;;  %v530_v48 = vld [vmem:[%s9525_s1 + $0xd70] sm:$0xff] }
 0x215   :  { %v6173_v58 = vcombine.low %v526_v47, %v530_v48 }
 0x216   :  { %4923 = vmatpush1.bf16.msra.mxu0 %v6109_v52  ;;  %v6174_v52 = vcombine.high %v526_v47, %v530_v48  ;;  %v575_v47 = vld [vmem:[%s9525_s1 + $0xed8] sm:$0xff] }
 0x217   :  { %5169 = vmatpush1.bf16.msra.mxu1 %v6111_v55  ;;  %4924 = vmatprep.subr.bf16.mxu0 %v6118_v25  ;;  %v6176_v55 = vcombine.high %v527_v15, %v531_v49  ;;  %v534_v25 = vld [vmem:[%s9525_s1 + $0xd90] sm:$0xff]  ;;  %v579_v48 = vld [vmem:[%s9525_s1 + $0xef8] sm:$0xff]  ;;  %v6215_v49 = vcombine.low %v567_v37, %v571_v39 }
 0x218   :  { %5170 = vmatprep.subr.bf16.mxu1 %v6120_v56  ;;  %v538_v56 = vld [vmem:[%s9525_s1 + $0xdb0] sm:$0xff] }
 0x21a   :  { %4925 = vmatpush1.bf16.msra.mxu0 %v6117_v62  ;;  %v6182_v62 = vcombine.high %v534_v25, %v538_v56 }
 0x21b   :  { %5171 = vmatpush1.bf16.msra.mxu1 %v6119_v0  ;;  %4926 = vmatprep.subr.bf16.mxu0 %v6126_v33  ;;  %v6184_v33 = vcombine.high %v535_v31, %v539_v57  ;;  %v6223_v57 = vcombine.low %v575_v47, %v579_v48 }
 0x21c   :  { %5172 = vmatprep.subr.bf16.mxu1 %v6128_v1  ;;  %v542_v1 = vld [vmem:[%s9525_s1 + $0xdd0] sm:$0xff] }
 0x21d   :  { %v6190_v59 = vcombine.high %v542_v1, %v546_v3  ;;  %v6189_v50 = vcombine.low %v542_v1, %v546_v3  ;;  %v591_v1 = vld [vmem:[%s9525_s1 + $0xf58] sm:$0xff] }
 0x21e   :  { %4927 = vmatpush1.bf16.msra.mxu0 %v6125_v6  ;;  %v547_v6 = vld [vmem:[%s9525_s1 + $0xdf8] sm:$0xff] }
 0x21f   :  { %5173 = vmatpush1.bf16.msra.mxu1 %v6127_v7  ;;  %4937 = vmatprep.subr.bf16.mxu0 %v6134_v8  ;;  %v6191_v24 = vcombine.low %v543_v5, %v547_v6  ;;  %v595_v3 = vld [vmem:[%s9525_s1 + $0xf78] sm:$0xff] }
 0x220   :  { %5183 = vmatprep.subr.bf16.mxu1 %v6136_v10  ;;  %v6181_v10 = vcombine.low %v534_v25, %v538_v56  ;;  %v583_v25 = vld [vmem:[%s9525_s1 + $0xf18] sm:$0xff] }
 0x221   :  { %4929 = vmatmul.mubr.bf16.vlgmr.msra.gmra.mrb[4].mxu0 %v7526_v2  ;;  %v587_v56 = vld [vmem:[%s9525_s1 + $0xf38] sm:$0xff] }
 0x222   :  { %4938 = vmatpush1.bf16.msra.mxu0 %v6133_v14  ;;  %5175 = vmatmul.mubr.bf16.vlgmr.msra.gmra.mrb[4].mxu1 %v7526_v2  ;;  %v511_v2 = vld [vmem:[%s9525_s1 + $0xcd8] sm:$0xff] }
 0x223   :  { %5184 = vmatpush1.bf16.msra.mxu1 %v6135_v16  ;;  %4939 = vmatprep.subr.bf16.mxu0 %v6142_v19  ;;  %v6160_v9 = vcombine.high %v511_v2, %v515_v34  ;;  %v6159_v43 = vcombine.low %v511_v2, %v515_v34  ;;  %v6192_v16 = vcombine.high %v543_v5, %v547_v6  ;;  %v550_v19 = vld [vmem:[%s9525_s1 + $0xe10] sm:$0xff] }
 0x224   :  { %5185 = vmatprep.subr.bf16.mxu1 %v6144_v20  ;;  %4969 = vmatprep.mubr.bf16.mxu0 %v7540_v11  ;;  %v554_v20 = vld [vmem:[%s9525_s1 + $0xe30] sm:$0xff]  ;;  %v6199_v34 = vcombine.low %v551_v21, %v555_v22  ;;  %v6231_v6 = vcombine.low %v583_v25, %v587_v56 }
 0x225   :  { %5215 = vmatprep.mubr.bf16.mxu1 %v7540_v11  ;;  %v519_v11 = vld [vmem:[%s9525_s1 + $0xd18] sm:$0xff]  ;;  %v6197_v2 = vcombine.low %v550_v19, %v554_v20 }
 0x226   :  { %4940 = vmatpush1.bf16.msra.mxu0 %v6141_v26  ;;  %v6168_v46 = vcombine.high %v519_v11, %v523_v40  ;;  %v6167_v23 = vcombine.low %v519_v11, %v523_v40  ;;  %v6198_v26 = vcombine.high %v550_v19, %v554_v20  ;;  %v6207_v40 = vcombine.low %v559_v63, %v563_v32 }
 0x227   :  { %5186 = vmatpush1.bf16.msra.mxu1 %v6143_v27  ;;  %4941 = vmatprep.subr.bf16.mxu0 %v6150_v28  ;;  %v6200_v27 = vcombine.high %v551_v21, %v555_v22  ;;  %v558_v28 = vld [vmem:[%s9525_s1 + $0xe50] sm:$0xff] }
 0x228   :  { %5187 = vmatprep.subr.bf16.mxu1 %v6152_v30  ;;  %v562_v30 = vld [vmem:[%s9525_s1 + $0xe70] sm:$0xff] }
 0x229   :  { %v6205_v11 = vcombine.low %v558_v28, %v562_v30  ;;  %v606_v21 = vld [vmem:[%s9525_s1 + $0xfd0] sm:$0xff] }
 0x22a   :  { %4942 = vmatpush1.bf16.msra.mxu0 %v6149_v35  ;;  %v6206_v35 = vcombine.high %v558_v28, %v562_v30  ;;  %v610_v22 = vld [vmem:[%s9525_s1 + $0xff0] sm:$0xff] }
 0x22b   :  { %5188 = vmatpush1.bf16.msra.mxu1 %v6151_v36  ;;  %4943 = vmatprep.subr.bf16.mxu0 %v6158_v54  ;;  %v6208_v36 = vcombine.high %v559_v63, %v563_v32  ;;  %v566_v54 = vld [vmem:[%s9525_s1 + $0xe90] sm:$0xff]  ;;  %v6254_v28 = vcombine.high %v606_v21, %v610_v22 }
 0x22c   :  { %5189 = vmatprep.subr.bf16.mxu1 %v6160_v9  ;;  %v570_v9 = vld [vmem:[%s9525_s1 + $0xeb0] sm:$0xff] }
 0x22d   :  { %v6213_v15 = vcombine.low %v566_v54, %v570_v9  ;;  %v614_v63 = vld [vmem:[%s9525_s1 + $0x1010] sm:$0xff] }
 0x22e   :  { %4944 = vmatpush1.bf16.msra.mxu0 %v6157_v42  ;;  %v6214_v42 = vcombine.high %v566_v54, %v570_v9  ;;  %v618_v32 = vld [vmem:[%s9525_s1 + $0x1030] sm:$0xff] }
 0x22f   :  { %5190 = vmatpush1.bf16.msra.mxu1 %v6159_v43  ;;  %4945 = vmatprep.subr.bf16.mxu0 %v6166_v45  ;;  %v6216_v43 = vcombine.high %v567_v37, %v571_v39  ;;  %v574_v45 = vld [vmem:[%s9525_s1 + $0xed0] sm:$0xff]  ;;  %v6262_v54 = vcombine.high %v614_v63, %v618_v32 }
 0x230   :  { %5191 = vmatprep.subr.bf16.mxu1 %v6168_v46  ;;  %v578_v46 = vld [vmem:[%s9525_s1 + $0xef0] sm:$0xff] }
 0x231   :  { %v6221_v31 = vcombine.low %v574_v45, %v578_v46  ;;  %v622_v37 = vld [vmem:[%s9525_s1 + $0x1050] sm:$0xff] }
 0x232   :  { %4946 = vmatpush1.bf16.msra.mxu0 %v6165_v51  ;;  %v6222_v51 = vcombine.high %v574_v45, %v578_v46  ;;  %v626_v39 = vld [vmem:[%s9525_s1 + $0x1070] sm:$0xff] }
 0x233   :  { %5192 = vmatpush1.bf16.msra.mxu1 %v6167_v23  ;;  %4947 = vmatprep.subr.bf16.mxu0 %v6174_v52  ;;  %v6224_v23 = vcombine.high %v575_v47, %v579_v48  ;;  %v582_v52 = vld [vmem:[%s9525_s1 + $0xf10] sm:$0xff]  ;;  %v6270_v45 = vcombine.high %v622_v37, %v626_v39 }
 0x234   :  { %v8696_v0 = vpop.f32.mrb[0].mxu0  ;;  %5193 = vmatprep.subr.bf16.mxu1 %v6176_v55  ;;  %v586_v55 = vld [vmem:[%s9525_s1 + $0xf30] sm:$0xff] }
 0x235   :  { %v8704_v4 = vpop.f32.mrb[0].mxu1  ;;  %v8706_v53 = vpop.f32.mrb[1].mxu0  ;;  %v6229_v5 = vcombine.low %v582_v52, %v586_v55  ;;  %v630_v47 = vld [vmem:[%s9525_s1 + $0x1090] sm:$0xff] }
 0x236   :  { %v8714_v7 = vpop.f32.mrb[1].mxu1  ;;  %v4565_v8 = vpop.f32.mrb[2].mxu0  ;;  %4948 = vmatpush1.bf16.msra.mxu0 %v6173_v58  ;;  %v6230_v58 = vcombine.high %v582_v52, %v586_v55  ;;  %v634_v48 = vld [vmem:[%s9525_s1 + $0x10b0] sm:$0xff] }
 0x237   :  { %v4811_v12 = vpop.f32.mrb[2].mxu1  ;;  %5194 = vmatpush1.bf16.msra.mxu1 %v6175_v60  ;;  %v4566_v13 = vpop.f32.mrb[3].mxu0  ;;  %4949 = vmatprep.subr.bf16.mxu0 %v6182_v62  ;;  %v6232_v60 = vcombine.high %v583_v25, %v587_v56  ;;  %v590_v62 = vld [vmem:[%s9525_s1 + $0xf50] sm:$0xff]  ;;  %v6278_v52 = vcombine.high %v630_v47, %v634_v48 }
 0x238   :  { %v4812_v14 = vpop.f32.mrb[3].mxu1  ;;  %5195 = vmatprep.subr.bf16.mxu1 %v6184_v33  ;;  %v594_v33 = vld [vmem:[%s9525_s1 + $0xf70] sm:$0xff] }
 0x239   :  { %v6238_v8 = vcombine.high %v590_v62, %v594_v33  ;;  %v598_v12 = vld [vmem:[%s9525_s1 + $0xf90] sm:$0xff]  ;;  %v6237_v14 = vcombine.low %v590_v62, %v594_v33 }
 0x23a   :  { %4950 = vmatpush1.bf16.msra.mxu0 %v6181_v10  ;;  %v6240_v10 = vcombine.high %v591_v1, %v595_v3  ;;  %v602_v13 = vld [vmem:[%s9525_s1 + $0xfb0] sm:$0xff] }
 0x23b   :  { %5196 = vmatpush1.bf16.msra.mxu1 %v6183_v41  ;;  %4951 = vmatprep.subr.bf16.mxu0 %v6190_v59  ;;  %v599_v41 = vld [vmem:[%s9525_s1 + $0xf98] sm:$0xff]  ;;  %v6246_v19 = vcombine.high %v598_v12, %v602_v13  ;;  %v638_v25 = vld [vmem:[%s9525_s1 + $0x10d0] sm:$0xff] }
 0x23c   :  { %5197 = vmatprep.subr.bf16.mxu1 %v6192_v16  ;;  %v603_v59 = vld [vmem:[%s9525_s1 + $0xfb8] sm:$0xff]  ;;  %v6239_v16 = vcombine.low %v591_v1, %v595_v3  ;;  %v642_v56 = vld [vmem:[%s9525_s1 + $0x10f0] sm:$0xff] }
 0x23d   :  { %v6248_v20 = vcombine.high %v599_v41, %v603_v59  ;;  %v646_v33 = vld [vmem:[%s9525_s1 + $0x1110] sm:$0xff]  ;;  %v651_v3 = vld [vmem:[%s9525_s1 + $0x1138] sm:$0xff] }
 0x23e   :  { %4952 = vmatpush1.bf16.msra.mxu0 %v6189_v50  ;;  %v607_v50 = vld [vmem:[%s9525_s1 + $0xfd8] sm:$0xff]  ;;  %v650_v1 = vld [vmem:[%s9525_s1 + $0x1130] sm:$0xff] }
 0x23f   :  { %5198 = vmatpush1.bf16.msra.mxu1 %v6191_v24  ;;  %4953 = vmatprep.subr.bf16.mxu0 %v6198_v26  ;;  %v611_v24 = vld [vmem:[%s9525_s1 + $0xff8] sm:$0xff]  ;;  %v6245_v26 = vcombine.low %v598_v12, %v602_v13  ;;  %v654_v12 = vld [vmem:[%s9525_s1 + $0x1150] sm:$0xff] }
 0x240   :  { %5199 = vmatprep.subr.bf16.mxu1 %v6200_v27  ;;  %v6247_v27 = vcombine.low %v599_v41, %v603_v59  ;;  %v6256_v30 = vcombine.high %v607_v50, %v611_v24  ;;  %v658_v13 = vld [vmem:[%s9525_s1 + $0x1170] sm:$0xff]  ;;  %v655_v41 = vld [vmem:[%s9525_s1 + $0x1158] sm:$0xff] }
 0x241   :  { %v659_v59 = vld [vmem:[%s9525_s1 + $0x1178] sm:$0xff] }
 0x242   :  { %4954 = vmatpush1.bf16.msra.mxu0 %v6197_v2  ;;  %v615_v2 = vld [vmem:[%s9525_s1 + $0x1018] sm:$0xff] }
 0x243   :  { %5200 = vmatpush1.bf16.msra.mxu1 %v6199_v34  ;;  %4955 = vmatprep.subr.bf16.mxu0 %v6206_v35  ;;  %v619_v34 = vld [vmem:[%s9525_s1 + $0x1038] sm:$0xff]  ;;  %v6253_v35 = vcombine.low %v606_v21, %v610_v22  ;;  %v662_v21 = vld [vmem:[%s9525_s1 + $0x1190] sm:$0xff] }
 0x244   :  { %5201 = vmatprep.subr.bf16.mxu1 %v6208_v36  ;;  %v6255_v36 = vcombine.low %v607_v50, %v611_v24  ;;  %v6264_v9 = vcombine.high %v615_v2, %v619_v34  ;;  %v666_v22 = vld [vmem:[%s9525_s1 + $0x11b0] sm:$0xff]  ;;  %v663_v50 = vld [vmem:[%s9525_s1 + $0x1198] sm:$0xff] }
 0x245   :  { %v667_v24 = vld [vmem:[%s9525_s1 + $0x11b8] sm:$0xff] }
 0x246   :  { %4956 = vmatpush1.bf16.msra.mxu0 %v6205_v11  ;;  %v623_v11 = vld [vmem:[%s9525_s1 + $0x1058] sm:$0xff] }
 0x247   :  { %5202 = vmatpush1.bf16.msra.mxu1 %v6207_v40  ;;  %4957 = vmatprep.subr.bf16.mxu0 %v6214_v42  ;;  %v627_v40 = vld [vmem:[%s9525_s1 + $0x1078] sm:$0xff]  ;;  %v6261_v42 = vcombine.low %v614_v63, %v618_v32  ;;  %v670_v63 = vld [vmem:[%s9525_s1 + $0x11d0] sm:$0xff] }
 0x248   :  { %5203 = vmatprep.subr.bf16.mxu1 %v6216_v43  ;;  %v6263_v43 = vcombine.low %v615_v2, %v619_v34  ;;  %v6272_v46 = vcombine.high %v623_v11, %v627_v40  ;;  %v674_v32 = vld [vmem:[%s9525_s1 + $0x11f0] sm:$0xff]  ;;  %v671_v2 = vld [vmem:[%s9525_s1 + $0x11d8] sm:$0xff] }
 0x249   :  { %v675_v34 = vld [vmem:[%s9525_s1 + $0x11f8] sm:$0xff] }
 0x24a   :  { %4958 = vmatpush1.bf16.msra.mxu0 %v6213_v15  ;;  %v631_v15 = vld [vmem:[%s9525_s1 + $0x1098] sm:$0xff] }
 0x24b   :  { %5204 = vmatpush1.bf16.msra.mxu1 %v6215_v49  ;;  %4959 = vmatprep.subr.bf16.mxu0 %v6222_v51  ;;  %v635_v49 = vld [vmem:[%s9525_s1 + $0x10b8] sm:$0xff]  ;;  %v6269_v51 = vcombine.low %v622_v37, %v626_v39  ;;  %v678_v37 = vld [vmem:[%s9525_s1 + $0x1210] sm:$0xff] }
 0x24c   :  { %5205 = vmatprep.subr.bf16.mxu1 %v6224_v23  ;;  %v6271_v23 = vcombine.low %v623_v11, %v627_v40  ;;  %v6280_v55 = vcombine.high %v631_v15, %v635_v49  ;;  %v682_v39 = vld [vmem:[%s9525_s1 + $0x1230] sm:$0xff]  ;;  %v679_v11 = vld [vmem:[%s9525_s1 + $0x1218] sm:$0xff] }
 0x24d   :  { %v683_v40 = vld [vmem:[%s9525_s1 + $0x1238] sm:$0xff] }
 0x24e   :  { %4960 = vmatpush1.bf16.msra.mxu0 %v6221_v31  ;;  %v643_v31 = vld [vmem:[%s9525_s1 + $0x10f8] sm:$0xff] }
 0x24f   :  { %5206 = vmatpush1.bf16.msra.mxu1 %v6223_v57  ;;  %4961 = vmatprep.subr.bf16.mxu0 %v6230_v58  ;;  %v6277_v57 = vcombine.low %v630_v47, %v634_v48  ;;  %v6279_v58 = vcombine.low %v631_v15, %v635_v49  ;;  %v686_v47 = vld [vmem:[%s9525_s1 + $0x1250] sm:$0xff]  ;;  %v687_v15 = vld [vmem:[%s9525_s1 + $0x1258] sm:$0xff] }
 0x250   :  { %5207 = vmatprep.subr.bf16.mxu1 %v6232_v60  ;;  %v6286_v60 = vcombine.high %v638_v25, %v642_v56  ;;  %v690_v48 = vld [vmem:[%s9525_s1 + $0x1270] sm:$0xff]  ;;  %v691_v49 = vld [vmem:[%s9525_s1 + $0x1278] sm:$0xff] }
 0x252   :  { %4962 = vmatpush1.bf16.msra.mxu0 %v6229_v5  ;;  %v6285_v5 = vcombine.low %v638_v25, %v642_v56  ;;  %v694_v25 = vld [vmem:[%s9525_s1 + $0x1290] sm:$0xff] }
 0x253   :  { %5208 = vmatpush1.bf16.msra.mxu1 %v6231_v6  ;;  %4963 = vmatprep.subr.bf16.mxu0 %v6238_v8  ;;  %v6294_v8 = vcombine.high %v646_v33, %v650_v1  ;;  %v698_v56 = vld [vmem:[%s9525_s1 + $0x12b0] sm:$0xff] }
 0x254   :  { %5209 = vmatprep.subr.bf16.mxu1 %v6240_v10 }
 0x256   :  { %4964 = vmatpush1.bf16.msra.mxu0 %v6237_v14  ;;  %v6293_v14 = vcombine.low %v646_v33, %v650_v1  ;;  %v702_v33 = vld [vmem:[%s9525_s1 + $0x12d0] sm:$0xff] }
 0x257   :  { %5210 = vmatpush1.bf16.msra.mxu1 %v6239_v16  ;;  %4965 = vmatprep.subr.bf16.mxu0 %v6246_v19  ;;  %v6302_v19 = vcombine.high %v654_v12, %v658_v13  ;;  %v706_v1 = vld [vmem:[%s9525_s1 + $0x12f0] sm:$0xff] }
 0x258   :  { %5211 = vmatprep.subr.bf16.mxu1 %v6248_v20  ;;  %v6304_v20 = vcombine.high %v655_v41, %v659_v59 }
 0x25a   :  { %4966 = vmatpush1.bf16.msra.mxu0 %v6245_v26  ;;  %v6301_v26 = vcombine.low %v654_v12, %v658_v13  ;;  %v710_v12 = vld [vmem:[%s9525_s1 + $0x1310] sm:$0xff] }
 0x25b   :  { %5212 = vmatpush1.bf16.msra.mxu1 %v6247_v27  ;;  %4967 = vmatprep.subr.bf16.mxu0 %v6254_v28  ;;  %v6303_v27 = vcombine.low %v655_v41, %v659_v59  ;;  %v6310_v28 = vcombine.high %v662_v21, %v666_v22  ;;  %v714_v13 = vld [vmem:[%s9525_s1 + $0x1330] sm:$0xff]  ;;  %v711_v41 = vld [vmem:[%s9525_s1 + $0x1318] sm:$0xff] }
 0x25c   :  { %5213 = vmatprep.subr.bf16.mxu1 %v6256_v30  ;;  %v6312_v30 = vcombine.high %v663_v50, %v667_v24  ;;  %v715_v59 = vld [vmem:[%s9525_s1 + $0x1338] sm:$0xff] }
 0x25e   :  { %4968 = vmatpush1.bf16.msra.mxu0 %v6253_v35  ;;  %v6309_v35 = vcombine.low %v662_v21, %v666_v22  ;;  %v718_v21 = vld [vmem:[%s9525_s1 + $0x1350] sm:$0xff] }
 0x25f   :  { %5214 = vmatpush1.bf16.msra.mxu1 %v6255_v36  ;;  %4978 = vmatprep.subr.bf16.mxu0 %v6262_v54  ;;  %v6311_v36 = vcombine.low %v663_v50, %v667_v24  ;;  %v6318_v54 = vcombine.high %v670_v63, %v674_v32  ;;  %v722_v22 = vld [vmem:[%s9525_s1 + $0x1370] sm:$0xff]  ;;  %v719_v50 = vld [vmem:[%s9525_s1 + $0x1358] sm:$0xff] }
 0x260   :  { %5224 = vmatprep.subr.bf16.mxu1 %v6264_v9  ;;  %v6320_v9 = vcombine.high %v671_v2, %v675_v34  ;;  %v723_v24 = vld [vmem:[%s9525_s1 + $0x1378] sm:$0xff] }
 0x261   :  { %4970 = vmatmul.mubr.bf16.vlgmr.msra.gmra.mrb[4].mxu0 %v7739_v29 }
 0x262   :  { %4979 = vmatpush1.bf16.msra.mxu0 %v6261_v42  ;;  %5216 = vmatmul.mubr.bf16.vlgmr.msra.gmra.mrb[4].mxu1 %v7739_v29  ;;  %v639_v29 = vld [vmem:[%s9525_s1 + $0x10d8] sm:$0xff]  ;;  %v6317_v42 = vcombine.low %v670_v63, %v674_v32  ;;  %v726_v63 = vld [vmem:[%s9525_s1 + $0x1390] sm:$0xff] }
 0x263   :  { %5225 = vmatpush1.bf16.msra.mxu1 %v6263_v43  ;;  %4980 = vmatprep.subr.bf16.mxu0 %v6270_v45  ;;  %v6288_v62 = vcombine.high %v639_v29, %v643_v31  ;;  %v6287_v6 = vcombine.low %v639_v29, %v643_v31  ;;  %v6319_v43 = vcombine.low %v671_v2, %v675_v34  ;;  %v695_v29 = vld [vmem:[%s9525_s1 + $0x1298] sm:$0xff]  ;;  %v730_v32 = vld [vmem:[%s9525_s1 + $0x13b0] sm:$0xff] }
 0x264   :  { %5226 = vmatprep.subr.bf16.mxu1 %v6272_v46  ;;  %5010 = vmatprep.mubr.bf16.mxu0 %v7753_v38  ;;  %v6326_v45 = vcombine.high %v678_v37, %v682_v39  ;;  %v6328_v46 = vcombine.high %v679_v11, %v683_v40  ;;  %v699_v31 = vld [vmem:[%s9525_s1 + $0x12b8] sm:$0xff] }
 0x265   :  { %5256 = vmatprep.mubr.bf16.mxu1 %v7753_v38  ;;  %v647_v38 = vld [vmem:[%s9525_s1 + $0x1118] sm:$0xff] }
 0x266   :  { %4981 = vmatpush1.bf16.msra.mxu0 %v6269_v51  ;;  %v6296_v10 = vcombine.high %v647_v38, %v651_v3  ;;  %v6295_v16 = vcombine.low %v647_v38, %v651_v3  ;;  %v6325_v51 = vcombine.low %v678_v37, %v682_v39  ;;  %v703_v38 = vld [vmem:[%s9525_s1 + $0x12d8] sm:$0xff]  ;;  %v734_v37 = vld [vmem:[%s9525_s1 + $0x13d0] sm:$0xff] }
 0x267   :  { %5227 = vmatpush1.bf16.msra.mxu1 %v6271_v23  ;;  %4982 = vmatprep.subr.bf16.mxu0 %v6278_v52  ;;  %v6327_v23 = vcombine.low %v679_v11, %v683_v40  ;;  %v6334_v52 = vcombine.high %v686_v47, %v690_v48  ;;  %v707_v3 = vld [vmem:[%s9525_s1 + $0x12f8] sm:$0xff]  ;;  %v738_v39 = vld [vmem:[%s9525_s1 + $0x13f0] sm:$0xff] }
 0x268   :  { %5228 = vmatprep.subr.bf16.mxu1 %v6280_v55  ;;  %v6336_v55 = vcombine.high %v687_v15, %v691_v49  ;;  %v727_v2 = vld [vmem:[%s9525_s1 + $0x1398] sm:$0xff] }
 0x269   :  { %v731_v34 = vld [vmem:[%s9525_s1 + $0x13b8] sm:$0xff] }
 0x26a   :  { %4983 = vmatpush1.bf16.msra.mxu0 %v6277_v57  ;;  %v6333_v57 = vcombine.low %v686_v47, %v690_v48  ;;  %v735_v11 = vld [vmem:[%s9525_s1 + $0x13d8] sm:$0xff]  ;;  %v742_v47 = vld [vmem:[%s9525_s1 + $0x1410] sm:$0xff] }
 0x26b   :  { %5229 = vmatpush1.bf16.msra.mxu1 %v6279_v58  ;;  %4984 = vmatprep.subr.bf16.mxu0 %v6286_v60  ;;  %v6335_v58 = vcombine.low %v687_v15, %v691_v49  ;;  %v6342_v60 = vcombine.high %v694_v25, %v698_v56  ;;  %v739_v40 = vld [vmem:[%s9525_s1 + $0x13f8] sm:$0xff]  ;;  %v746_v48 = vld [vmem:[%s9525_s1 + $0x1430] sm:$0xff] }
 0x26c   :  { %5230 = vmatprep.subr.bf16.mxu1 %v6288_v62  ;;  %v6344_v62 = vcombine.high %v695_v29, %v699_v31  ;;  %v743_v15 = vld [vmem:[%s9525_s1 + $0x1418] sm:$0xff] }
 0x26d   :  { %v747_v49 = vld [vmem:[%s9525_s1 + $0x1438] sm:$0xff] }
 0x26e   :  { %4985 = vmatpush1.bf16.msra.mxu0 %v6285_v5  ;;  %v6341_v5 = vcombine.low %v694_v25, %v698_v56  ;;  %v750_v25 = vld [vmem:[%s9525_s1 + $0x1450] sm:$0xff] }
 0x26f   :  { %5231 = vmatpush1.bf16.msra.mxu1 %v6287_v6  ;;  %4986 = vmatprep.subr.bf16.mxu0 %v6294_v8  ;;  %v6343_v6 = vcombine.low %v695_v29, %v699_v31  ;;  %v6350_v8 = vcombine.high %v702_v33, %v706_v1  ;;  %v754_v56 = vld [vmem:[%s9525_s1 + $0x1470] sm:$0xff]  ;;  %v751_v29 = vld [vmem:[%s9525_s1 + $0x1458] sm:$0xff] }
 0x270   :  { %5232 = vmatprep.subr.bf16.mxu1 %v6296_v10  ;;  %v6352_v10 = vcombine.high %v703_v38, %v707_v3  ;;  %v755_v31 = vld [vmem:[%s9525_s1 + $0x1478] sm:$0xff] }
 0x272   :  { %4987 = vmatpush1.bf16.msra.mxu0 %v6293_v14  ;;  %v6349_v14 = vcombine.low %v702_v33, %v706_v1  ;;  %v758_v33 = vld [vmem:[%s9525_s1 + $0x1490] sm:$0xff] }
 0x273   :  { %5233 = vmatpush1.bf16.msra.mxu1 %v6295_v16  ;;  %4988 = vmatprep.subr.bf16.mxu0 %v6302_v19  ;;  %v6351_v16 = vcombine.low %v703_v38, %v707_v3  ;;  %v6358_v19 = vcombine.high %v710_v12, %v714_v13  ;;  %v762_v1 = vld [vmem:[%s9525_s1 + $0x14b0] sm:$0xff]  ;;  %v759_v38 = vld [vmem:[%s9525_s1 + $0x1498] sm:$0xff] }
 0x274   :  { %5234 = vmatprep.subr.bf16.mxu1 %v6304_v20  ;;  %v6360_v20 = vcombine.high %v711_v41, %v715_v59  ;;  %v763_v3 = vld [vmem:[%s9525_s1 + $0x14b8] sm:$0xff] }
 0x276   :  { %4989 = vmatpush1.bf16.msra.mxu0 %v6301_v26  ;;  %v6357_v26 = vcombine.low %v710_v12, %v714_v13  ;;  %v766_v12 = vld [vmem:[%s9525_s1 + $0x14d0] sm:$0xff] }
 0x277   :  { %5235 = vmatpush1.bf16.msra.mxu1 %v6303_v27  ;;  %4990 = vmatprep.subr.bf16.mxu0 %v6310_v28  ;;  %v6359_v27 = vcombine.low %v711_v41, %v715_v59  ;;  %v6366_v28 = vcombine.high %v718_v21, %v722_v22  ;;  %v770_v13 = vld [vmem:[%s9525_s1 + $0x14f0] sm:$0xff]  ;;  %v771_v41 = vld [vmem:[%s9525_s1 + $0x14f8] sm:$0xff]  ;;  %v6405_v59 = vcombine.low %v758_v33, %v762_v1 }
 0x278   :  { %5236 = vmatprep.subr.bf16.mxu1 %v6312_v30  ;;  %v6368_v30 = vcombine.high %v719_v50, %v723_v24 }
 0x27a   :  { %4991 = vmatpush1.bf16.msra.mxu0 %v6309_v35  ;;  %v6365_v35 = vcombine.low %v718_v21, %v722_v22  ;;  %v778_v21 = vld [vmem:[%s9525_s1 + $0x1530] sm:$0xff]  ;;  %v779_v22 = vld [vmem:[%s9525_s1 + $0x1538] sm:$0xff] }
 0x27b   :  { %5237 = vmatpush1.bf16.msra.mxu1 %v6311_v36  ;;  %4992 = vmatprep.subr.bf16.mxu0 %v6318_v54  ;;  %v6367_v36 = vcombine.low %v719_v50, %v723_v24  ;;  %v6374_v54 = vcombine.high %v726_v63, %v730_v32  ;;  %v6413_v50 = vcombine.low %v766_v12, %v770_v13 }
 0x27c   :  { %5238 = vmatprep.subr.bf16.mxu1 %v6320_v9  ;;  %v6376_v9 = vcombine.high %v727_v2, %v731_v34 }
 0x27e   :  { %4993 = vmatpush1.bf16.msra.mxu0 %v6317_v42  ;;  %v6373_v42 = vcombine.low %v726_v63, %v730_v32  ;;  %v783_v63 = vld [vmem:[%s9525_s1 + $0x1558] sm:$0xff] }
 0x27f   :  { %5239 = vmatpush1.bf16.msra.mxu1 %v6319_v43  ;;  %4994 = vmatprep.subr.bf16.mxu0 %v6326_v45  ;;  %v6375_v43 = vcombine.low %v727_v2, %v731_v34  ;;  %v6382_v45 = vcombine.high %v734_v37, %v738_v39  ;;  %v787_v32 = vld [vmem:[%s9525_s1 + $0x1578] sm:$0xff] }
 0x280   :  { %5240 = vmatprep.subr.bf16.mxu1 %v6328_v46  ;;  %v6384_v46 = vcombine.high %v735_v11, %v739_v40 }
 0x282   :  { %4995 = vmatpush1.bf16.msra.mxu0 %v6325_v51  ;;  %v6381_v51 = vcombine.low %v734_v37, %v738_v39  ;;  %v804_v37 = vsub.s32 1, %v6931_v44  ;;  %v791_v39 = vld [vmem:[%s9525_s1 + $0x1598] sm:$0xff] }
 0x283   :  { %5241 = vmatpush1.bf16.msra.mxu1 %v6327_v23  ;;  %4996 = vmatprep.subr.bf16.mxu0 %v6334_v52  ;;  %v6383_v23 = vcombine.low %v735_v11, %v739_v40  ;;  %v6390_v52 = vcombine.high %v742_v47, %v746_v48  ;;  %v795_v11 = vld [vmem:[%s9525_s1 + $0x15b8] sm:$0xff]  ;;  %v9100_v40 = vld [vmem:[%s9526_s2] sm:$0xff] }
 0x284   :  { %5242 = vmatprep.subr.bf16.mxu1 %v6336_v55  ;;  %v6392_v55 = vcombine.high %v743_v15, %v747_v49 }
 0x286   :  { %4997 = vmatpush1.bf16.msra.mxu0 %v6333_v57  ;;  %v6389_v57 = vcombine.low %v742_v47, %v746_v48  ;;  %v6440_v47 = vcombine.high %v791_v39, %v795_v11  ;;  %v5330_v48 = vld [vmem:[%s9527_s3 + $0x80] sm:$0xff] }
 0x287   :  { %5243 = vmatpush1.bf16.msra.mxu1 %v6335_v58  ;;  %4998 = vmatprep.subr.bf16.mxu0 %v6342_v60  ;;  %v6391_v58 = vcombine.low %v743_v15, %v747_v49  ;;  %v6398_v60 = vcombine.high %v750_v25, %v754_v56  ;;  %v5331_v15 = vld [vmem:[%s9527_s3 + $0x88] sm:$0xff]  ;;  %v805_v49 = vrot.slane %v9100_v40, %v804_v37 }
 0x288   :  { %5244 = vmatprep.subr.bf16.mxu1 %v6344_v62  ;;  %v6400_v62 = vcombine.high %v751_v29, %v755_v31 }
 0x28a   :  { %4999 = vmatpush1.bf16.msra.mxu0 %v6341_v5  ;;  %v6397_v5 = vcombine.low %v750_v25, %v754_v56  ;;  %v6439_v25 = vcombine.low %v791_v39, %v795_v11  ;;  %v6586_v56 = vpack.c.bf16 %v5331_v15, %v5330_v48  ;;  %v5353_v39 = vld [vmem:[%s9527_s3 + $0x138] sm:$0xff]  ;;  %v5338_v11 = vld [vmem:[%s9527_s3 + $0xc0] sm:$0xff] }
 0x28b   :  { %5245 = vmatpush1.bf16.msra.mxu1 %v6343_v6  ;;  %5000 = vmatprep.subr.bf16.mxu0 %v6350_v8  ;;  %v6399_v6 = vcombine.low %v751_v29, %v755_v31  ;;  %v6406_v8 = vcombine.high %v758_v33, %v762_v1  ;;  %v5314_v29 = vld [vmem:[%s9527_s3] sm:$0xff]  ;;  %v5315_v31 = vld [vmem:[%s9527_s3 + $0x8] sm:$0xff]  ;;  %v5332_v33 = vld [vmem:[%s9527_s3 + $0x90] sm:$0xff] }
 0x28c   :  { %5246 = vmatprep.subr.bf16.mxu1 %v6352_v10  ;;  %v6408_v10 = vcombine.high %v759_v38, %v763_v3  ;;  %v5333_v1 = vld [vmem:[%s9527_s3 + $0x98] sm:$0xff]  ;;  %v5322_v15 = vld [vmem:[%s9527_s3 + $0x40] sm:$0xff] }
 0x28e   :  { %5001 = vmatpush1.bf16.msra.mxu0 %v6349_v14  ;;  %v6407_v14 = vcombine.low %v759_v38, %v763_v3  ;;  %v6588_v3 = vpack.c.bf16 %v5315_v31, %v5314_v29  ;;  %v5373_v29 = vld [vmem:[%s9527_s3 + $0x1d8] sm:$0xff] }
 0x28f   :  { %5247 = vmatpush1.bf16.msra.mxu1 %v6351_v16  ;;  %5002 = vmatprep.subr.bf16.mxu0 %v6358_v19  ;;  %v6414_v16 = vcombine.high %v766_v12, %v770_v13  ;;  %v6590_v12 = vpack.c.bf16 %v5333_v1, %v5332_v33  ;;  %v5349_v13 = vld [vmem:[%s9527_s3 + $0x118] sm:$0xff]  ;;  %v5356_v33 = vld [vmem:[%s9527_s3 + $0x150] sm:$0xff] }
 0x290   :  { %5248 = vmatprep.subr.bf16.mxu1 %v6360_v20  ;;  %v774_v20 = vld [vmem:[%s9525_s1 + $0x1510] sm:$0xff] }
 0x291   :  { %v6421_v2 = vcombine.low %v774_v20, %v778_v21 }
 0x292   :  { %5003 = vmatpush1.bf16.msra.mxu0 %v6357_v26  ;;  %v6422_v26 = vcombine.high %v774_v20, %v778_v21 }
 0x293   :  { %5249 = vmatpush1.bf16.msra.mxu1 %v6359_v27  ;;  %5004 = vmatprep.subr.bf16.mxu0 %v6366_v28  ;;  %v782_v28 = vld [vmem:[%s9525_s1 + $0x1550] sm:$0xff] }
 0x294   :  { %5250 = vmatprep.subr.bf16.mxu1 %v6368_v30  ;;  %v786_v30 = vld [vmem:[%s9525_s1 + $0x1570] sm:$0xff] }
 0x296   :  { %5005 = vmatpush1.bf16.msra.mxu0 %v6365_v35  ;;  %v6430_v35 = vcombine.high %v782_v28, %v786_v30 }
 0x297   :  { %5251 = vmatpush1.bf16.msra.mxu1 %v6367_v36  ;;  %5006 = vmatprep.subr.bf16.mxu0 %v6374_v54  ;;  %v6432_v36 = vcombine.high %v783_v63, %v787_v32  ;;  %v790_v54 = vld [vmem:[%s9525_s1 + $0x1590] sm:$0xff] }
 0x298   :  { %5252 = vmatprep.subr.bf16.mxu1 %v6376_v9  ;;  %v794_v9 = vld [vmem:[%s9525_s1 + $0x15b0] sm:$0xff] }
 0x29a   :  { %5007 = vmatpush1.bf16.msra.mxu0 %v6373_v42  ;;  %v812_v42 = vsub.s32 3, %v6931_v44 }
 0x29b   :  { %5253 = vmatpush1.bf16.msra.mxu1 %v6375_v43  ;;  %5008 = vmatprep.subr.bf16.mxu0 %v6382_v45  ;;  %v6429_v43 = vcombine.low %v782_v28, %v786_v30  ;;  %v6431_v45 = vcombine.low %v783_v63, %v787_v32  ;;  %v5336_v28 = vld [vmem:[%s9527_s3 + $0xb0] sm:$0xff]  ;;  %v5337_v30 = vld [vmem:[%s9527_s3 + $0xb8] sm:$0xff] }
 0x29c   :  { %5254 = vmatprep.subr.bf16.mxu1 %v6384_v46  ;;  %v6438_v46 = vcombine.high %v790_v54, %v794_v9  ;;  %v5368_v63 = vld [vmem:[%s9527_s3 + $0x1b0] sm:$0xff]  ;;  %v5369_v32 = vld [vmem:[%s9527_s3 + $0x1b8] sm:$0xff] }
 0x29d   :  { %v6630_v37 = vpack.c.bf16 %v5369_v32, %v5368_v63  ;;  %v5361_v32 = vld [vmem:[%s9527_s3 + $0x178] sm:$0xff] }
 0x29e   :  { %5009 = vmatpush1.bf16.msra.mxu0 %v6381_v51  ;;  %v5362_v51 = vld [vmem:[%s9527_s3 + $0x180] sm:$0xff] }
 0x29f   :  { %5255 = vmatpush1.bf16.msra.mxu1 %v6383_v23  ;;  %5019 = vmatprep.subr.bf16.mxu0 %v6390_v52  ;;  %v5363_v23 = vld [vmem:[%s9527_s3 + $0x188] sm:$0xff]  ;;  %v813_v52 = vrot.slane %v9100_v40, %v812_v42 }
 0x2a0   :  { %5265 = vmatprep.subr.bf16.mxu1 %v6392_v55  ;;  %v6437_v55 = vcombine.low %v790_v54, %v794_v9  ;;  %v5321_v54 = vld [vmem:[%s9527_s3 + $0x38] sm:$0xff]  ;;  %v5352_v9 = vld [vmem:[%s9527_s3 + $0x130] sm:$0xff]  ;;  %v5339_v42 = vld [vmem:[%s9527_s3 + $0xc8] sm:$0xff] }
 0x2a1   :  { %5011 = vmatmul.mubr.bf16.vlgmr.msra.gmra.mrb[4].mxu0 %v7941_v61  ;;  %v6717_v38 = vadd.f32 %v8714_v7, %v813_v52  ;;  %v5317_v7 = vld [vmem:[%s9527_s3 + $0x18] sm:$0xff]  ;;  %v6602_v48 = vpack.c.bf16 %v5339_v42, %v5338_v11  ;;  %v5355_v52 = vld [vmem:[%s9527_s3 + $0x148] sm:$0xff]  ;;  %v5378_v11 = vld [vmem:[%s9527_s3 + $0x200] sm:$0xff] }
 0x2a2   :  { %5020 = vmatpush1.bf16.msra.mxu0 %v6389_v57  ;;  %5257 = vmatmul.mubr.bf16.vlgmr.msra.gmra.mrb[4].mxu1 %v7941_v61  ;;  %v767_v61 = vld [vmem:[%s9525_s1 + $0x14d8] sm:$0xff]  ;;  %v6618_v57 = vpack.c.bf16 %v5363_v23, %v5362_v51  ;;  %v5354_v51 = vld [vmem:[%s9527_s3 + $0x140] sm:$0xff]  ;;  %v5379_v42 = vld [vmem:[%s9527_s3 + $0x208] sm:$0xff] }
 0x2a3   :  { %5266 = vmatpush1.bf16.msra.mxu1 %v6391_v58  ;;  %5021 = vmatprep.subr.bf16.mxu0 %v6398_v60  ;;  %v6416_v19 = vcombine.high %v767_v61, %v771_v41  ;;  %v6415_v24 = vcombine.low %v767_v61, %v771_v41  ;;  %v5346_v58 = vld [vmem:[%s9527_s3 + $0x100] sm:$0xff]  ;;  %v5347_v60 = vld [vmem:[%s9527_s3 + $0x108] sm:$0xff]  ;;  %v5309_v20 = vmax.f32 %v6717_v38, 0.0  ;;  %v5357_v38 = vld [vmem:[%s9527_s3 + $0x158] sm:$0xff] }
 0x2a4   :  { %5267 = vmatprep.subr.bf16.mxu1 %v6400_v62  ;;  %5051 = vmatprep.mubr.bf16.mxu0 %v6833_v18  ;;  %v6715_v62 = vadd.f32 %v8706_v53, %v805_v49  ;;  %v5365_v53 = vld [vmem:[%s9527_s3 + $0x198] sm:$0xff]  ;;  %v5334_v61 = vld [vmem:[%s9527_s3 + $0xa0] sm:$0xff]  ;;  %v5335_v41 = vld [vmem:[%s9527_s3 + $0xa8] sm:$0xff] }
 0x2a5   :  { %5297 = vmatprep.mubr.bf16.mxu1 %v6833_v18  ;;  %v775_v18 = vld [vmem:[%s9525_s1 + $0x1518] sm:$0xff]  ;;  %v5323_v49 = vld [vmem:[%s9527_s3 + $0x48] sm:$0xff] }
 0x2a6   :  { %5022 = vmatpush1.bf16.msra.mxu0 %v6397_v5  ;;  %v6424_v27 = vcombine.high %v775_v18, %v779_v22  ;;  %v6423_v34 = vcombine.low %v775_v18, %v779_v22  ;;  %v5364_v5 = vld [vmem:[%s9527_s3 + $0x190] sm:$0xff]  ;;  %v6594_v22 = vpack.c.bf16 %v5335_v41, %v5334_v61  ;;  %v6604_v31 = vpack.c.bf16 %v5323_v49, %v5322_v15  ;;  %v5327_v61 = vld [vmem:[%s9527_s3 + $0x68] sm:$0xff]  ;;  %v5358_v41 = vld [vmem:[%s9527_s3 + $0x160] sm:$0xff] }
 0x2a7   :  { %5268 = vmatpush1.bf16.msra.mxu1 %v6399_v6  ;;  %5023 = vmatprep.subr.bf16.mxu0 %v6406_v8  ;;  %v6620_v6 = vpack.c.bf16 %v5347_v60, %v5346_v58  ;;  %v5316_v8 = vld [vmem:[%s9527_s3 + $0x10] sm:$0xff]  ;;  %v6652_v49 = vpack.c.bf16 %v5379_v42, %v5378_v11 }
 0x2a8   :  { %5269 = vmatprep.subr.bf16.mxu1 %v6408_v10  ;;  %v5348_v10 = vld [vmem:[%s9527_s3 + $0x110] sm:$0xff]  ;;  %v6592_v21 = vpack.c.bf16 %v5317_v7, %v5316_v8  ;;  %v800_v7 = vsub.s32 0, %v6931_v44 }
 0x2a9   :  { %v6624_v18 = vpack.c.bf16 %v5349_v13, %v5348_v10  ;;  %v5324_v60 = vld [vmem:[%s9527_s3 + $0x50] sm:$0xff]  ;;  %v6640_v10 = vpack.c.bf16 %v5357_v38, %v5356_v33  ;;  %v5326_v13 = vld [vmem:[%s9527_s3 + $0x60] sm:$0xff]  ;;  %v5431_v33 = vld [vmem:[%s9527_s3 + $0x3a8] sm:$0xff] }
 0x2aa   :  { %5024 = vmatpush1.bf16.msra.mxu0 %v6405_v59  ;;  %v5307_v59 = vmax.f32 %v6715_v62, 0.0  ;;  %v5325_v62 = vld [vmem:[%s9527_s3 + $0x58] sm:$0xff]  ;;  %v5428_v15 = vld [vmem:[%s9527_s3 + $0x390] sm:$0xff] }
 0x2ab   :  { %5270 = vmatpush1.bf16.msra.mxu1 %v6407_v14  ;;  %5025 = vmatprep.subr.bf16.mxu0 %v6414_v16  ;;  %v6622_v14 = vpack.c.bf16 %v5365_v53, %v5364_v5  ;;  %v5366_v16 = vld [vmem:[%s9527_s3 + $0x1a0] sm:$0xff]  ;;  %v5343_v5 = vld [vmem:[%s9527_s3 + $0xe8] sm:$0xff]  ;;  %v6608_v8 = vpack.c.bf16 %v5325_v62, %v5324_v60  ;;  %v5388_v42 = vld [vmem:[%s9527_s3 + $0x250] sm:$0xff] }
 0x2ac   :  { %5271 = vmatprep.subr.bf16.mxu1 %v6416_v19  ;;  %v5367_v19 = vld [vmem:[%s9527_s3 + $0x1a8] sm:$0xff]  ;;  %v5374_v53 = vld [vmem:[%s9527_s3 + $0x1e0] sm:$0xff] }
 0x2ad   :  { %v5399_v60 = vld [vmem:[%s9527_s3 + $0x2a8] sm:$0xff]  ;;  %v5430_v62 = vld [vmem:[%s9527_s3 + $0x3a0] sm:$0xff] }
 0x2ae   :  { %5026 = vmatpush1.bf16.msra.mxu0 %v6413_v50  ;;  %v5318_v50 = vld [vmem:[%s9527_s3 + $0x20] sm:$0xff] }
 0x2af   :  { %5272 = vmatpush1.bf16.msra.mxu1 %v6415_v24  ;;  %5027 = vmatprep.subr.bf16.mxu0 %v6422_v26  ;;  %v5319_v24 = vld [vmem:[%s9527_s3 + $0x28] sm:$0xff]  ;;  %v5350_v26 = vld [vmem:[%s9527_s3 + $0x120] sm:$0xff] }
 0x2b0   :  { %5273 = vmatprep.subr.bf16.mxu1 %v6424_v27  ;;  %v5351_v27 = vld [vmem:[%s9527_s3 + $0x128] sm:$0xff] }
 0x2b2   :  { %5028 = vmatpush1.bf16.msra.mxu0 %v6421_v2  ;;  %v6596_v2 = vpack.c.bf16 %v5319_v24, %v5318_v50  ;;  %v801_v50 = vrot.slane %v9100_v40, %v800_v7  ;;  %v5415_v7 = vld [vmem:[%s9527_s3 + $0x328] sm:$0xff] }
 0x2b3   :  { %5274 = vmatpush1.bf16.msra.mxu1 %v6423_v34  ;;  %5029 = vmatprep.subr.bf16.mxu0 %v6430_v35  ;;  %v6628_v34 = vpack.c.bf16 %v5351_v27, %v5350_v26  ;;  %v6598_v35 = vpack.c.bf16 %v5337_v30, %v5336_v28  ;;  %v5329_v27 = vld [vmem:[%s9527_s3 + $0x78] sm:$0xff]  ;;  %v5360_v28 = vld [vmem:[%s9527_s3 + $0x170] sm:$0xff] }
 0x2b4   :  { %5275 = vmatprep.subr.bf16.mxu1 %v6432_v36  ;;  %v5320_v36 = vld [vmem:[%s9527_s3 + $0x30] sm:$0xff] }
 0x2b6   :  { %5030 = vmatpush1.bf16.msra.mxu0 %v6429_v43  ;;  %v5370_v43 = vld [vmem:[%s9527_s3 + $0x1c0] sm:$0xff] }
 0x2b7   :  { %5276 = vmatpush1.bf16.msra.mxu1 %v6431_v45  ;;  %5031 = vmatprep.subr.bf16.mxu0 %v6438_v46  ;;  %v5371_v45 = vld [vmem:[%s9527_s3 + $0x1c8] sm:$0xff]  ;;  %v6600_v46 = vpack.c.bf16 %v5321_v54, %v5320_v36 }
 0x2b8   :  { %5277 = vmatprep.subr.bf16.mxu1 %v6440_v47  ;;  %v6632_v47 = vpack.c.bf16 %v5353_v39, %v5352_v9  ;;  %v6634_v23 = vpack.c.bf16 %v5371_v45, %v5370_v43  ;;  %v5427_v36 = vld [vmem:[%s9527_s3 + $0x388] sm:$0xff]  ;;  %v6714_v9 = vadd.f32 %v8696_v0, %v801_v50  ;;  %v5410_v43 = vld [vmem:[%s9527_s3 + $0x300] sm:$0xff] }
 0x2b9   :  { %v5403_v50 = vld [vmem:[%s9527_s3 + $0x2c8] sm:$0xff] }
 0x2ba   :  { %5032 = vmatpush1.bf16.msra.mxu0 %v6437_v55  ;;  %v5340_v55 = vld [vmem:[%s9527_s3 + $0xd0] sm:$0xff] }
 0x2bb   :  { %5278 = vmatpush1.bf16.msra.mxu1 %v6439_v25  ;;  %6587 = vmatprep.subr.bf16.mxu0 %v6586_v56  ;;  %v5341_v25 = vld [vmem:[%s9527_s3 + $0xd8] sm:$0xff]  ;;  %v5372_v56 = vld [vmem:[%s9527_s3 + $0x1d0] sm:$0xff] }
 0x2bc   :  { %6619 = vmatprep.subr.bf16.mxu1 %v6618_v57  ;;  %v6636_v57 = vpack.c.bf16 %v5355_v52, %v5354_v51  ;;  %v6606_v58 = vpack.c.bf16 %v5341_v25, %v5340_v55  ;;  %v6638_v1 = vpack.c.bf16 %v5373_v29, %v5372_v56  ;;  %v5306_v51 = vmax.f32 %v6714_v9, 0.0  ;;  %v5380_v55 = vld [vmem:[%s9527_s3 + $0x210] sm:$0xff]  ;;  %v5381_v25 = vld [vmem:[%s9527_s3 + $0x218] sm:$0xff] }
 0x2bd   :  { %6443 = vmatmul.mubr.msk.bf16.vlgmr.msra.gmra.mrb[4].mxu0 %vm4318_vm0, %v8034_v17  ;;  %v5412_v56 = vld [vmem:[%s9527_s3 + $0x310] sm:$0xff]  ;;  %v5437_v9 = vld [vmem:[%s9527_s3 + $0x3d8] sm:$0xff] }
 0x2be   :  { %6444 = vmatmul.mubr.msk.bf16.vlgmr.msra.gmra.mrb[4].mxu1 %vm4318_vm0, %v8034_v17  ;;  %6589 = vmatpush3.bf16.msra.mxu0 %v6588_v3  ;;  %v6626_v17 = vpack.c.bf16 %v5367_v19, %v5366_v16  ;;  %v5342_v3 = vld [vmem:[%s9527_s3 + $0xe0] sm:$0xff]  ;;  %v5359_v16 = vld [vmem:[%s9527_s3 + $0x168] sm:$0xff]  ;;  %v5344_v19 = vld [vmem:[%s9527_s3 + $0xf0] sm:$0xff] }
 0x2bf   :  { %5513 = vmatprep.mubr.f32.mxu0 %v5307_v59  ;;  %6621 = vmatpush3.bf16.msra.mxu1 %v6620_v6  ;;  %v5375_v6 = vld [vmem:[%s9527_s3 + $0x1e8] sm:$0xff]  ;;  %v808_v59 = vsub.s32 2, %v6931_v44  ;;  %v6644_v24 = vpack.c.bf16 %v5359_v16, %v5358_v41  ;;  %v5384_v16 = vld [vmem:[%s9527_s3 + $0x230] sm:$0xff] }
 0x2c0   :  { %5583 = vmatprep.mubr.f32.mxu1 %v5309_v20  ;;  %6591 = vmatprep.subr.bf16.mxu0 %v6590_v12  ;;  %v6610_v12 = vpack.c.bf16 %v5343_v5, %v5342_v3  ;;  %v5345_v20 = vld [vmem:[%s9527_s3 + $0xf8] sm:$0xff]  ;;  %v5382_v5 = vld [vmem:[%s9527_s3 + $0x220] sm:$0xff] }
 0x2c1   :  { %6623 = vmatprep.subr.bf16.mxu1 %v6622_v14  ;;  %v6642_v14 = vpack.c.bf16 %v5375_v6, %v5374_v53  ;;  %v6614_v26 = vpack.c.bf16 %v5345_v20, %v5344_v19  ;;  %v809_v30 = vrot.slane %v9100_v40, %v808_v59  ;;  %v5383_v53 = vld [vmem:[%s9527_s3 + $0x228] sm:$0xff]  ;;  %v5414_v6 = vld [vmem:[%s9527_s3 + $0x320] sm:$0xff]  ;;  %v5385_v19 = vld [vmem:[%s9527_s3 + $0x238] sm:$0xff] }
 0x2c2   :  { %6593 = vmatpush3.bf16.msra.mxu0 %v6592_v21  ;;  %v5376_v21 = vld [vmem:[%s9527_s3 + $0x1f0] sm:$0xff]  ;;  %v6660_v41 = vpack.c.bf16 %v5383_v53, %v5382_v5  ;;  %v6692_v59 = vpack.c.bf16 %v5415_v7, %v5414_v6 }
 0x2c3   :  { %6625 = vmatpush3.bf16.msra.mxu1 %v6624_v18  ;;  %6595 = vmatprep.subr.bf16.mxu0 %v6594_v22  ;;  %v5377_v18 = vld [vmem:[%s9527_s3 + $0x1f8] sm:$0xff]  ;;  %v6612_v22 = vpack.c.bf16 %v5327_v61, %v5326_v13  ;;  %v6716_v45 = vadd.f32 %v8704_v4, %v809_v30  ;;  %v5432_v13 = vld [vmem:[%s9527_s3 + $0x3b0] sm:$0xff]  ;;  %v5386_v30 = vld [vmem:[%s9527_s3 + $0x240] sm:$0xff] }
 0x2c4   :  { %6627 = vmatprep.subr.bf16.mxu1 %v6626_v17  ;;  %v5328_v17 = vld [vmem:[%s9527_s3 + $0x70] sm:$0xff]  ;;  %v6646_v63 = vpack.c.bf16 %v5377_v18, %v5376_v21  ;;  %v5429_v4 = vld [vmem:[%s9527_s3 + $0x398] sm:$0xff] }
 0x2c5   :  { %v6616_v54 = vpack.c.bf16 %v5329_v27, %v5328_v17  ;;  %v5308_v29 = vmax.f32 %v6716_v45, 0.0  ;;  %v5433_v61 = vld [vmem:[%s9527_s3 + $0x3b8] sm:$0xff]  ;;  %v5416_v20 = vld [vmem:[%s9527_s3 + $0x330] sm:$0xff]  ;;  %v6664_v17 = vpack.c.bf16 %v5385_v19, %v5384_v16 }
 0x2c6   :  { %6597 = vmatpush3.bf16.msra.mxu0 %v6596_v2  ;;  %v5394_v2 = vld [vmem:[%s9527_s3 + $0x280] sm:$0xff]  ;;  %v6694_v21 = vpack.c.bf16 %v5433_v61, %v5432_v13  ;;  %v5417_v18 = vld [vmem:[%s9527_s3 + $0x338] sm:$0xff]  ;;  %v5420_v45 = vld [vmem:[%s9527_s3 + $0x350] sm:$0xff]  ;;  %v820_v13 = vsub.s32 5, %v6931_v44  ;;  %v828_v61 = vsub.s32 7, %v6931_v44 }
 0x2c7   :  { %6629 = vmatpush3.bf16.msra.mxu1 %v6628_v34  ;;  %6599 = vmatprep.subr.bf16.mxu0 %v6598_v35  ;;  %v5395_v34 = vld [vmem:[%s9527_s3 + $0x288] sm:$0xff]  ;;  %v5426_v35 = vld [vmem:[%s9527_s3 + $0x380] sm:$0xff]  ;;  %v6696_v27 = vpack.c.bf16 %v5417_v18, %v5416_v20  ;;  %v5424_v6 = vld [vmem:[%s9527_s3 + $0x370] sm:$0xff] }
 0x2c8   :  { %6631 = vmatprep.subr.bf16.mxu1 %v6630_v37  ;;  %v6648_v37 = vpack.c.bf16 %v5361_v32, %v5360_v28  ;;  %v6650_v39 = vpack.c.bf16 %v5395_v34, %v5394_v2  ;;  %v6682_v0 = vpack.c.bf16 %v5427_v36, %v5426_v35  ;;  %v5418_v32 = vld [vmem:[%s9527_s3 + $0x340] sm:$0xff]  ;;  %v5419_v34 = vld [vmem:[%s9527_s3 + $0x348] sm:$0xff]  ;;  %v5404_v35 = vld [vmem:[%s9527_s3 + $0x2d0] sm:$0xff]  ;;  %v829_v16 = vrot.slane %v9100_v40, %v828_v61 }
 0x2c9   :  { %v5405_v36 = vld [vmem:[%s9527_s3 + $0x2d8] sm:$0xff] }
 0x2ca   :  { %6601 = vmatpush3.bf16.msra.mxu0 %v6600_v46  ;;  %v5411_v46 = vld [vmem:[%s9527_s3 + $0x308] sm:$0xff]  ;;  %v6670_v11 = vpack.c.bf16 %v5405_v36, %v5404_v35  ;;  %v6445_v35 = vld [vmem:[%s9528_s4] ss:$0 sm:$0xff]  ;;  %s6808_s4 = scalar_lea.vmem %s5738_s13, 32 }
 0x2cb   :  { %6633 = vmatpush3.bf16.msra.mxu1 %v6632_v47  ;;  %6603 = vmatprep.subr.bf16.mxu0 %v6602_v48  ;;  %v5396_v47 = vld [vmem:[%s9527_s3 + $0x290] sm:$0xff]  ;;  %v5397_v48 = vld [vmem:[%s9527_s3 + $0x298] sm:$0xff]  ;;  %p6809_p0 = scmp.ne.s32.totalorder %s5738_s13, %s6808_s4  ;;  %p6814_p2 = scmp.lt.s32.totalorder %s6808_s4, %s6808_s4 }
 0x2cc   :  { %6635 = vmatprep.subr.bf16.mxu1 %v6634_v23  ;;  %v6684_v23 = vpack.c.bf16 %v5411_v46, %v5410_v43  ;;  %v6654_v52 = vpack.c.bf16 %v5397_v48, %v5396_v47  ;;  %v5389_v43 = vld [vmem:[%s9527_s3 + $0x258] sm:$0xff]  ;;  %v5406_v47 = vld [vmem:[%s9527_s3 + $0x2e0] sm:$0xff]  ;;  %v5407_v48 = vld [vmem:[%s9527_s3 + $0x2e8] sm:$0xff] }
 0x2cd   :  { %v5421_v46 = vld [vmem:[%s9527_s3 + $0x358] sm:$0xff]  ;;  %p6815_p3 = por %p6814_p2, %p6813_p1 }
 0x2ce   :  { %6605 = vmatpush3.bf16.msra.mxu0 %v6604_v31  ;;  %v6686_v31 = vpack.c.bf16 %v5429_v4, %v5428_v15  ;;  %v5438_v15 = vld [vmem:[%s9527_s3 + $0x3e0] sm:$0xff]  ;;  %v5439_v4 = vld [vmem:[%s9527_s3 + $0x3e8] sm:$0xff] }
 0x2cf   :  { %6637 = vmatpush3.bf16.msra.mxu1 %v6636_v57  ;;  %6607 = vmatprep.subr.bf16.mxu0 %v6606_v58  ;;  %v5413_v57 = vld [vmem:[%s9527_s3 + $0x318] sm:$0xff]  ;;  %v5398_v58 = vld [vmem:[%s9527_s3 + $0x2a0] sm:$0xff]  ;;  %p6816_p4 = pnand %p6815_p3, %p6809_p0 }
 0x2d0   :  { %6639 = vmatprep.subr.bf16.mxu1 %v6638_v1  ;;  %v6656_v1 = vpack.c.bf16 %v5381_v25, %v5380_v55  ;;  %v6688_v38 = vpack.c.bf16 %v5413_v57, %v5412_v56  ;;  %v6658_v3 = vpack.c.bf16 %v5399_v60, %v5398_v58  ;;  %v5390_v55 = vld [vmem:[%s9527_s3 + $0x260] sm:$0xff]  ;;  %v5391_v25 = vld [vmem:[%s9527_s3 + $0x268] sm:$0xff]  ;;  %v5408_v58 = vld [vmem:[%s9527_s3 + $0x2f0] sm:$0xff] }
 0x2d1   :  { %v5422_v56 = vld [vmem:[%s9527_s3 + $0x360] sm:$0xff]  ;;  %v5409_v60 = vld [vmem:[%s9527_s3 + $0x2f8] sm:$0xff] }
 0x2d2   :  { %6609 = vmatpush3.bf16.msra.mxu0 %v6608_v8  ;;  %v6690_v8 = vpack.c.bf16 %v5431_v33, %v5430_v62  ;;  %v5440_v62 = vld [vmem:[%s9527_s3 + $0x3f0] sm:$0xff]  ;;  %v6678_v33 = vpack.c.bf16 %v5409_v60, %v5408_v58 }
 0x2d3   :  { %6641 = vmatpush3.bf16.msra.mxu1 %v6640_v10  ;;  %6611 = vmatprep.subr.bf16.mxu0 %v6610_v12  ;;  %v5400_v10 = vld [vmem:[%s9527_s3 + $0x2b0] sm:$0xff]  ;;  %v5401_v12 = vld [vmem:[%s9527_s3 + $0x2b8] sm:$0xff] }
 0x2d4   :  { %6643 = vmatprep.subr.bf16.mxu1 %v6642_v14  ;;  %v6662_v14 = vpack.c.bf16 %v5401_v12, %v5400_v10  ;;  %v816_v10 = vsub.s32 4, %v6931_v44  ;;  %v824_v12 = vsub.s32 6, %v6931_v44 }
 0x2d6   :  { %6613 = vmatpush3.bf16.msra.mxu0 %v6612_v22  ;;  %v5402_v22 = vld [vmem:[%s9527_s3 + $0x2c0] sm:$0xff] }
 0x2d7   :  { %6645 = vmatpush3.bf16.msra.mxu1 %v6644_v24  ;;  %6615 = vmatprep.subr.bf16.mxu0 %v6614_v26  ;;  %v5434_v24 = vld [vmem:[%s9527_s3 + $0x3c0] sm:$0xff]  ;;  %v5435_v26 = vld [vmem:[%s9527_s3 + $0x3c8] sm:$0xff]  ;;  %v6666_v28 = vpack.c.bf16 %v5403_v50, %v5402_v22 }
 0x2d8   :  { %6647 = vmatprep.subr.bf16.mxu1 %v6646_v63  ;;  %v5387_v63 = vld [vmem:[%s9527_s3 + $0x248] sm:$0xff]  ;;  %v6698_v2 = vpack.c.bf16 %v5435_v26, %v5434_v24 }
 0x2da   :  { %6617 = vmatpush3.bf16.msra.mxu0 %v6616_v54  ;;  %v5436_v54 = vld [vmem:[%s9527_s3 + $0x3d0] sm:$0xff] }
 0x2db   :  { %6649 = vmatpush3.bf16.msra.mxu1 %v6648_v37  ;;  %6651 = vmatprep.subr.bf16.mxu0 %v6650_v39  ;;  %v6668_v37 = vpack.c.bf16 %v5387_v63, %v5386_v30  ;;  %v6700_v39 = vpack.c.bf16 %v5419_v34, %v5418_v32 }
 0x2dc   :  { %6683 = vmatprep.subr.bf16.mxu1 %v6682_v0  ;;  %v6702_v0 = vpack.c.bf16 %v5437_v9, %v5436_v54 }
 0x2dd   :  { %5514 = vmatmul.mubr.f32.vlgmr.msra.gmra.mrb[8].mxu0 %v5306_v51  ;;  %v6704_v51 = vpack.c.bf16 %v5421_v46, %v5420_v45 }
 0x2de   :  { %5584 = vmatmul.mubr.f32.vlgmr.msra.gmra.mrb[8].mxu1 %v5308_v29  ;;  %6653 = vmatpush3.bf16.msra.mxu0 %v6652_v49  ;;  %v6672_v49 = vpack.c.bf16 %v5389_v43, %v5388_v42  ;;  %v6676_v29 = vpack.c.bf16 %v5391_v25, %v5390_v55 }
 0x2df   :  { %6685 = vmatpush3.bf16.msra.mxu1 %v6684_v23  ;;  %6655 = vmatprep.subr.bf16.mxu0 %v6654_v52  ;;  %v6674_v23 = vpack.c.bf16 %v5407_v48, %v5406_v47  ;;  %v6706_v52 = vpack.c.bf16 %v5439_v4, %v5438_v15 }
 0x2e0   :  { %6687 = vmatprep.subr.bf16.mxu1 %v6686_v31  ;;  %v5423_v31 = vld [vmem:[%s9527_s3 + $0x368] sm:$0xff] }
 0x2e1   :  { %v6708_v57 = vpack.c.bf16 %v5423_v31, %v5422_v56 }
 0x2e2   :  { %6657 = vmatpush3.bf16.msra.mxu0 %v6656_v1  ;;  %v5441_v1 = vld [vmem:[%s9527_s3 + $0x3f8] sm:$0xff] }
 0x2e3   :  { %6689 = vmatpush3.bf16.msra.mxu1 %v6688_v38  ;;  %6659 = vmatprep.subr.bf16.mxu0 %v6658_v3  ;;  %v5392_v38 = vld [vmem:[%s9527_s3 + $0x270] sm:$0xff]  ;;  %v5393_v3 = vld [vmem:[%s9527_s3 + $0x278] sm:$0xff]  ;;  %v6710_v5 = vpack.c.bf16 %v5441_v1, %v5440_v62 }
 0x2e4   :  { %6691 = vmatprep.subr.bf16.mxu1 %v6690_v8  ;;  %v6680_v53 = vpack.c.bf16 %v5393_v3, %v5392_v38  ;;  %v5425_v8 = vld [vmem:[%s9527_s3 + $0x378] sm:$0xff] }
 0x2e5   :  { %v6712_v7 = vpack.c.bf16 %v5425_v8, %v5424_v6 }
 0x2e6   :  { %6661 = vmatpush3.bf16.msra.mxu0 %v6660_v41  ;;  %v817_v41 = vrot.slane %v9100_v40, %v816_v10 }
 0x2e7   :  { %6693 = vmatpush3.bf16.msra.mxu1 %v6692_v59  ;;  %6663 = vmatprep.subr.bf16.mxu0 %v6662_v14  ;;  %v825_v59 = vrot.slane %v9100_v40, %v824_v12  ;;  %v821_v14 = vrot.slane %v9100_v40, %v820_v13 }
 0x2e8   :  { %6695 = vmatprep.subr.bf16.mxu1 %v6694_v21 }
 0x2ea   :  { %6665 = vmatpush3.bf16.msra.mxu0 %v6664_v17 }
 0x2eb   :  { %6697 = vmatpush3.bf16.msra.mxu1 %v6696_v27  ;;  %6667 = vmatprep.subr.bf16.mxu0 %v6666_v28 }
 0x2ec   :  { %6699 = vmatprep.subr.bf16.mxu1 %v6698_v2 }
 0x2ee   :  { %6669 = vmatpush3.bf16.msra.mxu0 %v6668_v37 }
 0x2ef   :  { %6701 = vmatpush3.bf16.msra.mxu1 %v6700_v39  ;;  %6671 = vmatprep.subr.bf16.mxu0 %v6670_v11 }
 0x2f0   :  { %6703 = vmatprep.subr.bf16.mxu1 %v6702_v0 }
 0x2f2   :  { %6673 = vmatpush3.bf16.msra.mxu0 %v6672_v49 }
 0x2f3   :  { %6705 = vmatpush3.bf16.msra.mxu1 %v6704_v51  ;;  %6675 = vmatprep.subr.bf16.mxu0 %v6674_v23 }
 0x2f4   :  { %6707 = vmatprep.subr.bf16.mxu1 %v6706_v52 }
 0x2f6   :  { %6677 = vmatpush3.bf16.msra.mxu0 %v6676_v29 }
 0x2f7   :  { %6709 = vmatpush3.bf16.msra.mxu1 %v6708_v57  ;;  %6679 = vmatprep.subr.bf16.mxu0 %v6678_v33 }
 0x2f8   :  { %6711 = vmatprep.subr.bf16.mxu1 %v6710_v5 }
 0x2fa   :  { %6681 = vmatpush3.bf16.msra.mxu0 %v6680_v53 }
 0x2fb   :  { %6713 = vmatpush3.bf16.msra.mxu1 %v6712_v7 }
 0x390   :  { %v5053_v19 = vpop.f32.mrb[4].mxu0 }
 0x391   :  { %v6718_v20 = vadd.f32 %v5053_v19, %v817_v41  ;;  %v5299_v21 = vpop.f32.mrb[4].mxu1  ;;  %v5055_v18 = vpop.f32.mrb[5].mxu0 }
 0x392   :  { %v6720_v22 = vadd.f32 %v5299_v21, %v825_v59  ;;  %v6719_v50 = vadd.f32 %v5055_v18, %v821_v14  ;;  %v5301_v24 = vpop.f32.mrb[5].mxu1  ;;  %v5057_v26 = vpop.f32.mrb[6].mxu0 }
 0x393   :  { %v6721_v17 = vadd.f32 %v5301_v24, %v829_v16  ;;  %v5303_v27 = vpop.f32.mrb[6].mxu1  ;;  %v5058_v28 = vpop.f32.mrb[7].mxu0  ;;  %v5310_v63 = vmax.f32 %v6718_v20, 0.0 }
 0x394   :  { %v5311_v44 = vmax.f32 %v6719_v50, 0.0  ;;  %v5304_v30 = vpop.f32.mrb[7].mxu1  ;;  %v5312_v2 = vmax.f32 %v6720_v22, 0.0 }
 0x395   :  { %v5313_v32 = vmax.f32 %v6721_v17, 0.0 }
 0x396   :  { %5653 = vmatprep.mubr.f32.mxu0 %v5311_v44 }
 0x397   :  { %5723 = vmatprep.mubr.f32.mxu1 %v5313_v32  ;;  %5654 = vmatmul.mubr.f32.vlgmr.msra.gmra.mrb[10].mxu0 %v5310_v63 }
 0x398   :  { %5724 = vmatmul.mubr.f32.vlgmr.msra.gmra.mrb[10].mxu1 %v5312_v2 }
 0x3b0   :  { %v6478_v40 = vpop.f32.mrb[8].mxu0 }
 0x3b1   :  { %v6513_v34 = vpop.f32.mrb[8].mxu1  ;;  %v6479_v36 = vpop.f32.mrb[9].mxu0 }
 0x3b2   :  { %v6480_v54 = vadd.f32 %v6479_v36, %v6478_v40  ;;  %v6514_v9 = vpop.f32.mrb[9].mxu1 }
 0x3b3   :  { %v6515_v37 = vadd.f32 %v6514_v9, %v6513_v34 }
 0x3b4   :  { %v5516_v39 = vadd.f32 %v6480_v54, %v6445_v35 }
 0x3b6   :  { %v5586_v11 = vadd.f32 %v6515_v37, %v5516_v39 }
 0x46a   :  { %v6548_v42 = vpop.f32.mrb[10].mxu0 }
 0x46b   :  { %v6583_v43 = vpop.f32.mrb[10].mxu1  ;;  %v6549_v45 = vpop.f32.mrb[11].mxu0 }
 0x46c   :  { %v6550_v0 = vadd.f32 %v6549_v45, %v6548_v42  ;;  %v6584_v46 = vpop.f32.mrb[11].mxu1 }
 0x46d   :  { %v6585_v47 = vadd.f32 %v6584_v46, %v6583_v43 }
 0x46e   :  { %v5656_v48 = vadd.f32 %v6550_v0, %v5586_v11 }
 0x470   :  { %v5726_v15 = vadd.f32 %v6585_v47, %v5656_v48 }
 0x472   :  { %5730 = vst.msk [vmem:[#allocation2] sm:$0x3] %vm5729_vm1, %v5726_v15 }
 0x473   :  { %6819 = shalt.err (!%p6816_p4)
}
 0x474   :  { %s6820_s15 = scalar_lea.hbm %s9529_s5, 32 }
 0x475   :  { %p6821_p5 = scmp.ne.s32.totalorder %s9529_s5, %s6820_s15  ;;  %p6824_p6 = scmp.lt.u32.totalorder %s6820_s15, %s9529_s5 }
 0x477   :  { %p6826_p7 = pnand %p6824_p6, %p6821_p5 }
 0x479   :  { %6829 = shalt.err (!%p6826_p7)
}
 0x47a   :  { %5740 = dma.vmem_to_hbm [thread:$0]  %s5738_s13, 32, %s9529_s5, [#allocation3]  }
 0x47b   :  { %6830 = dma.done.wait [#allocation3], 32  }
 0x47c   :  { %6831 = vsyncadd [#allocation3], 4294967264 }
 0x47d   :  { %5744 = vsyncpa [#allocation3], 1 }

</bundles_post_ra>
